<compile_context>
chip_gen: v6e
topology: v6e:2x2x1
jax: 0.10.0
libtpu: 0.0.40
codegen_flags: <defaults>
</compile_context>

<pallas_src>
import functools

import jax
import jax.numpy as jnp
from jax import lax
from jax.experimental import pallas as pl
from jax.experimental.pallas import tpu as pltpu

EPS = 1e-5       # InstanceNorm2d default eps
SLOPE = 0.2      # LeakyReLU negative slope
LANE = 128


def _round_up(x, m):
    return (x + m - 1) // m * m


def _choose_tile(n, cap=2048):
    """Largest tile <= cap dividing n (n is small or a multiple of 128)."""
    if n <= cap:
        return n
    for t in (2048, 1024, 512, 256, 128):
        if t <= cap and n % t == 0:
            return t
    return n


# ----------------------------------------------------------------------------
# glue: channels-last im2col via static strided slices (no gather)
# ----------------------------------------------------------------------------
def _im2col_nhwc(x, k, s, p):
    """x: (N, H, W, C) NHWC -> patches (N, Ho*Wo, k*k*C) in (di, dj, c) order."""
    N, H, W, C = x.shape
    xp = jnp.pad(x, ((0, 0), (p, p), (p, p), (0, 0)))
    Ho = (H + 2 * p - k) // s + 1
    Wo = (W + 2 * p - k) // s + 1
    cols = []
    for di in range(k):
        for dj in range(k):
            sl = xp[:, di:di + (Ho - 1) * s + 1:s,
                    dj:dj + (Wo - 1) * s + 1:s, :]          # (N, Ho, Wo, C)
            cols.append(sl.reshape(N, Ho * Wo, C))
    patches = jnp.concatenate(cols, axis=-1)                # (N, P, k*k*C)
    return patches, Ho, Wo


# ----------------------------------------------------------------------------
# Pallas kernel: conv tile matmul (bf16 operands, f32 accumulation)
#                [+ InstanceNorm] [+ LeakyReLU] [+ commuted global avg pool]
# grid = (N, P_tiles, K_tiles); K is the reduction axis (innermost, arbitrary).
# ----------------------------------------------------------------------------
def _conv_block_kernel(p_ref, w_ref, b_ref, o_ref, *scratch,
                       norm, act, avgpool, nk):
    x = p_ref[0]                       # (tp, tk)   bf16 patches
    w = w_ref[...]                     # (tk, Cout) bf16 weights

    if avgpool:
        # conv5 + avg_pool2d commuted: mean over P (f32 sublane reduce), then dot.
        xm = jnp.mean(x.astype(jnp.float32), axis=0, keepdims=True)   # (1, tk)
        part = jnp.dot(xm.astype(w.dtype), w,
                       preferred_element_type=jnp.float32)            # (1, Cout)
    else:
        part = jnp.dot(x, w, preferred_element_type=jnp.float32)      # (tp, Cout)

    def finalize(y):
        y = y + b_ref[...]                                            # f32
        if norm:                       # InstanceNorm2d: biased var, eps=1e-5
            mean = jnp.mean(y, axis=0, keepdims=True)
            var = jnp.mean((y - mean) ** 2, axis=0, keepdims=True)
            y = (y - mean) * lax.rsqrt(var + EPS)
        if act:                        # LeakyReLU(0.2)
            y = jnp.where(y >= 0.0, y, SLOPE * y)
        o_ref[0] = y.astype(o_ref.dtype)

    if nk == 1:                        # single K tile: no accumulator needed
        finalize(part)
    else:                              # K-tiled reduction with f32 accumulator
        acc_ref = scratch[0]
        k_step = pl.program_id(2)

        @pl.when(k_step == 0)
        def _():
            acc_ref[...] = jnp.zeros_like(acc_ref)

        acc_ref[...] += part

        @pl.when(k_step == nk - 1)
        def _():
            finalize(acc_ref[...])


def _conv_block(x_nhwc, w, b, stride, pad, *, norm, act, avgpool=False):
    """One DiscrimConv / conv layer.  x: (N,H,W,Cin) NHWC, w: (Cout,Cin,k,k)."""
    Cout, Cin, k, _ = w.shape
    patches, Ho, Wo = _im2col_nhwc(x_nhwc, k, stride, pad)
    N, P, K = patches.shape

    # Lane-pad K (layer 1: 16*Cin=48 -> 128) and the Cout=1 head to 128 lanes.
    Kp = _round_up(K, LANE)
    Cp = _round_up(Cout, LANE) if avgpool else Cout
    w2 = jnp.transpose(w, (2, 3, 1, 0)).reshape(K, Cout)     # (K, Cout), (di,dj,c)
    if Kp != K:
        patches = jnp.pad(patches, ((0, 0), (0, 0), (0, Kp - K)))
        w2 = jnp.pad(w2, ((0, Kp - K), (0, 0)))
    if Cp != Cout:
        w2 = jnp.pad(w2, ((0, 0), (0, Cp - Cout)))
        b = jnp.pad(b, (0, Cp - Cout))
    patches = patches.astype(jnp.bfloat16)                   # bf16 operands,
    w2 = w2.astype(jnp.bfloat16)                             # f32 accumulation
    b2 = b.reshape(1, Cp).astype(jnp.float32)

    tk = _choose_tile(Kp)                                    # reduction tile
    nk = Kp // tk
    tp = P if (norm or avgpool) else _choose_tile(P)         # IN / pool need full P
    npt = P // tp

    out_P = 1 if avgpool else P
    out_tp = 1 if avgpool else tp
    out_dtype = jnp.float32 if avgpool else jnp.bfloat16
    acc_rows = 1 if avgpool else tp

    kernel = functools.partial(_conv_block_kernel, norm=norm, act=act,
                               avgpool=avgpool, nk=nk)
    scratch = [pltpu.VMEM((acc_rows, Cp), jnp.float32)] if nk > 1 else []

    if avgpool:
        out_map = lambda n, ip, ik: (n, 0, 0)
    else:
        out_map = lambda n, ip, ik: (n, ip, 0)

    out = pl.pallas_call(
        kernel,
        out_shape=jax.ShapeDtypeStruct((N, out_P, Cp), out_dtype),
        grid_spec=pltpu.PrefetchScalarGridSpec(
            num_scalar_prefetch=0,
            grid=(N, npt, nk),                               # K innermost
            in_specs=[
                pl.BlockSpec((1, tp, tk), lambda n, ip, ik: (n, ip, ik)),
                pl.BlockSpec((tk, Cp), lambda n, ip, ik: (ik, 0)),
                pl.BlockSpec((1, Cp), lambda n, ip, ik: (0, 0)),
            ],
            out_specs=pl.BlockSpec((1, out_tp, Cp), out_map),
            scratch_shapes=scratch,
        ),
        compiler_params=pltpu.CompilerParams(
            dimension_semantics=("parallel", "parallel", "arbitrary"),
            vmem_limit_bytes=32 * 1024 * 1024,
        ),
    )(patches, w2, b2)

    if avgpool:
        return out[:, 0, :Cout]                              # (N, 1) f32
    return out.reshape(N, Ho, Wo, Cout)                      # NHWC, bf16


# ----------------------------------------------------------------------------
# Discriminator forward (matches the PyTorch module)
# ----------------------------------------------------------------------------
def discriminator_forward(params, x_nchw):
    (w1, b1), (w2, b2), (w3, b3), (w4, b4), (w5, b5) = params
    x = jnp.transpose(x_nchw, (0, 2, 3, 1))                  # NCHW -> NHWC (once)
    x = _conv_block(x, w1, b1, 2, 1, norm=False, act=True)   # disconv1.forward_nonorm
    x = _conv_block(x, w2, b2, 2, 1, norm=True,  act=True)   # disconv2
    x = _conv_block(x, w3, b3, 2, 1, norm=True,  act=True)   # disconv3
    x = _conv_block(x, w4, b4, 1, 1, norm=True,  act=True)   # disconv4
    # conv5 + avg_pool2d(full spatial) + view(N, -1), fused & pool-commuted
    x = _conv_block(x, w5, b5, 1, 1, norm=False, act=False, avgpool=True)
    return x                                                 # (N, 1)


def init_params(key, input_nc):
    chans = [(input_nc, 64), (64, 128), (128, 256), (256, 512), (512, 1)]
    params = []
    for cin, cout in chans:
        key, kw, kb = jax.random.split(key, 3)
        w = 0.02 * jax.random.normal(kw, (cout, cin, 4, 4), jnp.float32)
        b = 0.02 * jax.random.normal(kb, (cout,), jnp.float32)
        params.append((w, b))
    return params


# ----------------------------------------------------------------------------
# pure-JAX f32 reference for correctness checking
# ----------------------------------------------------------------------------
def _ref_conv(x, w, b, s, p):
    y = lax.conv_general_dilated(
        x, w, (s, s), [(p, p), (p, p)],
        dimension_numbers=("NCHW", "OIHW", "NCHW"),
        precision=lax.Precision.HIGHEST)
    return y + b[None, :, None, None]


def _ref_forward(params, x):
    (w1, b1), (w2, b2), (w3, b3), (w4, b4), (w5, b5) = params

    def inorm(y):
        m = y.mean(axis=(2, 3), keepdims=True)
        v = ((y - m) ** 2).mean(axis=(2, 3), keepdims=True)
        return (y - m) * lax.rsqrt(v + EPS)

    def lrelu(y):
        return jnp.where(y >= 0, y, SLOPE * y)

    y = lrelu(_ref_conv(x, w1, b1, 2, 1))
    y = lrelu(inorm(_ref_conv(y, w2, b2, 2, 1)))
    y = lrelu(inorm(_ref_conv(y, w3, b3, 2, 1)))
    y = lrelu(inorm(_ref_conv(y, w4, b4, 1, 1)))
    y = _ref_conv(y, w5, b5, 1, 1)
    return y.mean(axis=(2, 3)).reshape(y.shape[0], -1)


if __name__ == "__main__":
    key = jax.random.PRNGKey(0)
    kx, kp = jax.random.split(key)
    N, C, H, W = 2, 3, 32, 32          # 32x32 is the smallest spatial size that
    x = jax.random.normal(kx, (N, C, H, W), jnp.float32)  # survives all 5 convs
    params = init_params(kp, C)

    out = jax.jit(discriminator_forward)(params, x)
    out = jax.block_until_ready(out)

    ref = _ref_forward(params, x)
    assert out.shape == (N, 1), out.shape
    # bf16 operands (f32 accumulation/statistics) vs pure-f32 reference:
    # check normalized max error.
    err = float(jnp.max(jnp.abs(out - ref)))
    scale = float(jnp.maximum(jnp.max(jnp.abs(ref)), 1e-2))
    assert err <= 5e-2 * scale, (out, ref, err, scale)
    print("KERNEL_OK")
</pallas_src>

<mosaic_0001>
module attributes {stable_mosaic.version = 11 : i64} {
  func.func @_conv_block_kernel(%arg0: i32, %arg1: i32, %arg2: i32, %arg3: memref<1x256x128xbf16, #tpu.memory_space<vmem>>, %arg4: memref<128x64xbf16, #tpu.memory_space<vmem>>, %arg5: memref<1x64xf32, #tpu.memory_space<vmem>>, %arg6: memref<1x256x64xbf16, #tpu.memory_space<vmem>>) attributes {dimension_semantics = [#tpu.dimension_semantics<parallel>, #tpu.dimension_semantics<parallel>, #tpu.dimension_semantics<arbitrary>], iteration_bounds = array<i64: 2, 1, 1>, scalar_prefetch = 0 : i64, scratch_operands = 0 : i64, tpu.core_type = #tpu.core_type<tc>, window_params = [{transform_indices = @transform_0, window_bounds = array<i64: 1, 256, 128>}, {transform_indices = @transform_1, window_bounds = array<i64: 128, 64>}, {pipeline_mode = #tpu.pipeline_mode<synchronous>, transform_indices = @transform_2, window_bounds = array<i64: 1, 64>}, {transform_indices = @transform_3, window_bounds = array<i64: 1, 256, 64>}]} {
    %c0 = arith.constant 0 : index
    %c0_0 = arith.constant 0 : index
    %c0_1 = arith.constant 0 : index
    %0 = vector.load %arg3[%c0, %c0_0, %c0_1] : memref<1x256x128xbf16, #tpu.memory_space<vmem>>, vector<1x256x128xbf16>
    %1 = vector.shape_cast %0 : vector<1x256x128xbf16> to vector<256x128xbf16>
    %c0_2 = arith.constant 0 : index
    %c0_3 = arith.constant 0 : index
    %2 = vector.load %arg4[%c0_2, %c0_3] : memref<128x64xbf16, #tpu.memory_space<vmem>>, vector<128x64xbf16>
    %cst = arith.constant dense<0.000000e+00> : vector<256x64xf32>
    %3 = tpu.matmul %1, %2, %cst {dimension_numbers = #tpu.dot_dimension_numbers<[1], [0], [0], [1], [0, 0, 1, 1], [], []>} : vector<256x128xbf16>, vector<128x64xbf16>, vector<256x64xf32> -> vector<256x64xf32>
    %c0_4 = arith.constant 0 : index
    %c0_5 = arith.constant 0 : index
    %4 = vector.load %arg5[%c0_4, %c0_5] : memref<1x64xf32, #tpu.memory_space<vmem>>, vector<1x64xf32>
    %5 = vector.broadcast %4 : vector<1x64xf32> to vector<256x64xf32>
    %6 = arith.addf %3, %5 : vector<256x64xf32>
    %cst_6 = arith.constant 0.000000e+00 : f32
    %7 = vector.broadcast %cst_6 : f32 to vector<256x64xf32>
    %8 = arith.cmpf oge, %6, %7 : vector<256x64xf32>
    %cst_7 = arith.constant 2.000000e-01 : f32
    %9 = vector.broadcast %cst_7 : f32 to vector<256x64xf32>
    %10 = arith.mulf %9, %6 : vector<256x64xf32>
    %11 = arith.select %8, %6, %10 : vector<256x64xi1>, vector<256x64xf32>
    %12 = arith.truncf %11 : vector<256x64xf32> to vector<256x64xbf16>
    %c0_8 = arith.constant 0 : index
    %c0_9 = arith.constant 0 : index
    %c0_10 = arith.constant 0 : index
    %13 = vector.load %arg6[%c0_8, %c0_9, %c0_10] : memref<1x256x64xbf16, #tpu.memory_space<vmem>>, vector<1x256x64xbf16>
    %14 = vector.shape_cast %13 : vector<1x256x64xbf16> to vector<256x64xbf16>
    %15 = vector.shape_cast %12 : vector<256x64xbf16> to vector<1x256x64xbf16>
    tpu.vector_store %arg6[%c0_8, %c0_9, %c0_10], %15 {strides = array<i32>} : memref<1x256x64xbf16, #tpu.memory_space<vmem>>, vector<1x256x64xbf16>,
    return
  }
  func.func @transform_0(%arg0: i32, %arg1: i32, %arg2: i32) -> (i32, i32, i32) {
    %c0_i32 = arith.constant 0 : i32
    return %arg0, %arg1, %arg2 : i32, i32, i32
  }
  func.func @transform_1(%arg0: i32, %arg1: i32, %arg2: i32) -> (i32, i32) {
    %c0_i32 = arith.constant 0 : i32
    %c0_i32_0 = arith.constant 0 : i32
    return %arg2, %c0_i32 : i32, i32
  }
  func.func @transform_2(%arg0: i32, %arg1: i32, %arg2: i32) -> (i32, i32) {
    %c0_i32 = arith.constant 0 : i32
    %c0_i32_0 = arith.constant 0 : i32
    %c0_i32_1 = arith.constant 0 : i32
    return %c0_i32, %c0_i32_0 : i32, i32
  }
  func.func @transform_3(%arg0: i32, %arg1: i32, %arg2: i32) -> (i32, i32, i32) {
    %c0_i32 = arith.constant 0 : i32
    %c0_i32_0 = arith.constant 0 : i32
    return %arg0, %arg1, %c0_i32 : i32, i32, i32
  }
}

module attributes {stable_mosaic.version = 11 : i64} {
  func.func @_conv_block_kernel(%arg0: i32, %arg1: i32, %arg2: i32, %arg3: memref<1x64x1024xbf16, #tpu.memory_space<vmem>>, %arg4: memref<1024x128xbf16, #tpu.memory_space<vmem>>, %arg5: memref<1x128xf32, #tpu.memory_space<vmem>>, %arg6: memref<1x64x128xbf16, #tpu.memory_space<vmem>>) attributes {dimension_semantics = [#tpu.dimension_semantics<parallel>, #tpu.dimension_semantics<parallel>, #tpu.dimension_semantics<arbitrary>], iteration_bounds = array<i64: 2, 1, 1>, scalar_prefetch = 0 : i64, scratch_operands = 0 : i64, tpu.core_type = #tpu.core_type<tc>, window_params = [{transform_indices = @transform_0, window_bounds = array<i64: 1, 64, 1024>}, {transform_indices = @transform_1, window_bounds = array<i64: 1024, 128>}, {pipeline_mode = #tpu.pipeline_mode<synchronous>, transform_indices = @transform_2, window_bounds = array<i64: 1, 128>}, {transform_indices = @transform_3, window_bounds = array<i64: 1, 64, 128>}]} {
    %c0 = arith.constant 0 : index
    %c0_0 = arith.constant 0 : index
    %c0_1 = arith.constant 0 : index
    %0 = vector.load %arg3[%c0, %c0_0, %c0_1] : memref<1x64x1024xbf16, #tpu.memory_space<vmem>>, vector<1x64x1024xbf16>
    %1 = vector.shape_cast %0 : vector<1x64x1024xbf16> to vector<64x1024xbf16>
    %c0_2 = arith.constant 0 : index
    %c0_3 = arith.constant 0 : index
    %2 = vector.load %arg4[%c0_2, %c0_3] : memref<1024x128xbf16, #tpu.memory_space<vmem>>, vector<1024x128xbf16>
    %cst = arith.constant dense<0.000000e+00> : vector<64x128xf32>
    %3 = tpu.matmul %1, %2, %cst {dimension_numbers = #tpu.dot_dimension_numbers<[1], [0], [0], [1], [0, 0, 1, 1], [], []>} : vector<64x1024xbf16>, vector<1024x128xbf16>, vector<64x128xf32> -> vector<64x128xf32>
    %c0_4 = arith.constant 0 : index
    %c0_5 = arith.constant 0 : index
    %4 = vector.load %arg5[%c0_4, %c0_5] : memref<1x128xf32, #tpu.memory_space<vmem>>, vector<1x128xf32>
    %5 = vector.broadcast %4 : vector<1x128xf32> to vector<64x128xf32>
    %6 = arith.addf %3, %5 : vector<64x128xf32>
    %cst_6 = arith.constant dense<0.000000e+00> : vector<128xf32>
    %7 = vector.multi_reduction <add>, %6, %cst_6 [0] : vector<64x128xf32> to vector<128xf32>
    %8 = vector.shape_cast %7 : vector<128xf32> to vector<1x128xf32>
    %cst_7 = arith.constant 6.400000e+01 : f32
    %9 = vector.broadcast %cst_7 : f32 to vector<1x128xf32>
    %10 = arith.divf %8, %9 : vector<1x128xf32>
    %11 = vector.broadcast %10 : vector<1x128xf32> to vector<64x128xf32>
    %12 = arith.subf %6, %11 : vector<64x128xf32>
    %13 = arith.mulf %12, %12 : vector<64x128xf32>
    %cst_8 = arith.constant dense<0.000000e+00> : vector<128xf32>
    %14 = vector.multi_reduction <add>, %13, %cst_8 [0] : vector<64x128xf32> to vector<128xf32>
    %15 = vector.shape_cast %14 : vector<128xf32> to vector<1x128xf32>
    %cst_9 = arith.constant 6.400000e+01 : f32
    %16 = vector.broadcast %cst_9 : f32 to vector<1x128xf32>
    %17 = arith.divf %15, %16 : vector<1x128xf32>
    %18 = vector.broadcast %10 : vector<1x128xf32> to vector<64x128xf32>
    %19 = arith.subf %6, %18 : vector<64x128xf32>
    %cst_10 = arith.constant 9.99999974E-6 : f32
    %20 = vector.broadcast %cst_10 : f32 to vector<1x128xf32>
    %21 = arith.addf %17, %20 : vector<1x128xf32>
    %22 = math.rsqrt %21 : vector<1x128xf32>
    %23 = vector.broadcast %22 : vector<1x128xf32> to vector<64x128xf32>
    %24 = arith.mulf %19, %23 : vector<64x128xf32>
    %cst_11 = arith.constant 0.000000e+00 : f32
    %25 = vector.broadcast %cst_11 : f32 to vector<64x128xf32>
    %26 = arith.cmpf oge, %24, %25 : vector<64x128xf32>
    %cst_12 = arith.constant 2.000000e-01 : f32
    %27 = vector.broadcast %cst_12 : f32 to vector<64x128xf32>
    %28 = arith.mulf %27, %24 : vector<64x128xf32>
    %29 = arith.select %26, %24, %28 : vector<64x128xi1>, vector<64x128xf32>
    %30 = arith.truncf %29 : vector<64x128xf32> to vector<64x128xbf16>
    %c0_13 = arith.constant 0 : index
    %c0_14 = arith.constant 0 : index
    %c0_15 = arith.constant 0 : index
    %31 = vector.load %arg6[%c0_13, %c0_14, %c0_15] : memref<1x64x128xbf16, #tpu.memory_space<vmem>>, vector<1x64x128xbf16>
    %32 = vector.shape_cast %31 : vector<1x64x128xbf16> to vector<64x128xbf16>
    %33 = vector.shape_cast %30 : vector<64x128xbf16> to vector<1x64x128xbf16>
    tpu.vector_store %arg6[%c0_13, %c0_14, %c0_15], %33 {strides = array<i32>} : memref<1x64x128xbf16, #tpu.memory_space<vmem>>, vector<1x64x128xbf16>,
    return
  }
  func.func @transform_0(%arg0: i32, %arg1: i32, %arg2: i32) -> (i32, i32, i32) {
    %c0_i32 = arith.constant 0 : i32
    return %arg0, %arg1, %arg2 : i32, i32, i32
  }
  func.func @transform_1(%arg0: i32, %arg1: i32, %arg2: i32) -> (i32, i32) {
    %c0_i32 = arith.constant 0 : i32
    %c0_i32_0 = arith.constant 0 : i32
    return %arg2, %c0_i32 : i32, i32
  }
  func.func @transform_2(%arg0: i32, %arg1: i32, %arg2: i32) -> (i32, i32) {
    %c0_i32 = arith.constant 0 : i32
    %c0_i32_0 = arith.constant 0 : i32
    %c0_i32_1 = arith.constant 0 : i32
    return %c0_i32, %c0_i32_0 : i32, i32
  }
  func.func @transform_3(%arg0: i32, %arg1: i32, %arg2: i32) -> (i32, i32, i32) {
    %c0_i32 = arith.constant 0 : i32
    %c0_i32_0 = arith.constant 0 : i32
    return %arg0, %arg1, %c0_i32 : i32, i32, i32
  }
}

module attributes {stable_mosaic.version = 11 : i64} {
  func.func @_conv_block_kernel(%arg0: i32, %arg1: i32, %arg2: i32, %arg3: memref<1x16x2048xbf16, #tpu.memory_space<vmem>>, %arg4: memref<2048x256xbf16, #tpu.memory_space<vmem>>, %arg5: memref<1x256xf32, #tpu.memory_space<vmem>>, %arg6: memref<1x16x256xbf16, #tpu.memory_space<vmem>>) attributes {dimension_semantics = [#tpu.dimension_semantics<parallel>, #tpu.dimension_semantics<parallel>, #tpu.dimension_semantics<arbitrary>], iteration_bounds = array<i64: 2, 1, 1>, scalar_prefetch = 0 : i64, scratch_operands = 0 : i64, tpu.core_type = #tpu.core_type<tc>, window_params = [{transform_indices = @transform_0, window_bounds = array<i64: 1, 16, 2048>}, {transform_indices = @transform_1, window_bounds = array<i64: 2048, 256>}, {pipeline_mode = #tpu.pipeline_mode<synchronous>, transform_indices = @transform_2, window_bounds = array<i64: 1, 256>}, {transform_indices = @transform_3, window_bounds = array<i64: 1, 16, 256>}]} {
    %c0 = arith.constant 0 : index
    %c0_0 = arith.constant 0 : index
    %c0_1 = arith.constant 0 : index
    %0 = vector.load %arg3[%c0, %c0_0, %c0_1] : memref<1x16x2048xbf16, #tpu.memory_space<vmem>>, vector<1x16x2048xbf16>
    %1 = vector.shape_cast %0 : vector<1x16x2048xbf16> to vector<16x2048xbf16>
    %c0_2 = arith.constant 0 : index
    %c0_3 = arith.constant 0 : index
    %2 = vector.load %arg4[%c0_2, %c0_3] : memref<2048x256xbf16, #tpu.memory_space<vmem>>, vector<2048x256xbf16>
    %cst = arith.constant dense<0.000000e+00> : vector<16x256xf32>
    %3 = tpu.matmul %1, %2, %cst {dimension_numbers = #tpu.dot_dimension_numbers<[1], [0], [0], [1], [0, 0, 1, 1], [], []>} : vector<16x2048xbf16>, vector<2048x256xbf16>, vector<16x256xf32> -> vector<16x256xf32>
    %c0_4 = arith.constant 0 : index
    %c0_5 = arith.constant 0 : index
    %4 = vector.load %arg5[%c0_4, %c0_5] : memref<1x256xf32, #tpu.memory_space<vmem>>, vector<1x256xf32>
    %5 = vector.broadcast %4 : vector<1x256xf32> to vector<16x256xf32>
    %6 = arith.addf %3, %5 : vector<16x256xf32>
    %cst_6 = arith.constant dense<0.000000e+00> : vector<256xf32>
    %7 = vector.multi_reduction <add>, %6, %cst_6 [0] : vector<16x256xf32> to vector<256xf32>
    %8 = vector.shape_cast %7 : vector<256xf32> to vector<1x256xf32>
    %cst_7 = arith.constant 1.600000e+01 : f32
    %9 = vector.broadcast %cst_7 : f32 to vector<1x256xf32>
    %10 = arith.divf %8, %9 : vector<1x256xf32>
    %11 = vector.broadcast %10 : vector<1x256xf32> to vector<16x256xf32>
    %12 = arith.subf %6, %11 : vector<16x256xf32>
    %13 = arith.mulf %12, %12 : vector<16x256xf32>
    %cst_8 = arith.constant dense<0.000000e+00> : vector<256xf32>
    %14 = vector.multi_reduction <add>, %13, %cst_8 [0] : vector<16x256xf32> to vector<256xf32>
    %15 = vector.shape_cast %14 : vector<256xf32> to vector<1x256xf32>
    %cst_9 = arith.constant 1.600000e+01 : f32
    %16 = vector.broadcast %cst_9 : f32 to vector<1x256xf32>
    %17 = arith.divf %15, %16 : vector<1x256xf32>
    %18 = vector.broadcast %10 : vector<1x256xf32> to vector<16x256xf32>
    %19 = arith.subf %6, %18 : vector<16x256xf32>
    %cst_10 = arith.constant 9.99999974E-6 : f32
    %20 = vector.broadcast %cst_10 : f32 to vector<1x256xf32>
    %21 = arith.addf %17, %20 : vector<1x256xf32>
    %22 = math.rsqrt %21 : vector<1x256xf32>
    %23 = vector.broadcast %22 : vector<1x256xf32> to vector<16x256xf32>
    %24 = arith.mulf %19, %23 : vector<16x256xf32>
    %cst_11 = arith.constant 0.000000e+00 : f32
    %25 = vector.broadcast %cst_11 : f32 to vector<16x256xf32>
    %26 = arith.cmpf oge, %24, %25 : vector<16x256xf32>
    %cst_12 = arith.constant 2.000000e-01 : f32
    %27 = vector.broadcast %cst_12 : f32 to vector<16x256xf32>
    %28 = arith.mulf %27, %24 : vector<16x256xf32>
    %29 = arith.select %26, %24, %28 : vector<16x256xi1>, vector<16x256xf32>
    %30 = arith.truncf %29 : vector<16x256xf32> to vector<16x256xbf16>
    %c0_13 = arith.constant 0 : index
    %c0_14 = arith.constant 0 : index
    %c0_15 = arith.constant 0 : index
    %31 = vector.load %arg6[%c0_13, %c0_14, %c0_15] : memref<1x16x256xbf16, #tpu.memory_space<vmem>>, vector<1x16x256xbf16>
    %32 = vector.shape_cast %31 : vector<1x16x256xbf16> to vector<16x256xbf16>
    %33 = vector.shape_cast %30 : vector<16x256xbf16> to vector<1x16x256xbf16>
    tpu.vector_store %arg6[%c0_13, %c0_14, %c0_15], %33 {strides = array<i32>} : memref<1x16x256xbf16, #tpu.memory_space<vmem>>, vector<1x16x256xbf16>,
    return
  }
  func.func @transform_0(%arg0: i32, %arg1: i32, %arg2: i32) -> (i32, i32, i32) {
    %c0_i32 = arith.constant 0 : i32
    return %arg0, %arg1, %arg2 : i32, i32, i32
  }
  func.func @transform_1(%arg0: i32, %arg1: i32, %arg2: i32) -> (i32, i32) {
    %c0_i32 = arith.constant 0 : i32
    %c0_i32_0 = arith.constant 0 : i32
    return %arg2, %c0_i32 : i32, i32
  }
  func.func @transform_2(%arg0: i32, %arg1: i32, %arg2: i32) -> (i32, i32) {
    %c0_i32 = arith.constant 0 : i32
    %c0_i32_0 = arith.constant 0 : i32
    %c0_i32_1 = arith.constant 0 : i32
    return %c0_i32, %c0_i32_0 : i32, i32
  }
  func.func @transform_3(%arg0: i32, %arg1: i32, %arg2: i32) -> (i32, i32, i32) {
    %c0_i32 = arith.constant 0 : i32
    %c0_i32_0 = arith.constant 0 : i32
    return %arg0, %arg1, %c0_i32 : i32, i32, i32
  }
}

module attributes {stable_mosaic.version = 11 : i64} {
  func.func @_conv_block_kernel(%arg0: i32, %arg1: i32, %arg2: i32, %arg3: memref<1x9x2048xbf16, #tpu.memory_space<vmem>>, %arg4: memref<2048x512xbf16, #tpu.memory_space<vmem>>, %arg5: memref<1x512xf32, #tpu.memory_space<vmem>>, %arg6: memref<1x9x512xbf16, #tpu.memory_space<vmem>>, %arg7: memref<9x512xf32, #tpu.memory_space<vmem>>) attributes {dimension_semantics = [#tpu.dimension_semantics<parallel>, #tpu.dimension_semantics<parallel>, #tpu.dimension_semantics<arbitrary>], iteration_bounds = array<i64: 2, 1, 2>, scalar_prefetch = 0 : i64, scratch_operands = 1 : i64, tpu.core_type = #tpu.core_type<tc>, window_params = [{transform_indices = @transform_0, window_bounds = array<i64: 1, 9, 2048>}, {transform_indices = @transform_1, window_bounds = array<i64: 2048, 512>}, {pipeline_mode = #tpu.pipeline_mode<synchronous>, transform_indices = @transform_2, window_bounds = array<i64: 1, 512>}, {transform_indices = @transform_3, window_bounds = array<i64: 1, 9, 512>}]} {
    %c0 = arith.constant 0 : index
    %c0_0 = arith.constant 0 : index
    %c0_1 = arith.constant 0 : index
    %0 = vector.load %arg3[%c0, %c0_0, %c0_1] : memref<1x9x2048xbf16, #tpu.memory_space<vmem>>, vector<1x9x2048xbf16>
    %1 = vector.shape_cast %0 : vector<1x9x2048xbf16> to vector<9x2048xbf16>
    %c0_2 = arith.constant 0 : index
    %c0_3 = arith.constant 0 : index
    %2 = vector.load %arg4[%c0_2, %c0_3] : memref<2048x512xbf16, #tpu.memory_space<vmem>>, vector<2048x512xbf16>
    %cst = arith.constant dense<0.000000e+00> : vector<9x512xf32>
    %3 = tpu.matmul %1, %2, %cst {dimension_numbers = #tpu.dot_dimension_numbers<[1], [0], [0], [1], [0, 0, 1, 1], [], []>} : vector<9x2048xbf16>, vector<2048x512xbf16>, vector<9x512xf32> -> vector<9x512xf32>
    %c0_i32 = arith.constant 0 : i32
    %4 = arith.cmpi eq, %arg2, %c0_i32 : i32
    %5 = arith.extui %4 : i1 to i32
    %c0_i32_4 = arith.constant 0 : i32
    %6 = arith.cmpi ne, %5, %c0_i32_4 : i32
    scf.if %6 {
      %cst_10 = arith.constant 0.000000e+00 : f32
      %13 = vector.broadcast %cst_10 : f32 to vector<9x512xf32>
      %c0_11 = arith.constant 0 : index
      %c0_12 = arith.constant 0 : index
      %14 = vector.load %arg7[%c0_11, %c0_12] : memref<9x512xf32, #tpu.memory_space<vmem>>, vector<9x512xf32>
      tpu.vector_store %arg7[%c0_11, %c0_12], %13 {strides = array<i32>} : memref<9x512xf32, #tpu.memory_space<vmem>>, vector<9x512xf32>,
    } else {
    }
    %c0_5 = arith.constant 0 : index
    %c0_6 = arith.constant 0 : index
    %7 = vector.load %arg7[%c0_5, %c0_6] : memref<9x512xf32, #tpu.memory_space<vmem>>, vector<9x512xf32>
    %8 = arith.addf %7, %3 : vector<9x512xf32>
    %c0_7 = arith.constant 0 : index
    %c0_8 = arith.constant 0 : index
    %9 = vector.load %arg7[%c0_7, %c0_8] : memref<9x512xf32, #tpu.memory_space<vmem>>, vector<9x512xf32>
    tpu.vector_store %arg7[%c0_7, %c0_8], %8 {strides = array<i32>} : memref<9x512xf32, #tpu.memory_space<vmem>>, vector<9x512xf32>,
    %c1_i32 = arith.constant 1 : i32
    %10 = arith.cmpi eq, %arg2, %c1_i32 : i32
    %11 = arith.extui %10 : i1 to i32
    %c0_i32_9 = arith.constant 0 : i32
    %12 = arith.cmpi ne, %11, %c0_i32_9 : i32
    scf.if %12 {
      %c0_10 = arith.constant 0 : index
      %c0_11 = arith.constant 0 : index
      %13 = vector.load %arg7[%c0_10, %c0_11] : memref<9x512xf32, #tpu.memory_space<vmem>>, vector<9x512xf32>
      %c0_12 = arith.constant 0 : index
      %c0_13 = arith.constant 0 : index
      %14 = vector.load %arg5[%c0_12, %c0_13] : memref<1x512xf32, #tpu.memory_space<vmem>>, vector<1x512xf32>
      %15 = vector.broadcast %14 : vector<1x512xf32> to vector<9x512xf32>
      %16 = arith.addf %13, %15 : vector<9x512xf32>
      %cst_14 = arith.constant dense<0.000000e+00> : vector<512xf32>
      %17 = vector.multi_reduction <add>, %16, %cst_14 [0] : vector<9x512xf32> to vector<512xf32>
      %18 = vector.shape_cast %17 : vector<512xf32> to vector<1x512xf32>
      %cst_15 = arith.constant 9.000000e+00 : f32
      %19 = vector.broadcast %cst_15 : f32 to vector<1x512xf32>
      %20 = arith.divf %18, %19 : vector<1x512xf32>
      %21 = vector.broadcast %20 : vector<1x512xf32> to vector<9x512xf32>
      %22 = arith.subf %16, %21 : vector<9x512xf32>
      %23 = arith.mulf %22, %22 : vector<9x512xf32>
      %cst_16 = arith.constant dense<0.000000e+00> : vector<512xf32>
      %24 = vector.multi_reduction <add>, %23, %cst_16 [0] : vector<9x512xf32> to vector<512xf32>
      %25 = vector.shape_cast %24 : vector<512xf32> to vector<1x512xf32>
      %cst_17 = arith.constant 9.000000e+00 : f32
      %26 = vector.broadcast %cst_17 : f32 to vector<1x512xf32>
      %27 = arith.divf %25, %26 : vector<1x512xf32>
      %28 = vector.broadcast %20 : vector<1x512xf32> to vector<9x512xf32>
      %29 = arith.subf %16, %28 : vector<9x512xf32>
      %cst_18 = arith.constant 9.99999974E-6 : f32
      %30 = vector.broadcast %cst_18 : f32 to vector<1x512xf32>
      %31 = arith.addf %27, %30 : vector<1x512xf32>
      %32 = math.rsqrt %31 : vector<1x512xf32>
      %33 = vector.broadcast %32 : vector<1x512xf32> to vector<9x512xf32>
      %34 = arith.mulf %29, %33 : vector<9x512xf32>
      %cst_19 = arith.constant 0.000000e+00 : f32
      %35 = vector.broadcast %cst_19 : f32 to vector<9x512xf32>
      %36 = arith.cmpf oge, %34, %35 : vector<9x512xf32>
      %cst_20 = arith.constant 2.000000e-01 : f32
      %37 = vector.broadcast %cst_20 : f32 to vector<9x512xf32>
      %38 = arith.mulf %37, %34 : vector<9x512xf32>
      %39 = arith.select %36, %34, %38 : vector<9x512xi1>, vector<9x512xf32>
      %40 = arith.truncf %39 : vector<9x512xf32> to vector<9x512xbf16>
      %c0_21 = arith.constant 0 : index
      %c0_22 = arith.constant 0 : index
      %c0_23 = arith.constant 0 : index
      %41 = vector.load %arg6[%c0_21, %c0_22, %c0_23] : memref<1x9x512xbf16, #tpu.memory_space<vmem>>, vector<1x9x512xbf16>
      %42 = vector.shape_cast %41 : vector<1x9x512xbf16> to vector<9x512xbf16>
      %43 = vector.shape_cast %40 : vector<9x512xbf16> to vector<1x9x512xbf16>
      tpu.vector_store %arg6[%c0_21, %c0_22, %c0_23], %43 {strides = array<i32>} : memref<1x9x512xbf16, #tpu.memory_space<vmem>>, vector<1x9x512xbf16>,
    } else {
    }
    return
  }
  func.func @transform_0(%arg0: i32, %arg1: i32, %arg2: i32) -> (i32, i32, i32) {
    %c0_i32 = arith.constant 0 : i32
    return %arg0, %arg1, %arg2 : i32, i32, i32
  }
  func.func @transform_1(%arg0: i32, %arg1: i32, %arg2: i32) -> (i32, i32) {
    %c0_i32 = arith.constant 0 : i32
    %c0_i32_0 = arith.constant 0 : i32
    return %arg2, %c0_i32 : i32, i32
  }
  func.func @transform_2(%arg0: i32, %arg1: i32, %arg2: i32) -> (i32, i32) {
    %c0_i32 = arith.constant 0 : i32
    %c0_i32_0 = arith.constant 0 : i32
    %c0_i32_1 = arith.constant 0 : i32
    return %c0_i32, %c0_i32_0 : i32, i32
  }
  func.func @transform_3(%arg0: i32, %arg1: i32, %arg2: i32) -> (i32, i32, i32) {
    %c0_i32 = arith.constant 0 : i32
    %c0_i32_0 = arith.constant 0 : i32
    return %arg0, %arg1, %c0_i32 : i32, i32, i32
  }
}

module attributes {stable_mosaic.version = 11 : i64} {
  func.func @_conv_block_kernel(%arg0: i32, %arg1: i32, %arg2: i32, %arg3: memref<1x4x2048xbf16, #tpu.memory_space<vmem>>, %arg4: memref<2048x128xbf16, #tpu.memory_space<vmem>>, %arg5: memref<1x128xf32, #tpu.memory_space<vmem>>, %arg6: memref<1x1x128xf32, #tpu.memory_space<vmem>>, %arg7: memref<1x128xf32, #tpu.memory_space<vmem>>) attributes {dimension_semantics = [#tpu.dimension_semantics<parallel>, #tpu.dimension_semantics<parallel>, #tpu.dimension_semantics<arbitrary>], iteration_bounds = array<i64: 2, 1, 4>, scalar_prefetch = 0 : i64, scratch_operands = 1 : i64, tpu.core_type = #tpu.core_type<tc>, window_params = [{transform_indices = @transform_0, window_bounds = array<i64: 1, 4, 2048>}, {transform_indices = @transform_1, window_bounds = array<i64: 2048, 128>}, {pipeline_mode = #tpu.pipeline_mode<synchronous>, transform_indices = @transform_2, window_bounds = array<i64: 1, 128>}, {transform_indices = @transform_3, window_bounds = array<i64: 1, 1, 128>}]} {
    %c0 = arith.constant 0 : index
    %c0_0 = arith.constant 0 : index
    %c0_1 = arith.constant 0 : index
    %0 = vector.load %arg3[%c0, %c0_0, %c0_1] : memref<1x4x2048xbf16, #tpu.memory_space<vmem>>, vector<1x4x2048xbf16>
    %1 = vector.shape_cast %0 : vector<1x4x2048xbf16> to vector<4x2048xbf16>
    %c0_2 = arith.constant 0 : index
    %c0_3 = arith.constant 0 : index
    %2 = vector.load %arg4[%c0_2, %c0_3] : memref<2048x128xbf16, #tpu.memory_space<vmem>>, vector<2048x128xbf16>
    %3 = arith.extf %1 : vector<4x2048xbf16> to vector<4x2048xf32>
    %cst = arith.constant dense<0.000000e+00> : vector<2048xf32>
    %4 = vector.multi_reduction <add>, %3, %cst [0] : vector<4x2048xf32> to vector<2048xf32>
    %5 = vector.shape_cast %4 : vector<2048xf32> to vector<1x2048xf32>
    %cst_4 = arith.constant 4.000000e+00 : f32
    %6 = vector.broadcast %cst_4 : f32 to vector<1x2048xf32>
    %7 = arith.divf %5, %6 : vector<1x2048xf32>
    %8 = arith.truncf %7 : vector<1x2048xf32> to vector<1x2048xbf16>
    %cst_5 = arith.constant dense<0.000000e+00> : vector<1x128xf32>
    %9 = tpu.matmul %8, %2, %cst_5 {dimension_numbers = #tpu.dot_dimension_numbers<[1], [0], [0], [1], [0, 0, 1, 1], [], []>} : vector<1x2048xbf16>, vector<2048x128xbf16>, vector<1x128xf32> -> vector<1x128xf32>
    %c0_i32 = arith.constant 0 : i32
    %10 = arith.cmpi eq, %arg2, %c0_i32 : i32
    %11 = arith.extui %10 : i1 to i32
    %c0_i32_6 = arith.constant 0 : i32
    %12 = arith.cmpi ne, %11, %c0_i32_6 : i32
    scf.if %12 {
      %cst_12 = arith.constant 0.000000e+00 : f32
      %19 = vector.broadcast %cst_12 : f32 to vector<1x128xf32>
      %c0_13 = arith.constant 0 : index
      %c0_14 = arith.constant 0 : index
      %20 = vector.load %arg7[%c0_13, %c0_14] : memref<1x128xf32, #tpu.memory_space<vmem>>, vector<1x128xf32>
      tpu.vector_store %arg7[%c0_13, %c0_14], %19 {strides = array<i32>} : memref<1x128xf32, #tpu.memory_space<vmem>>, vector<1x128xf32>,
    } else {
    }
    %c0_7 = arith.constant 0 : index
    %c0_8 = arith.constant 0 : index
    %13 = vector.load %arg7[%c0_7, %c0_8] : memref<1x128xf32, #tpu.memory_space<vmem>>, vector<1x128xf32>
    %14 = arith.addf %13, %9 : vector<1x128xf32>
    %c0_9 = arith.constant 0 : index
    %c0_10 = arith.constant 0 : index
    %15 = vector.load %arg7[%c0_9, %c0_10] : memref<1x128xf32, #tpu.memory_space<vmem>>, vector<1x128xf32>
    tpu.vector_store %arg7[%c0_9, %c0_10], %14 {strides = array<i32>} : memref<1x128xf32, #tpu.memory_space<vmem>>, vector<1x128xf32>,
    %c3_i32 = arith.constant 3 : i32
    %16 = arith.cmpi eq, %arg2, %c3_i32 : i32
    %17 = arith.extui %16 : i1 to i32
    %c0_i32_11 = arith.constant 0 : i32
    %18 = arith.cmpi ne, %17, %c0_i32_11 : i32
    scf.if %18 {
      %c0_12 = arith.constant 0 : index
      %c0_13 = arith.constant 0 : index
      %19 = vector.load %arg7[%c0_12, %c0_13] : memref<1x128xf32, #tpu.memory_space<vmem>>, vector<1x128xf32>
      %c0_14 = arith.constant 0 : index
      %c0_15 = arith.constant 0 : index
      %20 = vector.load %arg5[%c0_14, %c0_15] : memref<1x128xf32, #tpu.memory_space<vmem>>, vector<1x128xf32>
      %21 = arith.addf %19, %20 : vector<1x128xf32>
      %c0_16 = arith.constant 0 : index
      %c0_17 = arith.constant 0 : index
      %c0_18 = arith.constant 0 : index
      %22 = vector.load %arg6[%c0_16, %c0_17, %c0_18] : memref<1x1x128xf32, #tpu.memory_space<vmem>>, vector<1x1x128xf32>
      %23 = vector.shape_cast %22 : vector<1x1x128xf32> to vector<1x128xf32>
      %24 = vector.shape_cast %21 : vector<1x128xf32> to vector<1x1x128xf32>
      tpu.vector_store %arg6[%c0_16, %c0_17, %c0_18], %24 {strides = array<i32>} : memref<1x1x128xf32, #tpu.memory_space<vmem>>, vector<1x1x128xf32>,
    } else {
    }
    return
  }
  func.func @transform_0(%arg0: i32, %arg1: i32, %arg2: i32) -> (i32, i32, i32) {
    %c0_i32 = arith.constant 0 : i32
    return %arg0, %arg1, %arg2 : i32, i32, i32
  }
  func.func @transform_1(%arg0: i32, %arg1: i32, %arg2: i32) -> (i32, i32) {
    %c0_i32 = arith.constant 0 : i32
    %c0_i32_0 = arith.constant 0 : i32
    return %arg2, %c0_i32 : i32, i32
  }
  func.func @transform_2(%arg0: i32, %arg1: i32, %arg2: i32) -> (i32, i32) {
    %c0_i32 = arith.constant 0 : i32
    %c0_i32_0 = arith.constant 0 : i32
    %c0_i32_1 = arith.constant 0 : i32
    return %c0_i32, %c0_i32_0 : i32, i32
  }
  func.func @transform_3(%arg0: i32, %arg1: i32, %arg2: i32) -> (i32, i32, i32) {
    %c0_i32 = arith.constant 0 : i32
    %c0_i32_0 = arith.constant 0 : i32
    %c0_i32_1 = arith.constant 0 : i32
    return %arg0, %c0_i32, %c0_i32_0 : i32, i32, i32
  }
}

</mosaic_0001>

<bundles_post_ra>
// kernel: discriminator_forward.5
= control target key start
LH: loop header
LB: loop body
LE: loop exit
PB: predicated region body
PF: predicated region fallthrough
CT: control target
= control target key end

     0   :  { %s1259_s12 = smov 0   ;;  %s1261_s13 = smov 0   ;;  %s1446_s0 = inlined_call_operand.vmem [shape: bf16[2,256,128], index: 0, kind: input, shape index: {}]   ;;  %s1447_s1 = inlined_call_operand.vmem [shape: bf16[128,64], index: 1, kind: input, shape index: {}]   ;;  %s1448_s2 = inlined_call_operand.vmem [shape: f32[1,64], index: 2, kind: input, shape index: {}]   ;;  %s1449_s3 = inlined_call_operand.vmem [shape: bf16[2,256,64], index: 3, kind: output, shape index: {}]  }
   0x1   :  { %s1263_s14 = smov 0  }
   0x2 LB: > { %s32_s15 = sadd.s32 1, %s1233_s13  ;;  %p981_p0 = scmp.ge.s32.totalorder %s1237_s14, 1  ;;  %s1237_s14 = sphi %s1263_s14, %s13_s14   ;;  %s1233_s13 = sphi %s1261_s13, %s1451_s13   ;;  %s1229_s12 = sphi %s1259_s12, %s1450_s12  }
   0x3   : > { %p34_p1 = scmp.ge.s32.totalorder %s32_s15, 2  ;;  %p181_p2 = scmp.lt.s32.totalorder %s1237_s14, 3 }
   0x5   : > { %s1453_s15 = smov (%p34_p1, %s32_s15), 0  ;;  %p182_p3 = pnand %p981_p0, %p181_p2 }
   0x6   : > { %p222_p4 = scmp.lt.s32.totalorder (!%p182_p3), %s1229_s12, 1 }
   0x7   : > { %185 = sbr.rel (%p182_p3) target bundleno = 285 (0x11d), region = 32 }
   0xc   : > { %v1191_v0 = vld [vmem:[%s1447_s1 + $0x38] sm:$0xff]   ;;  %v1192_v1 = vld [vmem:[%s1447_s1 + $0x30] sm:$0xff]   ;;  %s1455_s12 = smov (!%p222_p4, %s1229_s12), 1  ;;  %v1193_v2 = vld [vmem:[%s1447_s1 + $0x28] sm:$0xff]   ;;  %vm835_vm2 = vcmask 519168  }
   0xd   : > { %1103 = vmatprep.subr.bf16.mxu0 %v1191_v0  ;;  %1151 = vmatprep.subr.bf16.mxu1 %v1191_v0  ;;  %s1045_s22 = sshll.u32 %s1455_s12, 7  ;;  %v1194_v3 = vld [vmem:[%s1447_s1 + $0x20] sm:$0xff]   ;;  %v1195_v6 = vld [vmem:[%s1447_s1 + $0x18] sm:$0xff]   ;;  %v1196_v7 = vld [vmem:[%s1447_s1 + $0x10] sm:$0xff]  }
   0xe   : > { %1104 = vmatpush3.bf16.msra.mxu0 %v1191_v0  ;;  %1159 = vmatpush3.bf16.msra.mxu1 %v1191_v0  ;;  %s1294_s25 = scalar_lea.vmem %s1446_s0, %s1045_s22  ;;  %v1197_v8 = vld [vmem:[%s1447_s1 + $0x8] sm:$0xff]   ;;  %v1198_v9 = vld [vmem:[%s1447_s1] sm:$0xff]   ;;  %s1341_s17 = scalar_lea.vmem %s1449_s3, %s1045_s22 }
   0xf   : > { %1105 = vmatprep.subr.bf16.mxu0 %v1192_v1  ;;  %1152 = vmatprep.subr.bf16.mxu1 %v1192_v1  ;;  %v1199_v4 = vld [vmem:[%s1294_s25] sm:$0xff]   ;;  %v1201_v10 = vld [vmem:[%s1294_s25 + $0x8] sm:$0xff]   ;;  %v1203_v12 = vld [vmem:[%s1294_s25 + $0x10] sm:$0xff]  }
  0x10   : > { %v1200_v5 = vld [vmem:[%s1294_s25 + $0x40] sm:$0xff]   ;;  %1119 = vmatprep.mubr.bf16.mxu0 %v1199_v4  ;;  %v1202_v11 = vld [vmem:[%s1294_s25 + $0x48] sm:$0xff]   ;;  %v1204_v13 = vld [vmem:[%s1294_s25 + $0x50] sm:$0xff]  }
  0x11   : > { %1135 = vmatprep.mubr.bf16.mxu1 %v1200_v5  ;;  %v1205_v14 = vld [vmem:[%s1294_s25 + $0x18] sm:$0xff]   ;;  %v1207_v16 = vld [vmem:[%s1294_s25 + $0x20] sm:$0xff]   ;;  %v1209_v18 = vld [vmem:[%s1294_s25 + $0x28] sm:$0xff]  }
  0x12   : > { %1106 = vmatpush3.bf16.msra.mxu0 %v1192_v1  ;;  %1160 = vmatpush3.bf16.msra.mxu1 %v1192_v1  ;;  %v1206_v15 = vld [vmem:[%s1294_s25 + $0x58] sm:$0xff]   ;;  %v1208_v17 = vld [vmem:[%s1294_s25 + $0x60] sm:$0xff]   ;;  %v1210_v19 = vld [vmem:[%s1294_s25 + $0x68] sm:$0xff]  }
  0x13   : > { %1107 = vmatprep.subr.bf16.mxu0 %v1193_v2  ;;  %1153 = vmatprep.subr.bf16.mxu1 %v1193_v2  ;;  %v1211_v20 = vld [vmem:[%s1294_s25 + $0x30] sm:$0xff]   ;;  %v1213_v22 = vld [vmem:[%s1294_s25 + $0x38] sm:$0xff]   ;;  %v1330_v24 = vld [vmem:[%s1448_s2] ss:$0 sm:$0xff] }
  0x14   : > { %v1212_v21 = vld [vmem:[%s1294_s25 + $0x70] sm:$0xff]   ;;  %v1214_v23 = vld [vmem:[%s1294_s25 + $0x78] sm:$0xff]  }
  0x16   : > { %1108 = vmatpush3.bf16.msra.mxu0 %v1193_v2  ;;  %1161 = vmatpush3.bf16.msra.mxu1 %v1193_v2 }
  0x17   : > { %1109 = vmatprep.subr.bf16.mxu0 %v1194_v3  ;;  %1154 = vmatprep.subr.bf16.mxu1 %v1194_v3 }
  0x1a   : > { %1110 = vmatpush3.bf16.msra.mxu0 %v1194_v3  ;;  %1162 = vmatpush3.bf16.msra.mxu1 %v1194_v3 }
  0x1b   : > { %1111 = vmatprep.subr.bf16.mxu0 %v1195_v6  ;;  %1155 = vmatprep.subr.bf16.mxu1 %v1195_v6 }
  0x1e   : > { %1112 = vmatpush3.bf16.msra.mxu0 %v1195_v6  ;;  %1163 = vmatpush3.bf16.msra.mxu1 %v1195_v6 }
  0x1f   : > { %1113 = vmatprep.subr.bf16.mxu0 %v1196_v7  ;;  %1156 = vmatprep.subr.bf16.mxu1 %v1196_v7 }
  0x22   : > { %1114 = vmatpush3.bf16.msra.mxu0 %v1196_v7  ;;  %1164 = vmatpush3.bf16.msra.mxu1 %v1196_v7 }
  0x23   : > { %1115 = vmatprep.subr.bf16.mxu0 %v1197_v8  ;;  %1157 = vmatprep.subr.bf16.mxu1 %v1197_v8 }
  0x26   : > { %1116 = vmatpush3.bf16.msra.mxu0 %v1197_v8  ;;  %1165 = vmatpush3.bf16.msra.mxu1 %v1197_v8 }
  0x27   : > { %1117 = vmatprep.subr.bf16.mxu0 %v1198_v9  ;;  %1158 = vmatprep.subr.bf16.mxu1 %v1198_v9 }
  0x2a   : > { %1118 = vmatpush3.bf16.msra.mxu0 %v1198_v9  ;;  %1166 = vmatpush3.bf16.msra.mxu1 %v1198_v9 }
  0x2d   : > { %1120 = vmatmul.mubr.bf16.vlgmr.msra.gmra.mxu0 %v1201_v10  ;;  %1136 = vmatmul.mubr.bf16.vlgmr.msra.gmra.mxu1 %v1202_v11 }
  0x2e   : > { %1123 = vmatprep.mubr.bf16.mxu0 %v1203_v12  ;;  %1139 = vmatprep.mubr.bf16.mxu1 %v1204_v13 }
  0x35   : > { %1124 = vmatmul.mubr.bf16.gmra.mxu0 %v1205_v14  ;;  %1140 = vmatmul.mubr.bf16.gmra.mxu1 %v1206_v15 }
  0x36   : > { %1127 = vmatprep.mubr.bf16.mxu0 %v1207_v16  ;;  %1143 = vmatprep.mubr.bf16.mxu1 %v1208_v17 }
  0x3d   : > { %1128 = vmatmul.mubr.bf16.gmra.mxu0 %v1209_v18  ;;  %1144 = vmatmul.mubr.bf16.gmra.mxu1 %v1210_v19 }
  0x3e   : > { %1131 = vmatprep.mubr.bf16.mxu0 %v1211_v20  ;;  %1147 = vmatprep.mubr.bf16.mxu1 %v1212_v21 }
  0x45   : > { %1132 = vmatmul.mubr.bf16.gmra.mxu0 %v1213_v22  ;;  %1148 = vmatmul.mubr.bf16.gmra.mxu1 %v1214_v23 }
  0xed   : > { %v1121_v25 = vpop.f32.mrf.mxu0  ;;  %v1137_v26 = vpop.f32.mrf.mxu1 }
  0xee   : > { %v493_v27 = vadd.f32 %v1121_v25, %v1330_v24  ;;  %v557_v28 = vadd.f32 %v1137_v26, %v1330_v24 }
  0xef   : > { %v484_v29 = vpop.f32.mrf.mxu0  ;;  %v548_v30 = vpop.f32.mrf.mxu1 }
  0xf0   : > { %vm613_vm0 = vcmp.ge.f32.partialorder %v493_v27, 0.0  ;;  %v645_v31 = vmul.f32 0.2, %v493_v27  ;;  %vm629_vm1 = vcmp.ge.f32.partialorder %v557_v28, 0.0  ;;  %v661_v32 = vmul.f32 0.2, %v557_v28 }
  0xf1   : > { %v485_v33 = vadd.f32 %v1330_v24, %v484_v29  ;;  %v549_v34 = vadd.f32 %v1330_v24, %v548_v30  ;;  %v1122_v35 = vpop.f32.mrf.mxu0  ;;  %v1138_v36 = vpop.f32.mrf.mxu1 }
  0xf2   : > { %v677_v37 = vsel %vm613_vm0, %v493_v27, %v645_v31  ;;  %v693_v38 = vsel %vm629_vm1, %v557_v28, %v661_v32  ;;  %v496_v39 = vadd.f32 %v1122_v35, %v1330_v24  ;;  %v560_v40 = vadd.f32 %v1138_v36, %v1330_v24 }
  0xf3   : > { %v1049_v41 = vpack.c.bf16 %v677_v37, %v677_v37  ;;  %v1065_v42 = vpack.c.bf16 %v693_v38, %v693_v38  ;;  %vm611_vm3 = vcmp.ge.f32.partialorder %v485_v33, 0.0  ;;  %v643_v43 = vmul.f32 0.2, %v485_v33  ;;  %v487_v44 = vpop.f32.mrf.mxu0  ;;  %v551_v45 = vpop.f32.mrf.mxu1 }
  0xf4   : > { %vm627_vm4 = vcmp.ge.f32.partialorder %v549_v34, 0.0  ;;  %v659_v46 = vmul.f32 0.2, %v549_v34  ;;  %vm614_vm5 = vcmp.ge.f32.partialorder %v496_v39, 0.0  ;;  %v646_v47 = vmul.f32 0.2, %v496_v39 }
  0xf5   : > { %838 = vst.msk [vmem:[%s1341_s17 + $0x8] sm:$0xf] %vm835_vm2, %v1049_v41  ;;  %854 = vst.msk [vmem:[%s1341_s17 + $0x48] sm:$0xf] %vm835_vm2, %v1065_v42  ;;  %v675_v48 = vsel %vm611_vm3, %v485_v33, %v643_v43  ;;  %vm630_vm6 = vcmp.ge.f32.partialorder %v560_v40, 0.0  ;;  %v488_v50 = vadd.f32 %v1330_v24, %v487_v44  ;;  %v1125_v51 = vpop.f32.mrf.mxu0  ;;  %v1141_v52 = vpop.f32.mrf.mxu1  ;;  %v552_v56 = vadd.f32 %v1330_v24, %v551_v45 }
  0xf6   : > { %v662_v49 = vmul.f32 0.2, %v560_v40  ;;  %v1047_v53 = vpack.c.bf16 %v675_v48, %v675_v48  ;;  %v691_v54 = vsel %vm627_vm4, %v549_v34, %v659_v46  ;;  %v678_v55 = vsel %vm614_vm5, %v496_v39, %v646_v47 }
  0xf7   : > { %v1063_v57 = vpack.c.bf16 %v691_v54, %v691_v54  ;;  %v1050_v58 = vpack.c.bf16 %v678_v55, %v678_v55  ;;  %vm612_vm7 = vcmp.ge.f32.partialorder %v488_v50, 0.0  ;;  %v500_v60 = vpop.f32.mrf.mxu0  ;;  %v564_v61 = vpop.f32.mrf.mxu1  ;;  %v644_v63 = vmul.f32 0.2, %v488_v50 }
  0xf8   : > { %v694_v59 = vsel %vm630_vm6, %v560_v40, %v662_v49  ;;  %836 = vst.msk [vmem:[%s1341_s17] sm:$0xf] %vm835_vm2, %v1047_v53  ;;  %vm628_vm8 = vcmp.ge.f32.partialorder %v552_v56, 0.0  ;;  %v660_v0 = vmul.f32 0.2, %v552_v56  ;;  %v509_v1 = vadd.f32 %v1125_v51, %v1330_v24 }
  0xf9   : > { %v1066_v62 = vpack.c.bf16 %v694_v59, %v694_v59  ;;  %852 = vst.msk [vmem:[%s1341_s17 + $0x40] sm:$0xf] %vm835_vm2, %v1063_v57  ;;  %839 = vst.msk [vmem:[%s1341_s17 + $0xc] sm:$0xf] %vm835_vm2, %v1050_v58  ;;  %v573_v2 = vadd.f32 %v1141_v52, %v1330_v24  ;;  %v501_v3 = vadd.f32 %v1330_v24, %v500_v60  ;;  %v1126_v5 = vpop.f32.mrf.mxu0  ;;  %v1142_v6 = vpop.f32.mrf.mxu1 }
  0xfa   : > { %v565_v4 = vadd.f32 %v1330_v24, %v564_v61  ;;  %v676_v7 = vsel %vm612_vm7, %v488_v50, %v644_v63  ;;  %v692_v8 = vsel %vm628_vm8, %v552_v56, %v660_v0  ;;  %v512_v9 = vadd.f32 %v1126_v5, %v1330_v24 }
  0xfb   : > { %855 = vst.msk [vmem:[%s1341_s17 + $0x4c] sm:$0xf] %vm835_vm2, %v1066_v62  ;;  %v576_v10 = vadd.f32 %v1142_v6, %v1330_v24  ;;  %v1048_v11 = vpack.c.bf16 %v676_v7, %v676_v7  ;;  %v1064_v12 = vpack.c.bf16 %v692_v8, %v692_v8  ;;  %vm617_vm9 = vcmp.ge.f32.partialorder %v509_v1, 0.0  ;;  %v503_v14 = vpop.f32.mrf.mxu0  ;;  %v567_v15 = vpop.f32.mrf.mxu1 }
  0xfc   : > { %v649_v13 = vmul.f32 0.2, %v509_v1  ;;  %vm633_vm10 = vcmp.ge.f32.partialorder %v573_v2, 0.0  ;;  %v665_v16 = vmul.f32 0.2, %v573_v2  ;;  %vm615_vm11 = vcmp.ge.f32.partialorder %v501_v3, 0.0 }
  0xfd   : > { %v647_v17 = vmul.f32 0.2, %v501_v3  ;;  %837 = vst.msk [vmem:[%s1341_s17 + $0x4] sm:$0xf] %vm835_vm2, %v1048_v11  ;;  %853 = vst.msk [vmem:[%s1341_s17 + $0x44] sm:$0xf] %vm835_vm2, %v1064_v12  ;;  %v1129_v20 = vpop.f32.mrf.mxu0  ;;  %v1145_v21 = vpop.f32.mrf.mxu1  ;;  %v504_v35 = vadd.f32 %v1330_v24, %v503_v14  ;;  %v568_v37 = vadd.f32 %v1330_v24, %v567_v15 }
  0xfe   : > { %v681_v18 = vsel %vm617_vm9, %v509_v1, %v649_v13  ;;  %vm631_vm12 = vcmp.ge.f32.partialorder %v565_v4, 0.0  ;;  %v663_v19 = vmul.f32 0.2, %v565_v4  ;;  %vm618_vm13 = vcmp.ge.f32.partialorder %v512_v9, 0.0 }
  0xff   : > { %v1053_v22 = vpack.c.bf16 %v681_v18, %v681_v18  ;;  %v697_v23 = vsel %vm633_vm10, %v573_v2, %v665_v16  ;;  %v679_v25 = vsel %vm615_vm11, %v501_v3, %v647_v17  ;;  %v650_v26 = vmul.f32 0.2, %v512_v9  ;;  %v516_v30 = vpop.f32.mrf.mxu0  ;;  %v580_v31 = vpop.f32.mrf.mxu1 }
 0x100   : > { %v1069_v27 = vpack.c.bf16 %v697_v23, %v697_v23  ;;  %v1051_v28 = vpack.c.bf16 %v679_v25, %v679_v25  ;;  %v695_v29 = vsel %vm631_vm12, %v565_v4, %v663_v19  ;;  %vm634_vm14 = vcmp.ge.f32.partialorder %v576_v10, 0.0 }
 0x101   : > { %842 = vst.msk [vmem:[%s1341_s17 + $0x18] sm:$0xf] %vm835_vm2, %v1053_v22  ;;  %v1067_v32 = vpack.c.bf16 %v695_v29, %v695_v29  ;;  %v682_v33 = vsel %vm618_vm13, %v512_v9, %v650_v26  ;;  %v666_v34 = vmul.f32 0.2, %v576_v10  ;;  %v525_v38 = vadd.f32 %v1129_v20, %v1330_v24  ;;  %v1130_v40 = vpop.f32.mrf.mxu0  ;;  %v1146_v41 = vpop.f32.mrf.mxu1 }
 0x102   : > { %858 = vst.msk [vmem:[%s1341_s17 + $0x58] sm:$0xf] %vm835_vm2, %v1069_v27  ;;  %840 = vst.msk [vmem:[%s1341_s17 + $0x10] sm:$0xf] %vm835_vm2, %v1051_v28  ;;  %v1054_v36 = vpack.c.bf16 %v682_v33, %v682_v33  ;;  %v589_v39 = vadd.f32 %v1145_v21, %v1330_v24  ;;  %vm616_vm15 = vcmp.ge.f32.partialorder %v504_v35, 0.0  ;;  %v517_v44 = vadd.f32 %v1330_v24, %v516_v30 }
 0x103   : > { %856 = vst.msk [vmem:[%s1341_s17 + $0x50] sm:$0xf] %vm835_vm2, %v1067_v32  ;;  %v698_v42 = vsel %vm634_vm14, %v576_v10, %v666_v34  ;;  %v648_v43 = vmul.f32 0.2, %v504_v35  ;;  %vm632_vm0 = vcmp.ge.f32.partialorder %v568_v37, 0.0  ;;  %vm621_vm1 = vcmp.ge.f32.partialorder %v525_v38, 0.0  ;;  %v519_v47 = vpop.f32.mrf.mxu0  ;;  %v583_v48 = vpop.f32.mrf.mxu1 }
 0x104   : > { %843 = vst.msk [vmem:[%s1341_s17 + $0x1c] sm:$0xf] %vm835_vm2, %v1054_v36  ;;  %v1070_v45 = vpack.c.bf16 %v698_v42, %v698_v42  ;;  %v664_v46 = vmul.f32 0.2, %v568_v37  ;;  %v653_v50 = vmul.f32 0.2, %v525_v38  ;;  %v581_v60 = vadd.f32 %v1330_v24, %v580_v31 }
 0x105   : > { %v680_v49 = vsel %vm616_vm15, %v504_v35, %v648_v43  ;;  %vm637_vm3 = vcmp.ge.f32.partialorder %v589_v39, 0.0  ;;  %v669_v51 = vmul.f32 0.2, %v589_v39  ;;  %vm619_vm4 = vcmp.ge.f32.partialorder %v517_v44, 0.0  ;;  %v1133_v55 = vpop.f32.mrf.mxu0  ;;  %v1149_v56 = vpop.f32.mrf.mxu1 }
 0x106   : > { %859 = vst.msk [vmem:[%s1341_s17 + $0x5c] sm:$0xf] %vm835_vm2, %v1070_v45  ;;  %v1052_v52 = vpack.c.bf16 %v680_v49, %v680_v49  ;;  %v696_v53 = vsel %vm632_vm0, %v568_v37, %v664_v46  ;;  %v651_v54 = vmul.f32 0.2, %v517_v44  ;;  %v685_v58 = vsel %vm621_vm1, %v525_v38, %v653_v50 }
 0x107   : > { %v1068_v57 = vpack.c.bf16 %v696_v53, %v696_v53  ;;  %v701_v59 = vsel %vm637_vm3, %v589_v39, %v669_v51  ;;  %v1057_v61 = vpack.c.bf16 %v685_v58, %v685_v58  ;;  %v528_v0 = vadd.f32 %v1130_v40, %v1330_v24  ;;  %v532_v1 = vpop.f32.mrf.mxu0  ;;  %v596_v5 = vpop.f32.mrf.mxu1 }
 0x108   : > { %841 = vst.msk [vmem:[%s1341_s17 + $0x14] sm:$0xf] %vm835_vm2, %v1052_v52  ;;  %v1073_v62 = vpack.c.bf16 %v701_v59, %v701_v59  ;;  %v683_v63 = vsel %vm619_vm4, %v517_v44, %v651_v54  ;;  %vm635_vm5 = vcmp.ge.f32.partialorder %v581_v60, 0.0  ;;  %v667_v3 = vmul.f32 0.2, %v581_v60 }
 0x109   : > { %857 = vst.msk [vmem:[%s1341_s17 + $0x54] sm:$0xf] %vm835_vm2, %v1068_v57  ;;  %v1055_v2 = vpack.c.bf16 %v683_v63, %v683_v63  ;;  %v592_v4 = vadd.f32 %v1146_v41, %v1330_v24  ;;  %846 = vst.msk [vmem:[%s1341_s17 + $0x28] sm:$0xf] %vm835_vm2, %v1057_v61  ;;  %vm622_vm6 = vcmp.ge.f32.partialorder %v528_v0, 0.0  ;;  %v520_v7 = vadd.f32 %v1330_v24, %v519_v47  ;;  %v1134_v15 = vpop.f32.mrf.mxu0  ;;  %v1150_v19 = vpop.f32.mrf.mxu1 }
 0x10a   : > { %862 = vst.msk [vmem:[%s1341_s17 + $0x68] sm:$0xf] %vm835_vm2, %v1073_v62  ;;  %v654_v6 = vmul.f32 0.2, %v528_v0  ;;  %v584_v8 = vadd.f32 %v1330_v24, %v583_v48  ;;  %v699_v9 = vsel %vm635_vm5, %v581_v60, %v667_v3  ;;  %v541_v11 = vadd.f32 %v1133_v55, %v1330_v24 }
 0x10b   : > { %844 = vst.msk [vmem:[%s1341_s17 + $0x20] sm:$0xf] %vm835_vm2, %v1055_v2  ;;  %vm638_vm7 = vcmp.ge.f32.partialorder %v592_v4, 0.0  ;;  %v670_v10 = vmul.f32 0.2, %v592_v4  ;;  %v1071_v12 = vpack.c.bf16 %v699_v9, %v699_v9  ;;  %vm620_vm8 = vcmp.ge.f32.partialorder %v520_v7, 0.0  ;;  %v535_v32 = vpop.f32.mrf.mxu0  ;;  %v599_v35 = vpop.f32.mrf.mxu1 }
 0x10c   : > { %v686_v13 = vsel %vm622_vm6, %v528_v0, %v654_v6  ;;  %v652_v14 = vmul.f32 0.2, %v520_v7  ;;  %vm636_vm9 = vcmp.ge.f32.partialorder %v584_v8, 0.0  ;;  %v668_v18 = vmul.f32 0.2, %v584_v8 }
 0x10d   : > { %v1058_v16 = vpack.c.bf16 %v686_v13, %v686_v13  ;;  %v702_v17 = vsel %vm638_vm7, %v592_v4, %v670_v10  ;;  %860 = vst.msk [vmem:[%s1341_s17 + $0x60] sm:$0xf] %vm835_vm2, %v1071_v12  ;;  %vm625_vm10 = vcmp.ge.f32.partialorder %v541_v11, 0.0  ;;  %v657_v22 = vmul.f32 0.2, %v541_v11 }
 0x10e   : > { %v1074_v20 = vpack.c.bf16 %v702_v17, %v702_v17  ;;  %v684_v21 = vsel %vm620_vm8, %v520_v7, %v652_v14  ;;  %v700_v25 = vsel %vm636_vm9, %v584_v8, %v668_v18  ;;  %v605_v26 = vadd.f32 %v1149_v56, %v1330_v24 }
 0x10f   : > { %847 = vst.msk [vmem:[%s1341_s17 + $0x2c] sm:$0xf] %vm835_vm2, %v1058_v16  ;;  %v1056_v23 = vpack.c.bf16 %v684_v21, %v684_v21  ;;  %v533_v27 = vadd.f32 %v1330_v24, %v532_v1  ;;  %v1072_v28 = vpack.c.bf16 %v700_v25, %v700_v25  ;;  %v689_v29 = vsel %vm625_vm10, %v541_v11, %v657_v22 }
 0x110   : > { %863 = vst.msk [vmem:[%s1341_s17 + $0x6c] sm:$0xf] %vm835_vm2, %v1074_v20  ;;  %v597_v30 = vadd.f32 %v1330_v24, %v596_v5  ;;  %v544_v31 = vadd.f32 %v1134_v15, %v1330_v24  ;;  %v1061_v33 = vpack.c.bf16 %v689_v29, %v689_v29  ;;  %vm641_vm11 = vcmp.ge.f32.partialorder %v605_v26, 0.0 }
 0x111   : > { %845 = vst.msk [vmem:[%s1341_s17 + $0x24] sm:$0xf] %vm835_vm2, %v1056_v23  ;;  %v673_v34 = vmul.f32 0.2, %v605_v26  ;;  %vm623_vm12 = vcmp.ge.f32.partialorder %v533_v27, 0.0  ;;  %v608_v40 = vadd.f32 %v1150_v19, %v1330_v24  ;;  %v536_v41 = vadd.f32 %v1330_v24, %v535_v32 }
 0x112   : > { %861 = vst.msk [vmem:[%s1341_s17 + $0x64] sm:$0xf] %vm835_vm2, %v1072_v28  ;;  %v655_v36 = vmul.f32 0.2, %v533_v27  ;;  %vm639_vm13 = vcmp.ge.f32.partialorder %v597_v30, 0.0  ;;  %vm626_vm14 = vcmp.ge.f32.partialorder %v544_v31, 0.0  ;;  %v600_v45 = vadd.f32 %v1330_v24, %v599_v35 }
 0x113   : > { %v671_v37 = vmul.f32 0.2, %v597_v30  ;;  %850 = vst.msk [vmem:[%s1341_s17 + $0x38] sm:$0xf] %vm835_vm2, %v1061_v33  ;;  %v705_v38 = vsel %vm641_vm11, %v605_v26, %v673_v34  ;;  %v658_v39 = vmul.f32 0.2, %v544_v31 }
 0x114   : > { %v1077_v42 = vpack.c.bf16 %v705_v38, %v705_v38  ;;  %v687_v43 = vsel %vm623_vm12, %v533_v27, %v655_v36  ;;  %vm642_vm15 = vcmp.ge.f32.partialorder %v608_v40, 0.0  ;;  %v674_v50 = vmul.f32 0.2, %v608_v40 }
 0x115   : > { %v703_v44 = vsel %vm639_vm13, %v597_v30, %v671_v37  ;;  %v1059_v46 = vpack.c.bf16 %v687_v43, %v687_v43  ;;  %v690_v48 = vsel %vm626_vm14, %v544_v31, %v658_v39  ;;  %vm624_vm0 = vcmp.ge.f32.partialorder %v536_v41, 0.0 }
 0x116   : > { %v1075_v47 = vpack.c.bf16 %v703_v44, %v703_v44  ;;  %866 = vst.msk [vmem:[%s1341_s17 + $0x78] sm:$0xf] %vm835_vm2, %v1077_v42  ;;  %v1062_v49 = vpack.c.bf16 %v690_v48, %v690_v48  ;;  %v656_v51 = vmul.f32 0.2, %v536_v41  ;;  %vm640_vm1 = vcmp.ge.f32.partialorder %v600_v45, 0.0 }
 0x117   : > { %848 = vst.msk [vmem:[%s1341_s17 + $0x30] sm:$0xf] %vm835_vm2, %v1059_v46  ;;  %v672_v52 = vmul.f32 0.2, %v600_v45  ;;  %v706_v24 = vsel %vm642_vm15, %v608_v40, %v674_v50 }
 0x118   : > { %864 = vst.msk [vmem:[%s1341_s17 + $0x70] sm:$0xf] %vm835_vm2, %v1075_v47  ;;  %851 = vst.msk [vmem:[%s1341_s17 + $0x3c] sm:$0xf] %vm835_vm2, %v1062_v49  ;;  %v688_v53 = vsel %vm624_vm0, %v536_v41, %v656_v51  ;;  %v1078_v54 = vpack.c.bf16 %v706_v24, %v706_v24 }
 0x119   : > { %v1060_v55 = vpack.c.bf16 %v688_v53, %v688_v53  ;;  %v704_v56 = vsel %vm640_vm1, %v600_v45, %v672_v52 }
 0x11a   : > { %v1076_v57 = vpack.c.bf16 %v704_v56, %v704_v56  ;;  %867 = vst.msk [vmem:[%s1341_s17 + $0x7c] sm:$0xf] %vm835_vm2, %v1078_v54 }
 0x11b   : > { %849 = vst.msk [vmem:[%s1341_s17 + $0x34] sm:$0xf] %vm835_vm2, %v1060_v55 }
 0x11c   : > { %865 = vst.msk [vmem:[%s1341_s17 + $0x74] sm:$0xf] %vm835_vm2, %v1076_v57 }
 0x11d PF: > { %s13_s14 = sadd.s32 1, %s1237_s14   ;;  %s1450_s12 = smov %s1233_s13 }
 0x11e   : > { %p10_p5 = scmp.ge.s32.totalorder %s13_s14, 4   ;;  %s1451_s13 = smov %s1453_s15 }
 0x120   :  { %12 = sbr.rel (!%p10_p5) target bundleno = 2 (0x2), region = 65 }

// kernel: discriminator_forward.6
= control target key start
LH: loop header
LB: loop body
LE: loop exit
PB: predicated region body
PF: predicated region fallthrough
CT: control target
= control target key end

     0   :  { %s1904_s12 = smov 0   ;;  %s1906_s13 = smov 0   ;;  %s2213_s0 = inlined_call_operand.vmem [shape: bf16[2,64,1024], index: 0, kind: input, shape index: {}]   ;;  %s2214_s1 = inlined_call_operand.vmem [shape: bf16[1024,128], index: 1, kind: input, shape index: {}]   ;;  %s2215_s2 = inlined_call_operand.vmem [shape: f32[1,128], index: 2, kind: input, shape index: {}]   ;;  %s2216_s3 = inlined_call_operand.vmem [shape: bf16[2,64,128], index: 3, kind: output, shape index: {}]  }
   0x1   :  { %s1908_s14 = smov 0  }
   0x2 LB: > { %s32_s15 = sadd.s32 1, %s1878_s13  ;;  %p1465_p0 = scmp.ge.s32.totalorder %s1882_s14, 1  ;;  %s1882_s14 = sphi %s1908_s14, %s13_s14   ;;  %s1878_s13 = sphi %s1906_s13, %s2218_s13   ;;  %s1874_s12 = sphi %s1904_s12, %s2217_s12  }
   0x3   : > { %p34_p1 = scmp.ge.s32.totalorder %s32_s15, 2  ;;  %p184_p2 = scmp.lt.s32.totalorder %s1882_s14, 3 }
   0x5   : > { %s2220_s15 = smov (%p34_p1, %s32_s15), 0  ;;  %p185_p3 = pnand %p1465_p0, %p184_p2 }
   0x6   : > { %p228_p4 = scmp.lt.s32.totalorder (!%p185_p3), %s1874_s12, 1 }
   0x7   : > { %188 = sbr.rel (%p185_p3) target bundleno = 383 (0x17f), region = 32 }
   0xc   : > { %v1794_v0 = vld [vmem:[%s2214_s1 + $0x78] sm:$0xff]   ;;  %v1798_v4 = vld [vmem:[%s2214_s1 + $0x70] sm:$0xff]   ;;  %v1802_v8 = vld [vmem:[%s2214_s1 + $0x68] sm:$0xff]   ;;  %s2222_s12 = smov (!%p228_p4, %s1874_s12), 1 }
   0xd   : > { %v1795_v1 = vld [vmem:[%s2214_s1 + $0xf8] sm:$0xff]   ;;  %1610 = vmatprep.subr.bf16.mxu0 %v1794_v0  ;;  %v1799_v5 = vld [vmem:[%s2214_s1 + $0xf0] sm:$0xff]   ;;  %v1803_v9 = vld [vmem:[%s2214_s1 + $0xe8] sm:$0xff]   ;;  %s1577_s24 = sshll.u32 %s2222_s12, 8  ;;  %s1578_s10 = sshll.u32 %s2222_s12, 5 }
   0xe   : > { %v1796_v2 = vld [vmem:[%s2214_s1 + $0x38] sm:$0xff]   ;;  %1650 = vmatprep.subr.bf16.mxu1 %v1795_v1  ;;  %v1800_v6 = vld [vmem:[%s2214_s1 + $0x30] sm:$0xff]   ;;  %v1804_v10 = vld [vmem:[%s2214_s1 + $0x28] sm:$0xff]   ;;  %s2022_s6 = scalar_lea.vmem %s2213_s0, %s1577_s24  ;;  %s256_s12 = scalar_lea.vmem %s2216_s3, %s1578_s10 }
   0xf   : > { %v1797_v3 = vld [vmem:[%s2214_s1 + $0xb8] sm:$0xff]   ;;  %1611 = vmatpush3.bf16.msra.mxu0 %v1796_v2  ;;  %v1801_v7 = vld [vmem:[%s2214_s1 + $0xb0] sm:$0xff]   ;;  %v1805_v11 = vld [vmem:[%s2214_s1 + $0xa8] sm:$0xff]  }
  0x10   : > { %1651 = vmatpush3.bf16.msra.mxu1 %v1797_v3  ;;  %1612 = vmatprep.subr.bf16.mxu0 %v1798_v4  ;;  %v1806_v12 = vld [vmem:[%s2214_s1 + $0x60] sm:$0xff]   ;;  %v1810_v16 = vld [vmem:[%s2214_s1 + $0x58] sm:$0xff]   ;;  %v1814_v20 = vld [vmem:[%s2214_s1 + $0x50] sm:$0xff]  }
  0x11   : > { %1652 = vmatprep.subr.bf16.mxu1 %v1799_v5  ;;  %v1807_v13 = vld [vmem:[%s2214_s1 + $0xe0] sm:$0xff]   ;;  %v1811_v17 = vld [vmem:[%s2214_s1 + $0xd8] sm:$0xff]   ;;  %v1815_v21 = vld [vmem:[%s2214_s1 + $0xd0] sm:$0xff]  }
  0x12   : > { %v1808_v14 = vld [vmem:[%s2214_s1 + $0x20] sm:$0xff]   ;;  %v1812_v18 = vld [vmem:[%s2214_s1 + $0x18] sm:$0xff]   ;;  %v1816_v22 = vld [vmem:[%s2214_s1 + $0x10] sm:$0xff]  }
  0x13   : > { %1613 = vmatpush3.bf16.msra.mxu0 %v1800_v6  ;;  %v1809_v15 = vld [vmem:[%s2214_s1 + $0xa0] sm:$0xff]   ;;  %v1813_v19 = vld [vmem:[%s2214_s1 + $0x98] sm:$0xff]   ;;  %v1817_v23 = vld [vmem:[%s2214_s1 + $0x90] sm:$0xff]  }
  0x14   : > { %1653 = vmatpush3.bf16.msra.mxu1 %v1801_v7  ;;  %1614 = vmatprep.subr.bf16.mxu0 %v1802_v8  ;;  %v1818_v24 = vld [vmem:[%s2214_s1 + $0x48] sm:$0xff]   ;;  %v1822_v28 = vld [vmem:[%s2214_s1 + $0x40] sm:$0xff]   ;;  %v1826_v40 = vld [vmem:[%s2214_s1 + $0x178] sm:$0xff]  }
  0x15   : > { %1654 = vmatprep.subr.bf16.mxu1 %v1803_v9  ;;  %v1819_v25 = vld [vmem:[%s2214_s1 + $0xc8] sm:$0xff]   ;;  %v1823_v29 = vld [vmem:[%s2214_s1 + $0xc0] sm:$0xff]   ;;  %v1827_v41 = vld [vmem:[%s2214_s1 + $0x1f8] sm:$0xff]  }
  0x16   : > { %v1820_v26 = vld [vmem:[%s2214_s1 + $0x8] sm:$0xff]   ;;  %v1824_v30 = vld [vmem:[%s2214_s1] sm:$0xff]   ;;  %v1828_v42 = vld [vmem:[%s2214_s1 + $0x138] sm:$0xff]  }
  0x17   : > { %1615 = vmatpush3.bf16.msra.mxu0 %v1804_v10  ;;  %v1821_v27 = vld [vmem:[%s2214_s1 + $0x88] sm:$0xff]   ;;  %v1825_v31 = vld [vmem:[%s2214_s1 + $0x80] sm:$0xff]   ;;  %v1829_v43 = vld [vmem:[%s2214_s1 + $0x1b8] sm:$0xff]  }
  0x18   : > { %1655 = vmatpush3.bf16.msra.mxu1 %v1805_v11  ;;  %1616 = vmatprep.subr.bf16.mxu0 %v1806_v12  ;;  %v259_v32 = vld [vmem:[%s2022_s6] sm:$0xff]  ;;  %v260_v34 = vld [vmem:[%s2022_s6 + $0x8] sm:$0xff]  ;;  %v1830_v44 = vld [vmem:[%s2214_s1 + $0x170] sm:$0xff]  }
  0x19   : > { %1656 = vmatprep.subr.bf16.mxu1 %v1807_v13  ;;  %v263_v33 = vld [vmem:[%s2022_s6 + $0x20] sm:$0xff]  ;;  %v264_v37 = vld [vmem:[%s2022_s6 + $0x28] sm:$0xff]  ;;  %v1831_v45 = vld [vmem:[%s2214_s1 + $0x1f0] sm:$0xff]  }
  0x1a   : > { %v1471_v35 = vcombine.low %v259_v32, %v263_v33  ;;  %v1472_v36 = vcombine.high %v259_v32, %v263_v33  ;;  %v1473_v38 = vcombine.low %v260_v34, %v264_v37  ;;  %v1474_v39 = vcombine.high %v260_v34, %v264_v37  ;;  %v1832_v46 = vld [vmem:[%s2214_s1 + $0x130] sm:$0xff]   ;;  %v267_v48 = vld [vmem:[%s2022_s6 + $0x40] sm:$0xff]  ;;  %v268_v51 = vld [vmem:[%s2022_s6 + $0x48] sm:$0xff] }
  0x1b   : > { %1617 = vmatpush3.bf16.msra.mxu0 %v1808_v14  ;;  %v1833_v47 = vld [vmem:[%s2214_s1 + $0x1b0] sm:$0xff]   ;;  %v271_v49 = vld [vmem:[%s2022_s6 + $0x60] sm:$0xff]  ;;  %v272_v52 = vld [vmem:[%s2022_s6 + $0x68] sm:$0xff] }
  0x1c   : > { %1657 = vmatpush3.bf16.msra.mxu1 %v1809_v15  ;;  %1618 = vmatprep.subr.bf16.mxu0 %v1810_v16  ;;  %v1480_v50 = vcombine.high %v267_v48, %v271_v49  ;;  %v1479_v53 = vcombine.low %v267_v48, %v271_v49  ;;  %v1482_v54 = vcombine.high %v268_v51, %v272_v52  ;;  %v1834_v56 = vld [vmem:[%s2214_s1 + $0x168] sm:$0xff]   ;;  %v1838_v60 = vld [vmem:[%s2214_s1 + $0x160] sm:$0xff]   ;;  %v1842_v8 = vld [vmem:[%s2214_s1 + $0x158] sm:$0xff]  }
  0x1d   : > { %1658 = vmatprep.subr.bf16.mxu1 %v1811_v17  ;;  %1002 = vmatprep.mubr.bf16.mxu0 %v1472_v36  ;;  %v1481_v55 = vcombine.low %v268_v51, %v272_v52  ;;  %v1835_v57 = vld [vmem:[%s2214_s1 + $0x1e8] sm:$0xff]   ;;  %v1839_v61 = vld [vmem:[%s2214_s1 + $0x1e0] sm:$0xff]   ;;  %v1843_v9 = vld [vmem:[%s2214_s1 + $0x1d8] sm:$0xff]  }
  0x1e   : > { %1067 = vmatprep.mubr.bf16.mxu1 %v1474_v39  ;;  %v1836_v58 = vld [vmem:[%s2214_s1 + $0x128] sm:$0xff]   ;;  %v1840_v62 = vld [vmem:[%s2214_s1 + $0x120] sm:$0xff]   ;;  %v1844_v10 = vld [vmem:[%s2214_s1 + $0x118] sm:$0xff]  }
  0x1f   : > { %1619 = vmatpush3.bf16.msra.mxu0 %v1812_v18  ;;  %v1837_v59 = vld [vmem:[%s2214_s1 + $0x1a8] sm:$0xff]   ;;  %v1841_v63 = vld [vmem:[%s2214_s1 + $0x1a0] sm:$0xff]   ;;  %v1845_v11 = vld [vmem:[%s2214_s1 + $0x198] sm:$0xff]  }
  0x20   : > { %1659 = vmatpush3.bf16.msra.mxu1 %v1813_v19  ;;  %1620 = vmatprep.subr.bf16.mxu0 %v1814_v20  ;;  %v275_v0 = vld [vmem:[%s2022_s6 + $0x80] sm:$0xff]  ;;  %v276_v2 = vld [vmem:[%s2022_s6 + $0x88] sm:$0xff]  ;;  %v1846_v12 = vld [vmem:[%s2214_s1 + $0x150] sm:$0xff]  }
  0x21   : > { %1660 = vmatprep.subr.bf16.mxu1 %v1815_v21  ;;  %v279_v1 = vld [vmem:[%s2022_s6 + $0xa0] sm:$0xff]  ;;  %v280_v3 = vld [vmem:[%s2022_s6 + $0xa8] sm:$0xff]  ;;  %v1847_v13 = vld [vmem:[%s2214_s1 + $0x1d0] sm:$0xff]  }
  0x22   : > { %v1488_v4 = vcombine.high %v275_v0, %v279_v1  ;;  %v1490_v5 = vcombine.high %v276_v2, %v280_v3  ;;  %v1487_v6 = vcombine.low %v275_v0, %v279_v1  ;;  %v1489_v7 = vcombine.low %v276_v2, %v280_v3  ;;  %v1848_v14 = vld [vmem:[%s2214_s1 + $0x110] sm:$0xff]   ;;  %v283_v16 = vld [vmem:[%s2022_s6 + $0xc0] sm:$0xff]  ;;  %v284_v18 = vld [vmem:[%s2022_s6 + $0xc8] sm:$0xff] }
  0x23   : > { %1621 = vmatpush3.bf16.msra.mxu0 %v1816_v22  ;;  %v1849_v15 = vld [vmem:[%s2214_s1 + $0x190] sm:$0xff]   ;;  %v287_v17 = vld [vmem:[%s2022_s6 + $0xe0] sm:$0xff]  ;;  %v288_v20 = vld [vmem:[%s2022_s6 + $0xe8] sm:$0xff] }
  0x24   : > { %1661 = vmatpush3.bf16.msra.mxu1 %v1817_v23  ;;  %1622 = vmatprep.subr.bf16.mxu0 %v1818_v24  ;;  %v1496_v19 = vcombine.high %v283_v16, %v287_v17  ;;  %v1495_v21 = vcombine.low %v283_v16, %v287_v17  ;;  %v1498_v22 = vcombine.high %v284_v18, %v288_v20  ;;  %v1850_v24 = vld [vmem:[%s2214_s1 + $0x148] sm:$0xff]   ;;  %v261_v32 = vld [vmem:[%s2022_s6 + $0x10] sm:$0xff]  ;;  %v262_v36 = vld [vmem:[%s2022_s6 + $0x18] sm:$0xff] }
  0x25   : > { %1662 = vmatprep.subr.bf16.mxu1 %v1819_v25  ;;  %v1497_v23 = vcombine.low %v284_v18, %v288_v20  ;;  %v1851_v25 = vld [vmem:[%s2214_s1 + $0x1c8] sm:$0xff]   ;;  %v265_v33 = vld [vmem:[%s2022_s6 + $0x30] sm:$0xff]  ;;  %v266_v37 = vld [vmem:[%s2022_s6 + $0x38] sm:$0xff] }
  0x26   : > { %v1475_v34 = vcombine.low %v261_v32, %v265_v33  ;;  %v1477_v39 = vcombine.low %v262_v36, %v266_v37  ;;  %v278_v48 = vld [vmem:[%s2022_s6 + $0x98] sm:$0xff] }
  0x27   : > { %1623 = vmatpush3.bf16.msra.mxu0 %v1820_v26  ;;  %v1852_v26 = vld [vmem:[%s2214_s1 + $0x108] sm:$0xff]   ;;  %v282_v49 = vld [vmem:[%s2022_s6 + $0xb8] sm:$0xff] }
  0x28   : > { %1663 = vmatpush3.bf16.msra.mxu1 %v1821_v27  ;;  %1624 = vmatprep.subr.bf16.mxu0 %v1822_v28  ;;  %v1853_v27 = vld [vmem:[%s2214_s1 + $0x188] sm:$0xff]   ;;  %v1854_v28 = vld [vmem:[%s2214_s1 + $0x140] sm:$0xff]  }
  0x29   : > { %1664 = vmatprep.subr.bf16.mxu1 %v1823_v29  ;;  %v1855_v29 = vld [vmem:[%s2214_s1 + $0x1c0] sm:$0xff]  }
  0x2b   : > { %1625 = vmatpush3.bf16.msra.mxu0 %v1824_v30  ;;  %v1856_v30 = vld [vmem:[%s2214_s1 + $0x100] sm:$0xff]  }
  0x2c   : > { %1665 = vmatpush3.bf16.msra.mxu1 %v1825_v31  ;;  %1690 = vmatprep.subr.bf16.mxu0 %v1826_v40  ;;  %v1857_v31 = vld [vmem:[%s2214_s1 + $0x180] sm:$0xff]   ;;  %v1478_v40 = vcombine.high %v262_v36, %v266_v37 }
  0x2d   : > { %1730 = vmatprep.subr.bf16.mxu1 %v1827_v41  ;;  %v273_v41 = vld [vmem:[%s2022_s6 + $0x70] sm:$0xff] }
  0x2e   : > { %1003 = vmatmul.mubr.bf16.vlgmr.msra.gmra.mxu0 %v1471_v35  ;;  %v1476_v35 = vcombine.high %v261_v32, %v265_v33 }
  0x2f   : > { %1068 = vmatmul.mubr.bf16.vlgmr.msra.gmra.mxu1 %v1473_v38  ;;  %1691 = vmatpush3.bf16.msra.mxu0 %v1828_v42  ;;  %v269_v38 = vld [vmem:[%s2022_s6 + $0x50] sm:$0xff]  ;;  %v270_v42 = vld [vmem:[%s2022_s6 + $0x58] sm:$0xff] }
  0x30   : > { %1731 = vmatpush3.bf16.msra.mxu1 %v1829_v43  ;;  %1692 = vmatprep.subr.bf16.mxu0 %v1830_v44  ;;  %v274_v43 = vld [vmem:[%s2022_s6 + $0x78] sm:$0xff]  ;;  %v1484_v44 = vcombine.high %v269_v38, %v273_v41 }
  0x31   : > { %1732 = vmatprep.subr.bf16.mxu1 %v1831_v45  ;;  %1010 = vmatprep.mubr.bf16.mxu0 %v1480_v50  ;;  %v1486_v45 = vcombine.high %v270_v42, %v274_v43  ;;  %v1483_v50 = vcombine.low %v269_v38, %v273_v41  ;;  %v1485_v51 = vcombine.low %v270_v42, %v274_v43  ;;  %v2175_v43 = vld [vmem:[%s2215_s2] ss:$0 sm:$0xff] }
  0x32   : > { %1075 = vmatprep.mubr.bf16.mxu1 %v1482_v54  ;;  %v285_v54 = vld [vmem:[%s2022_s6 + $0xd0] sm:$0xff] }
  0x33   : > { %1693 = vmatpush3.bf16.msra.mxu0 %v1832_v46  ;;  %v277_v46 = vld [vmem:[%s2022_s6 + $0x90] sm:$0xff] }
  0x34   : > { %1733 = vmatpush3.bf16.msra.mxu1 %v1833_v47  ;;  %1694 = vmatprep.subr.bf16.mxu0 %v1834_v56  ;;  %v281_v47 = vld [vmem:[%s2022_s6 + $0xb0] sm:$0xff]  ;;  %v286_v56 = vld [vmem:[%s2022_s6 + $0xd8] sm:$0xff] }
  0x35   : > { %1734 = vmatprep.subr.bf16.mxu1 %v1835_v57  ;;  %v1492_v52 = vcombine.high %v277_v46, %v281_v47  ;;  %v290_v57 = vld [vmem:[%s2022_s6 + $0xf8] sm:$0xff] }
  0x36   : > { %1011 = vmatmul.mubr.bf16.gmra.mxu0 %v1479_v53  ;;  %v1494_v53 = vcombine.high %v278_v48, %v282_v49 }
  0x37   : > { %1076 = vmatmul.mubr.bf16.gmra.mxu1 %v1481_v55  ;;  %1695 = vmatpush3.bf16.msra.mxu0 %v1836_v58  ;;  %v289_v55 = vld [vmem:[%s2022_s6 + $0xf0] sm:$0xff]  ;;  %v1491_v58 = vcombine.low %v277_v46, %v281_v47 }
  0x38   : > { %1735 = vmatpush3.bf16.msra.mxu1 %v1837_v59  ;;  %1696 = vmatprep.subr.bf16.mxu0 %v1838_v60  ;;  %v1493_v59 = vcombine.low %v278_v48, %v282_v49  ;;  %v1500_v60 = vcombine.high %v285_v54, %v289_v55 }
  0x39   : > { %1736 = vmatprep.subr.bf16.mxu1 %v1839_v61  ;;  %1018 = vmatprep.mubr.bf16.mxu0 %v1488_v4  ;;  %v1502_v61 = vcombine.high %v286_v56, %v290_v57 }
  0x3a   : > { %1083 = vmatprep.mubr.bf16.mxu1 %v1490_v5 }
  0x3b   : > { %1697 = vmatpush3.bf16.msra.mxu0 %v1840_v62  ;;  %v1499_v62 = vcombine.low %v285_v54, %v289_v55 }
  0x3c   : > { %1737 = vmatpush3.bf16.msra.mxu1 %v1841_v63  ;;  %1698 = vmatprep.subr.bf16.mxu0 %v1842_v8  ;;  %v1501_v63 = vcombine.low %v286_v56, %v290_v57 }
  0x3d   : > { %1738 = vmatprep.subr.bf16.mxu1 %v1843_v9 }
  0x3e   : > { %1019 = vmatmul.mubr.bf16.gmra.mxu0 %v1487_v6 }
  0x3f   : > { %1084 = vmatmul.mubr.bf16.gmra.mxu1 %v1489_v7  ;;  %1699 = vmatpush3.bf16.msra.mxu0 %v1844_v10 }
  0x40   : > { %1739 = vmatpush3.bf16.msra.mxu1 %v1845_v11  ;;  %1700 = vmatprep.subr.bf16.mxu0 %v1846_v12 }
  0x41   : > { %1740 = vmatprep.subr.bf16.mxu1 %v1847_v13  ;;  %1026 = vmatprep.mubr.bf16.mxu0 %v1496_v19 }
  0x42   : > { %1091 = vmatprep.mubr.bf16.mxu1 %v1498_v22 }
  0x43   : > { %1701 = vmatpush3.bf16.msra.mxu0 %v1848_v14 }
  0x44   : > { %1741 = vmatpush3.bf16.msra.mxu1 %v1849_v15  ;;  %1702 = vmatprep.subr.bf16.mxu0 %v1850_v24 }
  0x45   : > { %1742 = vmatprep.subr.bf16.mxu1 %v1851_v25 }
  0x46   : > { %1027 = vmatmul.mubr.bf16.gmra.mxu0 %v1495_v21 }
  0x47   : > { %1092 = vmatmul.mubr.bf16.gmra.mxu1 %v1497_v23  ;;  %1703 = vmatpush3.bf16.msra.mxu0 %v1852_v26 }
  0x48   : > { %1743 = vmatpush3.bf16.msra.mxu1 %v1853_v27  ;;  %1704 = vmatprep.subr.bf16.mxu0 %v1854_v28 }
  0x49   : > { %1744 = vmatprep.subr.bf16.mxu1 %v1855_v29  ;;  %1132 = vmatprep.mubr.bf16.mxu0 %v1476_v35 }
  0x4a   : > { %1197 = vmatprep.mubr.bf16.mxu1 %v1478_v40 }
  0x4b   : > { %1705 = vmatpush3.bf16.msra.mxu0 %v1856_v30 }
  0x4c   : > { %1745 = vmatpush3.bf16.msra.mxu1 %v1857_v31 }
  0x4e   : > { %1133 = vmatmul.mubr.bf16.vlgmr.msra.gmra.mxu0 %v1475_v34 }
  0x4f   : > { %1198 = vmatmul.mubr.bf16.vlgmr.msra.gmra.mxu1 %v1477_v39  ;;  %1140 = vmatprep.mubr.bf16.mxu0 %v1484_v44 }
  0x50   : > { %1205 = vmatprep.mubr.bf16.mxu1 %v1486_v45 }
  0x56   : > { %1141 = vmatmul.mubr.bf16.gmra.mxu0 %v1483_v50 }
  0x57   : > { %1206 = vmatmul.mubr.bf16.gmra.mxu1 %v1485_v51  ;;  %1148 = vmatprep.mubr.bf16.mxu0 %v1492_v52 }
  0x58   : > { %1213 = vmatprep.mubr.bf16.mxu1 %v1494_v53 }
  0x5e   : > { %1149 = vmatmul.mubr.bf16.gmra.mxu0 %v1491_v58 }
  0x5f   : > { %1214 = vmatmul.mubr.bf16.gmra.mxu1 %v1493_v59  ;;  %1156 = vmatprep.mubr.bf16.mxu0 %v1500_v60 }
  0x60   : > { %1221 = vmatprep.mubr.bf16.mxu1 %v1502_v61 }
  0x66   : > { %1157 = vmatmul.mubr.bf16.gmra.mxu0 %v1499_v62 }
  0x67   : > { %1222 = vmatmul.mubr.bf16.gmra.mxu1 %v1501_v63 }
  0xee   : > { %v1626_v0 = vpop.f32.mrf.mxu0 }
  0xef   : > { %v1666_v1 = vpop.f32.mrf.mxu1 }
  0xf0   : > { %v1627_v2 = vpop.f32.mrf.mxu0 }
  0xf1   : > { %v1667_v3 = vpop.f32.mrf.mxu1  ;;  %v1628_v41 = vadd.f32 %v1627_v2, %v1626_v0 }
  0xf2   : > { %v1629_v4 = vpop.f32.mrf.mxu0  ;;  %v1668_v57 = vadd.f32 %v1667_v3, %v1666_v1 }
  0xf3   : > { %v1669_v5 = vpop.f32.mrf.mxu1  ;;  %v1005_v50 = vadd.f32 %v1628_v41, %v2175_v43 }
  0xf4   : > { %v1630_v6 = vpop.f32.mrf.mxu0 }
  0xf5   : > { %v1670_v7 = vpop.f32.mrf.mxu1  ;;  %v1631_v39 = vadd.f32 %v1630_v6, %v1629_v4  ;;  %v1070_v4 = vadd.f32 %v1668_v57, %v1005_v50 }
  0xf6   : > { %v1632_v8 = vpop.f32.mrf.mxu0  ;;  %v1671_v52 = vadd.f32 %v1670_v7, %v1669_v5 }
  0xf7   : > { %v1672_v9 = vpop.f32.mrf.mxu1  ;;  %v1008_v48 = vadd.f32 %v1631_v39, %v2175_v43 }
  0xf8   : > { %v1633_v10 = vpop.f32.mrf.mxu0 }
  0xf9   : > { %v1673_v11 = vpop.f32.mrf.mxu1  ;;  %v1634_v44 = vadd.f32 %v1633_v10, %v1632_v8  ;;  %v1073_v62 = vadd.f32 %v1671_v52, %v1008_v48 }
  0xfa   : > { %v1635_v12 = vpop.f32.mrf.mxu0  ;;  %v1674_v63 = vadd.f32 %v1673_v11, %v1672_v9 }
  0xfb   : > { %v1675_v13 = vpop.f32.mrf.mxu1  ;;  %v1013_v53 = vadd.f32 %v1634_v44, %v2175_v43 }
  0xfc   : > { %v1636_v14 = vpop.f32.mrf.mxu0 }
  0xfd   : > { %v1676_v15 = vpop.f32.mrf.mxu1  ;;  %v1637_v46 = vadd.f32 %v1636_v14, %v1635_v12  ;;  %v1078_v10 = vadd.f32 %v1674_v63, %v1013_v53 }
  0xfe   : > { %v1638_v16 = vpop.f32.mrf.mxu0  ;;  %v1677_v6 = vadd.f32 %v1676_v15, %v1675_v13 }
  0xff   : > { %v1678_v17 = vpop.f32.mrf.mxu1  ;;  %v1016_v58 = vadd.f32 %v1637_v46, %v2175_v43 }
 0x100   : > { %v1639_v18 = vpop.f32.mrf.mxu0 }
 0x101   : > { %v1679_v19 = vpop.f32.mrf.mxu1  ;;  %v1640_v54 = vadd.f32 %v1639_v18, %v1638_v16  ;;  %v1081_v16 = vadd.f32 %v1677_v6, %v1016_v58 }
 0x102   : > { %v1641_v20 = vpop.f32.mrf.mxu0 }
 0x103   : > { %v2158_v21 = vpop.f32.mrf.mxu1  ;;  %v1021_v5 = vadd.f32 %v1640_v54, %v2175_v43 }
 0x104   : > { %v1642_v22 = vpop.f32.mrf.mxu0 }
 0x105   : > { %v1682_v23 = vpop.f32.mrf.mxu1  ;;  %v1643_v59 = vadd.f32 %v1642_v22, %v1641_v20  ;;  %v1680_v22 = vadd.f32 %v1679_v19, %v1678_v17 }
 0x106   : > { %v1644_v24 = vpop.f32.mrf.mxu0  ;;  %v1683_v13 = vadd.f32 %v1682_v23, %v2158_v21 }
 0x107   : > { %v2160_v25 = vpop.f32.mrf.mxu1  ;;  %v1024_v1 = vadd.f32 %v1643_v59, %v2175_v43 }
 0x108   : > { %v1645_v26 = vpop.f32.mrf.mxu0 }
 0x109   : > { %v2162_v27 = vpop.f32.mrf.mxu1  ;;  %v1646_v3 = vadd.f32 %v1645_v26, %v1644_v24  ;;  %v1089_v46 = vadd.f32 %v1683_v13, %v1024_v1 }
 0x10a   : > { %v2164_v28 = vpop.f32.mrf.mxu0  ;;  %v1686_v23 = vadd.f32 %v2162_v27, %v2160_v25 }
 0x10b   : > { %v2166_v29 = vpop.f32.mrf.mxu1 }
 0x10c   : > { %v2168_v30 = vpop.f32.mrf.mxu0 }
 0x10d   : > { %v2170_v31 = vpop.f32.mrf.mxu1  ;;  %v1649_v24 = vadd.f32 %v2168_v30, %v2164_v28 }
 0x10e   : > { %v1706_v32 = vpop.f32.mrf.mxu0  ;;  %v1689_v58 = vadd.f32 %v2170_v31, %v2166_v29 }
 0x10f   : > { %v1746_v33 = vpop.f32.mrf.mxu1  ;;  %v1032_v53 = vadd.f32 %v1649_v24, %v2175_v43 }
 0x110   : > { %v1707_v34 = vpop.f32.mrf.mxu0 }
 0x111   : > { %v1747_v35 = vpop.f32.mrf.mxu1  ;;  %v1708_v60 = vadd.f32 %v1707_v34, %v1706_v32 }
 0x112   : > { %v1709_v36 = vpop.f32.mrf.mxu0  ;;  %v1748_v15 = vadd.f32 %v1747_v35, %v1746_v33 }
 0x113   : > { %v1749_v37 = vpop.f32.mrf.mxu1  ;;  %v1135_v18 = vadd.f32 %v1708_v60, %v1070_v4 }
 0x114   : > { %v1710_v38 = vpop.f32.mrf.mxu0 }
 0x115   : > { %v1750_v40 = vpop.f32.mrf.mxu1  ;;  %v1711_v55 = vadd.f32 %v1710_v38, %v1709_v36  ;;  %v1086_v38 = vadd.f32 %v1680_v22, %v1021_v5  ;;  %v1200_v17 = vadd.f32 %v1748_v15, %v1135_v18 }
 0x116   : > { %v1712_v42 = vpop.f32.mrf.mxu0  ;;  %v1751_v32 = vadd.f32 %v1750_v40, %v1749_v37 }
 0x117   : > { %v1752_v45 = vpop.f32.mrf.mxu1  ;;  %v1138_v7 = vadd.f32 %v1711_v55, %v1073_v62 }
 0x118   : > { %v1713_v47 = vpop.f32.mrf.mxu0 }
 0x119   : > { %v1753_v49 = vpop.f32.mrf.mxu1  ;;  %v1714_v0 = vadd.f32 %v1713_v47, %v1712_v42  ;;  %v1203_v39 = vadd.f32 %v1751_v32, %v1138_v7  ;;  %v1029_v47 = vadd.f32 %v1646_v3, %v2175_v43 }
 0x11a   : > { %v1715_v51 = vpop.f32.mrf.mxu0  ;;  %v1754_v41 = vadd.f32 %v1753_v49, %v1752_v45 }
 0x11b   : > { %v1755_v56 = vpop.f32.mrf.mxu1  ;;  %v1143_v9 = vadd.f32 %v1714_v0, %v1078_v10  ;;  %v1230_v35 = vadd.f32 %v1203_v39, %v1200_v17  ;;  %v1094_v52 = vadd.f32 %v1686_v23, %v1029_v47  ;;  %v1097_v0 = vadd.f32 %v1689_v58, %v1032_v53 }
 0x11c   : > { %v1716_v61 = vpop.f32.mrf.mxu0 }
 0x11d   : > { %v1756_v2 = vpop.f32.mrf.mxu1  ;;  %v1717_v12 = vadd.f32 %v1716_v61, %v1715_v51  ;;  %v1208_v26 = vadd.f32 %v1754_v41, %v1143_v9 }
 0x11e   : > { %v1718_v8 = vpop.f32.mrf.mxu0  ;;  %v1757_v37 = vadd.f32 %v1756_v2, %v1755_v56 }
 0x11f   : > { %v1758_v14 = vpop.f32.mrf.mxu1  ;;  %v1146_v42 = vadd.f32 %v1717_v12, %v1081_v16  ;;  %v1231_v30 = vadd.f32 %v1230_v35, %v1208_v26 }
 0x120   : > { %v1719_v20 = vpop.f32.mrf.mxu0 }
 0x121   : > { %v1720_v11 = vadd.f32 %v1719_v20, %v1718_v8  ;;  %v1759_v34 = vpop.f32.mrf.mxu1  ;;  %v1211_v45 = vadd.f32 %v1757_v37, %v1146_v42 }
 0x122   : > { %v1721_v36 = vpop.f32.mrf.mxu0  ;;  %v1760_v49 = vadd.f32 %v1759_v34, %v1758_v14 }
 0x123   : > { %v1761_v44 = vpop.f32.mrf.mxu1  ;;  %v1151_v40 = vadd.f32 %v1720_v11, %v1086_v38  ;;  %v1232_v25 = vadd.f32 %v1231_v30, %v1211_v45 }
 0x124   : > { %v1722_v19 = vpop.f32.mrf.mxu0 }
 0x125   : > { %v1723_v48 = vadd.f32 %v1722_v19, %v1721_v36  ;;  %v1762_v21 = vpop.f32.mrf.mxu1  ;;  %v1216_v54 = vadd.f32 %v1760_v49, %v1151_v40 }
 0x126   : > { %v1724_v33 = vpop.f32.mrf.mxu0  ;;  %v1763_v55 = vadd.f32 %v1762_v21, %v1761_v44 }
 0x127   : > { %v1154_v50 = vadd.f32 %v1723_v48, %v1089_v46  ;;  %v1764_v51 = vpop.f32.mrf.mxu1  ;;  %v1233_v2 = vadd.f32 %v1232_v25, %v1216_v54 }
 0x128   : > { %v1725_v28 = vpop.f32.mrf.mxu0 }
 0x129   : > { %v1726_v56 = vadd.f32 %v1725_v28, %v1724_v33  ;;  %v1765_v57 = vpop.f32.mrf.mxu1  ;;  %v1219_v27 = vadd.f32 %v1763_v55, %v1154_v50 }
 0x12a   : > { %v1727_v59 = vpop.f32.mrf.mxu0  ;;  %v1766_v61 = vadd.f32 %v1765_v57, %v1764_v51 }
 0x12b   : > { %v1159_v60 = vadd.f32 %v1726_v56, %v1094_v52  ;;  %v1767_v62 = vpop.f32.mrf.mxu1  ;;  %v1234_v8 = vadd.f32 %v1233_v2, %v1219_v27 }
 0x12c   : > { %v1728_v63 = vpop.f32.mrf.mxu0 }
 0x12d   : > { %v1224_v4 = vadd.f32 %v1766_v61, %v1159_v60  ;;  %v1729_v43 = vadd.f32 %v1728_v63, %v1727_v59  ;;  %v1768_v6 = vpop.f32.mrf.mxu1 }
 0x12e   : > { %v1769_v5 = vadd.f32 %v1768_v6, %v1767_v62 }
 0x12f   : > { %v1162_v10 = vadd.f32 %v1729_v43, %v1097_v0  ;;  %v1235_v7 = vadd.f32 %v1234_v8, %v1224_v4 }
 0x131   : > { %v1227_v12 = vadd.f32 %v1769_v5, %v1162_v10 }
 0x133   : > { %v1236_v14 = vadd.f32 %v1235_v7, %v1227_v12 }
 0x135   : > { %v1237_v16 = vrot.slane %v1236_v14, 4 }
 0x137   : > { %v1238_v29 = vadd.f32 %v1237_v16, %v1236_v14 }
 0x139   : > { %v1239_v31 = vrot.slane %v1238_v29, 2 }
 0x13b   : > { %v1240_v1 = vadd.f32 %v1239_v31, %v1238_v29 }
 0x13d   : > { %v1241_v3 = vrot.slane %v1240_v1, 1 }
 0x13f   : > { %v1242_v18 = vadd.f32 %v1241_v3, %v1240_v1 }
 0x141   : > { %v1244_v20 = vmul.f32 0.015625, %v1242_v18 }
 0x143   : > { %v1245_v22 = vsub.f32 %v1200_v17, %v1244_v20  ;;  %v1246_v32 = vsub.f32 %v1203_v39, %v1244_v20  ;;  %v1247_v9 = vsub.f32 %v1208_v26, %v1244_v20  ;;  %v1248_v11 = vsub.f32 %v1211_v45, %v1244_v20 }
 0x144   : > { %v1249_v15 = vsub.f32 %v1216_v54, %v1244_v20  ;;  %v1250_v41 = vsub.f32 %v1219_v27, %v1244_v20  ;;  %v1251_v46 = vsub.f32 %v1224_v4, %v1244_v20  ;;  %v1252_v19 = vsub.f32 %v1227_v12, %v1244_v20 }
 0x145   : > { %v1253_v34 = vmul.f32 %v1245_v22, %v1245_v22  ;;  %v1254_v13 = vmul.f32 %v1246_v32, %v1246_v32  ;;  %v1255_v36 = vmul.f32 %v1247_v9, %v1247_v9  ;;  %v1256_v42 = vmul.f32 %v1248_v11, %v1248_v11 }
 0x146   : > { %v1257_v47 = vmul.f32 %v1249_v15, %v1249_v15  ;;  %v1258_v37 = vmul.f32 %v1250_v41, %v1250_v41  ;;  %v1259_v48 = vmul.f32 %v1251_v46, %v1251_v46  ;;  %v1260_v17 = vmul.f32 %v1252_v19, %v1252_v19 }
 0x147   : > { %v1261_v38 = vadd.f32 %v1254_v13, %v1253_v34 }
 0x149   : > { %v1262_v44 = vadd.f32 %v1261_v38, %v1255_v36 }
 0x14b   : > { %v1263_v24 = vadd.f32 %v1262_v44, %v1256_v42 }
 0x14d   : > { %v1264_v40 = vadd.f32 %v1263_v24, %v1257_v47 }
 0x14f   : > { %v1265_v21 = vadd.f32 %v1264_v40, %v1258_v37 }
 0x151   : > { %v1266_v39 = vadd.f32 %v1265_v21, %v1259_v48 }
 0x153   : > { %v1267_v26 = vadd.f32 %v1266_v39, %v1260_v17 }
 0x155   : > { %v1268_v23 = vrot.slane %v1267_v26, 4 }
 0x157   : > { %v1269_v33 = vadd.f32 %v1268_v23, %v1267_v26 }
 0x159   : > { %v1270_v35 = vrot.slane %v1269_v33, 2 }
 0x15b   : > { %v1271_v45 = vadd.f32 %v1270_v35, %v1269_v33 }
 0x15d   : > { %v1272_v49 = vrot.slane %v1271_v45, 1 }
 0x15f   : > { %v1273_v50 = vadd.f32 %v1272_v49, %v1271_v45 }
 0x161   : > { %v1274_v51 = vmul.f32 0.015625, %v1273_v50 }
 0x163   : > { %v1275_v52 = vadd.f32 1e-05, %v1274_v51 }
 0x165   : > { %1858 = vrsqrt.f32 %v1275_v52 }
 0x172   : > { %v1859_v53 = vpop.eup %1858 }
 0x173   : > { %v1277_v28 = vmul.f32 %v1859_v53, %v1245_v22  ;;  %v1278_v30 = vmul.f32 %v1859_v53, %v1246_v32  ;;  %v1279_v54 = vmul.f32 %v1859_v53, %v1247_v9  ;;  %v1280_v55 = vmul.f32 %v1859_v53, %v1248_v11 }
 0x174   : > { %v1281_v56 = vmul.f32 %v1859_v53, %v1249_v15  ;;  %v1282_v57 = vmul.f32 %v1859_v53, %v1250_v41  ;;  %v1283_v58 = vmul.f32 %v1859_v53, %v1251_v46  ;;  %v1284_v59 = vmul.f32 %v1859_v53, %v1252_v19 }
 0x175   : > { %vm1285_vm0 = vcmp.ge.f32.partialorder %v1277_v28, 0.0  ;;  %vm1286_vm1 = vcmp.ge.f32.partialorder %v1278_v30, 0.0  ;;  %vm1287_vm2 = vcmp.ge.f32.partialorder %v1279_v54, 0.0  ;;  %vm1288_vm3 = vcmp.ge.f32.partialorder %v1280_v55, 0.0 }
 0x176   : > { %vm1289_vm4 = vcmp.ge.f32.partialorder %v1281_v56, 0.0  ;;  %vm1290_vm5 = vcmp.ge.f32.partialorder %v1282_v57, 0.0  ;;  %vm1291_vm6 = vcmp.ge.f32.partialorder %v1283_v58, 0.0  ;;  %vm1292_vm7 = vcmp.ge.f32.partialorder %v1284_v59, 0.0 }
 0x177   : > { %v1293_v25 = vmul.f32 0.2, %v1277_v28  ;;  %v1294_v27 = vmul.f32 0.2, %v1278_v30  ;;  %v1295_v60 = vmul.f32 0.2, %v1279_v54 }
 0x178   : > { %v1296_v61 = vmul.f32 0.2, %v1280_v55  ;;  %v1297_v62 = vmul.f32 0.2, %v1281_v56  ;;  %v1298_v63 = vmul.f32 0.2, %v1282_v57 }
 0x179   : > { %v1299_v0 = vmul.f32 0.2, %v1283_v58  ;;  %v1300_v2 = vmul.f32 0.2, %v1284_v59  ;;  %v1301_v4 = vsel %vm1285_vm0, %v1277_v28, %v1293_v25  ;;  %v1302_v43 = vsel %vm1286_vm1, %v1278_v30, %v1294_v27 }
 0x17a   : > { %v1303_v6 = vsel %vm1287_vm2, %v1279_v54, %v1295_v60  ;;  %v1304_v8 = vsel %vm1288_vm3, %v1280_v55, %v1296_v61  ;;  %v1305_v10 = vsel %vm1289_vm4, %v1281_v56, %v1297_v62  ;;  %v1306_v5 = vsel %vm1290_vm5, %v1282_v57, %v1298_v63 }
 0x17b   : > { %v1307_v7 = vsel %vm1291_vm6, %v1283_v58, %v1299_v0  ;;  %v1308_v12 = vsel %vm1292_vm7, %v1284_v59, %v1300_v2  ;;  %v1590_v14 = vpack.c.bf16 %v1302_v43, %v1301_v4  ;;  %v1595_v16 = vpack.c.bf16 %v1304_v8, %v1303_v6 }
 0x17c   : > { %v1600_v29 = vpack.c.bf16 %v1306_v5, %v1305_v10  ;;  %v1605_v31 = vpack.c.bf16 %v1308_v12, %v1307_v7 }
 0x17d   : > { %1591 = vst [vmem:[%s256_s12] sm:$0xff] %v1590_v14   ;;  %1607 = vst [vmem:[%s256_s12 + $0x8] sm:$0xff] %v1595_v16  }
 0x17e   : > { %1608 = vst [vmem:[%s256_s12 + $0x10] sm:$0xff] %v1600_v29   ;;  %1609 = vst [vmem:[%s256_s12 + $0x18] sm:$0xff] %v1605_v31  }
 0x17f PF: > { %s13_s14 = sadd.s32 1, %s1882_s14   ;;  %s2217_s12 = smov %s1878_s13 }
 0x180   : > { %p10_p5 = scmp.ge.s32.totalorder %s13_s14, 4   ;;  %s2218_s13 = smov %s2220_s15 }
 0x182   :  { %12 = sbr.rel (!%p10_p5) target bundleno = 2 (0x2), region = 65 }

// kernel: discriminator_forward.7
= control target key start
LH: loop header
LB: loop body
LE: loop exit
PB: predicated region body
PF: predicated region fallthrough
CT: control target
= control target key end

     0   :  { %s3189_s12 = smov 0   ;;  %s3191_s13 = smov 0   ;;  %s4067_s0 = inlined_call_operand.vmem [shape: bf16[2,16,2048], index: 0, kind: input, shape index: {}]   ;;  %s4068_s1 = inlined_call_operand.vmem [shape: bf16[2048,256], index: 1, kind: input, shape index: {}]   ;;  %s4069_s2 = inlined_call_operand.vmem [shape: f32[1,256], index: 2, kind: input, shape index: {}]   ;;  %s4070_s3 = inlined_call_operand.vmem [shape: bf16[2,16,256], index: 3, kind: output, shape index: {}]  }
   0x1   :  { %s3193_s14 = smov 0  }
   0x2 LB: > { %s32_s15 = sadd.s32 1, %s3163_s13  ;;  %p2448_p0 = scmp.ge.s32.totalorder %s3167_s14, 1  ;;  %s3167_s14 = sphi %s3193_s14, %s13_s14   ;;  %s3163_s13 = sphi %s3191_s13, %s4072_s13   ;;  %s3159_s12 = sphi %s3189_s12, %s4071_s12  }
   0x3   : > { %p34_p1 = scmp.ge.s32.totalorder %s32_s15, 2  ;;  %p185_p2 = scmp.lt.s32.totalorder %s3167_s14, 3 }
   0x5   : > { %s4074_s15 = smov (%p34_p1, %s32_s15), 0  ;;  %p186_p3 = pnand %p2448_p0, %p185_p2 }
   0x6   : > { %p231_p4 = scmp.lt.s32.totalorder (!%p186_p3), %s3159_s12, 1 }
   0x7   : > { %189 = sbr.rel (%p186_p3) target bundleno = 532 (0x214), region = 32 }
   0xc   : > { %v2757_v0 = vld [vmem:[%s4068_s1 + $0x74] ss:$8 sps:$4 sm:$0xff]   ;;  %v2761_v2 = vld [vmem:[%s4068_s1 + $0x70] ss:$8 sps:$4 sm:$0xff]   ;;  %v2763_v4 = vld [vmem:[%s4068_s1 + $0x64] ss:$8 sps:$4 sm:$0xff]  }
   0xd   : > { %v2759_v1 = vld [vmem:[%s4068_s1 + $0x174] ss:$8 sps:$4 sm:$0xff]   ;;  %1907 = vmatprep.subr.bf16.mxu0 %v2757_v0  ;;  %v2762_v3 = vld [vmem:[%s4068_s1 + $0x170] ss:$8 sps:$4 sm:$0xff]   ;;  %v2765_v5 = vld [vmem:[%s4068_s1 + $0x164] ss:$8 sps:$4 sm:$0xff]  }
   0xe   : > { %1950 = vmatprep.subr.bf16.mxu1 %v2759_v1  ;;  %1908 = vmatpush1.bf16.msra.mxu0 %v2761_v2  ;;  %v2767_v6 = vld [vmem:[%s4068_s1 + $0x60] ss:$8 sps:$4 sm:$0xff]   ;;  %v2769_v8 = vld [vmem:[%s4068_s1 + $0x54] ss:$8 sps:$4 sm:$0xff]   ;;  %v2773_v10 = vld [vmem:[%s4068_s1 + $0x50] ss:$8 sps:$4 sm:$0xff]  }
   0xf   : > { %1951 = vmatpush1.bf16.msra.mxu1 %v2762_v3  ;;  %1909 = vmatprep.subr.bf16.mxu0 %v2763_v4  ;;  %v2768_v7 = vld [vmem:[%s4068_s1 + $0x160] ss:$8 sps:$4 sm:$0xff]   ;;  %v2771_v9 = vld [vmem:[%s4068_s1 + $0x154] ss:$8 sps:$4 sm:$0xff]   ;;  %v2774_v11 = vld [vmem:[%s4068_s1 + $0x150] ss:$8 sps:$4 sm:$0xff]  }
  0x10   : > { %1952 = vmatprep.subr.bf16.mxu1 %v2765_v5  ;;  %v2775_v12 = vld [vmem:[%s4068_s1 + $0x44] ss:$8 sps:$4 sm:$0xff]   ;;  %v2779_v14 = vld [vmem:[%s4068_s1 + $0x40] ss:$8 sps:$4 sm:$0xff]   ;;  %v2781_v16 = vld [vmem:[%s4068_s1 + $0x34] ss:$8 sps:$4 sm:$0xff]  }
  0x11   : > { %v2777_v13 = vld [vmem:[%s4068_s1 + $0x144] ss:$8 sps:$4 sm:$0xff]   ;;  %v2780_v15 = vld [vmem:[%s4068_s1 + $0x140] ss:$8 sps:$4 sm:$0xff]   ;;  %v2783_v17 = vld [vmem:[%s4068_s1 + $0x134] ss:$8 sps:$4 sm:$0xff]  }
  0x12   : > { %1910 = vmatpush1.bf16.msra.mxu0 %v2767_v6  ;;  %v2785_v18 = vld [vmem:[%s4068_s1 + $0x30] ss:$8 sps:$4 sm:$0xff]   ;;  %v2787_v20 = vld [vmem:[%s4068_s1 + $0x24] ss:$8 sps:$4 sm:$0xff]   ;;  %v2791_v22 = vld [vmem:[%s4068_s1 + $0x20] ss:$8 sps:$4 sm:$0xff]  }
  0x13   : > { %1953 = vmatpush1.bf16.msra.mxu1 %v2768_v7  ;;  %1911 = vmatprep.subr.bf16.mxu0 %v2769_v8  ;;  %v2786_v19 = vld [vmem:[%s4068_s1 + $0x130] ss:$8 sps:$4 sm:$0xff]   ;;  %v2789_v21 = vld [vmem:[%s4068_s1 + $0x124] ss:$8 sps:$4 sm:$0xff]   ;;  %v2792_v23 = vld [vmem:[%s4068_s1 + $0x120] ss:$8 sps:$4 sm:$0xff]  }
  0x14   : > { %1954 = vmatprep.subr.bf16.mxu1 %v2771_v9  ;;  %v2793_v24 = vld [vmem:[%s4068_s1 + $0x14] ss:$8 sps:$4 sm:$0xff]   ;;  %v2797_v26 = vld [vmem:[%s4068_s1 + $0x10] ss:$8 sps:$4 sm:$0xff]   ;;  %v2799_v28 = vld [vmem:[%s4068_s1 + $0x4] ss:$8 sps:$4 sm:$0xff]  }
  0x15   : > { %v2795_v25 = vld [vmem:[%s4068_s1 + $0x114] ss:$8 sps:$4 sm:$0xff]   ;;  %v2798_v27 = vld [vmem:[%s4068_s1 + $0x110] ss:$8 sps:$4 sm:$0xff]   ;;  %v2801_v29 = vld [vmem:[%s4068_s1 + $0x104] ss:$8 sps:$4 sm:$0xff]  }
  0x16   : > { %1912 = vmatpush1.bf16.msra.mxu0 %v2773_v10  ;;  %v2803_v30 = vld [vmem:[%s4068_s1] ss:$8 sps:$4 sm:$0xff]   ;;  %v2805_v32 = vld [vmem:[%s4068_s1 + $0xf4] ss:$8 sps:$4 sm:$0xff]   ;;  %v2809_v34 = vld [vmem:[%s4068_s1 + $0xf0] ss:$8 sps:$4 sm:$0xff]  }
  0x17   : > { %1955 = vmatpush1.bf16.msra.mxu1 %v2774_v11  ;;  %1913 = vmatprep.subr.bf16.mxu0 %v2775_v12  ;;  %v2804_v31 = vld [vmem:[%s4068_s1 + $0x100] ss:$8 sps:$4 sm:$0xff]   ;;  %v2807_v33 = vld [vmem:[%s4068_s1 + $0x1f4] ss:$8 sps:$4 sm:$0xff]   ;;  %v2810_v35 = vld [vmem:[%s4068_s1 + $0x1f0] ss:$8 sps:$4 sm:$0xff]  }
  0x18   : > { %1956 = vmatprep.subr.bf16.mxu1 %v2777_v13  ;;  %v2811_v36 = vld [vmem:[%s4068_s1 + $0xe4] ss:$8 sps:$4 sm:$0xff]   ;;  %s4076_s12 = smov (!%p231_p4, %s3159_s12), 1  ;;  %v2815_v38 = vld [vmem:[%s4068_s1 + $0xe0] ss:$8 sps:$4 sm:$0xff]  }
  0x19   : > { %v2813_v37 = vld [vmem:[%s4068_s1 + $0x1e4] ss:$8 sps:$4 sm:$0xff]   ;;  %v2816_v39 = vld [vmem:[%s4068_s1 + $0x1e0] ss:$8 sps:$4 sm:$0xff]   ;;  %v2817_v40 = vld [vmem:[%s4068_s1 + $0xd4] ss:$8 sps:$4 sm:$0xff]  }
  0x1a   : > { %1914 = vmatpush1.bf16.msra.mxu0 %v2779_v14  ;;  %s2729_s29 = sshll.u32 %s4076_s12, 7  ;;  %v2819_v41 = vld [vmem:[%s4068_s1 + $0x1d4] ss:$8 sps:$4 sm:$0xff]   ;;  %v2821_v42 = vld [vmem:[%s4068_s1 + $0xd0] ss:$8 sps:$4 sm:$0xff]   ;;  %s2730_s18 = sshll.u32 %s4076_s12, 4 }
  0x1b   : > { %1957 = vmatpush1.bf16.msra.mxu1 %v2780_v15  ;;  %1915 = vmatprep.subr.bf16.mxu0 %v2781_v16  ;;  %v2822_v43 = vld [vmem:[%s4068_s1 + $0x1d0] ss:$8 sps:$4 sm:$0xff]   ;;  %s3349_s11 = scalar_lea.vmem %s4067_s0, %s2729_s29  ;;  %v2823_v44 = vld [vmem:[%s4068_s1 + $0xc4] ss:$8 sps:$4 sm:$0xff]   ;;  %v2827_v46 = vld [vmem:[%s4068_s1 + $0xc0] ss:$8 sps:$4 sm:$0xff]   ;;  %s261_s21 = scalar_lea.vmem %s4070_s3, %s2730_s18 }
  0x1c   : > { %1958 = vmatprep.subr.bf16.mxu1 %v2783_v17  ;;  %v2825_v45 = vld [vmem:[%s4068_s1 + $0x1c4] ss:$8 sps:$4 sm:$0xff]   ;;  %v2828_v47 = vld [vmem:[%s4068_s1 + $0x1c0] ss:$8 sps:$4 sm:$0xff]   ;;  %v2829_v52 = vld [vmem:[%s4068_s1 + $0xb4] ss:$8 sps:$4 sm:$0xff]  }
  0x1d   : > { %v263_v48 = vld [vmem:[%s3349_s11] sm:$0xff]  ;;  %v264_v50 = vld [vmem:[%s3349_s11 + $0x8] sm:$0xff]  ;;  %v2831_v54 = vld [vmem:[%s4068_s1 + $0x1b4] ss:$8 sps:$4 sm:$0xff]  }
  0x1e   : > { %1916 = vmatpush1.bf16.msra.mxu0 %v2785_v18  ;;  %v271_v49 = vld [vmem:[%s3349_s11 + $0x40] sm:$0xff]  ;;  %v272_v51 = vld [vmem:[%s3349_s11 + $0x48] sm:$0xff]  ;;  %v2833_v56 = vld [vmem:[%s4068_s1 + $0xb0] ss:$8 sps:$4 sm:$0xff]  }
  0x1f   : > { %1959 = vmatpush1.bf16.msra.mxu1 %v2786_v19  ;;  %1917 = vmatprep.subr.bf16.mxu0 %v2787_v20  ;;  %v2454_v53 = vcombine.high %v263_v48, %v271_v49  ;;  %v2456_v55 = vcombine.high %v264_v50, %v272_v51  ;;  %v2834_v57 = vld [vmem:[%s4068_s1 + $0x1b0] ss:$8 sps:$4 sm:$0xff]   ;;  %v2835_v58 = vld [vmem:[%s4068_s1 + $0xa4] ss:$8 sps:$4 sm:$0xff]   ;;  %v2839_v60 = vld [vmem:[%s4068_s1 + $0xa0] ss:$8 sps:$4 sm:$0xff]   ;;  %v2453_v8 = vcombine.low %v263_v48, %v271_v49 }
  0x20   : > { %1960 = vmatprep.subr.bf16.mxu1 %v2789_v21  ;;  %v2837_v59 = vld [vmem:[%s4068_s1 + $0x1a4] ss:$8 sps:$4 sm:$0xff]   ;;  %v2840_v61 = vld [vmem:[%s4068_s1 + $0x1a0] ss:$8 sps:$4 sm:$0xff]   ;;  %v2841_v62 = vld [vmem:[%s4068_s1 + $0x94] ss:$8 sps:$4 sm:$0xff]   ;;  %v2455_v9 = vcombine.low %v264_v50, %v272_v51 }
  0x21   : > { %1939 = vmatprep.mubr.bf16.mxu0 %v2454_v53  ;;  %1982 = vmatprep.mubr.bf16.mxu1 %v2456_v55  ;;  %v2843_v63 = vld [vmem:[%s4068_s1 + $0x194] ss:$8 sps:$4 sm:$0xff]   ;;  %v2845_v0 = vld [vmem:[%s4068_s1 + $0x90] ss:$8 sps:$4 sm:$0xff]   ;;  %v2847_v2 = vld [vmem:[%s4068_s1 + $0x84] ss:$8 sps:$4 sm:$0xff]  }
  0x22   : > { %1918 = vmatpush1.bf16.msra.mxu0 %v2791_v22  ;;  %v2846_v1 = vld [vmem:[%s4068_s1 + $0x190] ss:$8 sps:$4 sm:$0xff]   ;;  %v2849_v3 = vld [vmem:[%s4068_s1 + $0x184] ss:$8 sps:$4 sm:$0xff]   ;;  %v2851_v4 = vld [vmem:[%s4068_s1 + $0x80] ss:$8 sps:$4 sm:$0xff]  }
  0x23   : > { %1961 = vmatpush1.bf16.msra.mxu1 %v2792_v23  ;;  %1919 = vmatprep.subr.bf16.mxu0 %v2793_v24  ;;  %v2852_v5 = vld [vmem:[%s4068_s1 + $0x180] ss:$8 sps:$4 sm:$0xff]   ;;  %v2855_v6 = vld [vmem:[%s4068_s1 + $0x274] ss:$8 sps:$4 sm:$0xff]   ;;  %v2853_v10 = vld [vmem:[%s4068_s1 + $0x270] ss:$8 sps:$4 sm:$0xff]  }
  0x24   : > { %1962 = vmatprep.subr.bf16.mxu1 %v2795_v25  ;;  %v2858_v7 = vld [vmem:[%s4068_s1 + $0x374] ss:$8 sps:$4 sm:$0xff]   ;;  %v2856_v11 = vld [vmem:[%s4068_s1 + $0x370] ss:$8 sps:$4 sm:$0xff]   ;;  %v2861_v12 = vld [vmem:[%s4068_s1 + $0x264] ss:$8 sps:$4 sm:$0xff]  }
  0x25   : > { %v2864_v13 = vld [vmem:[%s4068_s1 + $0x364] ss:$8 sps:$4 sm:$0xff]   ;;  %v2859_v14 = vld [vmem:[%s4068_s1 + $0x260] ss:$8 sps:$4 sm:$0xff]   ;;  %v2867_v16 = vld [vmem:[%s4068_s1 + $0x254] ss:$8 sps:$4 sm:$0xff]  }
  0x26   : > { %1920 = vmatpush1.bf16.msra.mxu0 %v2797_v26  ;;  %v2862_v15 = vld [vmem:[%s4068_s1 + $0x360] ss:$8 sps:$4 sm:$0xff]   ;;  %v2870_v17 = vld [vmem:[%s4068_s1 + $0x354] ss:$8 sps:$4 sm:$0xff]   ;;  %v2865_v18 = vld [vmem:[%s4068_s1 + $0x250] ss:$8 sps:$4 sm:$0xff]  }
  0x27   : > { %1963 = vmatpush1.bf16.msra.mxu1 %v2798_v27  ;;  %1921 = vmatprep.subr.bf16.mxu0 %v2799_v28  ;;  %v2868_v19 = vld [vmem:[%s4068_s1 + $0x350] ss:$8 sps:$4 sm:$0xff]   ;;  %v2873_v20 = vld [vmem:[%s4068_s1 + $0x244] ss:$8 sps:$4 sm:$0xff]   ;;  %v2871_v22 = vld [vmem:[%s4068_s1 + $0x240] ss:$8 sps:$4 sm:$0xff]  }
  0x28   : > { %1964 = vmatprep.subr.bf16.mxu1 %v2801_v29  ;;  %v2876_v21 = vld [vmem:[%s4068_s1 + $0x344] ss:$8 sps:$4 sm:$0xff]   ;;  %v2874_v23 = vld [vmem:[%s4068_s1 + $0x340] ss:$8 sps:$4 sm:$0xff]   ;;  %v2879_v24 = vld [vmem:[%s4068_s1 + $0x234] ss:$8 sps:$4 sm:$0xff]  }
  0x29   : > { %v2882_v25 = vld [vmem:[%s4068_s1 + $0x334] ss:$8 sps:$4 sm:$0xff]   ;;  %v2877_v26 = vld [vmem:[%s4068_s1 + $0x230] ss:$8 sps:$4 sm:$0xff]   ;;  %v2885_v28 = vld [vmem:[%s4068_s1 + $0x224] ss:$8 sps:$4 sm:$0xff]  }
  0x2a   : > { %1922 = vmatpush1.bf16.msra.mxu0 %v2803_v30  ;;  %v2880_v27 = vld [vmem:[%s4068_s1 + $0x330] ss:$8 sps:$4 sm:$0xff]   ;;  %v2888_v29 = vld [vmem:[%s4068_s1 + $0x324] ss:$8 sps:$4 sm:$0xff]   ;;  %v2883_v30 = vld [vmem:[%s4068_s1 + $0x220] ss:$8 sps:$4 sm:$0xff]  }
  0x2b   : > { %1965 = vmatpush1.bf16.msra.mxu1 %v2804_v31  ;;  %1923 = vmatprep.subr.bf16.mxu0 %v2805_v32  ;;  %v2886_v31 = vld [vmem:[%s4068_s1 + $0x320] ss:$8 sps:$4 sm:$0xff]   ;;  %v2891_v32 = vld [vmem:[%s4068_s1 + $0x214] ss:$8 sps:$4 sm:$0xff]   ;;  %v2901_v48 = vld [vmem:[%s4068_s1 + $0x2f0] ss:$8 sps:$4 sm:$0xff]  }
  0x2c   : > { %1966 = vmatprep.subr.bf16.mxu1 %v2807_v33  ;;  %v2894_v33 = vld [vmem:[%s4068_s1 + $0x314] ss:$8 sps:$4 sm:$0xff]   ;;  %v2904_v49 = vld [vmem:[%s4068_s1 + $0x3f0] ss:$8 sps:$4 sm:$0xff]   ;;  %v2909_v50 = vld [vmem:[%s4068_s1 + $0x2e4] ss:$8 sps:$4 sm:$0xff]  }
  0x2d   : > { %v2912_v51 = vld [vmem:[%s4068_s1 + $0x3e4] ss:$8 sps:$4 sm:$0xff]   ;;  %v2910_v53 = vld [vmem:[%s4068_s1 + $0x3e0] ss:$8 sps:$4 sm:$0xff]   ;;  %v2918_v55 = vld [vmem:[%s4068_s1 + $0x3d4] ss:$8 sps:$4 sm:$0xff]  }
  0x2e   : > { %1924 = vmatpush2.bf16.msra.mxu0 %v2809_v34  ;;  %v2889_v34 = vld [vmem:[%s4068_s1 + $0x210] ss:$8 sps:$4 sm:$0xff]  }
  0x2f   : > { %1967 = vmatpush2.bf16.msra.mxu1 %v2810_v35  ;;  %1925 = vmatprep.subr.bf16.mxu0 %v2811_v36  ;;  %v2892_v35 = vld [vmem:[%s4068_s1 + $0x310] ss:$8 sps:$4 sm:$0xff]  }
  0x30   : > { %1968 = vmatprep.subr.bf16.mxu1 %v2813_v37  ;;  %v3500_v36 = vld [vmem:[%s3349_s11 + $0x10] sm:$0xff] }
  0x31   : > { %v3503_v37 = vld [vmem:[%s3349_s11 + $0x50] sm:$0xff] }
  0x32   : > { %1926 = vmatpush2.bf16.msra.mxu0 %v2815_v38  ;;  %v3506_v38 = vld [vmem:[%s3349_s11 + $0x18] sm:$0xff] }
  0x33   : > { %1969 = vmatpush2.bf16.msra.mxu1 %v2816_v39  ;;  %1927 = vmatprep.subr.bf16.mxu0 %v2817_v40  ;;  %v3509_v39 = vld [vmem:[%s3349_s11 + $0x58] sm:$0xff]  ;;  %v2897_v40 = vld [vmem:[%s4068_s1 + $0x204] ss:$8 sps:$4 sm:$0xff]  }
  0x34   : > { %1970 = vmatprep.subr.bf16.mxu1 %v2819_v41  ;;  %v2458_v41 = vcombine.high %v3500_v36, %v3503_v37 }
  0x36   : > { %1928 = vmatpush2.bf16.msra.mxu0 %v2821_v42  ;;  %v2900_v42 = vld [vmem:[%s4068_s1 + $0x304] ss:$8 sps:$4 sm:$0xff]  }
  0x37   : > { %1971 = vmatpush2.bf16.msra.mxu1 %v2822_v43  ;;  %1929 = vmatprep.subr.bf16.mxu0 %v2823_v44  ;;  %v2460_v43 = vcombine.high %v3506_v38, %v3509_v39  ;;  %v2895_v44 = vld [vmem:[%s4068_s1 + $0x200] ss:$8 sps:$4 sm:$0xff]  }
  0x38   : > { %1972 = vmatprep.subr.bf16.mxu1 %v2825_v45  ;;  %v2898_v45 = vld [vmem:[%s4068_s1 + $0x300] ss:$8 sps:$4 sm:$0xff]  }
  0x3a   : > { %1930 = vmatpush2.bf16.msra.mxu0 %v2827_v46  ;;  %v2903_v46 = vld [vmem:[%s4068_s1 + $0x2f4] ss:$8 sps:$4 sm:$0xff]  }
  0x3b   : > { %1973 = vmatpush2.bf16.msra.mxu1 %v2828_v47  ;;  %1931 = vmatprep.subr.bf16.mxu0 %v2829_v52  ;;  %v2906_v47 = vld [vmem:[%s4068_s1 + $0x3f4] ss:$8 sps:$4 sm:$0xff]   ;;  %v2907_v52 = vld [vmem:[%s4068_s1 + $0x2e0] ss:$8 sps:$4 sm:$0xff]  }
  0x3c   : > { %1974 = vmatprep.subr.bf16.mxu1 %v2831_v54  ;;  %v2915_v54 = vld [vmem:[%s4068_s1 + $0x2d4] ss:$8 sps:$4 sm:$0xff]  }
  0x3e   : > { %1932 = vmatpush2.bf16.msra.mxu0 %v2833_v56  ;;  %v2913_v56 = vld [vmem:[%s4068_s1 + $0x2d0] ss:$8 sps:$4 sm:$0xff]  }
  0x3f   : > { %1975 = vmatpush2.bf16.msra.mxu1 %v2834_v57  ;;  %1933 = vmatprep.subr.bf16.mxu0 %v2835_v58  ;;  %v2916_v57 = vld [vmem:[%s4068_s1 + $0x3d0] ss:$8 sps:$4 sm:$0xff]   ;;  %v2921_v58 = vld [vmem:[%s4068_s1 + $0x2c4] ss:$8 sps:$4 sm:$0xff]  }
  0x40   : > { %1976 = vmatprep.subr.bf16.mxu1 %v2837_v59  ;;  %v2924_v59 = vld [vmem:[%s4068_s1 + $0x3c4] ss:$8 sps:$4 sm:$0xff]  }
  0x42   : > { %1934 = vmatpush2.bf16.msra.mxu0 %v2839_v60  ;;  %v2919_v60 = vld [vmem:[%s4068_s1 + $0x2c0] ss:$8 sps:$4 sm:$0xff]  }
  0x43   : > { %1977 = vmatpush2.bf16.msra.mxu1 %v2840_v61  ;;  %1935 = vmatprep.subr.bf16.mxu0 %v2841_v62  ;;  %v2922_v61 = vld [vmem:[%s4068_s1 + $0x3c0] ss:$8 sps:$4 sm:$0xff]   ;;  %v2927_v62 = vld [vmem:[%s4068_s1 + $0x2b4] ss:$8 sps:$4 sm:$0xff]  }
  0x44   : > { %1978 = vmatprep.subr.bf16.mxu1 %v2843_v63  ;;  %v2930_v63 = vld [vmem:[%s4068_s1 + $0x3b4] ss:$8 sps:$4 sm:$0xff]  }
  0x46   : > { %1936 = vmatpush2.bf16.msra.mxu0 %v2845_v0  ;;  %v2925_v0 = vld [vmem:[%s4068_s1 + $0x2b0] ss:$8 sps:$4 sm:$0xff]  }
  0x47   : > { %1979 = vmatpush2.bf16.msra.mxu1 %v2846_v1  ;;  %1937 = vmatprep.subr.bf16.mxu0 %v2847_v2  ;;  %v2928_v1 = vld [vmem:[%s4068_s1 + $0x3b0] ss:$8 sps:$4 sm:$0xff]   ;;  %v2933_v2 = vld [vmem:[%s4068_s1 + $0x2a4] ss:$8 sps:$4 sm:$0xff]  }
  0x48   : > { %1980 = vmatprep.subr.bf16.mxu1 %v2849_v3  ;;  %v2936_v3 = vld [vmem:[%s4068_s1 + $0x3a4] ss:$8 sps:$4 sm:$0xff]  }
  0x4a   : > { %1938 = vmatpush2.bf16.msra.mxu0 %v2851_v4  ;;  %v2931_v4 = vld [vmem:[%s4068_s1 + $0x2a0] ss:$8 sps:$4 sm:$0xff]  }
  0x4b   : > { %1981 = vmatpush2.bf16.msra.mxu1 %v2852_v5  ;;  %1993 = vmatprep.subr.bf16.mxu0 %v2855_v6  ;;  %v2934_v5 = vld [vmem:[%s4068_s1 + $0x3a0] ss:$8 sps:$4 sm:$0xff]   ;;  %v2939_v6 = vld [vmem:[%s4068_s1 + $0x294] ss:$8 sps:$4 sm:$0xff]  }
  0x4c   : > { %2036 = vmatprep.subr.bf16.mxu1 %v2858_v7  ;;  %v2942_v7 = vld [vmem:[%s4068_s1 + $0x394] ss:$8 sps:$4 sm:$0xff]  }
  0x4d   : > { %1940 = vmatmul.mubr.bf16.vlgmr.msra.gmra.mxu0 %v2453_v8  ;;  %v2937_v8 = vld [vmem:[%s4068_s1 + $0x290] ss:$8 sps:$4 sm:$0xff]  }
  0x4e   : > { %1983 = vmatmul.mubr.bf16.vlgmr.msra.gmra.mxu1 %v2455_v9  ;;  %1994 = vmatpush1.bf16.msra.mxu0 %v2853_v10  ;;  %v2940_v9 = vld [vmem:[%s4068_s1 + $0x390] ss:$8 sps:$4 sm:$0xff]   ;;  %v2945_v10 = vld [vmem:[%s4068_s1 + $0x284] ss:$8 sps:$4 sm:$0xff]  }
  0x4f   : > { %2037 = vmatpush1.bf16.msra.mxu1 %v2856_v11  ;;  %1995 = vmatprep.subr.bf16.mxu0 %v2861_v12  ;;  %v2948_v11 = vld [vmem:[%s4068_s1 + $0x384] ss:$8 sps:$4 sm:$0xff]   ;;  %v2943_v12 = vld [vmem:[%s4068_s1 + $0x280] ss:$8 sps:$4 sm:$0xff]  }
  0x50   : > { %2038 = vmatprep.subr.bf16.mxu1 %v2864_v13  ;;  %2025 = vmatprep.mubr.bf16.mxu0 %v2458_v41  ;;  %v2946_v13 = vld [vmem:[%s4068_s1 + $0x380] ss:$8 sps:$4 sm:$0xff]   ;;  %v2976_v41 = vld [vmem:[%s4068_s1 + $0x530] ss:$8 sps:$4 sm:$0xff]  }
  0x51   : > { %2068 = vmatprep.mubr.bf16.mxu1 %v2460_v43  ;;  %v2984_v43 = vld [vmem:[%s4068_s1 + $0x524] ss:$8 sps:$4 sm:$0xff]  }
  0x52   : > { %1996 = vmatpush1.bf16.msra.mxu0 %v2859_v14  ;;  %v2951_v14 = vld [vmem:[%s4068_s1 + $0x474] ss:$8 sps:$4 sm:$0xff]  }
  0x53   : > { %2039 = vmatpush1.bf16.msra.mxu1 %v2862_v15  ;;  %1997 = vmatprep.subr.bf16.mxu0 %v2867_v16  ;;  %v2954_v15 = vld [vmem:[%s4068_s1 + $0x574] ss:$8 sps:$4 sm:$0xff]   ;;  %v2457_v16 = vcombine.low %v3500_v36, %v3503_v37  ;;  %v2967_v36 = vld [vmem:[%s4068_s1 + $0x440] ss:$8 sps:$4 sm:$0xff]  }
  0x54   : > { %2040 = vmatprep.subr.bf16.mxu1 %v2870_v17  ;;  %v2459_v17 = vcombine.low %v3506_v38, %v3509_v39  ;;  %v2970_v37 = vld [vmem:[%s4068_s1 + $0x540] ss:$8 sps:$4 sm:$0xff]   ;;  %v2975_v38 = vld [vmem:[%s4068_s1 + $0x434] ss:$8 sps:$4 sm:$0xff]  }
  0x55   : > { %v2978_v39 = vld [vmem:[%s4068_s1 + $0x534] ss:$8 sps:$4 sm:$0xff]  }
  0x56   : > { %1998 = vmatpush1.bf16.msra.mxu0 %v2865_v18  ;;  %v2949_v18 = vld [vmem:[%s4068_s1 + $0x470] ss:$8 sps:$4 sm:$0xff]  }
  0x57   : > { %2041 = vmatpush1.bf16.msra.mxu1 %v2868_v19  ;;  %1999 = vmatprep.subr.bf16.mxu0 %v2873_v20  ;;  %v2952_v19 = vld [vmem:[%s4068_s1 + $0x570] ss:$8 sps:$4 sm:$0xff]   ;;  %v2957_v20 = vld [vmem:[%s4068_s1 + $0x464] ss:$8 sps:$4 sm:$0xff]  }
  0x58   : > { %2042 = vmatprep.subr.bf16.mxu1 %v2876_v21  ;;  %v2960_v21 = vld [vmem:[%s4068_s1 + $0x564] ss:$8 sps:$4 sm:$0xff]  }
  0x5a   : > { %2000 = vmatpush1.bf16.msra.mxu0 %v2871_v22  ;;  %v2955_v22 = vld [vmem:[%s4068_s1 + $0x460] ss:$8 sps:$4 sm:$0xff]  }
  0x5b   : > { %2043 = vmatpush1.bf16.msra.mxu1 %v2874_v23  ;;  %2001 = vmatprep.subr.bf16.mxu0 %v2879_v24  ;;  %v2958_v23 = vld [vmem:[%s4068_s1 + $0x560] ss:$8 sps:$4 sm:$0xff]  }
  0x5c   : > { %2044 = vmatprep.subr.bf16.mxu1 %v2882_v25  ;;  %v3652_v24 = vld [vmem:[%s3349_s11 + $0x20] sm:$0xff] }
  0x5d   : > { %v3655_v25 = vld [vmem:[%s3349_s11 + $0x60] sm:$0xff] }
  0x5e   : > { %2002 = vmatpush1.bf16.msra.mxu0 %v2877_v26  ;;  %v3658_v26 = vld [vmem:[%s3349_s11 + $0x28] sm:$0xff] }
  0x5f   : > { %2045 = vmatpush1.bf16.msra.mxu1 %v2880_v27  ;;  %2003 = vmatprep.subr.bf16.mxu0 %v2885_v28  ;;  %v3661_v27 = vld [vmem:[%s3349_s11 + $0x68] sm:$0xff]  ;;  %v2963_v28 = vld [vmem:[%s4068_s1 + $0x454] ss:$8 sps:$4 sm:$0xff]  }
  0x60   : > { %2046 = vmatprep.subr.bf16.mxu1 %v2888_v29  ;;  %v2462_v29 = vcombine.high %v3652_v24, %v3655_v25 }
  0x62   : > { %2004 = vmatpush1.bf16.msra.mxu0 %v2883_v30  ;;  %v2966_v30 = vld [vmem:[%s4068_s1 + $0x554] ss:$8 sps:$4 sm:$0xff]  }
  0x63   : > { %2047 = vmatpush1.bf16.msra.mxu1 %v2886_v31  ;;  %2005 = vmatprep.subr.bf16.mxu0 %v2891_v32  ;;  %v2464_v31 = vcombine.high %v3658_v26, %v3661_v27  ;;  %v2961_v32 = vld [vmem:[%s4068_s1 + $0x450] ss:$8 sps:$4 sm:$0xff]  }
  0x64   : > { %2048 = vmatprep.subr.bf16.mxu1 %v2894_v33  ;;  %v2964_v33 = vld [vmem:[%s4068_s1 + $0x550] ss:$8 sps:$4 sm:$0xff]  }
  0x66   : > { %2006 = vmatpush1.bf16.msra.mxu0 %v2889_v34  ;;  %v2969_v34 = vld [vmem:[%s4068_s1 + $0x444] ss:$8 sps:$4 sm:$0xff]  }
  0x67   : > { %2049 = vmatpush1.bf16.msra.mxu1 %v2892_v35  ;;  %2007 = vmatprep.subr.bf16.mxu0 %v2897_v40  ;;  %v2972_v35 = vld [vmem:[%s4068_s1 + $0x544] ss:$8 sps:$4 sm:$0xff]   ;;  %v2973_v40 = vld [vmem:[%s4068_s1 + $0x430] ss:$8 sps:$4 sm:$0xff]  }
  0x68   : > { %2050 = vmatprep.subr.bf16.mxu1 %v2900_v42  ;;  %v2981_v42 = vld [vmem:[%s4068_s1 + $0x424] ss:$8 sps:$4 sm:$0xff]  }
  0x6a   : > { %2008 = vmatpush1.bf16.msra.mxu0 %v2895_v44  ;;  %v2979_v44 = vld [vmem:[%s4068_s1 + $0x420] ss:$8 sps:$4 sm:$0xff]  }
  0x6b   : > { %2051 = vmatpush1.bf16.msra.mxu1 %v2898_v45  ;;  %2009 = vmatprep.subr.bf16.mxu0 %v2903_v46  ;;  %v2982_v45 = vld [vmem:[%s4068_s1 + $0x520] ss:$8 sps:$4 sm:$0xff]   ;;  %v2987_v46 = vld [vmem:[%s4068_s1 + $0x414] ss:$8 sps:$4 sm:$0xff]  }
  0x6c   : > { %2052 = vmatprep.subr.bf16.mxu1 %v2906_v47  ;;  %v2990_v47 = vld [vmem:[%s4068_s1 + $0x514] ss:$8 sps:$4 sm:$0xff]  }
  0x6e   : > { %2010 = vmatpush2.bf16.msra.mxu0 %v2901_v48  ;;  %v2985_v48 = vld [vmem:[%s4068_s1 + $0x410] ss:$8 sps:$4 sm:$0xff]  }
  0x6f   : > { %2053 = vmatpush2.bf16.msra.mxu1 %v2904_v49  ;;  %2011 = vmatprep.subr.bf16.mxu0 %v2909_v50  ;;  %v2988_v49 = vld [vmem:[%s4068_s1 + $0x510] ss:$8 sps:$4 sm:$0xff]   ;;  %v2993_v50 = vld [vmem:[%s4068_s1 + $0x404] ss:$8 sps:$4 sm:$0xff]  }
  0x70   : > { %2054 = vmatprep.subr.bf16.mxu1 %v2912_v51  ;;  %v2996_v51 = vld [vmem:[%s4068_s1 + $0x504] ss:$8 sps:$4 sm:$0xff]  }
  0x72   : > { %2012 = vmatpush2.bf16.msra.mxu0 %v2907_v52  ;;  %v2991_v52 = vld [vmem:[%s4068_s1 + $0x400] ss:$8 sps:$4 sm:$0xff]  }
  0x73   : > { %2055 = vmatpush2.bf16.msra.mxu1 %v2910_v53  ;;  %2013 = vmatprep.subr.bf16.mxu0 %v2915_v54  ;;  %v2994_v53 = vld [vmem:[%s4068_s1 + $0x500] ss:$8 sps:$4 sm:$0xff]   ;;  %v2999_v54 = vld [vmem:[%s4068_s1 + $0x4f4] ss:$8 sps:$4 sm:$0xff]  }
  0x74   : > { %2056 = vmatprep.subr.bf16.mxu1 %v2918_v55  ;;  %v3002_v55 = vld [vmem:[%s4068_s1 + $0x5f4] ss:$8 sps:$4 sm:$0xff]  }
  0x76   : > { %2014 = vmatpush2.bf16.msra.mxu0 %v2913_v56  ;;  %v2997_v56 = vld [vmem:[%s4068_s1 + $0x4f0] ss:$8 sps:$4 sm:$0xff]  }
  0x77   : > { %2057 = vmatpush2.bf16.msra.mxu1 %v2916_v57  ;;  %2015 = vmatprep.subr.bf16.mxu0 %v2921_v58  ;;  %v3000_v57 = vld [vmem:[%s4068_s1 + $0x5f0] ss:$8 sps:$4 sm:$0xff]   ;;  %v3005_v58 = vld [vmem:[%s4068_s1 + $0x4e4] ss:$8 sps:$4 sm:$0xff]  }
  0x78   : > { %2058 = vmatprep.subr.bf16.mxu1 %v2924_v59  ;;  %v3008_v59 = vld [vmem:[%s4068_s1 + $0x5e4] ss:$8 sps:$4 sm:$0xff]  }
  0x7a   : > { %2016 = vmatpush2.bf16.msra.mxu0 %v2919_v60  ;;  %v3003_v60 = vld [vmem:[%s4068_s1 + $0x4e0] ss:$8 sps:$4 sm:$0xff]  }
  0x7b   : > { %2059 = vmatpush2.bf16.msra.mxu1 %v2922_v61  ;;  %2017 = vmatprep.subr.bf16.mxu0 %v2927_v62  ;;  %v3006_v61 = vld [vmem:[%s4068_s1 + $0x5e0] ss:$8 sps:$4 sm:$0xff]   ;;  %v3011_v62 = vld [vmem:[%s4068_s1 + $0x4d4] ss:$8 sps:$4 sm:$0xff]  }
  0x7c   : > { %2060 = vmatprep.subr.bf16.mxu1 %v2930_v63  ;;  %v3014_v63 = vld [vmem:[%s4068_s1 + $0x5d4] ss:$8 sps:$4 sm:$0xff]  }
  0x7e   : > { %2018 = vmatpush2.bf16.msra.mxu0 %v2925_v0  ;;  %v3009_v0 = vld [vmem:[%s4068_s1 + $0x4d0] ss:$8 sps:$4 sm:$0xff]  }
  0x7f   : > { %2061 = vmatpush2.bf16.msra.mxu1 %v2928_v1  ;;  %2019 = vmatprep.subr.bf16.mxu0 %v2933_v2  ;;  %v3012_v1 = vld [vmem:[%s4068_s1 + $0x5d0] ss:$8 sps:$4 sm:$0xff]   ;;  %v3017_v2 = vld [vmem:[%s4068_s1 + $0x4c4] ss:$8 sps:$4 sm:$0xff]  }
  0x80   : > { %2062 = vmatprep.subr.bf16.mxu1 %v2936_v3  ;;  %v3020_v3 = vld [vmem:[%s4068_s1 + $0x5c4] ss:$8 sps:$4 sm:$0xff]  }
  0x82   : > { %2020 = vmatpush2.bf16.msra.mxu0 %v2931_v4  ;;  %v3015_v4 = vld [vmem:[%s4068_s1 + $0x4c0] ss:$8 sps:$4 sm:$0xff]  }
  0x83   : > { %2063 = vmatpush2.bf16.msra.mxu1 %v2934_v5  ;;  %2021 = vmatprep.subr.bf16.mxu0 %v2939_v6  ;;  %v3018_v5 = vld [vmem:[%s4068_s1 + $0x5c0] ss:$8 sps:$4 sm:$0xff]   ;;  %v3023_v6 = vld [vmem:[%s4068_s1 + $0x4b4] ss:$8 sps:$4 sm:$0xff]  }
  0x84   : > { %2064 = vmatprep.subr.bf16.mxu1 %v2942_v7  ;;  %v3026_v7 = vld [vmem:[%s4068_s1 + $0x5b4] ss:$8 sps:$4 sm:$0xff]  }
  0x86   : > { %2022 = vmatpush2.bf16.msra.mxu0 %v2937_v8  ;;  %v3021_v8 = vld [vmem:[%s4068_s1 + $0x4b0] ss:$8 sps:$4 sm:$0xff]  }
  0x87   : > { %2065 = vmatpush2.bf16.msra.mxu1 %v2940_v9  ;;  %2023 = vmatprep.subr.bf16.mxu0 %v2945_v10  ;;  %v3024_v9 = vld [vmem:[%s4068_s1 + $0x5b0] ss:$8 sps:$4 sm:$0xff]   ;;  %v3029_v10 = vld [vmem:[%s4068_s1 + $0x4a4] ss:$8 sps:$4 sm:$0xff]  }
  0x88   : > { %2066 = vmatprep.subr.bf16.mxu1 %v2948_v11  ;;  %v3032_v11 = vld [vmem:[%s4068_s1 + $0x5a4] ss:$8 sps:$4 sm:$0xff]  }
  0x8a   : > { %2024 = vmatpush2.bf16.msra.mxu0 %v2943_v12  ;;  %v3027_v12 = vld [vmem:[%s4068_s1 + $0x4a0] ss:$8 sps:$4 sm:$0xff]  }
  0x8b   : > { %2067 = vmatpush2.bf16.msra.mxu1 %v2946_v13  ;;  %2079 = vmatprep.subr.bf16.mxu0 %v2951_v14  ;;  %v3030_v13 = vld [vmem:[%s4068_s1 + $0x5a0] ss:$8 sps:$4 sm:$0xff]   ;;  %v3035_v14 = vld [vmem:[%s4068_s1 + $0x494] ss:$8 sps:$4 sm:$0xff]  }
  0x8c   : > { %2122 = vmatprep.subr.bf16.mxu1 %v2954_v15  ;;  %v3038_v15 = vld [vmem:[%s4068_s1 + $0x594] ss:$8 sps:$4 sm:$0xff]  }
  0x8d   : > { %2026 = vmatmul.mubr.bf16.vlgmr.msra.gmra.mxu0 %v2457_v16  ;;  %v3033_v16 = vld [vmem:[%s4068_s1 + $0x490] ss:$8 sps:$4 sm:$0xff]  }
  0x8e   : > { %2069 = vmatmul.mubr.bf16.vlgmr.msra.gmra.mxu1 %v2459_v17  ;;  %2080 = vmatpush1.bf16.msra.mxu0 %v2949_v18  ;;  %v3036_v17 = vld [vmem:[%s4068_s1 + $0x590] ss:$8 sps:$4 sm:$0xff]   ;;  %v3041_v18 = vld [vmem:[%s4068_s1 + $0x484] ss:$8 sps:$4 sm:$0xff]  }
  0x8f   : > { %2123 = vmatpush1.bf16.msra.mxu1 %v2952_v19  ;;  %2081 = vmatprep.subr.bf16.mxu0 %v2957_v20  ;;  %v3044_v19 = vld [vmem:[%s4068_s1 + $0x584] ss:$8 sps:$4 sm:$0xff]   ;;  %v3039_v20 = vld [vmem:[%s4068_s1 + $0x480] ss:$8 sps:$4 sm:$0xff]  }
  0x90   : > { %2124 = vmatprep.subr.bf16.mxu1 %v2960_v21  ;;  %2111 = vmatprep.mubr.bf16.mxu0 %v2462_v29  ;;  %v3042_v21 = vld [vmem:[%s4068_s1 + $0x580] ss:$8 sps:$4 sm:$0xff]   ;;  %v2461_v29 = vcombine.low %v3652_v24, %v3655_v25  ;;  %v3053_v24 = vld [vmem:[%s4068_s1 + $0x664] ss:$8 sps:$4 sm:$0xff]  }
  0x91   : > { %2154 = vmatprep.mubr.bf16.mxu1 %v2464_v31  ;;  %v3849_v31 = vld [vmem:[%s3349_s11 + $0x70] sm:$0xff]  ;;  %v3056_v25 = vld [vmem:[%s4068_s1 + $0x764] ss:$8 sps:$4 sm:$0xff]  }
  0x92   : > { %2082 = vmatpush1.bf16.msra.mxu0 %v2955_v22  ;;  %v3047_v22 = vld [vmem:[%s4068_s1 + $0x674] ss:$8 sps:$4 sm:$0xff]  }
  0x93   : > { %2125 = vmatpush1.bf16.msra.mxu1 %v2958_v23  ;;  %2083 = vmatprep.subr.bf16.mxu0 %v2963_v28  ;;  %v3050_v23 = vld [vmem:[%s4068_s1 + $0x774] ss:$8 sps:$4 sm:$0xff]  }
  0x94   : > { %2126 = vmatprep.subr.bf16.mxu1 %v2966_v30  ;;  %v3842_v28 = vld [vmem:[%s3349_s11 + $0x30] sm:$0xff]  ;;  %v2463_v30 = vcombine.low %v3658_v26, %v3661_v27 }
  0x95   : > { %v2466_v26 = vcombine.high %v3842_v28, %v3849_v31 }
  0x96   : > { %2084 = vmatpush1.bf16.msra.mxu0 %v2961_v32  ;;  %v3852_v32 = vld [vmem:[%s3349_s11 + $0x38] sm:$0xff] }
  0x97   : > { %2127 = vmatpush1.bf16.msra.mxu1 %v2964_v33  ;;  %2085 = vmatprep.subr.bf16.mxu0 %v2969_v34  ;;  %v3855_v33 = vld [vmem:[%s3349_s11 + $0x78] sm:$0xff] }
  0x98   : > { %2128 = vmatprep.subr.bf16.mxu1 %v2972_v35  ;;  %v3045_v34 = vld [vmem:[%s4068_s1 + $0x670] ss:$8 sps:$4 sm:$0xff]   ;;  %v2468_v27 = vcombine.high %v3852_v32, %v3855_v33 }
  0x99   : > { %v3048_v35 = vld [vmem:[%s4068_s1 + $0x770] ss:$8 sps:$4 sm:$0xff]  }
  0x9a   : > { %2086 = vmatpush1.bf16.msra.mxu0 %v2967_v36  ;;  %v3051_v36 = vld [vmem:[%s4068_s1 + $0x660] ss:$8 sps:$4 sm:$0xff]  }
  0x9b   : > { %2129 = vmatpush1.bf16.msra.mxu1 %v2970_v37  ;;  %2087 = vmatprep.subr.bf16.mxu0 %v2975_v38  ;;  %v3054_v37 = vld [vmem:[%s4068_s1 + $0x760] ss:$8 sps:$4 sm:$0xff]   ;;  %v3059_v38 = vld [vmem:[%s4068_s1 + $0x654] ss:$8 sps:$4 sm:$0xff]  }
  0x9c   : > { %2130 = vmatprep.subr.bf16.mxu1 %v2978_v39  ;;  %v3062_v39 = vld [vmem:[%s4068_s1 + $0x754] ss:$8 sps:$4 sm:$0xff]  }
  0x9e   : > { %2088 = vmatpush1.bf16.msra.mxu0 %v2973_v40  ;;  %v3057_v40 = vld [vmem:[%s4068_s1 + $0x650] ss:$8 sps:$4 sm:$0xff]  }
  0x9f   : > { %2131 = vmatpush1.bf16.msra.mxu1 %v2976_v41  ;;  %2089 = vmatprep.subr.bf16.mxu0 %v2981_v42  ;;  %v3060_v41 = vld [vmem:[%s4068_s1 + $0x750] ss:$8 sps:$4 sm:$0xff]   ;;  %v3065_v42 = vld [vmem:[%s4068_s1 + $0x644] ss:$8 sps:$4 sm:$0xff]  }
  0xa0   : > { %2132 = vmatprep.subr.bf16.mxu1 %v2984_v43  ;;  %v3068_v43 = vld [vmem:[%s4068_s1 + $0x744] ss:$8 sps:$4 sm:$0xff]  }
  0xa2   : > { %2090 = vmatpush1.bf16.msra.mxu0 %v2979_v44  ;;  %v3063_v44 = vld [vmem:[%s4068_s1 + $0x640] ss:$8 sps:$4 sm:$0xff]  }
  0xa3   : > { %2133 = vmatpush1.bf16.msra.mxu1 %v2982_v45  ;;  %2091 = vmatprep.subr.bf16.mxu0 %v2987_v46  ;;  %v3066_v45 = vld [vmem:[%s4068_s1 + $0x740] ss:$8 sps:$4 sm:$0xff]   ;;  %v3071_v46 = vld [vmem:[%s4068_s1 + $0x634] ss:$8 sps:$4 sm:$0xff]  }
  0xa4   : > { %2134 = vmatprep.subr.bf16.mxu1 %v2990_v47  ;;  %v3074_v47 = vld [vmem:[%s4068_s1 + $0x734] ss:$8 sps:$4 sm:$0xff]  }
  0xa6   : > { %2092 = vmatpush1.bf16.msra.mxu0 %v2985_v48  ;;  %v3069_v48 = vld [vmem:[%s4068_s1 + $0x630] ss:$8 sps:$4 sm:$0xff]  }
  0xa7   : > { %2135 = vmatpush1.bf16.msra.mxu1 %v2988_v49  ;;  %2093 = vmatprep.subr.bf16.mxu0 %v2993_v50  ;;  %v3072_v49 = vld [vmem:[%s4068_s1 + $0x730] ss:$8 sps:$4 sm:$0xff]   ;;  %v3077_v50 = vld [vmem:[%s4068_s1 + $0x624] ss:$8 sps:$4 sm:$0xff]  }
  0xa8   : > { %2136 = vmatprep.subr.bf16.mxu1 %v2996_v51  ;;  %v3080_v51 = vld [vmem:[%s4068_s1 + $0x724] ss:$8 sps:$4 sm:$0xff]  }
  0xaa   : > { %2094 = vmatpush1.bf16.msra.mxu0 %v2991_v52  ;;  %v3075_v52 = vld [vmem:[%s4068_s1 + $0x620] ss:$8 sps:$4 sm:$0xff]  }
  0xab   : > { %2137 = vmatpush1.bf16.msra.mxu1 %v2994_v53  ;;  %2095 = vmatprep.subr.bf16.mxu0 %v2999_v54  ;;  %v3078_v53 = vld [vmem:[%s4068_s1 + $0x720] ss:$8 sps:$4 sm:$0xff]   ;;  %v3083_v54 = vld [vmem:[%s4068_s1 + $0x614] ss:$8 sps:$4 sm:$0xff]  }
  0xac   : > { %2138 = vmatprep.subr.bf16.mxu1 %v3002_v55  ;;  %v3086_v55 = vld [vmem:[%s4068_s1 + $0x714] ss:$8 sps:$4 sm:$0xff]  }
  0xae   : > { %2096 = vmatpush2.bf16.msra.mxu0 %v2997_v56  ;;  %v3081_v56 = vld [vmem:[%s4068_s1 + $0x610] ss:$8 sps:$4 sm:$0xff]  }
  0xaf   : > { %2139 = vmatpush2.bf16.msra.mxu1 %v3000_v57  ;;  %2097 = vmatprep.subr.bf16.mxu0 %v3005_v58  ;;  %v3084_v57 = vld [vmem:[%s4068_s1 + $0x710] ss:$8 sps:$4 sm:$0xff]   ;;  %v3089_v58 = vld [vmem:[%s4068_s1 + $0x604] ss:$8 sps:$4 sm:$0xff]  }
  0xb0   : > { %2140 = vmatprep.subr.bf16.mxu1 %v3008_v59  ;;  %v3092_v59 = vld [vmem:[%s4068_s1 + $0x704] ss:$8 sps:$4 sm:$0xff]  }
  0xb2   : > { %2098 = vmatpush2.bf16.msra.mxu0 %v3003_v60  ;;  %v3087_v60 = vld [vmem:[%s4068_s1 + $0x600] ss:$8 sps:$4 sm:$0xff]  }
  0xb3   : > { %2141 = vmatpush2.bf16.msra.mxu1 %v3006_v61  ;;  %2099 = vmatprep.subr.bf16.mxu0 %v3011_v62  ;;  %v3090_v61 = vld [vmem:[%s4068_s1 + $0x700] ss:$8 sps:$4 sm:$0xff]   ;;  %v3095_v62 = vld [vmem:[%s4068_s1 + $0x6f4] ss:$8 sps:$4 sm:$0xff]  }
  0xb4   : > { %2142 = vmatprep.subr.bf16.mxu1 %v3014_v63  ;;  %v3098_v63 = vld [vmem:[%s4068_s1 + $0x7f4] ss:$8 sps:$4 sm:$0xff]  }
  0xb6   : > { %2100 = vmatpush2.bf16.msra.mxu0 %v3009_v0  ;;  %v3093_v0 = vld [vmem:[%s4068_s1 + $0x6f0] ss:$8 sps:$4 sm:$0xff]  }
  0xb7   : > { %2143 = vmatpush2.bf16.msra.mxu1 %v3012_v1  ;;  %2101 = vmatprep.subr.bf16.mxu0 %v3017_v2  ;;  %v3096_v1 = vld [vmem:[%s4068_s1 + $0x7f0] ss:$8 sps:$4 sm:$0xff]   ;;  %v3101_v2 = vld [vmem:[%s4068_s1 + $0x6e4] ss:$8 sps:$4 sm:$0xff]  }
  0xb8   : > { %2144 = vmatprep.subr.bf16.mxu1 %v3020_v3  ;;  %v3104_v3 = vld [vmem:[%s4068_s1 + $0x7e4] ss:$8 sps:$4 sm:$0xff]  }
  0xba   : > { %2102 = vmatpush2.bf16.msra.mxu0 %v3015_v4  ;;  %v3099_v4 = vld [vmem:[%s4068_s1 + $0x6e0] ss:$8 sps:$4 sm:$0xff]  }
  0xbb   : > { %2145 = vmatpush2.bf16.msra.mxu1 %v3018_v5  ;;  %2103 = vmatprep.subr.bf16.mxu0 %v3023_v6  ;;  %v3102_v5 = vld [vmem:[%s4068_s1 + $0x7e0] ss:$8 sps:$4 sm:$0xff]   ;;  %v3107_v6 = vld [vmem:[%s4068_s1 + $0x6d4] ss:$8 sps:$4 sm:$0xff]  }
  0xbc   : > { %2146 = vmatprep.subr.bf16.mxu1 %v3026_v7  ;;  %v3110_v7 = vld [vmem:[%s4068_s1 + $0x7d4] ss:$8 sps:$4 sm:$0xff]  }
  0xbe   : > { %2104 = vmatpush2.bf16.msra.mxu0 %v3021_v8  ;;  %v3105_v8 = vld [vmem:[%s4068_s1 + $0x6d0] ss:$8 sps:$4 sm:$0xff]  }
  0xbf   : > { %2147 = vmatpush2.bf16.msra.mxu1 %v3024_v9  ;;  %2105 = vmatprep.subr.bf16.mxu0 %v3029_v10  ;;  %v3108_v9 = vld [vmem:[%s4068_s1 + $0x7d0] ss:$8 sps:$4 sm:$0xff]   ;;  %v3113_v10 = vld [vmem:[%s4068_s1 + $0x6c4] ss:$8 sps:$4 sm:$0xff]  }
  0xc0   : > { %2148 = vmatprep.subr.bf16.mxu1 %v3032_v11  ;;  %v3116_v11 = vld [vmem:[%s4068_s1 + $0x7c4] ss:$8 sps:$4 sm:$0xff]  }
  0xc2   : > { %2106 = vmatpush2.bf16.msra.mxu0 %v3027_v12  ;;  %v3111_v12 = vld [vmem:[%s4068_s1 + $0x6c0] ss:$8 sps:$4 sm:$0xff]  }
  0xc3   : > { %2149 = vmatpush2.bf16.msra.mxu1 %v3030_v13  ;;  %2107 = vmatprep.subr.bf16.mxu0 %v3035_v14  ;;  %v3114_v13 = vld [vmem:[%s4068_s1 + $0x7c0] ss:$8 sps:$4 sm:$0xff]   ;;  %v3119_v14 = vld [vmem:[%s4068_s1 + $0x6b4] ss:$8 sps:$4 sm:$0xff]  }
  0xc4   : > { %2150 = vmatprep.subr.bf16.mxu1 %v3038_v15  ;;  %v3122_v15 = vld [vmem:[%s4068_s1 + $0x7b4] ss:$8 sps:$4 sm:$0xff]  }
  0xc6   : > { %2108 = vmatpush2.bf16.msra.mxu0 %v3033_v16  ;;  %v3117_v16 = vld [vmem:[%s4068_s1 + $0x6b0] ss:$8 sps:$4 sm:$0xff]  }
  0xc7   : > { %2151 = vmatpush2.bf16.msra.mxu1 %v3036_v17  ;;  %2109 = vmatprep.subr.bf16.mxu0 %v3041_v18  ;;  %v3120_v17 = vld [vmem:[%s4068_s1 + $0x7b0] ss:$8 sps:$4 sm:$0xff]   ;;  %v3125_v18 = vld [vmem:[%s4068_s1 + $0x6a4] ss:$8 sps:$4 sm:$0xff]  }
  0xc8   : > { %2152 = vmatprep.subr.bf16.mxu1 %v3044_v19  ;;  %v3128_v19 = vld [vmem:[%s4068_s1 + $0x7a4] ss:$8 sps:$4 sm:$0xff]  }
  0xca   : > { %2110 = vmatpush2.bf16.msra.mxu0 %v3039_v20  ;;  %v3123_v20 = vld [vmem:[%s4068_s1 + $0x6a0] ss:$8 sps:$4 sm:$0xff]  }
  0xcb   : > { %2153 = vmatpush2.bf16.msra.mxu1 %v3042_v21  ;;  %2165 = vmatprep.subr.bf16.mxu0 %v3047_v22  ;;  %v3126_v21 = vld [vmem:[%s4068_s1 + $0x7a0] ss:$8 sps:$4 sm:$0xff]   ;;  %v3131_v22 = vld [vmem:[%s4068_s1 + $0x694] ss:$8 sps:$4 sm:$0xff]  }
  0xcc   : > { %2208 = vmatprep.subr.bf16.mxu1 %v3050_v23  ;;  %v3134_v23 = vld [vmem:[%s4068_s1 + $0x794] ss:$8 sps:$4 sm:$0xff]  }
  0xcd   : > { %2112 = vmatmul.mubr.bf16.vlgmr.msra.gmra.mxu0 %v2461_v29  ;;  %v3129_v29 = vld [vmem:[%s4068_s1 + $0x690] ss:$8 sps:$4 sm:$0xff]  }
  0xce   : > { %2155 = vmatmul.mubr.bf16.vlgmr.msra.gmra.mxu1 %v2463_v30  ;;  %2166 = vmatpush1.bf16.msra.mxu0 %v3045_v34  ;;  %v3132_v30 = vld [vmem:[%s4068_s1 + $0x790] ss:$8 sps:$4 sm:$0xff]   ;;  %v3137_v34 = vld [vmem:[%s4068_s1 + $0x684] ss:$8 sps:$4 sm:$0xff]  }
  0xcf   : > { %2209 = vmatpush1.bf16.msra.mxu1 %v3048_v35  ;;  %2167 = vmatprep.subr.bf16.mxu0 %v3053_v24  ;;  %v3140_v35 = vld [vmem:[%s4068_s1 + $0x784] ss:$8 sps:$4 sm:$0xff]   ;;  %v3135_v24 = vld [vmem:[%s4068_s1 + $0x680] ss:$8 sps:$4 sm:$0xff]  }
  0xd0   : > { %2210 = vmatprep.subr.bf16.mxu1 %v3056_v25  ;;  %2197 = vmatprep.mubr.bf16.mxu0 %v2466_v26  ;;  %v3138_v25 = vld [vmem:[%s4068_s1 + $0x780] ss:$8 sps:$4 sm:$0xff]   ;;  %v2465_v26 = vcombine.low %v3842_v28, %v3849_v31 }
  0xd1   : > { %2240 = vmatprep.mubr.bf16.mxu1 %v2468_v27  ;;  %v2467_v27 = vcombine.low %v3852_v32, %v3855_v33  ;;  %v535_v32 = vld [vmem:[%s4069_s2] sm:$0x3] }
  0xd2   : > { %2168 = vmatpush1.bf16.msra.mxu0 %v3051_v36 }
  0xd3   : > { %2211 = vmatpush1.bf16.msra.mxu1 %v3054_v37  ;;  %2169 = vmatprep.subr.bf16.mxu0 %v3059_v38 }
  0xd4   : > { %2212 = vmatprep.subr.bf16.mxu1 %v3062_v39 }
  0xd6   : > { %2170 = vmatpush1.bf16.msra.mxu0 %v3057_v40 }
  0xd7   : > { %2213 = vmatpush1.bf16.msra.mxu1 %v3060_v41  ;;  %2171 = vmatprep.subr.bf16.mxu0 %v3065_v42  ;;  %v537_v42 = vlaneseq }
  0xd8   : > { %2214 = vmatprep.subr.bf16.mxu1 %v3068_v43 }
  0xda   : > { %2172 = vmatpush1.bf16.msra.mxu0 %v3063_v44 }
  0xdb   : > { %2215 = vmatpush1.bf16.msra.mxu1 %v3066_v45  ;;  %2173 = vmatprep.subr.bf16.mxu0 %v3071_v46 }
  0xdc   : > { %2216 = vmatprep.subr.bf16.mxu1 %v3074_v47  ;;  %v538_v47 = vshrl.u32 %v537_v42, 7 }
  0xde   : > { %2174 = vmatpush1.bf16.msra.mxu0 %v3069_v48  ;;  %v539_v48 = vsub.s32 0, %v538_v47  ;;  %v543_v33 = vsub.s32 1, %v538_v47 }
  0xdf   : > { %2217 = vmatpush1.bf16.msra.mxu1 %v3072_v49  ;;  %2175 = vmatprep.subr.bf16.mxu0 %v3077_v50 }
  0xe0   : > { %2218 = vmatprep.subr.bf16.mxu1 %v3080_v51  ;;  %v540_v51 = vrot.slane %v535_v32, %v539_v48 }
  0xe2   : > { %2176 = vmatpush1.bf16.msra.mxu0 %v3075_v52  ;;  %v544_v52 = vrot.slane %v535_v32, %v543_v33 }
  0xe3   : > { %2219 = vmatpush1.bf16.msra.mxu1 %v3078_v53  ;;  %2177 = vmatprep.subr.bf16.mxu0 %v3083_v54 }
  0xe4   : > { %2220 = vmatprep.subr.bf16.mxu1 %v3086_v55 }
  0xe6   : > { %2178 = vmatpush1.bf16.msra.mxu0 %v3081_v56 }
  0xe7   : > { %2221 = vmatpush1.bf16.msra.mxu1 %v3084_v57  ;;  %2179 = vmatprep.subr.bf16.mxu0 %v3089_v58 }
  0xe8   : > { %2222 = vmatprep.subr.bf16.mxu1 %v3092_v59 }
  0xea   : > { %2180 = vmatpush1.bf16.msra.mxu0 %v3087_v60 }
  0xeb   : > { %2223 = vmatpush1.bf16.msra.mxu1 %v3090_v61  ;;  %2181 = vmatprep.subr.bf16.mxu0 %v3095_v62 }
  0xec   : > { %2224 = vmatprep.subr.bf16.mxu1 %v3098_v63 }
  0xee   : > { %2182 = vmatpush2.bf16.msra.mxu0 %v3093_v0 }
  0xef   : > { %2225 = vmatpush2.bf16.msra.mxu1 %v3096_v1  ;;  %2183 = vmatprep.subr.bf16.mxu0 %v3101_v2 }
  0xf0   : > { %2226 = vmatprep.subr.bf16.mxu1 %v3104_v3 }
  0xf2   : > { %2184 = vmatpush2.bf16.msra.mxu0 %v3099_v4 }
  0xf3   : > { %2227 = vmatpush2.bf16.msra.mxu1 %v3102_v5  ;;  %2185 = vmatprep.subr.bf16.mxu0 %v3107_v6 }
  0xf4   : > { %2228 = vmatprep.subr.bf16.mxu1 %v3110_v7 }
  0xf6   : > { %2186 = vmatpush2.bf16.msra.mxu0 %v3105_v8 }
  0xf7   : > { %2229 = vmatpush2.bf16.msra.mxu1 %v3108_v9  ;;  %2187 = vmatprep.subr.bf16.mxu0 %v3113_v10 }
  0xf8   : > { %2230 = vmatprep.subr.bf16.mxu1 %v3116_v11 }
  0xfa   : > { %2188 = vmatpush2.bf16.msra.mxu0 %v3111_v12 }
  0xfb   : > { %2231 = vmatpush2.bf16.msra.mxu1 %v3114_v13  ;;  %2189 = vmatprep.subr.bf16.mxu0 %v3119_v14 }
  0xfc   : > { %2232 = vmatprep.subr.bf16.mxu1 %v3122_v15 }
  0xfe   : > { %2190 = vmatpush2.bf16.msra.mxu0 %v3117_v16 }
  0xff   : > { %2233 = vmatpush2.bf16.msra.mxu1 %v3120_v17  ;;  %2191 = vmatprep.subr.bf16.mxu0 %v3125_v18 }
 0x100   : > { %2234 = vmatprep.subr.bf16.mxu1 %v3128_v19 }
 0x102   : > { %2192 = vmatpush2.bf16.msra.mxu0 %v3123_v20 }
 0x103   : > { %2235 = vmatpush2.bf16.msra.mxu1 %v3126_v21  ;;  %2193 = vmatprep.subr.bf16.mxu0 %v3131_v22 }
 0x104   : > { %2236 = vmatprep.subr.bf16.mxu1 %v3134_v23 }
 0x106   : > { %2194 = vmatpush2.bf16.msra.mxu0 %v3129_v29 }
 0x107   : > { %2237 = vmatpush2.bf16.msra.mxu1 %v3132_v30  ;;  %2195 = vmatprep.subr.bf16.mxu0 %v3137_v34 }
 0x108   : > { %2238 = vmatprep.subr.bf16.mxu1 %v3140_v35 }
 0x10a   : > { %2196 = vmatpush2.bf16.msra.mxu0 %v3135_v24 }
 0x10b   : > { %2239 = vmatpush2.bf16.msra.mxu1 %v3138_v25 }
 0x10d   : > { %2198 = vmatmul.mubr.bf16.vlgmr.msra.gmra.mxu0 %v2465_v26  ;;  %v1941_v36 = vpop.f32.mrf.mxu0 }
 0x10e   : > { %2241 = vmatmul.mubr.bf16.vlgmr.msra.gmra.mxu1 %v2467_v27  ;;  %v1984_v37 = vpop.f32.mrf.mxu1  ;;  %v1942_v55 = vadd.f32 %v1941_v36, %v540_v51 }
 0x10f   : > { %v1943_v38 = vpop.f32.mrf.mxu0 }
 0x110   : > { %v1986_v39 = vpop.f32.mrf.mxu1  ;;  %v1944_v58 = vadd.f32 %v1943_v38, %v544_v52  ;;  %v1985_v60 = vadd.f32 %v1984_v37, %v1942_v55 }
 0x111   : > { %v1945_v40 = vpop.f32.mrf.mxu0 }
 0x112   : > { %v1988_v41 = vpop.f32.mrf.mxu1  ;;  %v1946_v59 = vadd.f32 %v1945_v40, %v540_v51  ;;  %v1987_v0 = vadd.f32 %v1986_v39, %v1944_v58 }
 0x113   : > { %v1947_v43 = vpop.f32.mrf.mxu0 }
 0x114   : > { %v1990_v44 = vpop.f32.mrf.mxu1  ;;  %v1948_v61 = vadd.f32 %v1947_v43, %v544_v52  ;;  %v1989_v1 = vadd.f32 %v1988_v41, %v1946_v59 }
 0x116   : > { %v1991_v3 = vadd.f32 %v1990_v44, %v1948_v61 }
 0x14d   : > { %v2027_v45 = vpop.f32.mrf.mxu0 }
 0x14e   : > { %v2070_v46 = vpop.f32.mrf.mxu1  ;;  %v2028_v2 = vadd.f32 %v2027_v45, %v1985_v60 }
 0x14f   : > { %v2029_v28 = vpop.f32.mrf.mxu0 }
 0x150   : > { %v2072_v31 = vpop.f32.mrf.mxu1  ;;  %v2030_v4 = vadd.f32 %v2029_v28, %v1987_v0  ;;  %v2071_v8 = vadd.f32 %v2070_v46, %v2028_v2 }
 0x151   : > { %v2031_v49 = vpop.f32.mrf.mxu0 }
 0x152   : > { %v2074_v50 = vpop.f32.mrf.mxu1  ;;  %v2032_v5 = vadd.f32 %v2031_v49, %v1989_v1  ;;  %v2073_v10 = vadd.f32 %v2072_v31, %v2030_v4 }
 0x153   : > { %v2033_v53 = vpop.f32.mrf.mxu0 }
 0x154   : > { %v2076_v54 = vpop.f32.mrf.mxu1  ;;  %v2034_v9 = vadd.f32 %v2033_v53, %v1991_v3  ;;  %v2075_v11 = vadd.f32 %v2074_v50, %v2032_v5 }
 0x156   : > { %v2077_v15 = vadd.f32 %v2076_v54, %v2034_v9 }
 0x18d   : > { %v2113_v56 = vpop.f32.mrf.mxu0 }
 0x18e   : > { %v2156_v57 = vpop.f32.mrf.mxu1  ;;  %v2114_v12 = vadd.f32 %v2113_v56, %v2071_v8 }
 0x18f   : > { %v2115_v62 = vpop.f32.mrf.mxu0 }
 0x190   : > { %v2158_v63 = vpop.f32.mrf.mxu1  ;;  %v2116_v16 = vadd.f32 %v2115_v62, %v2073_v10  ;;  %v2157_v20 = vadd.f32 %v2156_v57, %v2114_v12 }
 0x191   : > { %v2117_v6 = vpop.f32.mrf.mxu0 }
 0x192   : > { %v2160_v7 = vpop.f32.mrf.mxu1  ;;  %v2118_v17 = vadd.f32 %v2117_v6, %v2075_v11  ;;  %v2159_v29 = vadd.f32 %v2158_v63, %v2116_v16 }
 0x193   : > { %v2119_v13 = vpop.f32.mrf.mxu0 }
 0x194   : > { %v2162_v14 = vpop.f32.mrf.mxu1  ;;  %v2120_v21 = vadd.f32 %v2119_v13, %v2077_v15  ;;  %v2161_v30 = vadd.f32 %v2160_v7, %v2118_v17 }
 0x196   : > { %v2163_v25 = vadd.f32 %v2162_v14, %v2120_v21 }
 0x1cd   : > { %v2199_v18 = vpop.f32.mrf.mxu0 }
 0x1ce   : > { %v2242_v19 = vpop.f32.mrf.mxu1  ;;  %v2200_v34 = vadd.f32 %v2199_v18, %v2157_v20 }
 0x1cf   : > { %v2201_v22 = vpop.f32.mrf.mxu0 }
 0x1d0   : > { %v2244_v23 = vpop.f32.mrf.mxu1  ;;  %v2202_v26 = vadd.f32 %v2201_v22, %v2159_v29  ;;  %v2243_v37 = vadd.f32 %v2242_v19, %v2200_v34 }
 0x1d1   : > { %v2203_v35 = vpop.f32.mrf.mxu0 }
 0x1d2   : > { %v2246_v24 = vpop.f32.mrf.mxu1  ;;  %v2204_v27 = vadd.f32 %v2203_v35, %v2161_v30  ;;  %v2245_v41 = vadd.f32 %v2244_v23, %v2202_v26 }
 0x1d3   : > { %v2205_v36 = vpop.f32.mrf.mxu0 }
 0x1d4   : > { %v2247_v38 = vadd.f32 %v2246_v24, %v2204_v27  ;;  %v2206_v39 = vadd.f32 %v2205_v36, %v2163_v25  ;;  %v2248_v40 = vpop.f32.mrf.mxu1 }
 0x1d6   : > { %v2251_v42 = vadd.f32 %v2247_v38, %v2243_v37  ;;  %v2249_v43 = vadd.f32 %v2248_v40, %v2206_v39 }
 0x1d8   : > { %v2252_v44 = vrot.slane %v2251_v42, 4  ;;  %v2258_v45 = vadd.f32 %v2249_v43, %v2245_v41 }
 0x1da   : > { %v2253_v46 = vadd.f32 %v2252_v44, %v2251_v42  ;;  %v2259_v47 = vrot.slane %v2258_v45, 4 }
 0x1dc   : > { %v2254_v28 = vrot.slane %v2253_v46, 2  ;;  %v2260_v31 = vadd.f32 %v2259_v47, %v2258_v45 }
 0x1de   : > { %v2255_v48 = vadd.f32 %v2254_v28, %v2253_v46  ;;  %v2261_v32 = vrot.slane %v2260_v31, 2 }
 0x1e0   : > { %v2256_v33 = vrot.slane %v2255_v48, 1  ;;  %v2262_v49 = vadd.f32 %v2261_v32, %v2260_v31 }
 0x1e2   : > { %v2257_v50 = vadd.f32 %v2256_v33, %v2255_v48  ;;  %v2263_v51 = vrot.slane %v2262_v49, 1 }
 0x1e4   : > { %v2266_v52 = vmul.f32 0.0625, %v2257_v50  ;;  %v2264_v53 = vadd.f32 %v2263_v51, %v2262_v49 }
 0x1e6   : > { %v2268_v54 = vsub.f32 %v2243_v37, %v2266_v52  ;;  %v2270_v55 = vsub.f32 %v2247_v38, %v2266_v52  ;;  %v2267_v56 = vmul.f32 0.0625, %v2264_v53 }
 0x1e8   : > { %v2272_v57 = vmul.f32 %v2268_v54, %v2268_v54  ;;  %v2274_v58 = vmul.f32 %v2270_v55, %v2270_v55  ;;  %v2269_v59 = vsub.f32 %v2245_v41, %v2267_v56  ;;  %v2271_v60 = vsub.f32 %v2249_v43, %v2267_v56 }
 0x1ea   : > { %v2276_v61 = vadd.f32 %v2274_v58, %v2272_v57  ;;  %v2273_v62 = vmul.f32 %v2269_v59, %v2269_v59  ;;  %v2275_v63 = vmul.f32 %v2271_v60, %v2271_v60 }
 0x1ec   : > { %v2277_v0 = vrot.slane %v2276_v61, 4  ;;  %v2283_v1 = vadd.f32 %v2275_v63, %v2273_v62 }
 0x1ee   : > { %v2278_v2 = vadd.f32 %v2277_v0, %v2276_v61  ;;  %v2284_v3 = vrot.slane %v2283_v1, 4 }
 0x1f0   : > { %v2279_v4 = vrot.slane %v2278_v2, 2  ;;  %v2285_v5 = vadd.f32 %v2284_v3, %v2283_v1 }
 0x1f2   : > { %v2280_v6 = vadd.f32 %v2279_v4, %v2278_v2  ;;  %v2286_v7 = vrot.slane %v2285_v5, 2 }
 0x1f4   : > { %v2281_v8 = vrot.slane %v2280_v6, 1  ;;  %v2287_v9 = vadd.f32 %v2286_v7, %v2285_v5 }
 0x1f6   : > { %v2282_v10 = vadd.f32 %v2281_v8, %v2280_v6  ;;  %v2288_v11 = vrot.slane %v2287_v9, 1 }
 0x1f8   : > { %v2290_v12 = vmul.f32 0.0625, %v2282_v10  ;;  %v2289_v13 = vadd.f32 %v2288_v11, %v2287_v9 }
 0x1fa   : > { %v2292_v14 = vadd.f32 1e-05, %v2290_v12  ;;  %v2291_v15 = vmul.f32 0.0625, %v2289_v13 }
 0x1fc   : > { %3141 = vrsqrt.f32 %v2292_v14  ;;  %v2293_v16 = vadd.f32 1e-05, %v2291_v15 }
 0x1fe   : > { %3143 = vrsqrt.f32 %v2293_v16 }
 0x209   : > { %v3142_v17 = vpop.eup %3141 }
 0x20a   : > { %v2296_v18 = vmul.f32 %v3142_v17, %v2268_v54  ;;  %v2298_v19 = vmul.f32 %v3142_v17, %v2270_v55 }
 0x20b   : > { %v3144_v20 = vpop.eup %3143 }
 0x20c   : > { %v2304_v21 = vmul.f32 0.2, %v2296_v18  ;;  %v2306_v22 = vmul.f32 0.2, %v2298_v19  ;;  %v2297_v23 = vmul.f32 %v3144_v20, %v2269_v59  ;;  %v2299_v29 = vmul.f32 %v3144_v20, %v2271_v60 }
 0x20d   : > { %vm2300_vm0 = vcmp.ge.f32.partialorder %v2296_v18, 0.0  ;;  %vm2302_vm1 = vcmp.ge.f32.partialorder %v2298_v19, 0.0 }
 0x20e   : > { %vm2301_vm2 = vcmp.ge.f32.partialorder %v2297_v23, 0.0  ;;  %vm2303_vm3 = vcmp.ge.f32.partialorder %v2299_v29, 0.0  ;;  %v2305_v30 = vmul.f32 0.2, %v2297_v23  ;;  %v2307_v34 = vmul.f32 0.2, %v2299_v29 }
 0x20f   : > { %v2308_v35 = vsel %vm2300_vm0, %v2296_v18, %v2304_v21  ;;  %v2310_v24 = vsel %vm2302_vm1, %v2298_v19, %v2306_v22 }
 0x210   : > { %v2309_v25 = vsel %vm2301_vm2, %v2297_v23, %v2305_v30  ;;  %v2311_v26 = vsel %vm2303_vm3, %v2299_v29, %v2307_v34 }
 0x211   : > { %v2731_v27 = vpack.c.bf16 %v2309_v25, %v2308_v35  ;;  %v2732_v36 = vpack.c.bf16 %v2311_v26, %v2310_v24 }
 0x213   : > { %2324 = vst [vmem:[%s261_s21] sm:$0xff] %v2731_v27  ;;  %2325 = vst [vmem:[%s261_s21 + $0x8] sm:$0xff] %v2732_v36 }
 0x214 PF: > { %s13_s14 = sadd.s32 1, %s3167_s14   ;;  %s4071_s12 = smov %s3163_s13 }
 0x215   : > { %p10_p5 = scmp.ge.s32.totalorder %s13_s14, 4   ;;  %s4072_s13 = smov %s4074_s15 }
 0x217   :  { %12 = sbr.rel (!%p10_p5) target bundleno = 2 (0x2), region = 65 }

// kernel: discriminator_forward.8
= control target key start
LH: loop header
LB: loop body
LE: loop exit
PB: predicated region body
PF: predicated region fallthrough
CT: control target
= control target key end

     0   :  { %s5975_s12 = smov 0   ;;  %s5977_s13 = smov 0   ;;  %s6842_s0 = inlined_call_operand.vmem [shape: bf16[2,9,4096], index: 0, kind: input, shape index: {}]   ;;  %s6843_s1 = inlined_call_operand.vmem [shape: bf16[4096,512], index: 1, kind: input, shape index: {}]   ;;  %s6844_s2 = inlined_call_operand.vmem [shape: f32[1,512], index: 2, kind: input, shape index: {}]   ;;  %s6845_s3 = inlined_call_operand.vmem [shape: bf16[2,9,512], index: 3, kind: output, shape index: {}]  }
   0x1   :  { %s5979_s14 = smov 0   ;;  %s5981_s15 = smov 0  }
   0x2   :  { %s5983_s16 = smov 0   ;;  %s5985_s17 = smov 0  }
   0x3   :  { %s5987_s18 = smov 0  }
   0x4 LB: > { %s25_s19 = sadd.s32 1, %s5944_s16  ;;  %s32_s20 = sadd.s32 1, %s5948_s17  ;;  %s5952_s18 = sphi %s5987_s18, %s13_s18   ;;  %s5948_s17 = sphi %s5985_s17, %s6855_s17   ;;  %s5944_s16 = sphi %s5983_s16, %s6854_s16   ;;  %s5940_s15 = sphi %s5981_s15, %s6853_s15   ;;  %s5936_s14 = sphi %s5979_s14, %s6852_s14   ;;  %s5932_s13 = sphi %s5977_s13, %s6851_s13   ;;  %s5928_s12 = sphi %s5975_s12, %s6850_s12  }
   0x5   : > { %p26_p0 = scmp.ge.s32.totalorder %s25_s19, 2  ;;  %p50_p1 = scmp.ne.s32.totalorder %s5932_s13, %s5928_s12 }
   0x6   : > { %p51_p2 = scmp.eq.s32.totalorder %s5952_s18, 0  ;;  %s43_s24 = sadd.s32 1, %s5932_s13 }
   0x7   : > { %s6857_s19 = smov (%p26_p0, %s25_s19), 0  ;;  %s6859_s20 = smov (!%p26_p0, %s32_s20), %s5948_s17 }
   0x8   : > { %p52_p3 = por %p51_p2, %p50_p1  ;;  %p34_p4 = scmp.ge.s32.totalorder %s6859_s20, 2 }
   0x9   : > { %s39_s21 = ssub.s32 %s5944_s16, %s6857_s19  ;;  %p4511_p6 = scmp.ge.s32.totalorder %s5952_s18, 4 }
   0xa   : > { %s6861_s20 = smov (%p34_p4, %s6859_s20), 0 }
   0xb   : > { %s36_s22 = ssub.s32 %s5948_s17, %s6861_s20  ;;  %154 = sbr.rel (%p4511_p6) target bundleno = 31 (0x1f), region = 20 }
   0xc   : > { %s40_s23 = sor.u32 %s39_s21, %s36_s22 }
   0xd   : > { %p41_p5 = scmp.eq.s32.totalorder %s40_s23, 0 }
   0xf   : > { %s6026_s25 = scalar_select %p41_p5, %s5932_s13, %s43_s24  }
  0x10   : > { %157 = sbr.rel (!%p52_p3) target bundleno = 31 (0x1f), region = 24  ;;  %s159_s26 = sand.u32 (%p52_p3), 1, %s5932_s13  }
  0x11   : > { %s4513_s27 = sshll.u32 (%p52_p3), %s5944_s16, 4  ;;  %s4512_s28 = sshll.u32 (%p52_p3), %s159_s26, 7 }
  0x12   : > { %s4514_s29 = sshll.u32 (%p52_p3), %s5948_s17, 6  ;;  %s161_s8 = scalar_lea.vmem (%p52_p3), [#allocation3], %s4512_s28 }
  0x13   : > { %s167_s30 = sadd.s32 (%p52_p3), %s4514_s29, %s4513_s27 }
  0x14   : > { %s4515_s4 = sshll.u32 (%p52_p3), %s167_s30, 2 }
  0x15   : > { %s6035_s7 = scalar_lea.vmem %s6842_s0, %s4515_s4 }
  0x16   : > { %v182_v0 = vld [vmem:[%s6035_s7] sm:$0xff]  ;;  %v184_v1 = vld [vmem:[%s6035_s7 + $0x8] sm:$0xff]  ;;  %v186_v2 = vld [vmem:[%s6035_s7 + $0x10] sm:$0xff] }
  0x17   : > { %183 = vst [vmem:[%s161_s8] sm:$0xff] %v182_v0  ;;  %185 = vst [vmem:[%s161_s8 + $0x8] sm:$0xff] %v184_v1  ;;  %v188_v3 = vld [vmem:[%s6035_s7 + $0x18] sm:$0xff]  ;;  %v190_v4 = vld [vmem:[%s6035_s7 + $0x20] sm:$0xff] }
  0x18   : > { %187 = vst [vmem:[%s161_s8 + $0x10] sm:$0xff] %v186_v2  ;;  %v192_v5 = vld [vmem:[%s6035_s7 + $0x28] sm:$0xff]  ;;  %189 = vst [vmem:[%s161_s8 + $0x18] sm:$0xff] %v188_v3  ;;  %v194_v6 = vld [vmem:[%s6035_s7 + $0x30] sm:$0xff] }
  0x19   : > { %191 = vst [vmem:[%s161_s8 + $0x20] sm:$0xff] %v190_v4  ;;  %193 = vst [vmem:[%s161_s8 + $0x28] sm:$0xff] %v192_v5  ;;  %v196_v7 = vld [vmem:[%s6035_s7 + $0x38] sm:$0xff]  ;;  %v198_v8 = vld [vmem:[%s6035_s7 + $0x80] sm:$0xff] }
  0x1a   : > { %195 = vst [vmem:[%s161_s8 + $0x30] sm:$0xff] %v194_v6  ;;  %197 = vst [vmem:[%s161_s8 + $0x38] sm:$0xff] %v196_v7  ;;  %v200_v9 = vld [vmem:[%s6035_s7 + $0x88] sm:$0xff]  ;;  %v202_v10 = vld [vmem:[%s6035_s7 + $0x90] sm:$0xff] }
  0x1b   : > { %199 = vst [vmem:[%s161_s8 + $0x40] sm:$0xff] %v198_v8  ;;  %v204_v11 = vld [vmem:[%s6035_s7 + $0x98] sm:$0xff]  ;;  %201 = vst [vmem:[%s161_s8 + $0x48] sm:$0xff] %v200_v9  ;;  %v206_v12 = vld [vmem:[%s6035_s7 + $0xa0] sm:$0xff] }
  0x1c   : > { %203 = vst [vmem:[%s161_s8 + $0x50] sm:$0xff] %v202_v10  ;;  %205 = vst [vmem:[%s161_s8 + $0x58] sm:$0xff] %v204_v11  ;;  %v208_v13 = vld [vmem:[%s6035_s7 + $0xa8] sm:$0xff]  ;;  %v210_v14 = vld [vmem:[%s6035_s7 + $0xb0] sm:$0xff] }
  0x1d   : > { %207 = vst [vmem:[%s161_s8 + $0x60] sm:$0xff] %v206_v12  ;;  %209 = vst [vmem:[%s161_s8 + $0x68] sm:$0xff] %v208_v13  ;;  %v212_v15 = vld [vmem:[%s6035_s7 + $0xb8] sm:$0xff] }
  0x1e   : > { %211 = vst [vmem:[%s161_s8 + $0x70] sm:$0xff] %v210_v14  ;;  %213 = vst [vmem:[%s161_s8 + $0x78] sm:$0xff] %v212_v15 }
  0x1f PF: > { %p4516_p7 = scmp.ge.s32.totalorder %s5952_s18, 1  ;;  %p228_p8 = scmp.lt.s32.totalorder %s5952_s18, 5 }
  0x21   : > { %p229_p9 = pnand %p4516_p7, %p228_p8 }
  0x22   : > { %s4518_s9 = sshll.u32 (!%p229_p9), %s5936_s14, 8  ;;  %p279_p10 = scmp.lt.s32.totalorder (!%p229_p9), %s5940_s15, 1 }
  0x23   : > { %232 = sbr.rel (%p229_p9) target bundleno = 853 (0x355), region = 51  ;;  %p272_p11 = scmp.lt.s32.totalorder (!%p229_p9), %s4518_s9, 511 }
  0x24   : > { %p5051_p12 = scmp.ne.s32.totalorder (!%p229_p9), %s5936_s14, 0 }
  0x28   : > { %s6863_s15 = smov (!%p279_p10, %s5940_s15), 1  ;;  %s6865_s9 = smov (!%p272_p11, %s4518_s9), 511 }
  0x29   : > { %s5060_s10 = sshll.u32 %s6863_s15, 5  ;;  %s5059_s11 = sshll.u32 %s6865_s9, 4 }
  0x2a   : > { %s6061_s23 = scalar_lea.vmem %s6845_s3, %s5060_s10  ;;  %s6066_s27 = scalar_lea.vmem %s6843_s1, %s5059_s11 }
  0x2b   : > { %v5122_v16 = vld [vmem:[%s6066_s27 + $0xe4] ss:$16 sps:$4 sm:$0xff]   ;;  %v5126_v18 = vld [vmem:[%s6066_s27 + $0xe0] ss:$16 sps:$4 sm:$0xff]   ;;  %s235_s15 = sand.u32 1, %s5928_s12  }
  0x2c   : > { %v5124_v17 = vld [vmem:[%s6066_s27 + $0x2e4] ss:$16 sps:$4 sm:$0xff]   ;;  %3457 = vmatprep.subr.bf16.mxu0 %v5122_v16  ;;  %v5127_v19 = vld [vmem:[%s6066_s27 + $0x2e0] ss:$16 sps:$4 sm:$0xff]   ;;  %s4517_s28 = sshll.u32 %s235_s15, 7 }
  0x2d   : > { %3500 = vmatprep.subr.bf16.mxu1 %v5124_v17  ;;  %v5128_v20 = vld [vmem:[%s6066_s27 + $0xc4] ss:$16 sps:$4 sm:$0xff]   ;;  %3458 = vmatpush1.bf16.msra.mxu0 %v5126_v18  ;;  %v5132_v22 = vld [vmem:[%s6066_s27 + $0xc0] ss:$16 sps:$4 sm:$0xff]   ;;  %s6117_s12 = scalar_lea.vmem [#allocation3], %s4517_s28 }
  0x2e   : > { %3501 = vmatpush1.bf16.msra.mxu1 %v5127_v19  ;;  %v5130_v21 = vld [vmem:[%s6066_s27 + $0x2c4] ss:$16 sps:$4 sm:$0xff]   ;;  %3459 = vmatprep.subr.bf16.mxu0 %v5128_v20  ;;  %v5133_v23 = vld [vmem:[%s6066_s27 + $0x2c0] ss:$16 sps:$4 sm:$0xff]   ;;  %v290_v2 = vld [vmem:[%s6117_s12 + $0x8] sm:$0xff] }
  0x2f   : > { %3502 = vmatprep.subr.bf16.mxu1 %v5130_v21  ;;  %v5134_v24 = vld [vmem:[%s6066_s27 + $0xa4] ss:$16 sps:$4 sm:$0xff]   ;;  %v5138_v26 = vld [vmem:[%s6066_s27 + $0xa0] ss:$16 sps:$4 sm:$0xff]   ;;  %v298_v3 = vld [vmem:[%s6117_s12 + $0x48] sm:$0x11] }
  0x30   : > { %v5136_v25 = vld [vmem:[%s6066_s27 + $0x2a4] ss:$16 sps:$4 sm:$0xff]   ;;  %v5139_v27 = vld [vmem:[%s6066_s27 + $0x2a0] ss:$16 sps:$4 sm:$0xff]   ;;  %v6127_v7 = vcombine.high %v290_v2, %v298_v3 }
  0x31   : > { %3460 = vmatpush1.bf16.msra.mxu0 %v5132_v22  ;;  %v5140_v28 = vld [vmem:[%s6066_s27 + $0x84] ss:$16 sps:$4 sm:$0xff]   ;;  %v5144_v30 = vld [vmem:[%s6066_s27 + $0x80] ss:$16 sps:$4 sm:$0xff]  }
  0x32   : > { %3503 = vmatpush1.bf16.msra.mxu1 %v5133_v23  ;;  %3461 = vmatprep.subr.bf16.mxu0 %v5134_v24  ;;  %v5142_v29 = vld [vmem:[%s6066_s27 + $0x284] ss:$16 sps:$4 sm:$0xff]   ;;  %v5145_v31 = vld [vmem:[%s6066_s27 + $0x280] ss:$16 sps:$4 sm:$0xff]  }
  0x33   : > { %3504 = vmatprep.subr.bf16.mxu1 %v5136_v25  ;;  %v5146_v32 = vld [vmem:[%s6066_s27 + $0x64] ss:$16 sps:$4 sm:$0xff]   ;;  %v5150_v34 = vld [vmem:[%s6066_s27 + $0x60] ss:$16 sps:$4 sm:$0xff]   ;;  %3532 = vmatprep.mubr.bf16.mxu1 %v6127_v7  ;;  %v6149_v25 = vcombine.low %v290_v2, %v298_v3 }
  0x34   : > { %v5148_v33 = vld [vmem:[%s6066_s27 + $0x264] ss:$16 sps:$4 sm:$0xff]   ;;  %v5151_v35 = vld [vmem:[%s6066_s27 + $0x260] ss:$16 sps:$4 sm:$0xff]  }
  0x35   : > { %3462 = vmatpush1.bf16.msra.mxu0 %v5138_v26  ;;  %v5152_v36 = vld [vmem:[%s6066_s27 + $0x44] ss:$16 sps:$4 sm:$0xff]   ;;  %v5156_v38 = vld [vmem:[%s6066_s27 + $0x40] ss:$16 sps:$4 sm:$0xff]  }
  0x36   : > { %3505 = vmatpush1.bf16.msra.mxu1 %v5139_v27  ;;  %3463 = vmatprep.subr.bf16.mxu0 %v5140_v28  ;;  %v5154_v37 = vld [vmem:[%s6066_s27 + $0x244] ss:$16 sps:$4 sm:$0xff]   ;;  %v5157_v39 = vld [vmem:[%s6066_s27 + $0x240] ss:$16 sps:$4 sm:$0xff]  }
  0x37   : > { %3506 = vmatprep.subr.bf16.mxu1 %v5142_v29  ;;  %v5158_v40 = vld [vmem:[%s6066_s27 + $0x24] ss:$16 sps:$4 sm:$0xff]   ;;  %v5162_v42 = vld [vmem:[%s6066_s27 + $0x20] ss:$16 sps:$4 sm:$0xff]  }
  0x38   : > { %v5160_v41 = vld [vmem:[%s6066_s27 + $0x224] ss:$16 sps:$4 sm:$0xff]   ;;  %v5163_v43 = vld [vmem:[%s6066_s27 + $0x220] ss:$16 sps:$4 sm:$0xff]  }
  0x39   : > { %3464 = vmatpush1.bf16.msra.mxu0 %v5144_v30  ;;  %v5164_v44 = vld [vmem:[%s6066_s27 + $0x4] ss:$16 sps:$4 sm:$0xff]   ;;  %v5168_v46 = vld [vmem:[%s6066_s27] ss:$16 sps:$4 sm:$0xff]  }
  0x3a   : > { %3507 = vmatpush1.bf16.msra.mxu1 %v5145_v31  ;;  %3465 = vmatprep.subr.bf16.mxu0 %v5146_v32  ;;  %v5166_v45 = vld [vmem:[%s6066_s27 + $0x204] ss:$16 sps:$4 sm:$0xff]   ;;  %v5169_v47 = vld [vmem:[%s6066_s27 + $0x200] ss:$16 sps:$4 sm:$0xff]  }
  0x3b   : > { %3508 = vmatprep.subr.bf16.mxu1 %v5148_v33  ;;  %v5170_v48 = vld [vmem:[%s6066_s27 + $0x1e4] ss:$16 sps:$4 sm:$0xff]   ;;  %v5174_v50 = vld [vmem:[%s6066_s27 + $0x1e0] ss:$16 sps:$4 sm:$0xff]  }
  0x3c   : > { %v5172_v49 = vld [vmem:[%s6066_s27 + $0x3e4] ss:$16 sps:$4 sm:$0xff]   ;;  %v5175_v51 = vld [vmem:[%s6066_s27 + $0x3e0] ss:$16 sps:$4 sm:$0xff]  }
  0x3d   : > { %3466 = vmatpush1.bf16.msra.mxu0 %v5150_v34  ;;  %v5176_v52 = vld [vmem:[%s6066_s27 + $0x1c4] ss:$16 sps:$4 sm:$0xff]   ;;  %v5180_v54 = vld [vmem:[%s6066_s27 + $0x1c0] ss:$16 sps:$4 sm:$0xff]  }
  0x3e   : > { %3509 = vmatpush1.bf16.msra.mxu1 %v5151_v35  ;;  %3467 = vmatprep.subr.bf16.mxu0 %v5152_v36  ;;  %v5178_v53 = vld [vmem:[%s6066_s27 + $0x3c4] ss:$16 sps:$4 sm:$0xff]   ;;  %v5181_v55 = vld [vmem:[%s6066_s27 + $0x3c0] ss:$16 sps:$4 sm:$0xff]  }
  0x3f   : > { %3510 = vmatprep.subr.bf16.mxu1 %v5154_v37  ;;  %v5182_v56 = vld [vmem:[%s6066_s27 + $0x1a4] ss:$16 sps:$4 sm:$0xff]   ;;  %v5186_v58 = vld [vmem:[%s6066_s27 + $0x1a0] ss:$16 sps:$4 sm:$0xff]  }
  0x40   : > { %v5184_v57 = vld [vmem:[%s6066_s27 + $0x3a4] ss:$16 sps:$4 sm:$0xff]   ;;  %v5187_v59 = vld [vmem:[%s6066_s27 + $0x3a0] ss:$16 sps:$4 sm:$0xff]  }
  0x41   : > { %3468 = vmatpush1.bf16.msra.mxu0 %v5156_v38  ;;  %v5188_v60 = vld [vmem:[%s6066_s27 + $0x184] ss:$16 sps:$4 sm:$0xff]   ;;  %v5192_v62 = vld [vmem:[%s6066_s27 + $0x180] ss:$16 sps:$4 sm:$0xff]  }
  0x42   : > { %3511 = vmatpush1.bf16.msra.mxu1 %v5157_v39  ;;  %3469 = vmatprep.subr.bf16.mxu0 %v5158_v40  ;;  %v5190_v61 = vld [vmem:[%s6066_s27 + $0x384] ss:$16 sps:$4 sm:$0xff]   ;;  %v5193_v63 = vld [vmem:[%s6066_s27 + $0x380] ss:$16 sps:$4 sm:$0xff]  }
  0x43   : > { %3512 = vmatprep.subr.bf16.mxu1 %v5160_v41  ;;  %v289_v0 = vld [vmem:[%s6117_s12] sm:$0xff] }
  0x44   : > { %v297_v1 = vld [vmem:[%s6117_s12 + $0x40] sm:$0x11] }
  0x45   : > { %3470 = vmatpush1.bf16.msra.mxu0 %v5162_v42  ;;  %v5194_v4 = vld [vmem:[%s6066_s27 + $0x164] ss:$16 sps:$4 sm:$0xff]   ;;  %v6124_v5 = vcombine.high %v289_v0, %v297_v1  ;;  %v5198_v8 = vld [vmem:[%s6066_s27 + $0x160] ss:$16 sps:$4 sm:$0xff]   ;;  %v6147_v24 = vcombine.low %v289_v0, %v297_v1 }
  0x46   : > { %3513 = vmatpush1.bf16.msra.mxu1 %v5163_v43  ;;  %3471 = vmatprep.subr.bf16.mxu0 %v5164_v44  ;;  %v5196_v6 = vld [vmem:[%s6066_s27 + $0x364] ss:$16 sps:$4 sm:$0xff]   ;;  %v5199_v9 = vld [vmem:[%s6066_s27 + $0x360] ss:$16 sps:$4 sm:$0xff]  }
  0x47   : > { %3514 = vmatprep.subr.bf16.mxu1 %v5166_v45  ;;  %3489 = vmatprep.mubr.bf16.mxu0 %v6124_v5  ;;  %v5200_v10 = vld [vmem:[%s6066_s27 + $0x144] ss:$16 sps:$4 sm:$0xff]   ;;  %v5204_v12 = vld [vmem:[%s6066_s27 + $0x140] ss:$16 sps:$4 sm:$0xff]  }
  0x48   : > { %v5202_v11 = vld [vmem:[%s6066_s27 + $0x344] ss:$16 sps:$4 sm:$0xff]   ;;  %v5205_v13 = vld [vmem:[%s6066_s27 + $0x340] ss:$16 sps:$4 sm:$0xff]  }
  0x49   : > { %3472 = vmatpush1.bf16.msra.mxu0 %v5168_v46  ;;  %v5206_v14 = vld [vmem:[%s6066_s27 + $0x124] ss:$16 sps:$4 sm:$0xff]   ;;  %v5210_v16 = vld [vmem:[%s6066_s27 + $0x120] ss:$16 sps:$4 sm:$0xff]  }
  0x4a   : > { %3515 = vmatpush1.bf16.msra.mxu1 %v5169_v47  ;;  %3473 = vmatprep.subr.bf16.mxu0 %v5170_v48  ;;  %v5208_v15 = vld [vmem:[%s6066_s27 + $0x324] ss:$16 sps:$4 sm:$0xff]   ;;  %v5211_v17 = vld [vmem:[%s6066_s27 + $0x320] ss:$16 sps:$4 sm:$0xff]  }
  0x4b   : > { %3516 = vmatprep.subr.bf16.mxu1 %v5172_v49  ;;  %v5212_v18 = vld [vmem:[%s6066_s27 + $0x104] ss:$16 sps:$4 sm:$0xff]   ;;  %v5216_v20 = vld [vmem:[%s6066_s27 + $0x100] ss:$16 sps:$4 sm:$0xff]  }
  0x4c   : > { %v5214_v19 = vld [vmem:[%s6066_s27 + $0x304] ss:$16 sps:$4 sm:$0xff]   ;;  %v5217_v21 = vld [vmem:[%s6066_s27 + $0x300] ss:$16 sps:$4 sm:$0xff]  }
  0x4d   : > { %3474 = vmatpush2.bf16.msra.mxu0 %v5174_v50  ;;  %v5220_v22 = vld [vmem:[%s6066_s27 + $0x4e4] ss:$16 sps:$4 sm:$0xff]   ;;  %v5218_v26 = vld [vmem:[%s6066_s27 + $0x4e0] ss:$16 sps:$4 sm:$0xff]  }
  0x4e   : > { %3517 = vmatpush2.bf16.msra.mxu1 %v5175_v51  ;;  %3475 = vmatprep.subr.bf16.mxu0 %v5176_v52  ;;  %v5223_v23 = vld [vmem:[%s6066_s27 + $0x6e4] ss:$16 sps:$4 sm:$0xff]   ;;  %v5221_v27 = vld [vmem:[%s6066_s27 + $0x6e0] ss:$16 sps:$4 sm:$0xff]  }
  0x4f   : > { %3518 = vmatprep.subr.bf16.mxu1 %v5178_v53  ;;  %v5226_v28 = vld [vmem:[%s6066_s27 + $0x4c4] ss:$16 sps:$4 sm:$0xff]   ;;  %v5224_v30 = vld [vmem:[%s6066_s27 + $0x4c0] ss:$16 sps:$4 sm:$0xff]  }
  0x50   : > { %v5229_v29 = vld [vmem:[%s6066_s27 + $0x6c4] ss:$16 sps:$4 sm:$0xff]   ;;  %v5227_v31 = vld [vmem:[%s6066_s27 + $0x6c0] ss:$16 sps:$4 sm:$0xff]  }
  0x51   : > { %3476 = vmatpush2.bf16.msra.mxu0 %v5180_v54  ;;  %v5232_v32 = vld [vmem:[%s6066_s27 + $0x4a4] ss:$16 sps:$4 sm:$0xff]   ;;  %v5230_v34 = vld [vmem:[%s6066_s27 + $0x4a0] ss:$16 sps:$4 sm:$0xff]   ;;  %v6186_v54 = vld [vmem:[%s6117_s12 + $0x18] sm:$0xff] }
  0x52   : > { %3519 = vmatpush2.bf16.msra.mxu1 %v5181_v55  ;;  %3477 = vmatprep.subr.bf16.mxu0 %v5182_v56  ;;  %v5235_v33 = vld [vmem:[%s6066_s27 + $0x6a4] ss:$16 sps:$4 sm:$0xff]   ;;  %v5233_v35 = vld [vmem:[%s6066_s27 + $0x6a0] ss:$16 sps:$4 sm:$0xff]   ;;  %v6189_v55 = vld [vmem:[%s6117_s12 + $0x58] sm:$0x11] }
  0x53   : > { %3520 = vmatprep.subr.bf16.mxu1 %v5184_v57  ;;  %v5238_v36 = vld [vmem:[%s6066_s27 + $0x484] ss:$16 sps:$4 sm:$0xff]   ;;  %v5236_v38 = vld [vmem:[%s6066_s27 + $0x480] ss:$16 sps:$4 sm:$0xff]  }
  0x54   : > { %v5241_v37 = vld [vmem:[%s6066_s27 + $0x684] ss:$16 sps:$4 sm:$0xff]   ;;  %v5239_v39 = vld [vmem:[%s6066_s27 + $0x680] ss:$16 sps:$4 sm:$0xff]  }
  0x55   : > { %3478 = vmatpush2.bf16.msra.mxu0 %v5186_v58  ;;  %v5244_v40 = vld [vmem:[%s6066_s27 + $0x464] ss:$16 sps:$4 sm:$0xff]   ;;  %v5242_v42 = vld [vmem:[%s6066_s27 + $0x460] ss:$16 sps:$4 sm:$0xff]  }
  0x56   : > { %3521 = vmatpush2.bf16.msra.mxu1 %v5187_v59  ;;  %3479 = vmatprep.subr.bf16.mxu0 %v5188_v60  ;;  %v5247_v41 = vld [vmem:[%s6066_s27 + $0x664] ss:$16 sps:$4 sm:$0xff]   ;;  %v5245_v43 = vld [vmem:[%s6066_s27 + $0x660] ss:$16 sps:$4 sm:$0xff]   ;;  %v6199_v59 = vcombine.high %v6186_v54, %v6189_v55 }
  0x57   : > { %3522 = vmatprep.subr.bf16.mxu1 %v5190_v61  ;;  %v5250_v44 = vld [vmem:[%s6066_s27 + $0x444] ss:$16 sps:$4 sm:$0xff]   ;;  %v5248_v46 = vld [vmem:[%s6066_s27 + $0x440] ss:$16 sps:$4 sm:$0xff]  }
  0x58   : > { %v5253_v45 = vld [vmem:[%s6066_s27 + $0x644] ss:$16 sps:$4 sm:$0xff]   ;;  %v5251_v47 = vld [vmem:[%s6066_s27 + $0x640] ss:$16 sps:$4 sm:$0xff]  }
  0x59   : > { %3480 = vmatpush2.bf16.msra.mxu0 %v5192_v62  ;;  %v5256_v48 = vld [vmem:[%s6066_s27 + $0x424] ss:$16 sps:$4 sm:$0xff]   ;;  %v5254_v50 = vld [vmem:[%s6066_s27 + $0x420] ss:$16 sps:$4 sm:$0xff]  }
  0x5a   : > { %3523 = vmatpush2.bf16.msra.mxu1 %v5193_v63  ;;  %3481 = vmatprep.subr.bf16.mxu0 %v5194_v4  ;;  %v5259_v49 = vld [vmem:[%s6066_s27 + $0x624] ss:$16 sps:$4 sm:$0xff]   ;;  %v5257_v51 = vld [vmem:[%s6066_s27 + $0x620] ss:$16 sps:$4 sm:$0xff]  }
  0x5b   : > { %3524 = vmatprep.subr.bf16.mxu1 %v5196_v6  ;;  %v6180_v52 = vld [vmem:[%s6117_s12 + $0x10] sm:$0xff] }
  0x5c   : > { %v6183_v53 = vld [vmem:[%s6117_s12 + $0x50] sm:$0x11] }
  0x5d   : > { %3482 = vmatpush2.bf16.msra.mxu0 %v5198_v8  ;;  %v5262_v56 = vld [vmem:[%s6066_s27 + $0x404] ss:$16 sps:$4 sm:$0xff]   ;;  %v6194_v57 = vcombine.high %v6180_v52, %v6183_v53  ;;  %v5260_v60 = vld [vmem:[%s6066_s27 + $0x400] ss:$16 sps:$4 sm:$0xff]  }
  0x5e   : > { %3525 = vmatpush2.bf16.msra.mxu1 %v5199_v9  ;;  %3483 = vmatprep.subr.bf16.mxu0 %v5200_v10  ;;  %v5265_v58 = vld [vmem:[%s6066_s27 + $0x604] ss:$16 sps:$4 sm:$0xff]   ;;  %v5263_v61 = vld [vmem:[%s6066_s27 + $0x600] ss:$16 sps:$4 sm:$0xff]  }
  0x5f   : > { %3526 = vmatprep.subr.bf16.mxu1 %v5202_v11  ;;  %v5268_v62 = vld [vmem:[%s6066_s27 + $0x5e4] ss:$16 sps:$4 sm:$0xff]   ;;  %v5266_v0 = vld [vmem:[%s6066_s27 + $0x5e0] ss:$16 sps:$4 sm:$0xff]  }
  0x60   : > { %v5271_v63 = vld [vmem:[%s6066_s27 + $0x7e4] ss:$16 sps:$4 sm:$0xff]   ;;  %v5269_v1 = vld [vmem:[%s6066_s27 + $0x7e0] ss:$16 sps:$4 sm:$0xff]  }
  0x61   : > { %3484 = vmatpush2.bf16.msra.mxu0 %v5204_v12  ;;  %v5274_v2 = vld [vmem:[%s6066_s27 + $0x5c4] ss:$16 sps:$4 sm:$0xff]   ;;  %v5272_v4 = vld [vmem:[%s6066_s27 + $0x5c0] ss:$16 sps:$4 sm:$0xff]  }
  0x62   : > { %3527 = vmatpush2.bf16.msra.mxu1 %v5205_v13  ;;  %3485 = vmatprep.subr.bf16.mxu0 %v5206_v14  ;;  %v5277_v3 = vld [vmem:[%s6066_s27 + $0x7c4] ss:$16 sps:$4 sm:$0xff]   ;;  %v5275_v6 = vld [vmem:[%s6066_s27 + $0x7c0] ss:$16 sps:$4 sm:$0xff]  }
  0x63   : > { %3528 = vmatprep.subr.bf16.mxu1 %v5208_v15  ;;  %v5280_v8 = vld [vmem:[%s6066_s27 + $0x5a4] ss:$16 sps:$4 sm:$0xff]   ;;  %v5278_v10 = vld [vmem:[%s6066_s27 + $0x5a0] ss:$16 sps:$4 sm:$0xff]  }
  0x64   : > { %v5283_v9 = vld [vmem:[%s6066_s27 + $0x7a4] ss:$16 sps:$4 sm:$0xff]   ;;  %v5281_v11 = vld [vmem:[%s6066_s27 + $0x7a0] ss:$16 sps:$4 sm:$0xff]  }
  0x65   : > { %3486 = vmatpush2.bf16.msra.mxu0 %v5210_v16  ;;  %v5286_v12 = vld [vmem:[%s6066_s27 + $0x584] ss:$16 sps:$4 sm:$0xff]   ;;  %v5284_v14 = vld [vmem:[%s6066_s27 + $0x580] ss:$16 sps:$4 sm:$0xff]  }
  0x66   : > { %3529 = vmatpush2.bf16.msra.mxu1 %v5211_v17  ;;  %3487 = vmatprep.subr.bf16.mxu0 %v5212_v18  ;;  %v5289_v13 = vld [vmem:[%s6066_s27 + $0x784] ss:$16 sps:$4 sm:$0xff]   ;;  %v5287_v15 = vld [vmem:[%s6066_s27 + $0x780] ss:$16 sps:$4 sm:$0xff]  }
  0x67   : > { %3530 = vmatprep.subr.bf16.mxu1 %v5214_v19  ;;  %v5292_v16 = vld [vmem:[%s6066_s27 + $0x564] ss:$16 sps:$4 sm:$0xff]   ;;  %v5290_v18 = vld [vmem:[%s6066_s27 + $0x560] ss:$16 sps:$4 sm:$0xff]  }
  0x68   : > { %v5295_v17 = vld [vmem:[%s6066_s27 + $0x764] ss:$16 sps:$4 sm:$0xff]   ;;  %v5293_v19 = vld [vmem:[%s6066_s27 + $0x760] ss:$16 sps:$4 sm:$0xff]  }
  0x69   : > { %3488 = vmatpush2.bf16.msra.mxu0 %v5216_v20  ;;  %v5298_v20 = vld [vmem:[%s6066_s27 + $0x544] ss:$16 sps:$4 sm:$0xff]  }
  0x6a   : > { %3531 = vmatpush2.bf16.msra.mxu1 %v5217_v21  ;;  %3543 = vmatprep.subr.bf16.mxu0 %v5220_v22  ;;  %v5301_v21 = vld [vmem:[%s6066_s27 + $0x744] ss:$16 sps:$4 sm:$0xff]   ;;  %v5296_v22 = vld [vmem:[%s6066_s27 + $0x540] ss:$16 sps:$4 sm:$0xff]  }
  0x6b   : > { %3586 = vmatprep.subr.bf16.mxu1 %v5223_v23  ;;  %v5299_v23 = vld [vmem:[%s6066_s27 + $0x740] ss:$16 sps:$4 sm:$0xff]  }
  0x6c   : > { %3490 = vmatmul.mubr.bf16.vlgmr.msra.gmra.mxu0 %v6147_v24 }
  0x6d   : > { %3533 = vmatmul.mubr.bf16.vlgmr.msra.gmra.mxu1 %v6149_v25  ;;  %3544 = vmatpush1.bf16.msra.mxu0 %v5218_v26  ;;  %v5304_v26 = vld [vmem:[%s6066_s27 + $0x524] ss:$16 sps:$4 sm:$0xff]  }
  0x6e   : > { %3587 = vmatpush1.bf16.msra.mxu1 %v5221_v27  ;;  %3545 = vmatprep.subr.bf16.mxu0 %v5226_v28  ;;  %v5307_v27 = vld [vmem:[%s6066_s27 + $0x724] ss:$16 sps:$4 sm:$0xff]   ;;  %v5302_v28 = vld [vmem:[%s6066_s27 + $0x520] ss:$16 sps:$4 sm:$0xff]  }
  0x6f   : > { %3588 = vmatprep.subr.bf16.mxu1 %v5229_v29  ;;  %3575 = vmatprep.mubr.bf16.mxu0 %v6194_v57  ;;  %v5305_v29 = vld [vmem:[%s6066_s27 + $0x720] ss:$16 sps:$4 sm:$0xff]  }
  0x70   : > { %3618 = vmatprep.mubr.bf16.mxu1 %v6199_v59 }
  0x71   : > { %3546 = vmatpush1.bf16.msra.mxu0 %v5224_v30  ;;  %v5310_v30 = vld [vmem:[%s6066_s27 + $0x504] ss:$16 sps:$4 sm:$0xff]  }
  0x72   : > { %3589 = vmatpush1.bf16.msra.mxu1 %v5227_v31  ;;  %3547 = vmatprep.subr.bf16.mxu0 %v5232_v32  ;;  %v5313_v31 = vld [vmem:[%s6066_s27 + $0x704] ss:$16 sps:$4 sm:$0xff]   ;;  %v5308_v32 = vld [vmem:[%s6066_s27 + $0x500] ss:$16 sps:$4 sm:$0xff]  }
  0x73   : > { %3590 = vmatprep.subr.bf16.mxu1 %v5235_v33  ;;  %v5311_v33 = vld [vmem:[%s6066_s27 + $0x700] ss:$16 sps:$4 sm:$0xff]  }
  0x75   : > { %3548 = vmatpush1.bf16.msra.mxu0 %v5230_v34  ;;  %v5316_v34 = vld [vmem:[%s6066_s27 + $0x8e4] ss:$16 sps:$4 sm:$0xff]  }
  0x76   : > { %3591 = vmatpush1.bf16.msra.mxu1 %v5233_v35  ;;  %3549 = vmatprep.subr.bf16.mxu0 %v5238_v36  ;;  %v5319_v35 = vld [vmem:[%s6066_s27 + $0xae4] ss:$16 sps:$4 sm:$0xff]   ;;  %v6241_v36 = vcombine.low %v6180_v52, %v6183_v53  ;;  %v5326_v52 = vld [vmem:[%s6066_s27 + $0x8a0] ss:$16 sps:$4 sm:$0xff]  }
  0x77   : > { %3592 = vmatprep.subr.bf16.mxu1 %v5241_v37  ;;  %v6245_v37 = vcombine.low %v6186_v54, %v6189_v55  ;;  %v5329_v53 = vld [vmem:[%s6066_s27 + $0xaa0] ss:$16 sps:$4 sm:$0xff]   ;;  %v5334_v54 = vld [vmem:[%s6066_s27 + $0x884] ss:$16 sps:$4 sm:$0xff]  }
  0x78   : > { %v5337_v55 = vld [vmem:[%s6066_s27 + $0xa84] ss:$16 sps:$4 sm:$0xff]  }
  0x79   : > { %3550 = vmatpush1.bf16.msra.mxu0 %v5236_v38  ;;  %v5314_v38 = vld [vmem:[%s6066_s27 + $0x8e0] ss:$16 sps:$4 sm:$0xff]  }
  0x7a   : > { %3593 = vmatpush1.bf16.msra.mxu1 %v5239_v39  ;;  %3551 = vmatprep.subr.bf16.mxu0 %v5244_v40  ;;  %v5317_v39 = vld [vmem:[%s6066_s27 + $0xae0] ss:$16 sps:$4 sm:$0xff]   ;;  %v5322_v40 = vld [vmem:[%s6066_s27 + $0x8c4] ss:$16 sps:$4 sm:$0xff]  }
  0x7b   : > { %3594 = vmatprep.subr.bf16.mxu1 %v5247_v41  ;;  %v5325_v41 = vld [vmem:[%s6066_s27 + $0xac4] ss:$16 sps:$4 sm:$0xff]  }
  0x7d   : > { %3552 = vmatpush1.bf16.msra.mxu0 %v5242_v42  ;;  %v5320_v42 = vld [vmem:[%s6066_s27 + $0x8c0] ss:$16 sps:$4 sm:$0xff]  }
  0x7e   : > { %3595 = vmatpush1.bf16.msra.mxu1 %v5245_v43  ;;  %3553 = vmatprep.subr.bf16.mxu0 %v5250_v44  ;;  %v5323_v43 = vld [vmem:[%s6066_s27 + $0xac0] ss:$16 sps:$4 sm:$0xff]  }
  0x7f   : > { %3596 = vmatprep.subr.bf16.mxu1 %v5253_v45  ;;  %v6254_v44 = vld [vmem:[%s6117_s12 + $0x20] sm:$0xff] }
  0x80   : > { %v6259_v45 = vld [vmem:[%s6117_s12 + $0x60] sm:$0x11] }
  0x81   : > { %3554 = vmatpush1.bf16.msra.mxu0 %v5248_v46  ;;  %v6262_v46 = vld [vmem:[%s6117_s12 + $0x28] sm:$0xff] }
  0x82   : > { %3597 = vmatpush1.bf16.msra.mxu1 %v5251_v47  ;;  %3555 = vmatprep.subr.bf16.mxu0 %v5256_v48  ;;  %v6265_v47 = vld [vmem:[%s6117_s12 + $0x68] sm:$0x11]  ;;  %v5328_v48 = vld [vmem:[%s6066_s27 + $0x8a4] ss:$16 sps:$4 sm:$0xff]  }
  0x83   : > { %3598 = vmatprep.subr.bf16.mxu1 %v5259_v49  ;;  %v6270_v49 = vcombine.high %v6254_v44, %v6259_v45 }
  0x85   : > { %3556 = vmatpush1.bf16.msra.mxu0 %v5254_v50  ;;  %v5331_v50 = vld [vmem:[%s6066_s27 + $0xaa4] ss:$16 sps:$4 sm:$0xff]  }
  0x86   : > { %3599 = vmatpush1.bf16.msra.mxu1 %v5257_v51  ;;  %3557 = vmatprep.subr.bf16.mxu0 %v5262_v56  ;;  %v6275_v51 = vcombine.high %v6262_v46, %v6265_v47  ;;  %v5332_v56 = vld [vmem:[%s6066_s27 + $0x880] ss:$16 sps:$4 sm:$0xff]  }
  0x87   : > { %3600 = vmatprep.subr.bf16.mxu1 %v5265_v58  ;;  %v5335_v58 = vld [vmem:[%s6066_s27 + $0xa80] ss:$16 sps:$4 sm:$0xff]  }
  0x89   : > { %3558 = vmatpush1.bf16.msra.mxu0 %v5260_v60  ;;  %v5340_v60 = vld [vmem:[%s6066_s27 + $0x864] ss:$16 sps:$4 sm:$0xff]  }
  0x8a   : > { %3601 = vmatpush1.bf16.msra.mxu1 %v5263_v61  ;;  %3559 = vmatprep.subr.bf16.mxu0 %v5268_v62  ;;  %v5343_v61 = vld [vmem:[%s6066_s27 + $0xa64] ss:$16 sps:$4 sm:$0xff]   ;;  %v5338_v62 = vld [vmem:[%s6066_s27 + $0x860] ss:$16 sps:$4 sm:$0xff]  }
  0x8b   : > { %3602 = vmatprep.subr.bf16.mxu1 %v5271_v63  ;;  %v5341_v63 = vld [vmem:[%s6066_s27 + $0xa60] ss:$16 sps:$4 sm:$0xff]  }
  0x8d   : > { %3560 = vmatpush2.bf16.msra.mxu0 %v5266_v0  ;;  %v5346_v0 = vld [vmem:[%s6066_s27 + $0x844] ss:$16 sps:$4 sm:$0xff]  }
  0x8e   : > { %3603 = vmatpush2.bf16.msra.mxu1 %v5269_v1  ;;  %3561 = vmatprep.subr.bf16.mxu0 %v5274_v2  ;;  %v5349_v1 = vld [vmem:[%s6066_s27 + $0xa44] ss:$16 sps:$4 sm:$0xff]   ;;  %v5344_v2 = vld [vmem:[%s6066_s27 + $0x840] ss:$16 sps:$4 sm:$0xff]  }
  0x8f   : > { %3604 = vmatprep.subr.bf16.mxu1 %v5277_v3  ;;  %v5347_v3 = vld [vmem:[%s6066_s27 + $0xa40] ss:$16 sps:$4 sm:$0xff]  }
  0x91   : > { %3562 = vmatpush2.bf16.msra.mxu0 %v5272_v4  ;;  %v5352_v4 = vld [vmem:[%s6066_s27 + $0x824] ss:$16 sps:$4 sm:$0xff]  }
  0x92   : > { %3605 = vmatpush2.bf16.msra.mxu1 %v5275_v6  ;;  %3563 = vmatprep.subr.bf16.mxu0 %v5280_v8  ;;  %v5355_v6 = vld [vmem:[%s6066_s27 + $0xa24] ss:$16 sps:$4 sm:$0xff]   ;;  %v5350_v8 = vld [vmem:[%s6066_s27 + $0x820] ss:$16 sps:$4 sm:$0xff]  }
  0x93   : > { %3606 = vmatprep.subr.bf16.mxu1 %v5283_v9  ;;  %v5353_v9 = vld [vmem:[%s6066_s27 + $0xa20] ss:$16 sps:$4 sm:$0xff]  }
  0x95   : > { %3564 = vmatpush2.bf16.msra.mxu0 %v5278_v10  ;;  %v5358_v10 = vld [vmem:[%s6066_s27 + $0x804] ss:$16 sps:$4 sm:$0xff]  }
  0x96   : > { %3607 = vmatpush2.bf16.msra.mxu1 %v5281_v11  ;;  %3565 = vmatprep.subr.bf16.mxu0 %v5286_v12  ;;  %v5361_v11 = vld [vmem:[%s6066_s27 + $0xa04] ss:$16 sps:$4 sm:$0xff]   ;;  %v5356_v12 = vld [vmem:[%s6066_s27 + $0x800] ss:$16 sps:$4 sm:$0xff]  }
  0x97   : > { %3608 = vmatprep.subr.bf16.mxu1 %v5289_v13  ;;  %v5359_v13 = vld [vmem:[%s6066_s27 + $0xa00] ss:$16 sps:$4 sm:$0xff]  }
  0x99   : > { %3566 = vmatpush2.bf16.msra.mxu0 %v5284_v14  ;;  %v5364_v14 = vld [vmem:[%s6066_s27 + $0x9e4] ss:$16 sps:$4 sm:$0xff]  }
  0x9a   : > { %3609 = vmatpush2.bf16.msra.mxu1 %v5287_v15  ;;  %3567 = vmatprep.subr.bf16.mxu0 %v5292_v16  ;;  %v5367_v15 = vld [vmem:[%s6066_s27 + $0xbe4] ss:$16 sps:$4 sm:$0xff]   ;;  %v5362_v16 = vld [vmem:[%s6066_s27 + $0x9e0] ss:$16 sps:$4 sm:$0xff]  }
  0x9b   : > { %3610 = vmatprep.subr.bf16.mxu1 %v5295_v17  ;;  %v5365_v17 = vld [vmem:[%s6066_s27 + $0xbe0] ss:$16 sps:$4 sm:$0xff]  }
  0x9d   : > { %3568 = vmatpush2.bf16.msra.mxu0 %v5290_v18  ;;  %v5370_v18 = vld [vmem:[%s6066_s27 + $0x9c4] ss:$16 sps:$4 sm:$0xff]  }
  0x9e   : > { %3611 = vmatpush2.bf16.msra.mxu1 %v5293_v19  ;;  %3569 = vmatprep.subr.bf16.mxu0 %v5298_v20  ;;  %v5373_v19 = vld [vmem:[%s6066_s27 + $0xbc4] ss:$16 sps:$4 sm:$0xff]   ;;  %v5368_v20 = vld [vmem:[%s6066_s27 + $0x9c0] ss:$16 sps:$4 sm:$0xff]  }
  0x9f   : > { %3612 = vmatprep.subr.bf16.mxu1 %v5301_v21  ;;  %v5371_v21 = vld [vmem:[%s6066_s27 + $0xbc0] ss:$16 sps:$4 sm:$0xff]  }
  0xa1   : > { %3570 = vmatpush2.bf16.msra.mxu0 %v5296_v22  ;;  %v5376_v22 = vld [vmem:[%s6066_s27 + $0x9a4] ss:$16 sps:$4 sm:$0xff]  }
  0xa2   : > { %3613 = vmatpush2.bf16.msra.mxu1 %v5299_v23  ;;  %3571 = vmatprep.subr.bf16.mxu0 %v5304_v26  ;;  %v5379_v23 = vld [vmem:[%s6066_s27 + $0xba4] ss:$16 sps:$4 sm:$0xff]   ;;  %v5374_v26 = vld [vmem:[%s6066_s27 + $0x9a0] ss:$16 sps:$4 sm:$0xff]  }
  0xa3   : > { %3614 = vmatprep.subr.bf16.mxu1 %v5307_v27  ;;  %v5377_v27 = vld [vmem:[%s6066_s27 + $0xba0] ss:$16 sps:$4 sm:$0xff]  }
  0xa5   : > { %3572 = vmatpush2.bf16.msra.mxu0 %v5302_v28  ;;  %v5382_v28 = vld [vmem:[%s6066_s27 + $0x984] ss:$16 sps:$4 sm:$0xff]  }
  0xa6   : > { %3615 = vmatpush2.bf16.msra.mxu1 %v5305_v29  ;;  %3573 = vmatprep.subr.bf16.mxu0 %v5310_v30  ;;  %v5385_v29 = vld [vmem:[%s6066_s27 + $0xb84] ss:$16 sps:$4 sm:$0xff]   ;;  %v5380_v30 = vld [vmem:[%s6066_s27 + $0x980] ss:$16 sps:$4 sm:$0xff]  }
  0xa7   : > { %3616 = vmatprep.subr.bf16.mxu1 %v5313_v31  ;;  %v5383_v31 = vld [vmem:[%s6066_s27 + $0xb80] ss:$16 sps:$4 sm:$0xff]  }
  0xa9   : > { %3574 = vmatpush2.bf16.msra.mxu0 %v5308_v32  ;;  %v5388_v32 = vld [vmem:[%s6066_s27 + $0x964] ss:$16 sps:$4 sm:$0xff]  }
  0xaa   : > { %3617 = vmatpush2.bf16.msra.mxu1 %v5311_v33  ;;  %3629 = vmatprep.subr.bf16.mxu0 %v5316_v34  ;;  %v5391_v33 = vld [vmem:[%s6066_s27 + $0xb64] ss:$16 sps:$4 sm:$0xff]   ;;  %v5386_v34 = vld [vmem:[%s6066_s27 + $0x960] ss:$16 sps:$4 sm:$0xff]  }
  0xab   : > { %3672 = vmatprep.subr.bf16.mxu1 %v5319_v35  ;;  %v5389_v35 = vld [vmem:[%s6066_s27 + $0xb60] ss:$16 sps:$4 sm:$0xff]  }
  0xac   : > { %3576 = vmatmul.mubr.bf16.vlgmr.msra.gmra.mxu0 %v6241_v36 }
  0xad   : > { %3619 = vmatmul.mubr.bf16.vlgmr.msra.gmra.mxu1 %v6245_v37  ;;  %3630 = vmatpush1.bf16.msra.mxu0 %v5314_v38  ;;  %v5394_v38 = vld [vmem:[%s6066_s27 + $0x944] ss:$16 sps:$4 sm:$0xff]  }
  0xae   : > { %3673 = vmatpush1.bf16.msra.mxu1 %v5317_v39  ;;  %3631 = vmatprep.subr.bf16.mxu0 %v5322_v40  ;;  %v5397_v39 = vld [vmem:[%s6066_s27 + $0xb44] ss:$16 sps:$4 sm:$0xff]   ;;  %v5392_v40 = vld [vmem:[%s6066_s27 + $0x940] ss:$16 sps:$4 sm:$0xff]  }
  0xaf   : > { %3674 = vmatprep.subr.bf16.mxu1 %v5325_v41  ;;  %3661 = vmatprep.mubr.bf16.mxu0 %v6270_v49  ;;  %v5395_v41 = vld [vmem:[%s6066_s27 + $0xb40] ss:$16 sps:$4 sm:$0xff]  }
  0xb0   : > { %3704 = vmatprep.mubr.bf16.mxu1 %v6275_v51 }
  0xb1   : > { %3632 = vmatpush1.bf16.msra.mxu0 %v5320_v42  ;;  %v5400_v42 = vld [vmem:[%s6066_s27 + $0x924] ss:$16 sps:$4 sm:$0xff]  }
  0xb2   : > { %3675 = vmatpush1.bf16.msra.mxu1 %v5323_v43  ;;  %3633 = vmatprep.subr.bf16.mxu0 %v5328_v48  ;;  %v5403_v43 = vld [vmem:[%s6066_s27 + $0xb24] ss:$16 sps:$4 sm:$0xff]   ;;  %v5398_v48 = vld [vmem:[%s6066_s27 + $0x920] ss:$16 sps:$4 sm:$0xff]  }
  0xb3   : > { %3676 = vmatprep.subr.bf16.mxu1 %v5331_v50  ;;  %v5401_v50 = vld [vmem:[%s6066_s27 + $0xb20] ss:$16 sps:$4 sm:$0xff]  }
  0xb5   : > { %3634 = vmatpush1.bf16.msra.mxu0 %v5326_v52  ;;  %v5406_v52 = vld [vmem:[%s6066_s27 + $0x904] ss:$16 sps:$4 sm:$0xff]  }
  0xb6   : > { %3677 = vmatpush1.bf16.msra.mxu1 %v5329_v53  ;;  %3635 = vmatprep.subr.bf16.mxu0 %v5334_v54  ;;  %v5409_v53 = vld [vmem:[%s6066_s27 + $0xb04] ss:$16 sps:$4 sm:$0xff]   ;;  %v5404_v54 = vld [vmem:[%s6066_s27 + $0x900] ss:$16 sps:$4 sm:$0xff]  }
  0xb7   : > { %3678 = vmatprep.subr.bf16.mxu1 %v5337_v55  ;;  %v5407_v55 = vld [vmem:[%s6066_s27 + $0xb00] ss:$16 sps:$4 sm:$0xff]  }
  0xb9   : > { %3636 = vmatpush1.bf16.msra.mxu0 %v5332_v56  ;;  %v5412_v56 = vld [vmem:[%s6066_s27 + $0xce4] ss:$16 sps:$4 sm:$0xff]  }
  0xba   : > { %3679 = vmatpush1.bf16.msra.mxu1 %v5335_v58  ;;  %3637 = vmatprep.subr.bf16.mxu0 %v5340_v60  ;;  %v5415_v58 = vld [vmem:[%s6066_s27 + $0xee4] ss:$16 sps:$4 sm:$0xff]   ;;  %v5410_v60 = vld [vmem:[%s6066_s27 + $0xce0] ss:$16 sps:$4 sm:$0xff]  }
  0xbb   : > { %3680 = vmatprep.subr.bf16.mxu1 %v5343_v61  ;;  %v5413_v61 = vld [vmem:[%s6066_s27 + $0xee0] ss:$16 sps:$4 sm:$0xff]  }
  0xbd   : > { %3638 = vmatpush1.bf16.msra.mxu0 %v5338_v62  ;;  %v6338_v62 = vld [vmem:[%s6117_s12 + $0x30] sm:$0xff] }
  0xbe   : > { %3681 = vmatpush1.bf16.msra.mxu1 %v5341_v63  ;;  %3639 = vmatprep.subr.bf16.mxu0 %v5346_v0  ;;  %v6341_v63 = vld [vmem:[%s6117_s12 + $0x70] sm:$0x11]  ;;  %v6345_v0 = vcombine.low %v6254_v44, %v6259_v45 }
  0xbf   : > { %3682 = vmatprep.subr.bf16.mxu1 %v5349_v1  ;;  %v6349_v1 = vcombine.low %v6262_v46, %v6265_v47  ;;  %v6361_v44 = vcombine.high %v6338_v62, %v6341_v63  ;;  %v5416_v46 = vld [vmem:[%s6066_s27 + $0xcc0] ss:$16 sps:$4 sm:$0xff]  }
  0xc0   : > { %v5419_v47 = vld [vmem:[%s6066_s27 + $0xec0] ss:$16 sps:$4 sm:$0xff]  }
  0xc1   : > { %3640 = vmatpush1.bf16.msra.mxu0 %v5344_v2  ;;  %v6352_v2 = vld [vmem:[%s6117_s12 + $0x38] sm:$0xff] }
  0xc2   : > { %3683 = vmatpush1.bf16.msra.mxu1 %v5347_v3  ;;  %3641 = vmatprep.subr.bf16.mxu0 %v5352_v4  ;;  %v6355_v3 = vld [vmem:[%s6117_s12 + $0x78] sm:$0x11]  ;;  %v5418_v4 = vld [vmem:[%s6066_s27 + $0xcc4] ss:$16 sps:$4 sm:$0xff]  }
  0xc3   : > { %3684 = vmatprep.subr.bf16.mxu1 %v5355_v6  ;;  %v5421_v6 = vld [vmem:[%s6066_s27 + $0xec4] ss:$16 sps:$4 sm:$0xff]   ;;  %v6365_v45 = vcombine.high %v6352_v2, %v6355_v3 }
  0xc5   : > { %3642 = vmatpush1.bf16.msra.mxu0 %v5350_v8  ;;  %v5424_v8 = vld [vmem:[%s6066_s27 + $0xca4] ss:$16 sps:$4 sm:$0xff]  }
  0xc6   : > { %3685 = vmatpush1.bf16.msra.mxu1 %v5353_v9  ;;  %3643 = vmatprep.subr.bf16.mxu0 %v5358_v10  ;;  %v5427_v9 = vld [vmem:[%s6066_s27 + $0xea4] ss:$16 sps:$4 sm:$0xff]   ;;  %v5422_v10 = vld [vmem:[%s6066_s27 + $0xca0] ss:$16 sps:$4 sm:$0xff]  }
  0xc7   : > { %3686 = vmatprep.subr.bf16.mxu1 %v5361_v11  ;;  %v5425_v11 = vld [vmem:[%s6066_s27 + $0xea0] ss:$16 sps:$4 sm:$0xff]  }
  0xc9   : > { %3644 = vmatpush1.bf16.msra.mxu0 %v5356_v12  ;;  %v5430_v12 = vld [vmem:[%s6066_s27 + $0xc84] ss:$16 sps:$4 sm:$0xff]  }
  0xca   : > { %3687 = vmatpush1.bf16.msra.mxu1 %v5359_v13  ;;  %3645 = vmatprep.subr.bf16.mxu0 %v5364_v14  ;;  %v5433_v13 = vld [vmem:[%s6066_s27 + $0xe84] ss:$16 sps:$4 sm:$0xff]   ;;  %v5428_v14 = vld [vmem:[%s6066_s27 + $0xc80] ss:$16 sps:$4 sm:$0xff]  }
  0xcb   : > { %3688 = vmatprep.subr.bf16.mxu1 %v5367_v15  ;;  %v5431_v15 = vld [vmem:[%s6066_s27 + $0xe80] ss:$16 sps:$4 sm:$0xff]  }
  0xcd   : > { %3646 = vmatpush2.bf16.msra.mxu0 %v5362_v16  ;;  %v5436_v16 = vld [vmem:[%s6066_s27 + $0xc64] ss:$16 sps:$4 sm:$0xff]  }
  0xce   : > { %3689 = vmatpush2.bf16.msra.mxu1 %v5365_v17  ;;  %3647 = vmatprep.subr.bf16.mxu0 %v5370_v18  ;;  %v5439_v17 = vld [vmem:[%s6066_s27 + $0xe64] ss:$16 sps:$4 sm:$0xff]   ;;  %v5434_v18 = vld [vmem:[%s6066_s27 + $0xc60] ss:$16 sps:$4 sm:$0xff]  }
  0xcf   : > { %3690 = vmatprep.subr.bf16.mxu1 %v5373_v19  ;;  %v5437_v19 = vld [vmem:[%s6066_s27 + $0xe60] ss:$16 sps:$4 sm:$0xff]  }
  0xd1   : > { %3648 = vmatpush2.bf16.msra.mxu0 %v5368_v20  ;;  %v5442_v20 = vld [vmem:[%s6066_s27 + $0xc44] ss:$16 sps:$4 sm:$0xff]  }
  0xd2   : > { %3691 = vmatpush2.bf16.msra.mxu1 %v5371_v21  ;;  %3649 = vmatprep.subr.bf16.mxu0 %v5376_v22  ;;  %v5445_v21 = vld [vmem:[%s6066_s27 + $0xe44] ss:$16 sps:$4 sm:$0xff]   ;;  %v5440_v22 = vld [vmem:[%s6066_s27 + $0xc40] ss:$16 sps:$4 sm:$0xff]  }
  0xd3   : > { %3692 = vmatprep.subr.bf16.mxu1 %v5379_v23  ;;  %v5443_v23 = vld [vmem:[%s6066_s27 + $0xe40] ss:$16 sps:$4 sm:$0xff]  }
  0xd5   : > { %3650 = vmatpush2.bf16.msra.mxu0 %v5374_v26  ;;  %v5448_v26 = vld [vmem:[%s6066_s27 + $0xc24] ss:$16 sps:$4 sm:$0xff]  }
  0xd6   : > { %3693 = vmatpush2.bf16.msra.mxu1 %v5377_v27  ;;  %3651 = vmatprep.subr.bf16.mxu0 %v5382_v28  ;;  %v5451_v27 = vld [vmem:[%s6066_s27 + $0xe24] ss:$16 sps:$4 sm:$0xff]   ;;  %v5446_v28 = vld [vmem:[%s6066_s27 + $0xc20] ss:$16 sps:$4 sm:$0xff]  }
  0xd7   : > { %3694 = vmatprep.subr.bf16.mxu1 %v5385_v29  ;;  %v5449_v29 = vld [vmem:[%s6066_s27 + $0xe20] ss:$16 sps:$4 sm:$0xff]  }
  0xd9   : > { %3652 = vmatpush2.bf16.msra.mxu0 %v5380_v30  ;;  %v5454_v30 = vld [vmem:[%s6066_s27 + $0xc04] ss:$16 sps:$4 sm:$0xff]  }
  0xda   : > { %3695 = vmatpush2.bf16.msra.mxu1 %v5383_v31  ;;  %3653 = vmatprep.subr.bf16.mxu0 %v5388_v32  ;;  %v5457_v31 = vld [vmem:[%s6066_s27 + $0xe04] ss:$16 sps:$4 sm:$0xff]   ;;  %v5452_v32 = vld [vmem:[%s6066_s27 + $0xc00] ss:$16 sps:$4 sm:$0xff]  }
  0xdb   : > { %3696 = vmatprep.subr.bf16.mxu1 %v5391_v33  ;;  %v5455_v33 = vld [vmem:[%s6066_s27 + $0xe00] ss:$16 sps:$4 sm:$0xff]  }
  0xdd   : > { %3654 = vmatpush2.bf16.msra.mxu0 %v5386_v34  ;;  %v5460_v34 = vld [vmem:[%s6066_s27 + $0xde4] ss:$16 sps:$4 sm:$0xff]  }
  0xde   : > { %3697 = vmatpush2.bf16.msra.mxu1 %v5389_v35  ;;  %3655 = vmatprep.subr.bf16.mxu0 %v5394_v38  ;;  %v5463_v35 = vld [vmem:[%s6066_s27 + $0xfe4] ss:$16 sps:$4 sm:$0xff]   ;;  %v5458_v38 = vld [vmem:[%s6066_s27 + $0xde0] ss:$16 sps:$4 sm:$0xff]  }
  0xdf   : > { %3698 = vmatprep.subr.bf16.mxu1 %v5397_v39  ;;  %v5461_v39 = vld [vmem:[%s6066_s27 + $0xfe0] ss:$16 sps:$4 sm:$0xff]  }
  0xe1   : > { %3656 = vmatpush2.bf16.msra.mxu0 %v5392_v40  ;;  %v5466_v40 = vld [vmem:[%s6066_s27 + $0xdc4] ss:$16 sps:$4 sm:$0xff]  }
  0xe2   : > { %3699 = vmatpush2.bf16.msra.mxu1 %v5395_v41  ;;  %3657 = vmatprep.subr.bf16.mxu0 %v5400_v42  ;;  %v5469_v41 = vld [vmem:[%s6066_s27 + $0xfc4] ss:$16 sps:$4 sm:$0xff]   ;;  %v5464_v42 = vld [vmem:[%s6066_s27 + $0xdc0] ss:$16 sps:$4 sm:$0xff]  }
  0xe3   : > { %3700 = vmatprep.subr.bf16.mxu1 %v5403_v43  ;;  %v5467_v43 = vld [vmem:[%s6066_s27 + $0xfc0] ss:$16 sps:$4 sm:$0xff]  }
  0xe5   : > { %3658 = vmatpush2.bf16.msra.mxu0 %v5398_v48  ;;  %v5472_v48 = vld [vmem:[%s6066_s27 + $0xda4] ss:$16 sps:$4 sm:$0xff]  }
  0xe6   : > { %3701 = vmatpush2.bf16.msra.mxu1 %v5401_v50  ;;  %3659 = vmatprep.subr.bf16.mxu0 %v5406_v52  ;;  %v5475_v50 = vld [vmem:[%s6066_s27 + $0xfa4] ss:$16 sps:$4 sm:$0xff]   ;;  %v5470_v52 = vld [vmem:[%s6066_s27 + $0xda0] ss:$16 sps:$4 sm:$0xff]  }
  0xe7   : > { %3702 = vmatprep.subr.bf16.mxu1 %v5409_v53  ;;  %v5473_v53 = vld [vmem:[%s6066_s27 + $0xfa0] ss:$16 sps:$4 sm:$0xff]  }
  0xe9   : > { %3660 = vmatpush2.bf16.msra.mxu0 %v5404_v54  ;;  %v5478_v54 = vld [vmem:[%s6066_s27 + $0xd84] ss:$16 sps:$4 sm:$0xff]  }
  0xea   : > { %3703 = vmatpush2.bf16.msra.mxu1 %v5407_v55  ;;  %3715 = vmatprep.subr.bf16.mxu0 %v5412_v56  ;;  %v5481_v55 = vld [vmem:[%s6066_s27 + $0xf84] ss:$16 sps:$4 sm:$0xff]   ;;  %v5476_v56 = vld [vmem:[%s6066_s27 + $0xd80] ss:$16 sps:$4 sm:$0xff]  }
  0xeb   : > { %3758 = vmatprep.subr.bf16.mxu1 %v5415_v58  ;;  %v5479_v58 = vld [vmem:[%s6066_s27 + $0xf80] ss:$16 sps:$4 sm:$0xff]  }
  0xec   : > { %3662 = vmatmul.mubr.bf16.vlgmr.msra.gmra.mxu0 %v6345_v0 }
  0xed   : > { %3705 = vmatmul.mubr.bf16.vlgmr.msra.gmra.mxu1 %v6349_v1  ;;  %3716 = vmatpush1.bf16.msra.mxu0 %v5410_v60  ;;  %v5484_v60 = vld [vmem:[%s6066_s27 + $0xd64] ss:$16 sps:$4 sm:$0xff]  }
  0xee   : > { %3759 = vmatpush1.bf16.msra.mxu1 %v5413_v61  ;;  %3717 = vmatprep.subr.bf16.mxu0 %v5418_v4  ;;  %v5487_v61 = vld [vmem:[%s6066_s27 + $0xf64] ss:$16 sps:$4 sm:$0xff]   ;;  %v5482_v4 = vld [vmem:[%s6066_s27 + $0xd60] ss:$16 sps:$4 sm:$0xff]  }
  0xef   : > { %3760 = vmatprep.subr.bf16.mxu1 %v5421_v6  ;;  %3747 = vmatprep.mubr.bf16.mxu0 %v6361_v44  ;;  %v5485_v6 = vld [vmem:[%s6066_s27 + $0xf60] ss:$16 sps:$4 sm:$0xff]  }
  0xf0   : > { %3790 = vmatprep.mubr.bf16.mxu1 %v6365_v45 }
  0xf1   : > { %3718 = vmatpush1.bf16.msra.mxu0 %v5416_v46  ;;  %v5490_v46 = vld [vmem:[%s6066_s27 + $0xd44] ss:$16 sps:$4 sm:$0xff]  }
  0xf2   : > { %3761 = vmatpush1.bf16.msra.mxu1 %v5419_v47  ;;  %3719 = vmatprep.subr.bf16.mxu0 %v5424_v8  ;;  %v5493_v47 = vld [vmem:[%s6066_s27 + $0xf44] ss:$16 sps:$4 sm:$0xff]   ;;  %v5488_v8 = vld [vmem:[%s6066_s27 + $0xd40] ss:$16 sps:$4 sm:$0xff]  }
  0xf3   : > { %3762 = vmatprep.subr.bf16.mxu1 %v5427_v9  ;;  %v5491_v9 = vld [vmem:[%s6066_s27 + $0xf40] ss:$16 sps:$4 sm:$0xff]  }
  0xf5   : > { %3720 = vmatpush1.bf16.msra.mxu0 %v5422_v10  ;;  %v5496_v10 = vld [vmem:[%s6066_s27 + $0xd24] ss:$16 sps:$4 sm:$0xff]  }
  0xf6   : > { %3763 = vmatpush1.bf16.msra.mxu1 %v5425_v11  ;;  %3721 = vmatprep.subr.bf16.mxu0 %v5430_v12  ;;  %v5499_v11 = vld [vmem:[%s6066_s27 + $0xf24] ss:$16 sps:$4 sm:$0xff]   ;;  %v5494_v12 = vld [vmem:[%s6066_s27 + $0xd20] ss:$16 sps:$4 sm:$0xff]  }
  0xf7   : > { %3764 = vmatprep.subr.bf16.mxu1 %v5433_v13  ;;  %v5497_v13 = vld [vmem:[%s6066_s27 + $0xf20] ss:$16 sps:$4 sm:$0xff]  }
  0xf9   : > { %3722 = vmatpush1.bf16.msra.mxu0 %v5428_v14  ;;  %v5502_v14 = vld [vmem:[%s6066_s27 + $0xd04] ss:$16 sps:$4 sm:$0xff]  }
  0xfa   : > { %3765 = vmatpush1.bf16.msra.mxu1 %v5431_v15  ;;  %3723 = vmatprep.subr.bf16.mxu0 %v5436_v16  ;;  %v5505_v15 = vld [vmem:[%s6066_s27 + $0xf04] ss:$16 sps:$4 sm:$0xff]   ;;  %v5500_v16 = vld [vmem:[%s6066_s27 + $0xd00] ss:$16 sps:$4 sm:$0xff]  }
  0xfb   : > { %3766 = vmatprep.subr.bf16.mxu1 %v5439_v17  ;;  %v5503_v17 = vld [vmem:[%s6066_s27 + $0xf00] ss:$16 sps:$4 sm:$0xff]  }
  0xfd   : > { %3724 = vmatpush1.bf16.msra.mxu0 %v5434_v18  ;;  %v5508_v18 = vld [vmem:[%s6066_s27 + $0xec] ss:$16 sps:$4 sm:$0xff]  }
  0xfe   : > { %3767 = vmatpush1.bf16.msra.mxu1 %v5437_v19  ;;  %3725 = vmatprep.subr.bf16.mxu0 %v5442_v20  ;;  %v5511_v19 = vld [vmem:[%s6066_s27 + $0x2ec] ss:$16 sps:$4 sm:$0xff]   ;;  %v6433_v20 = vcombine.low %v6338_v62, %v6341_v63  ;;  %v5512_v62 = vld [vmem:[%s6066_s27 + $0xc8] ss:$16 sps:$4 sm:$0xff]  }
  0xff   : > { %3768 = vmatprep.subr.bf16.mxu1 %v5445_v21  ;;  %v6437_v21 = vcombine.low %v6352_v2, %v6355_v3  ;;  %v5515_v63 = vld [vmem:[%s6066_s27 + $0x2c8] ss:$16 sps:$4 sm:$0xff]   ;;  %v5520_v2 = vld [vmem:[%s6066_s27 + $0xac] ss:$16 sps:$4 sm:$0xff]  }
 0x100   : > { %v5523_v3 = vld [vmem:[%s6066_s27 + $0x2ac] ss:$16 sps:$4 sm:$0xff]  }
 0x101   : > { %3726 = vmatpush1.bf16.msra.mxu0 %v5440_v22  ;;  %v5506_v22 = vld [vmem:[%s6066_s27 + $0xe8] ss:$16 sps:$4 sm:$0xff]  }
 0x102   : > { %3769 = vmatpush1.bf16.msra.mxu1 %v5443_v23  ;;  %3727 = vmatprep.subr.bf16.mxu0 %v5448_v26  ;;  %v5509_v23 = vld [vmem:[%s6066_s27 + $0x2e8] ss:$16 sps:$4 sm:$0xff]   ;;  %v5514_v26 = vld [vmem:[%s6066_s27 + $0xcc] ss:$16 sps:$4 sm:$0xff]  }
 0x103   : > { %3770 = vmatprep.subr.bf16.mxu1 %v5451_v27  ;;  %v5517_v27 = vld [vmem:[%s6066_s27 + $0x2cc] ss:$16 sps:$4 sm:$0xff]  }
 0x105   : > { %3728 = vmatpush1.bf16.msra.mxu0 %v5446_v28  ;;  %v5518_v28 = vld [vmem:[%s6066_s27 + $0xa8] ss:$16 sps:$4 sm:$0xff]  }
 0x106   : > { %3771 = vmatpush1.bf16.msra.mxu1 %v5449_v29  ;;  %3729 = vmatprep.subr.bf16.mxu0 %v5454_v30  ;;  %v5521_v29 = vld [vmem:[%s6066_s27 + $0x2a8] ss:$16 sps:$4 sm:$0xff]   ;;  %v5526_v30 = vld [vmem:[%s6066_s27 + $0x8c] ss:$16 sps:$4 sm:$0xff]  }
 0x107   : > { %3772 = vmatprep.subr.bf16.mxu1 %v5457_v31  ;;  %v5529_v31 = vld [vmem:[%s6066_s27 + $0x28c] ss:$16 sps:$4 sm:$0xff]  }
 0x109   : > { %3730 = vmatpush1.bf16.msra.mxu0 %v5452_v32  ;;  %v5524_v32 = vld [vmem:[%s6066_s27 + $0x88] ss:$16 sps:$4 sm:$0xff]  }
 0x10a   : > { %3773 = vmatpush1.bf16.msra.mxu1 %v5455_v33  ;;  %3731 = vmatprep.subr.bf16.mxu0 %v5460_v34  ;;  %v5527_v33 = vld [vmem:[%s6066_s27 + $0x288] ss:$16 sps:$4 sm:$0xff]  }
 0x10b   : > { %3774 = vmatprep.subr.bf16.mxu1 %v5463_v35  ;;  %v5530_v34 = vld [vmem:[%s6066_s27 + $0x68] ss:$16 sps:$4 sm:$0xff]  }
 0x10c   : > { %v5533_v35 = vld [vmem:[%s6066_s27 + $0x268] ss:$16 sps:$4 sm:$0xff]  }
 0x10d   : > { %3732 = vmatpush2.bf16.msra.mxu0 %v5458_v38  ;;  %v5538_v38 = vld [vmem:[%s6066_s27 + $0x4c] ss:$16 sps:$4 sm:$0xff]  }
 0x10e   : > { %3775 = vmatpush2.bf16.msra.mxu1 %v5461_v39  ;;  %3733 = vmatprep.subr.bf16.mxu0 %v5466_v40  ;;  %v5541_v39 = vld [vmem:[%s6066_s27 + $0x24c] ss:$16 sps:$4 sm:$0xff]   ;;  %v5536_v40 = vld [vmem:[%s6066_s27 + $0x48] ss:$16 sps:$4 sm:$0xff]  }
 0x10f   : > { %3776 = vmatprep.subr.bf16.mxu1 %v5469_v41  ;;  %v5539_v41 = vld [vmem:[%s6066_s27 + $0x248] ss:$16 sps:$4 sm:$0xff]  }
 0x111   : > { %3734 = vmatpush2.bf16.msra.mxu0 %v5464_v42  ;;  %v5544_v42 = vld [vmem:[%s6066_s27 + $0x2c] ss:$16 sps:$4 sm:$0xff]  }
 0x112   : > { %3777 = vmatpush2.bf16.msra.mxu1 %v5467_v43  ;;  %3735 = vmatprep.subr.bf16.mxu0 %v5472_v48  ;;  %v5547_v43 = vld [vmem:[%s6066_s27 + $0x22c] ss:$16 sps:$4 sm:$0xff]   ;;  %v5542_v48 = vld [vmem:[%s6066_s27 + $0x28] ss:$16 sps:$4 sm:$0xff]  }
 0x113   : > { %3778 = vmatprep.subr.bf16.mxu1 %v5475_v50  ;;  %v5545_v50 = vld [vmem:[%s6066_s27 + $0x228] ss:$16 sps:$4 sm:$0xff]  }
 0x115   : > { %3736 = vmatpush2.bf16.msra.mxu0 %v5470_v52  ;;  %v5550_v52 = vld [vmem:[%s6066_s27 + $0xc] ss:$16 sps:$4 sm:$0xff]  }
 0x116   : > { %3779 = vmatpush2.bf16.msra.mxu1 %v5473_v53  ;;  %3737 = vmatprep.subr.bf16.mxu0 %v5478_v54  ;;  %v5553_v53 = vld [vmem:[%s6066_s27 + $0x20c] ss:$16 sps:$4 sm:$0xff]   ;;  %v5548_v54 = vld [vmem:[%s6066_s27 + $0x8] ss:$16 sps:$4 sm:$0xff]  }
 0x117   : > { %3780 = vmatprep.subr.bf16.mxu1 %v5481_v55  ;;  %v5551_v55 = vld [vmem:[%s6066_s27 + $0x208] ss:$16 sps:$4 sm:$0xff]  }
 0x119   : > { %3738 = vmatpush2.bf16.msra.mxu0 %v5476_v56  ;;  %v5556_v56 = vld [vmem:[%s6066_s27 + $0x1ec] ss:$16 sps:$4 sm:$0xff]  }
 0x11a   : > { %3781 = vmatpush2.bf16.msra.mxu1 %v5479_v58  ;;  %3739 = vmatprep.subr.bf16.mxu0 %v5484_v60  ;;  %v5559_v58 = vld [vmem:[%s6066_s27 + $0x3ec] ss:$16 sps:$4 sm:$0xff]   ;;  %v5554_v60 = vld [vmem:[%s6066_s27 + $0x1e8] ss:$16 sps:$4 sm:$0xff]  }
 0x11b   : > { %3782 = vmatprep.subr.bf16.mxu1 %v5487_v61  ;;  %v5557_v61 = vld [vmem:[%s6066_s27 + $0x3e8] ss:$16 sps:$4 sm:$0xff]  }
 0x11d   : > { %3740 = vmatpush2.bf16.msra.mxu0 %v5482_v4  ;;  %v5562_v4 = vld [vmem:[%s6066_s27 + $0x1cc] ss:$16 sps:$4 sm:$0xff]  }
 0x11e   : > { %3783 = vmatpush2.bf16.msra.mxu1 %v5485_v6  ;;  %3741 = vmatprep.subr.bf16.mxu0 %v5490_v46  ;;  %v5565_v6 = vld [vmem:[%s6066_s27 + $0x3cc] ss:$16 sps:$4 sm:$0xff]   ;;  %v5560_v46 = vld [vmem:[%s6066_s27 + $0x1c8] ss:$16 sps:$4 sm:$0xff]  }
 0x11f   : > { %3784 = vmatprep.subr.bf16.mxu1 %v5493_v47  ;;  %v5563_v47 = vld [vmem:[%s6066_s27 + $0x3c8] ss:$16 sps:$4 sm:$0xff]  }
 0x121   : > { %3742 = vmatpush2.bf16.msra.mxu0 %v5488_v8  ;;  %v5568_v8 = vld [vmem:[%s6066_s27 + $0x1ac] ss:$16 sps:$4 sm:$0xff]  }
 0x122   : > { %3785 = vmatpush2.bf16.msra.mxu1 %v5491_v9  ;;  %3743 = vmatprep.subr.bf16.mxu0 %v5496_v10  ;;  %v5571_v9 = vld [vmem:[%s6066_s27 + $0x3ac] ss:$16 sps:$4 sm:$0xff]   ;;  %v5566_v10 = vld [vmem:[%s6066_s27 + $0x1a8] ss:$16 sps:$4 sm:$0xff]  }
 0x123   : > { %3786 = vmatprep.subr.bf16.mxu1 %v5499_v11  ;;  %v5569_v11 = vld [vmem:[%s6066_s27 + $0x3a8] ss:$16 sps:$4 sm:$0xff]  }
 0x125   : > { %3744 = vmatpush2.bf16.msra.mxu0 %v5494_v12  ;;  %v5574_v12 = vld [vmem:[%s6066_s27 + $0x18c] ss:$16 sps:$4 sm:$0xff]  }
 0x126   : > { %3787 = vmatpush2.bf16.msra.mxu1 %v5497_v13  ;;  %3745 = vmatprep.subr.bf16.mxu0 %v5502_v14  ;;  %v5577_v13 = vld [vmem:[%s6066_s27 + $0x38c] ss:$16 sps:$4 sm:$0xff]   ;;  %v5572_v14 = vld [vmem:[%s6066_s27 + $0x188] ss:$16 sps:$4 sm:$0xff]  }
 0x127   : > { %3788 = vmatprep.subr.bf16.mxu1 %v5505_v15  ;;  %v5575_v15 = vld [vmem:[%s6066_s27 + $0x388] ss:$16 sps:$4 sm:$0xff]  }
 0x129   : > { %3746 = vmatpush2.bf16.msra.mxu0 %v5500_v16  ;;  %v5580_v16 = vld [vmem:[%s6066_s27 + $0x16c] ss:$16 sps:$4 sm:$0xff]  }
 0x12a   : > { %3789 = vmatpush2.bf16.msra.mxu1 %v5503_v17  ;;  %3801 = vmatprep.subr.bf16.mxu0 %v5508_v18  ;;  %v5583_v17 = vld [vmem:[%s6066_s27 + $0x36c] ss:$16 sps:$4 sm:$0xff]   ;;  %v5578_v18 = vld [vmem:[%s6066_s27 + $0x168] ss:$16 sps:$4 sm:$0xff]  }
 0x12b   : > { %3844 = vmatprep.subr.bf16.mxu1 %v5511_v19  ;;  %v5581_v19 = vld [vmem:[%s6066_s27 + $0x368] ss:$16 sps:$4 sm:$0xff]  }
 0x12c   : > { %3748 = vmatmul.mubr.bf16.vlgmr.msra.gmra.mxu0 %v6433_v20 }
 0x12d   : > { %3791 = vmatmul.mubr.bf16.vlgmr.msra.gmra.mxu1 %v6437_v21  ;;  %3802 = vmatpush1.bf16.msra.mxu0 %v5506_v22  ;;  %v5586_v22 = vld [vmem:[%s6066_s27 + $0x14c] ss:$16 sps:$4 sm:$0xff]  }
 0x12e   : > { %3845 = vmatpush1.bf16.msra.mxu1 %v5509_v23  ;;  %3803 = vmatprep.subr.bf16.mxu0 %v5514_v26  ;;  %v5589_v23 = vld [vmem:[%s6066_s27 + $0x34c] ss:$16 sps:$4 sm:$0xff]   ;;  %v5584_v26 = vld [vmem:[%s6066_s27 + $0x148] ss:$16 sps:$4 sm:$0xff]  }
 0x12f   : > { %3846 = vmatprep.subr.bf16.mxu1 %v5517_v27  ;;  %3833 = vmatprep.mubr.bf16.mxu0 %v6124_v5  ;;  %v5532_v5 = vld [vmem:[%s6066_s27 + $0x6c] ss:$16 sps:$4 sm:$0xff]   ;;  %v5587_v27 = vld [vmem:[%s6066_s27 + $0x348] ss:$16 sps:$4 sm:$0xff]  }
 0x130   : > { %3876 = vmatprep.mubr.bf16.mxu1 %v6127_v7  ;;  %v5535_v7 = vld [vmem:[%s6066_s27 + $0x26c] ss:$16 sps:$4 sm:$0xff]  }
 0x131   : > { %3804 = vmatpush1.bf16.msra.mxu0 %v5512_v62  ;;  %v5592_v62 = vld [vmem:[%s6066_s27 + $0x12c] ss:$16 sps:$4 sm:$0xff]  }
 0x132   : > { %3847 = vmatpush1.bf16.msra.mxu1 %v5515_v63  ;;  %3805 = vmatprep.subr.bf16.mxu0 %v5520_v2  ;;  %v5595_v63 = vld [vmem:[%s6066_s27 + $0x32c] ss:$16 sps:$4 sm:$0xff]   ;;  %v5590_v2 = vld [vmem:[%s6066_s27 + $0x128] ss:$16 sps:$4 sm:$0xff]  }
 0x133   : > { %3848 = vmatprep.subr.bf16.mxu1 %v5523_v3  ;;  %v5593_v3 = vld [vmem:[%s6066_s27 + $0x328] ss:$16 sps:$4 sm:$0xff]  }
 0x135   : > { %3806 = vmatpush1.bf16.msra.mxu0 %v5518_v28  ;;  %v5598_v28 = vld [vmem:[%s6066_s27 + $0x10c] ss:$16 sps:$4 sm:$0xff]  }
 0x136   : > { %3849 = vmatpush1.bf16.msra.mxu1 %v5521_v29  ;;  %3807 = vmatprep.subr.bf16.mxu0 %v5526_v30  ;;  %v5601_v29 = vld [vmem:[%s6066_s27 + $0x30c] ss:$16 sps:$4 sm:$0xff]   ;;  %v5596_v30 = vld [vmem:[%s6066_s27 + $0x108] ss:$16 sps:$4 sm:$0xff]  }
 0x137   : > { %3850 = vmatprep.subr.bf16.mxu1 %v5529_v31  ;;  %v5599_v31 = vld [vmem:[%s6066_s27 + $0x308] ss:$16 sps:$4 sm:$0xff]  }
 0x139   : > { %3808 = vmatpush1.bf16.msra.mxu0 %v5524_v32  ;;  %v5604_v32 = vld [vmem:[%s6066_s27 + $0x4ec] ss:$16 sps:$4 sm:$0xff]  }
 0x13a   : > { %3851 = vmatpush1.bf16.msra.mxu1 %v5527_v33  ;;  %3809 = vmatprep.subr.bf16.mxu0 %v5532_v5  ;;  %v5607_v33 = vld [vmem:[%s6066_s27 + $0x6ec] ss:$16 sps:$4 sm:$0xff]   ;;  %v5602_v5 = vld [vmem:[%s6066_s27 + $0x4e8] ss:$16 sps:$4 sm:$0xff]  }
 0x13b   : > { %3852 = vmatprep.subr.bf16.mxu1 %v5535_v7  ;;  %v5605_v7 = vld [vmem:[%s6066_s27 + $0x6e8] ss:$16 sps:$4 sm:$0xff]  }
 0x13d   : > { %3810 = vmatpush1.bf16.msra.mxu0 %v5530_v34  ;;  %v5610_v34 = vld [vmem:[%s6066_s27 + $0x4cc] ss:$16 sps:$4 sm:$0xff]  }
 0x13e   : > { %3853 = vmatpush1.bf16.msra.mxu1 %v5533_v35  ;;  %3811 = vmatprep.subr.bf16.mxu0 %v5538_v38  ;;  %v5613_v35 = vld [vmem:[%s6066_s27 + $0x6cc] ss:$16 sps:$4 sm:$0xff]   ;;  %v5608_v38 = vld [vmem:[%s6066_s27 + $0x4c8] ss:$16 sps:$4 sm:$0xff]  }
 0x13f   : > { %3854 = vmatprep.subr.bf16.mxu1 %v5541_v39  ;;  %v5611_v39 = vld [vmem:[%s6066_s27 + $0x6c8] ss:$16 sps:$4 sm:$0xff]  }
 0x141   : > { %3812 = vmatpush1.bf16.msra.mxu0 %v5536_v40  ;;  %v5616_v40 = vld [vmem:[%s6066_s27 + $0x4ac] ss:$16 sps:$4 sm:$0xff]  }
 0x142   : > { %3855 = vmatpush1.bf16.msra.mxu1 %v5539_v41  ;;  %3813 = vmatprep.subr.bf16.mxu0 %v5544_v42  ;;  %v5619_v41 = vld [vmem:[%s6066_s27 + $0x6ac] ss:$16 sps:$4 sm:$0xff]  }
 0x143   : > { %3856 = vmatprep.subr.bf16.mxu1 %v5547_v43  ;;  %v5622_v42 = vld [vmem:[%s6066_s27 + $0x48c] ss:$16 sps:$4 sm:$0xff]  }
 0x144   : > { %v5625_v43 = vld [vmem:[%s6066_s27 + $0x68c] ss:$16 sps:$4 sm:$0xff]  }
 0x145   : > { %3814 = vmatpush1.bf16.msra.mxu0 %v5542_v48  ;;  %v5620_v48 = vld [vmem:[%s6066_s27 + $0x488] ss:$16 sps:$4 sm:$0xff]  }
 0x146   : > { %3857 = vmatpush1.bf16.msra.mxu1 %v5545_v50  ;;  %3815 = vmatprep.subr.bf16.mxu0 %v5550_v52  ;;  %v5631_v50 = vld [vmem:[%s6066_s27 + $0x66c] ss:$16 sps:$4 sm:$0xff]   ;;  %v5626_v52 = vld [vmem:[%s6066_s27 + $0x468] ss:$16 sps:$4 sm:$0xff]  }
 0x147   : > { %3858 = vmatprep.subr.bf16.mxu1 %v5553_v53  ;;  %v5629_v53 = vld [vmem:[%s6066_s27 + $0x668] ss:$16 sps:$4 sm:$0xff]  }
 0x149   : > { %3816 = vmatpush1.bf16.msra.mxu0 %v5548_v54  ;;  %v5634_v54 = vld [vmem:[%s6066_s27 + $0x44c] ss:$16 sps:$4 sm:$0xff]  }
 0x14a   : > { %3859 = vmatpush1.bf16.msra.mxu1 %v5551_v55  ;;  %3817 = vmatprep.subr.bf16.mxu0 %v5556_v56  ;;  %v5637_v55 = vld [vmem:[%s6066_s27 + $0x64c] ss:$16 sps:$4 sm:$0xff]   ;;  %v5632_v56 = vld [vmem:[%s6066_s27 + $0x448] ss:$16 sps:$4 sm:$0xff]  }
 0x14b   : > { %3860 = vmatprep.subr.bf16.mxu1 %v5559_v58  ;;  %v5635_v58 = vld [vmem:[%s6066_s27 + $0x648] ss:$16 sps:$4 sm:$0xff]  }
 0x14d   : > { %3818 = vmatpush2.bf16.msra.mxu0 %v5554_v60  ;;  %v5640_v60 = vld [vmem:[%s6066_s27 + $0x42c] ss:$16 sps:$4 sm:$0xff]  }
 0x14e   : > { %3861 = vmatpush2.bf16.msra.mxu1 %v5557_v61  ;;  %3819 = vmatprep.subr.bf16.mxu0 %v5562_v4  ;;  %v5643_v61 = vld [vmem:[%s6066_s27 + $0x62c] ss:$16 sps:$4 sm:$0xff]   ;;  %v5638_v4 = vld [vmem:[%s6066_s27 + $0x428] ss:$16 sps:$4 sm:$0xff]  }
 0x14f   : > { %3862 = vmatprep.subr.bf16.mxu1 %v5565_v6  ;;  %v5641_v6 = vld [vmem:[%s6066_s27 + $0x628] ss:$16 sps:$4 sm:$0xff]  }
 0x151   : > { %3820 = vmatpush2.bf16.msra.mxu0 %v5560_v46  ;;  %v5646_v46 = vld [vmem:[%s6066_s27 + $0x40c] ss:$16 sps:$4 sm:$0xff]  }
 0x152   : > { %3863 = vmatpush2.bf16.msra.mxu1 %v5563_v47  ;;  %3821 = vmatprep.subr.bf16.mxu0 %v5568_v8  ;;  %v5649_v47 = vld [vmem:[%s6066_s27 + $0x60c] ss:$16 sps:$4 sm:$0xff]   ;;  %v5644_v8 = vld [vmem:[%s6066_s27 + $0x408] ss:$16 sps:$4 sm:$0xff]  }
 0x153   : > { %3864 = vmatprep.subr.bf16.mxu1 %v5571_v9  ;;  %v5647_v9 = vld [vmem:[%s6066_s27 + $0x608] ss:$16 sps:$4 sm:$0xff]  }
 0x155   : > { %3822 = vmatpush2.bf16.msra.mxu0 %v5566_v10  ;;  %v5652_v10 = vld [vmem:[%s6066_s27 + $0x5ec] ss:$16 sps:$4 sm:$0xff]  }
 0x156   : > { %3865 = vmatpush2.bf16.msra.mxu1 %v5569_v11  ;;  %3823 = vmatprep.subr.bf16.mxu0 %v5574_v12  ;;  %v5655_v11 = vld [vmem:[%s6066_s27 + $0x7ec] ss:$16 sps:$4 sm:$0xff]   ;;  %v5650_v12 = vld [vmem:[%s6066_s27 + $0x5e8] ss:$16 sps:$4 sm:$0xff]  }
 0x157   : > { %3866 = vmatprep.subr.bf16.mxu1 %v5577_v13  ;;  %v5653_v13 = vld [vmem:[%s6066_s27 + $0x7e8] ss:$16 sps:$4 sm:$0xff]  }
 0x159   : > { %3824 = vmatpush2.bf16.msra.mxu0 %v5572_v14  ;;  %v5658_v14 = vld [vmem:[%s6066_s27 + $0x5cc] ss:$16 sps:$4 sm:$0xff]  }
 0x15a   : > { %3867 = vmatpush2.bf16.msra.mxu1 %v5575_v15  ;;  %3825 = vmatprep.subr.bf16.mxu0 %v5580_v16  ;;  %v5661_v15 = vld [vmem:[%s6066_s27 + $0x7cc] ss:$16 sps:$4 sm:$0xff]   ;;  %v5656_v16 = vld [vmem:[%s6066_s27 + $0x5c8] ss:$16 sps:$4 sm:$0xff]  }
 0x15b   : > { %3868 = vmatprep.subr.bf16.mxu1 %v5583_v17  ;;  %v5659_v17 = vld [vmem:[%s6066_s27 + $0x7c8] ss:$16 sps:$4 sm:$0xff]  }
 0x15d   : > { %3826 = vmatpush2.bf16.msra.mxu0 %v5578_v18  ;;  %v5664_v18 = vld [vmem:[%s6066_s27 + $0x5ac] ss:$16 sps:$4 sm:$0xff]  }
 0x15e   : > { %3869 = vmatpush2.bf16.msra.mxu1 %v5581_v19  ;;  %3827 = vmatprep.subr.bf16.mxu0 %v5586_v22  ;;  %v5667_v19 = vld [vmem:[%s6066_s27 + $0x7ac] ss:$16 sps:$4 sm:$0xff]   ;;  %v5662_v22 = vld [vmem:[%s6066_s27 + $0x5a8] ss:$16 sps:$4 sm:$0xff]  }
 0x15f   : > { %3870 = vmatprep.subr.bf16.mxu1 %v5589_v23  ;;  %v5665_v23 = vld [vmem:[%s6066_s27 + $0x7a8] ss:$16 sps:$4 sm:$0xff]  }
 0x161   : > { %3828 = vmatpush2.bf16.msra.mxu0 %v5584_v26  ;;  %v5670_v26 = vld [vmem:[%s6066_s27 + $0x58c] ss:$16 sps:$4 sm:$0xff]  }
 0x162   : > { %3871 = vmatpush2.bf16.msra.mxu1 %v5587_v27  ;;  %3829 = vmatprep.subr.bf16.mxu0 %v5592_v62  ;;  %v5673_v27 = vld [vmem:[%s6066_s27 + $0x78c] ss:$16 sps:$4 sm:$0xff]   ;;  %v5668_v62 = vld [vmem:[%s6066_s27 + $0x588] ss:$16 sps:$4 sm:$0xff]  }
 0x163   : > { %3872 = vmatprep.subr.bf16.mxu1 %v5595_v63  ;;  %v5671_v63 = vld [vmem:[%s6066_s27 + $0x788] ss:$16 sps:$4 sm:$0xff]  }
 0x165   : > { %3830 = vmatpush2.bf16.msra.mxu0 %v5590_v2  ;;  %v5676_v2 = vld [vmem:[%s6066_s27 + $0x56c] ss:$16 sps:$4 sm:$0xff]  }
 0x166   : > { %3873 = vmatpush2.bf16.msra.mxu1 %v5593_v3  ;;  %3831 = vmatprep.subr.bf16.mxu0 %v5598_v28  ;;  %v5679_v3 = vld [vmem:[%s6066_s27 + $0x76c] ss:$16 sps:$4 sm:$0xff]   ;;  %v5674_v28 = vld [vmem:[%s6066_s27 + $0x568] ss:$16 sps:$4 sm:$0xff]  }
 0x167   : > { %3874 = vmatprep.subr.bf16.mxu1 %v5601_v29  ;;  %v5677_v29 = vld [vmem:[%s6066_s27 + $0x768] ss:$16 sps:$4 sm:$0xff]  }
 0x169   : > { %3832 = vmatpush2.bf16.msra.mxu0 %v5596_v30  ;;  %v5682_v30 = vld [vmem:[%s6066_s27 + $0x54c] ss:$16 sps:$4 sm:$0xff]  }
 0x16a   : > { %3875 = vmatpush2.bf16.msra.mxu1 %v5599_v31  ;;  %3887 = vmatprep.subr.bf16.mxu0 %v5604_v32  ;;  %v5685_v31 = vld [vmem:[%s6066_s27 + $0x74c] ss:$16 sps:$4 sm:$0xff]   ;;  %v5680_v32 = vld [vmem:[%s6066_s27 + $0x548] ss:$16 sps:$4 sm:$0xff]  }
 0x16b   : > { %3930 = vmatprep.subr.bf16.mxu1 %v5607_v33  ;;  %v5683_v33 = vld [vmem:[%s6066_s27 + $0x748] ss:$16 sps:$4 sm:$0xff]  }
 0x16c   : > { %3834 = vmatmul.mubr.bf16.vlgmr.msra.gmra.mxu0 %v6147_v24  ;;  %v5614_v24 = vld [vmem:[%s6066_s27 + $0x4a8] ss:$16 sps:$4 sm:$0xff]  }
 0x16d   : > { %3877 = vmatmul.mubr.bf16.vlgmr.msra.gmra.mxu1 %v6149_v25  ;;  %3888 = vmatpush1.bf16.msra.mxu0 %v5602_v5  ;;  %v5617_v25 = vld [vmem:[%s6066_s27 + $0x6a8] ss:$16 sps:$4 sm:$0xff]   ;;  %v5688_v5 = vld [vmem:[%s6066_s27 + $0x52c] ss:$16 sps:$4 sm:$0xff]  }
 0x16e   : > { %3931 = vmatpush1.bf16.msra.mxu1 %v5605_v7  ;;  %3889 = vmatprep.subr.bf16.mxu0 %v5610_v34  ;;  %v5691_v7 = vld [vmem:[%s6066_s27 + $0x72c] ss:$16 sps:$4 sm:$0xff]   ;;  %v5686_v34 = vld [vmem:[%s6066_s27 + $0x528] ss:$16 sps:$4 sm:$0xff]  }
 0x16f   : > { %3932 = vmatprep.subr.bf16.mxu1 %v5613_v35  ;;  %3919 = vmatprep.mubr.bf16.mxu0 %v6194_v57  ;;  %v5623_v57 = vld [vmem:[%s6066_s27 + $0x688] ss:$16 sps:$4 sm:$0xff]  }
 0x170   : > { %3962 = vmatprep.mubr.bf16.mxu1 %v6199_v59  ;;  %v5628_v59 = vld [vmem:[%s6066_s27 + $0x46c] ss:$16 sps:$4 sm:$0xff]   ;;  %v5689_v35 = vld [vmem:[%s6066_s27 + $0x728] ss:$16 sps:$4 sm:$0xff]  }
 0x171   : > { %3890 = vmatpush1.bf16.msra.mxu0 %v5608_v38  ;;  %v5694_v38 = vld [vmem:[%s6066_s27 + $0x50c] ss:$16 sps:$4 sm:$0xff]  }
 0x172   : > { %3933 = vmatpush1.bf16.msra.mxu1 %v5611_v39  ;;  %3891 = vmatprep.subr.bf16.mxu0 %v5616_v40  ;;  %v5697_v39 = vld [vmem:[%s6066_s27 + $0x70c] ss:$16 sps:$4 sm:$0xff]   ;;  %v5692_v40 = vld [vmem:[%s6066_s27 + $0x508] ss:$16 sps:$4 sm:$0xff]  }
 0x173   : > { %3934 = vmatprep.subr.bf16.mxu1 %v5619_v41  ;;  %v5695_v41 = vld [vmem:[%s6066_s27 + $0x708] ss:$16 sps:$4 sm:$0xff]  }
 0x175   : > { %3892 = vmatpush1.bf16.msra.mxu0 %v5614_v24  ;;  %v5700_v24 = vld [vmem:[%s6066_s27 + $0x8ec] ss:$16 sps:$4 sm:$0xff]  }
 0x176   : > { %3935 = vmatpush1.bf16.msra.mxu1 %v5617_v25  ;;  %3893 = vmatprep.subr.bf16.mxu0 %v5622_v42  ;;  %v5703_v25 = vld [vmem:[%s6066_s27 + $0xaec] ss:$16 sps:$4 sm:$0xff]   ;;  %v5698_v42 = vld [vmem:[%s6066_s27 + $0x8e8] ss:$16 sps:$4 sm:$0xff]  }
 0x177   : > { %3936 = vmatprep.subr.bf16.mxu1 %v5625_v43  ;;  %v5701_v43 = vld [vmem:[%s6066_s27 + $0xae8] ss:$16 sps:$4 sm:$0xff]  }
 0x179   : > { %3894 = vmatpush1.bf16.msra.mxu0 %v5620_v48  ;;  %v5706_v48 = vld [vmem:[%s6066_s27 + $0x8cc] ss:$16 sps:$4 sm:$0xff]  }
 0x17a   : > { %3937 = vmatpush1.bf16.msra.mxu1 %v5623_v57  ;;  %3895 = vmatprep.subr.bf16.mxu0 %v5628_v59  ;;  %v5709_v57 = vld [vmem:[%s6066_s27 + $0xacc] ss:$16 sps:$4 sm:$0xff]   ;;  %v5704_v59 = vld [vmem:[%s6066_s27 + $0x8c8] ss:$16 sps:$4 sm:$0xff]  }
 0x17b   : > { %3938 = vmatprep.subr.bf16.mxu1 %v5631_v50  ;;  %v5707_v50 = vld [vmem:[%s6066_s27 + $0xac8] ss:$16 sps:$4 sm:$0xff]  }
 0x17d   : > { %3896 = vmatpush1.bf16.msra.mxu0 %v5626_v52  ;;  %v5712_v52 = vld [vmem:[%s6066_s27 + $0x8ac] ss:$16 sps:$4 sm:$0xff]  }
 0x17e   : > { %3939 = vmatpush1.bf16.msra.mxu1 %v5629_v53  ;;  %3897 = vmatprep.subr.bf16.mxu0 %v5634_v54  ;;  %v5715_v53 = vld [vmem:[%s6066_s27 + $0xaac] ss:$16 sps:$4 sm:$0xff]  }
 0x17f   : > { %3940 = vmatprep.subr.bf16.mxu1 %v5637_v55  ;;  %v5718_v54 = vld [vmem:[%s6066_s27 + $0x88c] ss:$16 sps:$4 sm:$0xff]  }
 0x180   : > { %v5721_v55 = vld [vmem:[%s6066_s27 + $0xa8c] ss:$16 sps:$4 sm:$0xff]  }
 0x181   : > { %3898 = vmatpush1.bf16.msra.mxu0 %v5632_v56  ;;  %v5716_v56 = vld [vmem:[%s6066_s27 + $0x888] ss:$16 sps:$4 sm:$0xff]  }
 0x182   : > { %3941 = vmatpush1.bf16.msra.mxu1 %v5635_v58  ;;  %3899 = vmatprep.subr.bf16.mxu0 %v5640_v60  ;;  %v5727_v58 = vld [vmem:[%s6066_s27 + $0xa6c] ss:$16 sps:$4 sm:$0xff]   ;;  %v5722_v60 = vld [vmem:[%s6066_s27 + $0x868] ss:$16 sps:$4 sm:$0xff]  }
 0x183   : > { %3942 = vmatprep.subr.bf16.mxu1 %v5643_v61  ;;  %v5725_v61 = vld [vmem:[%s6066_s27 + $0xa68] ss:$16 sps:$4 sm:$0xff]  }
 0x185   : > { %3900 = vmatpush1.bf16.msra.mxu0 %v5638_v4  ;;  %v5730_v4 = vld [vmem:[%s6066_s27 + $0x84c] ss:$16 sps:$4 sm:$0xff]  }
 0x186   : > { %3943 = vmatpush1.bf16.msra.mxu1 %v5641_v6  ;;  %3901 = vmatprep.subr.bf16.mxu0 %v5646_v46  ;;  %v5733_v6 = vld [vmem:[%s6066_s27 + $0xa4c] ss:$16 sps:$4 sm:$0xff]   ;;  %v5728_v46 = vld [vmem:[%s6066_s27 + $0x848] ss:$16 sps:$4 sm:$0xff]  }
 0x187   : > { %3944 = vmatprep.subr.bf16.mxu1 %v5649_v47  ;;  %v5731_v47 = vld [vmem:[%s6066_s27 + $0xa48] ss:$16 sps:$4 sm:$0xff]  }
 0x189   : > { %3902 = vmatpush1.bf16.msra.mxu0 %v5644_v8  ;;  %v5736_v8 = vld [vmem:[%s6066_s27 + $0x82c] ss:$16 sps:$4 sm:$0xff]  }
 0x18a   : > { %3945 = vmatpush1.bf16.msra.mxu1 %v5647_v9  ;;  %3903 = vmatprep.subr.bf16.mxu0 %v5652_v10  ;;  %v5739_v9 = vld [vmem:[%s6066_s27 + $0xa2c] ss:$16 sps:$4 sm:$0xff]   ;;  %v5734_v10 = vld [vmem:[%s6066_s27 + $0x828] ss:$16 sps:$4 sm:$0xff]  }
 0x18b   : > { %3946 = vmatprep.subr.bf16.mxu1 %v5655_v11  ;;  %v5737_v11 = vld [vmem:[%s6066_s27 + $0xa28] ss:$16 sps:$4 sm:$0xff]  }
 0x18d   : > { %3904 = vmatpush2.bf16.msra.mxu0 %v5650_v12  ;;  %v6605_v12 = vpop.f32.mrf.mxu0 }
 0x18e   : > { %3947 = vmatpush2.bf16.msra.mxu1 %v5653_v13  ;;  %3905 = vmatprep.subr.bf16.mxu0 %v5658_v14  ;;  %v6607_v13 = vpop.f32.mrf.mxu1  ;;  %v5742_v14 = vld [vmem:[%s6066_s27 + $0x80c] ss:$16 sps:$4 sm:$0xff]  }
 0x18f   : > { %3948 = vmatprep.subr.bf16.mxu1 %v5661_v15  ;;  %v5745_v15 = vld [vmem:[%s6066_s27 + $0xa0c] ss:$16 sps:$4 sm:$0xff]  }
 0x191   : > { %3906 = vmatpush2.bf16.msra.mxu0 %v5656_v16  ;;  %v5740_v16 = vld [vmem:[%s6066_s27 + $0x808] ss:$16 sps:$4 sm:$0xff]  }
 0x192   : > { %3949 = vmatpush2.bf16.msra.mxu1 %v5659_v17  ;;  %3907 = vmatprep.subr.bf16.mxu0 %v5664_v18  ;;  %v5743_v17 = vld [vmem:[%s6066_s27 + $0xa08] ss:$16 sps:$4 sm:$0xff]   ;;  %v6613_v18 = vpop.f32.mrf.mxu0 }
 0x193   : > { %3950 = vmatprep.subr.bf16.mxu1 %v5667_v19  ;;  %v6615_v19 = vpop.f32.mrf.mxu1 }
 0x195   : > { %3908 = vmatpush2.bf16.msra.mxu0 %v5662_v22  ;;  %v5748_v22 = vld [vmem:[%s6066_s27 + $0x9ec] ss:$16 sps:$4 sm:$0xff]  }
 0x196   : > { %3951 = vmatpush2.bf16.msra.mxu1 %v5665_v23  ;;  %3909 = vmatprep.subr.bf16.mxu0 %v5670_v26  ;;  %v5751_v23 = vld [vmem:[%s6066_s27 + $0xbec] ss:$16 sps:$4 sm:$0xff]   ;;  %v5746_v26 = vld [vmem:[%s6066_s27 + $0x9e8] ss:$16 sps:$4 sm:$0xff]  }
 0x197   : > { %3952 = vmatprep.subr.bf16.mxu1 %v5673_v27  ;;  %v5749_v27 = vld [vmem:[%s6066_s27 + $0xbe8] ss:$16 sps:$4 sm:$0xff]  }
 0x199   : > { %3910 = vmatpush2.bf16.msra.mxu0 %v5668_v62  ;;  %v6621_v62 = vpop.f32.mrf.mxu0 }
 0x19a   : > { %3953 = vmatpush2.bf16.msra.mxu1 %v5671_v63  ;;  %3911 = vmatprep.subr.bf16.mxu0 %v5676_v2  ;;  %v6623_v63 = vpop.f32.mrf.mxu1  ;;  %v5754_v2 = vld [vmem:[%s6066_s27 + $0x9cc] ss:$16 sps:$4 sm:$0xff]  }
 0x19b   : > { %3954 = vmatprep.subr.bf16.mxu1 %v5679_v3  ;;  %v5757_v3 = vld [vmem:[%s6066_s27 + $0xbcc] ss:$16 sps:$4 sm:$0xff]  }
 0x19d   : > { %3912 = vmatpush2.bf16.msra.mxu0 %v5674_v28  ;;  %v5752_v28 = vld [vmem:[%s6066_s27 + $0x9c8] ss:$16 sps:$4 sm:$0xff]  }
 0x19e   : > { %3955 = vmatpush2.bf16.msra.mxu1 %v5677_v29  ;;  %3913 = vmatprep.subr.bf16.mxu0 %v5682_v30  ;;  %v5755_v29 = vld [vmem:[%s6066_s27 + $0xbc8] ss:$16 sps:$4 sm:$0xff]   ;;  %v6629_v30 = vpop.f32.mrf.mxu0 }
 0x19f   : > { %3956 = vmatprep.subr.bf16.mxu1 %v5685_v31  ;;  %v3540_v31 = vpop.f32.mrf.mxu1 }
 0x1a1   : > { %3914 = vmatpush2.bf16.msra.mxu0 %v5680_v32  ;;  %v5760_v32 = vld [vmem:[%s6066_s27 + $0x9ac] ss:$16 sps:$4 sm:$0xff]  }
 0x1a2   : > { %3957 = vmatpush2.bf16.msra.mxu1 %v5683_v33  ;;  %3915 = vmatprep.subr.bf16.mxu0 %v5688_v5  ;;  %v5763_v33 = vld [vmem:[%s6066_s27 + $0xbac] ss:$16 sps:$4 sm:$0xff]   ;;  %v3577_v5 = vpop.f32.mrf.mxu0 }
 0x1a3   : > { %3958 = vmatprep.subr.bf16.mxu1 %v5691_v7  ;;  %v3620_v7 = vpop.f32.mrf.mxu1 }
 0x1a5   : > { %3916 = vmatpush2.bf16.msra.mxu0 %v5686_v34  ;;  %v5758_v34 = vld [vmem:[%s6066_s27 + $0x9a8] ss:$16 sps:$4 sm:$0xff]  }
 0x1a6   : > { %3959 = vmatpush2.bf16.msra.mxu1 %v5689_v35  ;;  %3917 = vmatprep.subr.bf16.mxu0 %v5694_v38  ;;  %v5761_v35 = vld [vmem:[%s6066_s27 + $0xba8] ss:$16 sps:$4 sm:$0xff]   ;;  %v5766_v38 = vld [vmem:[%s6066_s27 + $0x98c] ss:$16 sps:$4 sm:$0xff]  }
 0x1a7   : > { %3960 = vmatprep.subr.bf16.mxu1 %v5697_v39  ;;  %v5769_v39 = vld [vmem:[%s6066_s27 + $0xb8c] ss:$16 sps:$4 sm:$0xff]  }
 0x1a9   : > { %3918 = vmatpush2.bf16.msra.mxu0 %v5692_v40  ;;  %v3579_v40 = vpop.f32.mrf.mxu0 }
 0x1aa   : > { %3961 = vmatpush2.bf16.msra.mxu1 %v5695_v41  ;;  %3973 = vmatprep.subr.bf16.mxu0 %v5700_v24  ;;  %v3622_v41 = vpop.f32.mrf.mxu1  ;;  %v5764_v24 = vld [vmem:[%s6066_s27 + $0x988] ss:$16 sps:$4 sm:$0xff]  }
 0x1ab   : > { %4016 = vmatprep.subr.bf16.mxu1 %v5703_v25  ;;  %v5767_v25 = vld [vmem:[%s6066_s27 + $0xb88] ss:$16 sps:$4 sm:$0xff]  }
 0x1ac   : > { %3920 = vmatmul.mubr.bf16.vlgmr.msra.gmra.mxu0 %v6241_v36  ;;  %v5710_v36 = vld [vmem:[%s6066_s27 + $0x8a8] ss:$16 sps:$4 sm:$0xff]  }
 0x1ad   : > { %3963 = vmatmul.mubr.bf16.vlgmr.msra.gmra.mxu1 %v6245_v37  ;;  %3974 = vmatpush1.bf16.msra.mxu0 %v5698_v42  ;;  %v5713_v37 = vld [vmem:[%s6066_s27 + $0xaa8] ss:$16 sps:$4 sm:$0xff]   ;;  %v5772_v42 = vld [vmem:[%s6066_s27 + $0x96c] ss:$16 sps:$4 sm:$0xff]  }
 0x1ae   : > { %4017 = vmatpush1.bf16.msra.mxu1 %v5701_v43  ;;  %3975 = vmatprep.subr.bf16.mxu0 %v5706_v48  ;;  %v5775_v43 = vld [vmem:[%s6066_s27 + $0xb6c] ss:$16 sps:$4 sm:$0xff]   ;;  %v3581_v48 = vpop.f32.mrf.mxu0 }
 0x1af   : > { %4018 = vmatprep.subr.bf16.mxu1 %v5709_v57  ;;  %4005 = vmatprep.mubr.bf16.mxu0 %v6270_v49  ;;  %v5719_v49 = vld [vmem:[%s6066_s27 + $0xa88] ss:$16 sps:$4 sm:$0xff]   ;;  %v3624_v57 = vpop.f32.mrf.mxu1 }
 0x1b0   : > { %4048 = vmatprep.mubr.bf16.mxu1 %v6275_v51  ;;  %v5724_v51 = vld [vmem:[%s6066_s27 + $0x86c] ss:$16 sps:$4 sm:$0xff]  }
 0x1b1   : > { %3976 = vmatpush1.bf16.msra.mxu0 %v5704_v59  ;;  %v5770_v59 = vld [vmem:[%s6066_s27 + $0x968] ss:$16 sps:$4 sm:$0xff]  }
 0x1b2   : > { %4019 = vmatpush1.bf16.msra.mxu1 %v5707_v50  ;;  %3977 = vmatprep.subr.bf16.mxu0 %v5712_v52  ;;  %v5773_v50 = vld [vmem:[%s6066_s27 + $0xb68] ss:$16 sps:$4 sm:$0xff]   ;;  %v5778_v52 = vld [vmem:[%s6066_s27 + $0x94c] ss:$16 sps:$4 sm:$0xff]  }
 0x1b3   : > { %4020 = vmatprep.subr.bf16.mxu1 %v5715_v53  ;;  %v5781_v53 = vld [vmem:[%s6066_s27 + $0xb4c] ss:$16 sps:$4 sm:$0xff]  }
 0x1b5   : > { %3978 = vmatpush1.bf16.msra.mxu0 %v5710_v36  ;;  %v3583_v36 = vpop.f32.mrf.mxu0 }
 0x1b6   : > { %4021 = vmatpush1.bf16.msra.mxu1 %v5713_v37  ;;  %3979 = vmatprep.subr.bf16.mxu0 %v5718_v54  ;;  %v3626_v37 = vpop.f32.mrf.mxu1  ;;  %v5776_v54 = vld [vmem:[%s6066_s27 + $0x948] ss:$16 sps:$4 sm:$0xff]  }
 0x1b7   : > { %4022 = vmatprep.subr.bf16.mxu1 %v5721_v55  ;;  %v5779_v55 = vld [vmem:[%s6066_s27 + $0xb48] ss:$16 sps:$4 sm:$0xff]  }
 0x1b9   : > { %3980 = vmatpush1.bf16.msra.mxu0 %v5716_v56  ;;  %v3663_v56 = vpop.f32.mrf.mxu0 }
 0x1ba   : > { %4023 = vmatpush1.bf16.msra.mxu1 %v5719_v49  ;;  %3981 = vmatprep.subr.bf16.mxu0 %v5724_v51  ;;  %v3706_v49 = vpop.f32.mrf.mxu1  ;;  %v5784_v51 = vld [vmem:[%s6066_s27 + $0x92c] ss:$16 sps:$4 sm:$0xff]  }
 0x1bb   : > { %4024 = vmatprep.subr.bf16.mxu1 %v5727_v58  ;;  %v5787_v58 = vld [vmem:[%s6066_s27 + $0xb2c] ss:$16 sps:$4 sm:$0xff]  }
 0x1bd   : > { %3982 = vmatpush1.bf16.msra.mxu0 %v5722_v60  ;;  %v3535_v60 = vadd.f32 %v6607_v13, %v6605_v12  ;;  %v3541_v13 = vadd.f32 %v3540_v31, %v6629_v30  ;;  %v5802_v31 = vld [vmem:[%s6066_s27 + $0xccc] ss:$16 sps:$4 sm:$0xff]  }
 0x1be   : > { %4025 = vmatpush1.bf16.msra.mxu1 %v5725_v61  ;;  %3983 = vmatprep.subr.bf16.mxu0 %v5730_v4  ;;  %v3537_v61 = vadd.f32 %v6615_v19, %v6613_v18 }
 0x1bf   : > { %4026 = vmatprep.subr.bf16.mxu1 %v5733_v6  ;;  %v3578_v4 = vadd.f32 %v3577_v5, %v3535_v60  ;;  %v5782_v6 = vld [vmem:[%s6066_s27 + $0x928] ss:$16 sps:$4 sm:$0xff]  }
 0x1c0   : > { %v3580_v12 = vadd.f32 %v3579_v40, %v3537_v61  ;;  %v5812_v60 = vld [vmem:[%s6066_s27 + $0xc88] ss:$16 sps:$4 sm:$0xff]  }
 0x1c1   : > { %3984 = vmatpush1.bf16.msra.mxu0 %v5728_v46  ;;  %v5785_v46 = vld [vmem:[%s6066_s27 + $0xb28] ss:$16 sps:$4 sm:$0xff]  }
 0x1c2   : > { %4027 = vmatpush1.bf16.msra.mxu1 %v5731_v47  ;;  %3985 = vmatprep.subr.bf16.mxu0 %v5736_v8  ;;  %v3665_v47 = vpop.f32.mrf.mxu0  ;;  %v3708_v8 = vpop.f32.mrf.mxu1  ;;  %v5815_v61 = vld [vmem:[%s6066_s27 + $0xe88] ss:$16 sps:$4 sm:$0xff]  }
 0x1c3   : > { %4028 = vmatprep.subr.bf16.mxu1 %v5739_v9  ;;  %v5790_v9 = vld [vmem:[%s6066_s27 + $0x90c] ss:$16 sps:$4 sm:$0xff]  }
 0x1c4   : > { %v3667_v18 = vpop.f32.mrf.mxu0  ;;  %v3710_v19 = vpop.f32.mrf.mxu1 }
 0x1c5   : > { %3986 = vmatpush1.bf16.msra.mxu0 %v5734_v10  ;;  %v5793_v10 = vld [vmem:[%s6066_s27 + $0xb0c] ss:$16 sps:$4 sm:$0xff]  }
 0x1c6   : > { %4029 = vmatpush1.bf16.msra.mxu1 %v5737_v11  ;;  %3987 = vmatprep.subr.bf16.mxu0 %v5742_v14  ;;  %v3539_v11 = vadd.f32 %v6623_v63, %v6621_v62  ;;  %v3621_v14 = vadd.f32 %v3620_v7, %v3578_v4  ;;  %v3712_v30 = vpop.f32.mrf.mxu1  ;;  %v5820_v4 = vld [vmem:[%s6066_s27 + $0xc6c] ss:$16 sps:$4 sm:$0xff]  }
 0x1c7   : > { %4030 = vmatprep.subr.bf16.mxu1 %v5745_v15 }
 0x1c8   : > { %v3582_v15 = vadd.f32 %v3581_v48, %v3539_v11  ;;  %v3664_v62 = vadd.f32 %v3663_v56, %v3621_v14  ;;  %v5811_v48 = vld [vmem:[%s6066_s27 + $0xeac] ss:$16 sps:$4 sm:$0xff]   ;;  %v5827_v11 = vld [vmem:[%s6066_s27 + $0xe48] ss:$16 sps:$4 sm:$0xff]  }
 0x1c9   : > { %3988 = vmatpush1.bf16.msra.mxu0 %v5740_v16  ;;  %v5788_v16 = vld [vmem:[%s6066_s27 + $0x908] ss:$16 sps:$4 sm:$0xff]  }
 0x1ca   : > { %4031 = vmatpush1.bf16.msra.mxu1 %v5743_v17  ;;  %3989 = vmatprep.subr.bf16.mxu0 %v5748_v22  ;;  %v5791_v17 = vld [vmem:[%s6066_s27 + $0xb08] ss:$16 sps:$4 sm:$0xff]   ;;  %v5796_v22 = vld [vmem:[%s6066_s27 + $0xcec] ss:$16 sps:$4 sm:$0xff]   ;;  %v3625_v63 = vadd.f32 %v3624_v57, %v3582_v15  ;;  %v3707_v5 = vadd.f32 %v3706_v49, %v3664_v62 }
 0x1cb   : > { %4032 = vmatprep.subr.bf16.mxu1 %v5751_v23  ;;  %v5799_v23 = vld [vmem:[%s6066_s27 + $0xeec] ss:$16 sps:$4 sm:$0xff]   ;;  %v5830_v14 = vld [vmem:[%s6066_s27 + $0xc28] ss:$16 sps:$4 sm:$0xff]  }
 0x1cc   : > { %v3668_v7 = vadd.f32 %v3667_v18, %v3625_v63  ;;  %v5833_v15 = vld [vmem:[%s6066_s27 + $0xe28] ss:$16 sps:$4 sm:$0xff]   ;;  %v5850_v62 = vld [vmem:[%s6066_s27 + $0xdcc] ss:$16 sps:$4 sm:$0xff]  }
 0x1cd   : > { %3990 = vmatpush2.bf16.msra.mxu0 %v5746_v26  ;;  %v3623_v26 = vadd.f32 %v3622_v41, %v3580_v12  ;;  %v5800_v41 = vld [vmem:[%s6066_s27 + $0xcc8] ss:$16 sps:$4 sm:$0xff]   ;;  %v5832_v12 = vld [vmem:[%s6066_s27 + $0xc2c] ss:$16 sps:$4 sm:$0xff]  }
 0x1ce   : > { %4033 = vmatpush2.bf16.msra.mxu1 %v5749_v27  ;;  %3991 = vmatprep.subr.bf16.mxu0 %v5754_v2  ;;  %v3584_v27 = vadd.f32 %v3583_v36, %v3541_v13  ;;  %v3711_v57 = vadd.f32 %v3710_v19, %v3668_v7  ;;  %v5835_v13 = vld [vmem:[%s6066_s27 + $0xe2c] ss:$16 sps:$4 sm:$0xff]   ;;  %v5836_v18 = vld [vmem:[%s6066_s27 + $0xc08] ss:$16 sps:$4 sm:$0xff]  }
 0x1cf   : > { %4034 = vmatprep.subr.bf16.mxu1 %v5757_v3  ;;  %v3666_v2 = vadd.f32 %v3665_v47, %v3623_v26  ;;  %v5794_v3 = vld [vmem:[%s6066_s27 + $0xce8] ss:$16 sps:$4 sm:$0xff]   ;;  %v5853_v63 = vld [vmem:[%s6066_s27 + $0xfcc] ss:$16 sps:$4 sm:$0xff]  }
 0x1d0   : > { %v5821_v47 = vld [vmem:[%s6066_s27 + $0xe68] ss:$16 sps:$4 sm:$0xff]  }
 0x1d1   : > { %3992 = vmatpush2.bf16.msra.mxu0 %v5752_v28  ;;  %v5797_v28 = vld [vmem:[%s6066_s27 + $0xee8] ss:$16 sps:$4 sm:$0xff]  }
 0x1d2   : > { %4035 = vmatpush2.bf16.msra.mxu1 %v5755_v29  ;;  %3993 = vmatprep.subr.bf16.mxu0 %v5760_v32  ;;  %v3669_v29 = vpop.f32.mrf.mxu0  ;;  %v5805_v32 = vld [vmem:[%s6066_s27 + $0xecc] ss:$16 sps:$4 sm:$0xff]   ;;  %v5839_v19 = vld [vmem:[%s6066_s27 + $0xe08] ss:$16 sps:$4 sm:$0xff]  }
 0x1d3   : > { %4036 = vmatprep.subr.bf16.mxu1 %v5763_v33  ;;  %v3627_v33 = vadd.f32 %v3626_v37, %v3584_v27  ;;  %v5806_v37 = vld [vmem:[%s6066_s27 + $0xca8] ss:$16 sps:$4 sm:$0xff]  }
 0x1d4   : > { %v5842_v26 = vld [vmem:[%s6066_s27 + $0xde8] ss:$16 sps:$4 sm:$0xff]  }
 0x1d5   : > { %3994 = vmatpush2.bf16.msra.mxu0 %v5758_v34  ;;  %v5845_v27 = vld [vmem:[%s6066_s27 + $0xfe8] ss:$16 sps:$4 sm:$0xff]  }
 0x1d6   : > { %4037 = vmatpush2.bf16.msra.mxu1 %v5761_v35  ;;  %3995 = vmatprep.subr.bf16.mxu0 %v5766_v38  ;;  %v3709_v38 = vadd.f32 %v3708_v8, %v3666_v2  ;;  %v5826_v8 = vld [vmem:[%s6066_s27 + $0xc4c] ss:$16 sps:$4 sm:$0xff]   ;;  %v5848_v2 = vld [vmem:[%s6066_s27 + $0xdc8] ss:$16 sps:$4 sm:$0xff]  }
 0x1d7   : > { %4038 = vmatprep.subr.bf16.mxu1 %v5769_v39  ;;  %v3670_v39 = vadd.f32 %v3669_v29, %v3627_v33  ;;  %v5859_v29 = vld [vmem:[%s6066_s27 + $0xfac] ss:$16 sps:$4 sm:$0xff]   ;;  %v5863_v7 = vld [vmem:[%s6066_s27 + $0xf88] ss:$16 sps:$4 sm:$0xff]  }
 0x1d8   : > { %v5865_v33 = vld [vmem:[%s6066_s27 + $0xf8c] ss:$16 sps:$4 sm:$0xff]  }
 0x1d9   : > { %3996 = vmatpush2.bf16.msra.mxu0 %v5764_v24  ;;  %v5803_v24 = vld [vmem:[%s6066_s27 + $0xec8] ss:$16 sps:$4 sm:$0xff]  }
 0x1da   : > { %4039 = vmatpush2.bf16.msra.mxu1 %v5767_v25  ;;  %3997 = vmatprep.subr.bf16.mxu0 %v5772_v42 }
 0x1db   : > { %4040 = vmatprep.subr.bf16.mxu1 %v5775_v43  ;;  %v5808_v43 = vld [vmem:[%s6066_s27 + $0xcac] ss:$16 sps:$4 sm:$0xff]  }
 0x1dd   : > { %3998 = vmatpush2.bf16.msra.mxu0 %v5770_v59 }
 0x1de   : > { %4041 = vmatpush2.bf16.msra.mxu1 %v5773_v50  ;;  %3999 = vmatprep.subr.bf16.mxu0 %v5778_v52  ;;  %v3713_v52 = vadd.f32 %v3712_v30, %v3670_v39  ;;  %v5854_v30 = vld [vmem:[%s6066_s27 + $0xda8] ss:$16 sps:$4 sm:$0xff]  }
 0x1df   : > { %4042 = vmatprep.subr.bf16.mxu1 %v5781_v53  ;;  %v5869_v39 = vld [vmem:[%s6066_s27 + $0xf68] ss:$16 sps:$4 sm:$0xff]  }
 0x1e1   : > { %4000 = vmatpush2.bf16.msra.mxu0 %v5776_v54  ;;  %v5809_v54 = vld [vmem:[%s6066_s27 + $0xea8] ss:$16 sps:$4 sm:$0xff]  }
 0x1e2   : > { %4043 = vmatpush2.bf16.msra.mxu1 %v5779_v55  ;;  %4001 = vmatprep.subr.bf16.mxu0 %v5784_v51 }
 0x1e3   : > { %4044 = vmatprep.subr.bf16.mxu1 %v5787_v58 }
 0x1e5   : > { %4002 = vmatpush2.bf16.msra.mxu0 %v5782_v6  ;;  %v5823_v6 = vld [vmem:[%s6066_s27 + $0xe6c] ss:$16 sps:$4 sm:$0xff]  }
 0x1e6   : > { %4045 = vmatpush2.bf16.msra.mxu1 %v5785_v46  ;;  %4003 = vmatprep.subr.bf16.mxu0 %v5790_v9  ;;  %v5818_v46 = vld [vmem:[%s6066_s27 + $0xc68] ss:$16 sps:$4 sm:$0xff]   ;;  %v5829_v9 = vld [vmem:[%s6066_s27 + $0xe4c] ss:$16 sps:$4 sm:$0xff]  }
 0x1e7   : > { %4046 = vmatprep.subr.bf16.mxu1 %v5793_v10  ;;  %v5824_v10 = vld [vmem:[%s6066_s27 + $0xc48] ss:$16 sps:$4 sm:$0xff]  }
 0x1e9   : > { %4004 = vmatpush2.bf16.msra.mxu0 %v5788_v16  ;;  %v5838_v16 = vld [vmem:[%s6066_s27 + $0xc0c] ss:$16 sps:$4 sm:$0xff]  }
 0x1ea   : > { %4047 = vmatpush2.bf16.msra.mxu1 %v5791_v17  ;;  %4059 = vmatprep.subr.bf16.mxu0 %v5796_v22  ;;  %v5841_v17 = vld [vmem:[%s6066_s27 + $0xe0c] ss:$16 sps:$4 sm:$0xff]  }
 0x1eb   : > { %4102 = vmatprep.subr.bf16.mxu1 %v5799_v23  ;;  %v5844_v22 = vld [vmem:[%s6066_s27 + $0xdec] ss:$16 sps:$4 sm:$0xff]  }
 0x1ec   : > { %v3749_v34 = vpop.f32.mrf.mxu0  ;;  %4006 = vmatmul.mubr.bf16.vlgmr.msra.gmra.mxu0 %v6345_v0  ;;  %v5847_v23 = vld [vmem:[%s6066_s27 + $0xfec] ss:$16 sps:$4 sm:$0xff]  }
 0x1ed   : > { %v3792_v35 = vpop.f32.mrf.mxu1  ;;  %4049 = vmatmul.mubr.bf16.vlgmr.msra.gmra.mxu1 %v6349_v1  ;;  %v3750_v40 = vadd.f32 %v3749_v34, %v3707_v5  ;;  %4060 = vmatpush1.bf16.msra.mxu0 %v5794_v3  ;;  %v5851_v3 = vld [vmem:[%s6066_s27 + $0xfc8] ss:$16 sps:$4 sm:$0xff]   ;;  %v5868_v34 = vld [vmem:[%s6066_s27 + $0xd6c] ss:$16 sps:$4 sm:$0xff]  }
 0x1ee   : > { %4103 = vmatpush1.bf16.msra.mxu1 %v5797_v28  ;;  %v3751_v25 = vpop.f32.mrf.mxu0  ;;  %4061 = vmatprep.subr.bf16.mxu0 %v5802_v31  ;;  %v5856_v28 = vld [vmem:[%s6066_s27 + $0xdac] ss:$16 sps:$4 sm:$0xff]   ;;  %v5857_v31 = vld [vmem:[%s6066_s27 + $0xfa8] ss:$16 sps:$4 sm:$0xff]  }
 0x1ef   : > { %v3794_v42 = vpop.f32.mrf.mxu1  ;;  %4104 = vmatprep.subr.bf16.mxu1 %v5805_v32  ;;  %v6674_v59 = vadd.f32 %v3792_v35, %v3750_v40  ;;  %v3752_v0 = vadd.f32 %v3751_v25, %v3709_v38  ;;  %4091 = vmatprep.mubr.bf16.mxu0 %v6361_v44  ;;  %v5814_v44 = vld [vmem:[%s6066_s27 + $0xc8c] ss:$16 sps:$4 sm:$0xff]   ;;  %v5860_v5 = vld [vmem:[%s6066_s27 + $0xd88] ss:$16 sps:$4 sm:$0xff]  }
 0x1f0   : > { %4134 = vmatprep.mubr.bf16.mxu1 %v6365_v45  ;;  %v3753_v1 = vpop.f32.mrf.mxu0  ;;  %v5817_v45 = vld [vmem:[%s6066_s27 + $0xe8c] ss:$16 sps:$4 sm:$0xff]   ;;  %v5866_v38 = vld [vmem:[%s6066_s27 + $0xd68] ss:$16 sps:$4 sm:$0xff]  }
 0x1f1   : > { %v3796_v50 = vpop.f32.mrf.mxu1  ;;  %v6678_v53 = vadd.f32 %v3794_v42, %v3752_v0  ;;  %v3754_v36 = vadd.f32 %v3753_v1, %v3711_v57  ;;  %4062 = vmatpush1.bf16.msra.mxu0 %v5800_v41  ;;  %v5862_v32 = vld [vmem:[%s6066_s27 + $0xd8c] ss:$16 sps:$4 sm:$0xff]   ;;  %v5875_v25 = vld [vmem:[%s6066_s27 + $0xf48] ss:$16 sps:$4 sm:$0xff]  }
 0x1f2   : > { %4105 = vmatpush1.bf16.msra.mxu1 %v5803_v24  ;;  %v3755_v55 = vpop.f32.mrf.mxu0  ;;  %4063 = vmatprep.subr.bf16.mxu0 %v5808_v43  ;;  %v5871_v35 = vld [vmem:[%s6066_s27 + $0xf6c] ss:$16 sps:$4 sm:$0xff]   ;;  %v5872_v24 = vld [vmem:[%s6066_s27 + $0xd48] ss:$16 sps:$4 sm:$0xff]  }
 0x1f3   : > { %4106 = vmatprep.subr.bf16.mxu1 %v5811_v48  ;;  %v6684_v56 = vadd.f32 %v3796_v50, %v3754_v36  ;;  %v3756_v49 = vadd.f32 %v3755_v55, %v3713_v52  ;;  %v3798_v51 = vpop.f32.mrf.mxu1  ;;  %v5874_v40 = vld [vmem:[%s6066_s27 + $0xd4c] ss:$16 sps:$4 sm:$0xff]   ;;  %v5878_v48 = vld [vmem:[%s6066_s27 + $0xd28] ss:$16 sps:$4 sm:$0xff]  }
 0x1f4   : > { %v5877_v41 = vld [vmem:[%s6066_s27 + $0xf4c] ss:$16 sps:$4 sm:$0xff]   ;;  %v5881_v57 = vld [vmem:[%s6066_s27 + $0xf28] ss:$16 sps:$4 sm:$0xff]  }
 0x1f5   : > { %v6686_v58 = vadd.f32 %v3798_v51, %v3756_v49  ;;  %4064 = vmatpush1.bf16.msra.mxu0 %v5806_v37  ;;  %v5880_v42 = vld [vmem:[%s6066_s27 + $0xd2c] ss:$16 sps:$4 sm:$0xff]   ;;  %v5884_v50 = vld [vmem:[%s6066_s27 + $0xd08] ss:$16 sps:$4 sm:$0xff]  }
 0x1f6   : > { %4107 = vmatpush1.bf16.msra.mxu1 %v5809_v54  ;;  %4065 = vmatprep.subr.bf16.mxu0 %v5814_v44  ;;  %v5883_v43 = vld [vmem:[%s6066_s27 + $0xf2c] ss:$16 sps:$4 sm:$0xff]   ;;  %v5887_v52 = vld [vmem:[%s6066_s27 + $0xf08] ss:$16 sps:$4 sm:$0xff]  }
 0x1f7   : > { %4108 = vmatprep.subr.bf16.mxu1 %v5817_v45  ;;  %v5886_v0 = vld [vmem:[%s6066_s27 + $0xd0c] ss:$16 sps:$4 sm:$0xff]  }
 0x1f8   : > { %v5889_v1 = vld [vmem:[%s6066_s27 + $0xf0c] ss:$16 sps:$4 sm:$0xff]  }
 0x1f9   : > { %4066 = vmatpush1.bf16.msra.mxu0 %v5812_v60 }
 0x1fa   : > { %4109 = vmatpush1.bf16.msra.mxu1 %v5815_v61  ;;  %4067 = vmatprep.subr.bf16.mxu0 %v5820_v4 }
 0x1fb   : > { %4110 = vmatprep.subr.bf16.mxu1 %v5823_v6 }
 0x1fd   : > { %4068 = vmatpush1.bf16.msra.mxu0 %v5818_v46 }
 0x1fe   : > { %4111 = vmatpush1.bf16.msra.mxu1 %v5821_v47  ;;  %4069 = vmatprep.subr.bf16.mxu0 %v5826_v8 }
 0x1ff   : > { %4112 = vmatprep.subr.bf16.mxu1 %v5829_v9 }
 0x201   : > { %4070 = vmatpush1.bf16.msra.mxu0 %v5824_v10 }
 0x202   : > { %4113 = vmatpush1.bf16.msra.mxu1 %v5827_v11  ;;  %4071 = vmatprep.subr.bf16.mxu0 %v5832_v12 }
 0x203   : > { %4114 = vmatprep.subr.bf16.mxu1 %v5835_v13 }
 0x205   : > { %4072 = vmatpush1.bf16.msra.mxu0 %v5830_v14 }
 0x206   : > { %4115 = vmatpush1.bf16.msra.mxu1 %v5833_v15  ;;  %4073 = vmatprep.subr.bf16.mxu0 %v5838_v16 }
 0x207   : > { %4116 = vmatprep.subr.bf16.mxu1 %v5841_v17 }
 0x209   : > { %4074 = vmatpush1.bf16.msra.mxu0 %v5836_v18 }
 0x20a   : > { %4117 = vmatpush1.bf16.msra.mxu1 %v5839_v19  ;;  %4075 = vmatprep.subr.bf16.mxu0 %v5844_v22 }
 0x20b   : > { %4118 = vmatprep.subr.bf16.mxu1 %v5847_v23 }
 0x20d   : > { %4076 = vmatpush2.bf16.msra.mxu0 %v5842_v26 }
 0x20e   : > { %4119 = vmatpush2.bf16.msra.mxu1 %v5845_v27  ;;  %4077 = vmatprep.subr.bf16.mxu0 %v5850_v62 }
 0x20f   : > { %4120 = vmatprep.subr.bf16.mxu1 %v5853_v63 }
 0x211   : > { %4078 = vmatpush2.bf16.msra.mxu0 %v5848_v2 }
 0x212   : > { %4121 = vmatpush2.bf16.msra.mxu1 %v5851_v3  ;;  %4079 = vmatprep.subr.bf16.mxu0 %v5856_v28 }
 0x213   : > { %4122 = vmatprep.subr.bf16.mxu1 %v5859_v29 }
 0x215   : > { %4080 = vmatpush2.bf16.msra.mxu0 %v5854_v30 }
 0x216   : > { %4123 = vmatpush2.bf16.msra.mxu1 %v5857_v31  ;;  %4081 = vmatprep.subr.bf16.mxu0 %v5862_v32 }
 0x217   : > { %4124 = vmatprep.subr.bf16.mxu1 %v5865_v33 }
 0x219   : > { %4082 = vmatpush2.bf16.msra.mxu0 %v5860_v5 }
 0x21a   : > { %4125 = vmatpush2.bf16.msra.mxu1 %v5863_v7  ;;  %4083 = vmatprep.subr.bf16.mxu0 %v5868_v34 }
 0x21b   : > { %4126 = vmatprep.subr.bf16.mxu1 %v5871_v35 }
 0x21d   : > { %4084 = vmatpush2.bf16.msra.mxu0 %v5866_v38 }
 0x21e   : > { %4127 = vmatpush2.bf16.msra.mxu1 %v5869_v39  ;;  %4085 = vmatprep.subr.bf16.mxu0 %v5874_v40 }
 0x21f   : > { %4128 = vmatprep.subr.bf16.mxu1 %v5877_v41 }
 0x221   : > { %4086 = vmatpush2.bf16.msra.mxu0 %v5872_v24 }
 0x222   : > { %4129 = vmatpush2.bf16.msra.mxu1 %v5875_v25  ;;  %4087 = vmatprep.subr.bf16.mxu0 %v5880_v42 }
 0x223   : > { %4130 = vmatprep.subr.bf16.mxu1 %v5883_v43 }
 0x225   : > { %4088 = vmatpush2.bf16.msra.mxu0 %v5878_v48 }
 0x226   : > { %4131 = vmatpush2.bf16.msra.mxu1 %v5881_v57  ;;  %4089 = vmatprep.subr.bf16.mxu0 %v5886_v0 }
 0x227   : > { %4132 = vmatprep.subr.bf16.mxu1 %v5889_v1 }
 0x229   : > { %4090 = vmatpush2.bf16.msra.mxu0 %v5884_v50 }
 0x22a   : > { %4133 = vmatpush2.bf16.msra.mxu1 %v5887_v52 }
 0x22c   : > { %4092 = vmatmul.mubr.bf16.vlgmr.msra.gmra.mxu0 %v6433_v20  ;;  %v3835_v36 = vpop.f32.mrf.mxu0 }
 0x22d   : > { %4135 = vmatmul.mubr.bf16.vlgmr.msra.gmra.mxu1 %v6437_v21  ;;  %v3878_v37 = vpop.f32.mrf.mxu1 }
 0x22e   : > { %v3837_v54 = vpop.f32.mrf.mxu0  ;;  %v3879_v11 = vadd.f32 %v3878_v37, %v3835_v36 }
 0x22f   : > { %v3880_v55 = vpop.f32.mrf.mxu1 }
 0x230   : > { %v3839_v44 = vpop.f32.mrf.mxu0  ;;  %v3881_v21 = vadd.f32 %v3880_v55, %v3837_v54 }
 0x231   : > { %v3882_v45 = vpop.f32.mrf.mxu1 }
 0x232   : > { %v3841_v49 = vpop.f32.mrf.mxu0  ;;  %v3883_v15 = vadd.f32 %v3882_v45, %v3839_v44 }
 0x233   : > { %v3884_v51 = vpop.f32.mrf.mxu1 }
 0x234   : > { %v3885_v17 = vadd.f32 %v3884_v51, %v3841_v49 }
 0x26c   : > { %v3921_v60 = vpop.f32.mrf.mxu0 }
 0x26d   : > { %v3964_v61 = vpop.f32.mrf.mxu1  ;;  %v3922_v12 = vadd.f32 %v3921_v60, %v3879_v11 }
 0x26e   : > { %v3923_v4 = vpop.f32.mrf.mxu0 }
 0x26f   : > { %v3966_v6 = vpop.f32.mrf.mxu1  ;;  %v3924_v16 = vadd.f32 %v3923_v4, %v3881_v21  ;;  %v3965_v18 = vadd.f32 %v3964_v61, %v3922_v12 }
 0x270   : > { %v3925_v46 = vpop.f32.mrf.mxu0 }
 0x271   : > { %v3968_v47 = vpop.f32.mrf.mxu1  ;;  %v3926_v19 = vadd.f32 %v3925_v46, %v3883_v15  ;;  %v3967_v26 = vadd.f32 %v3966_v6, %v3924_v16 }
 0x272   : > { %v3927_v8 = vpop.f32.mrf.mxu0 }
 0x273   : > { %v3970_v9 = vpop.f32.mrf.mxu1  ;;  %v3928_v27 = vadd.f32 %v3927_v8, %v3885_v17  ;;  %v3969_v63 = vadd.f32 %v3968_v47, %v3926_v19 }
 0x275   : > { %v3971_v29 = vadd.f32 %v3970_v9, %v3928_v27 }
 0x2ac   : > { %v4007_v10 = vpop.f32.mrf.mxu0 }
 0x2ad   : > { %v4050_v20 = vpop.f32.mrf.mxu1  ;;  %v4008_v62 = vadd.f32 %v4007_v10, %v3965_v18 }
 0x2ae   : > { %v4009_v13 = vpop.f32.mrf.mxu0 }
 0x2af   : > { %v4052_v14 = vpop.f32.mrf.mxu1  ;;  %v4010_v2 = vadd.f32 %v4009_v13, %v3967_v26  ;;  %v4051_v30 = vadd.f32 %v4050_v20, %v4008_v62 }
 0x2b0   : > { %v4011_v22 = vpop.f32.mrf.mxu0 }
 0x2b1   : > { %v4054_v23 = vpop.f32.mrf.mxu1  ;;  %v4012_v31 = vadd.f32 %v4011_v22, %v3969_v63  ;;  %v4053_v5 = vadd.f32 %v4052_v14, %v4010_v2 }
 0x2b2   : > { %v4013_v3 = vpop.f32.mrf.mxu0 }
 0x2b3   : > { %v4056_v28 = vpop.f32.mrf.mxu1  ;;  %v4014_v7 = vadd.f32 %v4013_v3, %v3971_v29  ;;  %v4055_v39 = vadd.f32 %v4054_v23, %v4012_v31 }
 0x2b5   : > { %v4057_v42 = vadd.f32 %v4056_v28, %v4014_v7 }
 0x2ec   : > { %v4093_v32 = vpop.f32.mrf.mxu0 }
 0x2ed   : > { %v4136_v33 = vpop.f32.mrf.mxu1  ;;  %v4094_v34 = vadd.f32 %v4093_v32, %v4051_v30 }
 0x2ee   : > { %v4095_v35 = vpop.f32.mrf.mxu0 }
 0x2ef   : > { %v4138_v38 = vpop.f32.mrf.mxu1  ;;  %v4137_v40 = vadd.f32 %v4136_v33, %v4094_v34  ;;  %v4096_v41 = vadd.f32 %v4095_v35, %v4053_v5 }
 0x2f0   : > { %v4097_v24 = vpop.f32.mrf.mxu0 }
 0x2f1   : > { %v4140_v25 = vpop.f32.mrf.mxu1  ;;  %v4139_v43 = vadd.f32 %v4138_v38, %v4096_v41  ;;  %v4098_v48 = vadd.f32 %v4097_v24, %v4055_v39  ;;  %4148 = sbr.rel (%p5051_p12) target bundleno = 763 (0x2fb), region = 59 }
 0x2f2   : > { %v4099_v57 = vpop.f32.mrf.mxu0 }
 0x2f3   : > { %v4141_v0 = vadd.f32 %v4140_v25, %v4098_v48  ;;  %v4100_v1 = vadd.f32 %v4099_v57, %v4057_v42  ;;  %v4142_v50 = vpop.f32.mrf.mxu1 }
 0x2f5   : > { %v4143_v52 = vadd.f32 %v4142_v50, %v4100_v1 }
 0x2f6   : > { %v5954_v36 = vmov 0.0  }
 0x2f7   : > { %4149 = vst [vmem:[#allocation2 + $0x30] sm:$0xff] %v5954_v36  ;;  %4150 = vst [vmem:[#allocation2] sm:$0xff] %v5954_v36 }
 0x2f8   : > { %4151 = vst [vmem:[#allocation2 + $0x18] sm:$0xff] %v5954_v36  ;;  %4152 = vst [vmem:[#allocation2 + $0x10] sm:$0xff] %v5954_v36 }
 0x2f9   : > { %4153 = vst [vmem:[#allocation2 + $0x8] sm:$0x1] %v5954_v36  ;;  %4154 = vst [vmem:[#allocation2 + $0x20] sm:$0x1] %v5954_v36 }
 0x2fa   : > { %4155 = vst [vmem:[#allocation2 + $0x28] sm:$0x1] %v5954_v36  ;;  %4156 = vst [vmem:[#allocation2 + $0x38] sm:$0x1] %v5954_v36 }
 0x2fb PF: > { %p5052_p13 = scmp.ne.s32.totalorder %s5936_s14, 1 }
 0x2fe   : > { %v4157_v37 = vld [vmem:[#allocation2 + $0x30] sm:$0xff]  ;;  %v4158_v54 = vld [vmem:[#allocation2] sm:$0xff] }
 0x2ff   : > { %v4159_v55 = vld [vmem:[#allocation2 + $0x18] sm:$0xff]  ;;  %v4165_v44 = vadd.f32 %v4157_v37, %v6674_v59  ;;  %v4166_v45 = vadd.f32 %v4158_v54, %v6678_v53  ;;  %v4160_v51 = vld [vmem:[#allocation2 + $0x10] sm:$0xff] }
 0x300   : > { %v4167_v49 = vadd.f32 %v4159_v55, %v4137_v40  ;;  %v4161_v60 = vld [vmem:[#allocation2 + $0x8] sm:$0x1]  ;;  %v4162_v61 = vld [vmem:[#allocation2 + $0x20] sm:$0x1]  ;;  %v4168_v4 = vadd.f32 %v4160_v51, %v4139_v43  ;;  %4184 = sbr.rel (%p5052_p13) target bundleno = 853 (0x355), region = 63 }
 0x301   : > { %v4169_v6 = vadd.f32 %v4161_v60, %v6684_v56  ;;  %v4170_v46 = vadd.f32 %v4162_v61, %v6686_v58  ;;  %v4163_v47 = vld [vmem:[#allocation2 + $0x28] sm:$0x1]  ;;  %v4164_v8 = vld [vmem:[#allocation2 + $0x38] sm:$0x1]  ;;  %4173 = vst [vmem:[#allocation2 + $0x30] sm:$0xff] %v4165_v44  ;;  %4174 = vst [vmem:[#allocation2] sm:$0xff] %v4166_v45 }
 0x302   : > { %4175 = vst [vmem:[#allocation2 + $0x18] sm:$0xff] %v4167_v49  ;;  %v4171_v9 = vadd.f32 %v4163_v47, %v4141_v0  ;;  %v4172_v10 = vadd.f32 %v4164_v8, %v4143_v52  ;;  %4176 = vst [vmem:[#allocation2 + $0x10] sm:$0xff] %v4168_v4 }
 0x303   : > { %4177 = vst [vmem:[#allocation2 + $0x8] sm:$0x1] %v4169_v6  ;;  %4178 = vst [vmem:[#allocation2 + $0x20] sm:$0x1] %v4170_v46 }
 0x304   : > { %4179 = vst [vmem:[#allocation2 + $0x28] sm:$0x1] %v4171_v9  ;;  %4180 = vst [vmem:[#allocation2 + $0x38] sm:$0x1] %v4172_v10 }
 0x305   : > { %v4195_v59 = vlaneseq  ;;  %v4193_v56 = vld [vmem:[%s6844_s2] sm:$0xf]  ;;  %vm4223_vm0 = vcmask 1040384   ;;  %vm4380_vm1 = vsmask.f32 256  ;;  %vm4382_vm2 = vcmask 1044484  }
 0x306   : > { %vm4383_vm3 = vsmask.f32 4352  ;;  %vm6787_vm8 = vmand %vm4223_vm0, %vm4380_vm1 }
 0x307   : > { %v4196_v53 = vshrl.u32 %v4195_v59, 7  ;;  %vm6793_vm10 = vmand %vm4382_vm2, %vm4383_vm3 }
 0x308   : > { %v4185_v58 = vld [vmem:[#allocation2 + $0x30] sm:$0xff]  ;;  %v4186_v20 = vld [vmem:[#allocation2] sm:$0xff]  ;;  %vm4385_vm12 = vmor %vm6793_vm10, %vm6787_vm8 }
 0x309   : > { %v4197_v11 = vsub.s32 0, %v4196_v53  ;;  %v4201_v21 = vsub.s32 1, %v4196_v53  ;;  %v4205_v12 = vsub.s32 2, %v4196_v53  ;;  %v4209_v13 = vsub.s32 3, %v4196_v53  ;;  %v4187_v16 = vld [vmem:[#allocation2 + $0x18] sm:$0xff]  ;;  %v4188_v19 = vld [vmem:[#allocation2 + $0x10] sm:$0xff] }
 0x30a   : > { %v4189_v14 = vld [vmem:[#allocation2 + $0x8] sm:$0x1]  ;;  %v4190_v15 = vld [vmem:[#allocation2 + $0x20] sm:$0x1] }
 0x30b   : > { %v4198_v17 = vrot.slane %v4193_v56, %v4197_v11  ;;  %v4202_v18 = vrot.slane %v4193_v56, %v4201_v21  ;;  %v4191_v22 = vld [vmem:[#allocation2 + $0x28] sm:$0x1]  ;;  %v4192_v23 = vld [vmem:[#allocation2 + $0x38] sm:$0x1]  ;;  %v4206_v26 = vrot.slane %v4193_v56, %v4205_v12  ;;  %v4210_v27 = vrot.slane %v4193_v56, %v4209_v13 }
 0x30d   : > { %v4215_v62 = vadd.f32 %v4198_v17, %v4185_v58  ;;  %v4216_v63 = vadd.f32 %v4202_v18, %v4186_v20  ;;  %v4219_v2 = vadd.f32 %v4198_v17, %v4189_v14  ;;  %v4220_v3 = vadd.f32 %v4202_v18, %v4190_v15 }
 0x30e   : > { %v4217_v28 = vadd.f32 %v4206_v26, %v4187_v16  ;;  %v4218_v29 = vadd.f32 %v4210_v27, %v4188_v19  ;;  %v4221_v30 = vadd.f32 %v4206_v26, %v4191_v22  ;;  %v4222_v31 = vadd.f32 %v4210_v27, %v4192_v23 }
 0x30f   : > { %v4224_v32 = vsel %vm4223_vm0, %v4219_v2, 0.0  ;;  %v4232_v33 = vsel %vm4223_vm0, %v4220_v3, 0.0 }
 0x310   : > { %v4225_v5 = vadd.f32 %v4224_v32, %v4215_v62  ;;  %v4233_v7 = vadd.f32 %v4232_v33, %v4216_v63  ;;  %v4240_v34 = vsel %vm4223_vm0, %v4221_v30, 0.0  ;;  %v4248_v35 = vsel %vm4223_vm0, %v4222_v31, 0.0 }
 0x311   : > { %v4241_v38 = vadd.f32 %v4240_v34, %v4217_v28  ;;  %v4249_v39 = vadd.f32 %v4248_v35, %v4218_v29 }
 0x312   : > { %v4226_v40 = vrot.slane %v4225_v5, 4  ;;  %v4234_v41 = vrot.slane %v4233_v7, 4 }
 0x313   : > { %v4242_v24 = vrot.slane %v4241_v38, 4  ;;  %v4250_v25 = vrot.slane %v4249_v39, 4 }
 0x314   : > { %v4227_v42 = vadd.f32 %v4226_v40, %v4225_v5  ;;  %v4235_v43 = vadd.f32 %v4234_v41, %v4233_v7 }
 0x315   : > { %v4243_v48 = vadd.f32 %v4242_v24, %v4241_v38  ;;  %v4251_v57 = vadd.f32 %v4250_v25, %v4249_v39 }
 0x316   : > { %v4228_v0 = vrot.slane %v4227_v42, 2  ;;  %v4236_v1 = vrot.slane %v4235_v43, 2 }
 0x317   : > { %v4244_v50 = vrot.slane %v4243_v48, 2  ;;  %v4252_v52 = vrot.slane %v4251_v57, 2 }
 0x318   : > { %v4229_v36 = vadd.f32 %v4228_v0, %v4227_v42  ;;  %v4237_v37 = vadd.f32 %v4236_v1, %v4235_v43 }
 0x319   : > { %v4245_v54 = vadd.f32 %v4244_v50, %v4243_v48  ;;  %v4253_v55 = vadd.f32 %v4252_v52, %v4251_v57 }
 0x31a   : > { %v4230_v44 = vrot.slane %v4229_v36, 1  ;;  %v4238_v45 = vrot.slane %v4237_v37, 1 }
 0x31b   : > { %v4246_v49 = vrot.slane %v4245_v54, 1  ;;  %v4254_v51 = vrot.slane %v4253_v55, 1 }
 0x31c   : > { %v4231_v60 = vadd.f32 %v4230_v44, %v4229_v36  ;;  %v4239_v61 = vadd.f32 %v4238_v45, %v4237_v37 }
 0x31d   : > { %v4247_v4 = vadd.f32 %v4246_v49, %v4245_v54  ;;  %v4255_v6 = vadd.f32 %v4254_v51, %v4253_v55 }
 0x31e   : > { %v4257_v46 = vmul.f32 0.11111111, %v4231_v60  ;;  %v4258_v47 = vmul.f32 0.11111111, %v4239_v61 }
 0x31f   : > { %v4259_v8 = vmul.f32 0.11111111, %v4247_v4  ;;  %v4260_v9 = vmul.f32 0.11111111, %v4255_v6 }
 0x320   : > { %v4261_v10 = vsub.f32 %v4215_v62, %v4257_v46  ;;  %v6753_v59 = vsub.f32 %v4216_v63, %v4258_v47  ;;  %v4265_v53 = vsub.f32 %v4219_v2, %v4257_v46  ;;  %v6755_v56 = vsub.f32 %v4220_v3, %v4258_v47 }
 0x321   : > { %v6757_v58 = vsub.f32 %v4217_v28, %v4259_v8  ;;  %v6759_v20 = vsub.f32 %v4218_v29, %v4260_v9  ;;  %v6761_v11 = vsub.f32 %v4221_v30, %v4259_v8  ;;  %v6763_v21 = vsub.f32 %v4222_v31, %v4260_v9 }
 0x322   : > { %v4269_v12 = vmul.f32 %v4261_v10, %v4261_v10  ;;  %v4270_v13 = vmul.f32 %v6753_v59, %v6753_v59  ;;  %v4273_v14 = vmul.f32 %v4265_v53, %v4265_v53  ;;  %v4274_v15 = vmul.f32 %v6755_v56, %v6755_v56 }
 0x323   : > { %v4271_v16 = vmul.f32 %v6757_v58, %v6757_v58  ;;  %v4272_v17 = vmul.f32 %v6759_v20, %v6759_v20  ;;  %v4275_v18 = vmul.f32 %v6761_v11, %v6761_v11  ;;  %v4276_v19 = vmul.f32 %v6763_v21, %v6763_v21 }
 0x324   : > { %v4277_v22 = vsel %vm4223_vm0, %v4273_v14, 0.0  ;;  %v4285_v23 = vsel %vm4223_vm0, %v4274_v15, 0.0 }
 0x325   : > { %v4278_v26 = vadd.f32 %v4277_v22, %v4269_v12  ;;  %v4286_v27 = vadd.f32 %v4285_v23, %v4270_v13  ;;  %v4293_v62 = vsel %vm4223_vm0, %v4275_v18, 0.0  ;;  %v4301_v63 = vsel %vm4223_vm0, %v4276_v19, 0.0 }
 0x326   : > { %v4294_v2 = vadd.f32 %v4293_v62, %v4271_v16  ;;  %v4302_v3 = vadd.f32 %v4301_v63, %v4272_v17  ;;  %v4386_v62 = vld [vmem:[%s6061_s23 + $0x10] sm:$0x11] }
 0x327   : > { %v4279_v28 = vrot.slane %v4278_v26, 4  ;;  %v4287_v29 = vrot.slane %v4286_v27, 4 }
 0x328   : > { %v4295_v30 = vrot.slane %v4294_v2, 4  ;;  %v4303_v31 = vrot.slane %v4302_v3, 4 }
 0x329   : > { %v4280_v32 = vadd.f32 %v4279_v28, %v4278_v26  ;;  %v4288_v33 = vadd.f32 %v4287_v29, %v4286_v27 }
 0x32a   : > { %v4296_v5 = vadd.f32 %v4295_v30, %v4294_v2  ;;  %v4304_v7 = vadd.f32 %v4303_v31, %v4302_v3 }
 0x32b   : > { %v4281_v34 = vrot.slane %v4280_v32, 2  ;;  %v4289_v35 = vrot.slane %v4288_v33, 2 }
 0x32c   : > { %v4297_v38 = vrot.slane %v4296_v5, 2  ;;  %v4305_v39 = vrot.slane %v4304_v7, 2 }
 0x32d   : > { %v4282_v40 = vadd.f32 %v4281_v34, %v4280_v32  ;;  %v4290_v41 = vadd.f32 %v4289_v35, %v4288_v33  ;;  %v4389_v32 = vld [vmem:[%s6061_s23 + $0x18] sm:$0x11] }
 0x32e   : > { %v4298_v24 = vadd.f32 %v4297_v38, %v4296_v5  ;;  %v4306_v25 = vadd.f32 %v4305_v39, %v4304_v7 }
 0x32f   : > { %v4283_v42 = vrot.slane %v4282_v40, 1  ;;  %v4291_v43 = vrot.slane %v4290_v41, 1 }
 0x330   : > { %v4299_v48 = vrot.slane %v4298_v24, 1  ;;  %v4307_v57 = vrot.slane %v4306_v25, 1 }
 0x331   : > { %v4284_v0 = vadd.f32 %v4283_v42, %v4282_v40  ;;  %v4292_v1 = vadd.f32 %v4291_v43, %v4290_v41 }
 0x332   : > { %v4300_v50 = vadd.f32 %v4299_v48, %v4298_v24  ;;  %v4308_v52 = vadd.f32 %v4307_v57, %v4306_v25 }
 0x333   : > { %v4309_v36 = vmul.f32 0.11111111, %v4284_v0  ;;  %v4310_v37 = vmul.f32 0.11111111, %v4292_v1 }
 0x334   : > { %v4311_v54 = vmul.f32 0.11111111, %v4300_v50  ;;  %v4312_v55 = vmul.f32 0.11111111, %v4308_v52 }
 0x335   : > { %v4313_v44 = vadd.f32 1e-05, %v4309_v36  ;;  %v4314_v45 = vadd.f32 1e-05, %v4310_v37 }
 0x336   : > { %v4315_v49 = vadd.f32 1e-05, %v4311_v54  ;;  %v4316_v51 = vadd.f32 1e-05, %v4312_v55 }
 0x337   : > { %5890 = vrsqrt.f32 %v4313_v44 }
 0x338   : > { %5892 = vrsqrt.f32 %v4314_v45 }
 0x339   : > { %5894 = vrsqrt.f32 %v4315_v49 }
 0x33a   : > { %5896 = vrsqrt.f32 %v4316_v51 }
 0x344   : > { %v5891_v60 = vpop.eup %5890 }
 0x345   : > { %v5893_v61 = vpop.eup %5892  ;;  %v4321_v4 = vmul.f32 %v5891_v60, %v4261_v10  ;;  %v4325_v6 = vmul.f32 %v5891_v60, %v4265_v53 }
 0x346   : > { %v5895_v46 = vpop.eup %5894  ;;  %v4322_v47 = vmul.f32 %v5893_v61, %v6753_v59  ;;  %v4326_v8 = vmul.f32 %v5893_v61, %v6755_v56 }
 0x347   : > { %v5897_v9 = vpop.eup %5896  ;;  %vm4329_vm4 = vcmp.ge.f32.partialorder %v4321_v4, 0.0  ;;  %v4337_v12 = vmul.f32 0.2, %v4321_v4  ;;  %v4323_v13 = vmul.f32 %v5895_v46, %v6757_v58  ;;  %vm4333_vm5 = vcmp.ge.f32.partialorder %v4325_v6, 0.0 }
 0x348   : > { %vm4330_vm6 = vcmp.ge.f32.partialorder %v4322_v47, 0.0  ;;  %v4338_v14 = vmul.f32 0.2, %v4322_v47  ;;  %v4324_v15 = vmul.f32 %v5897_v9, %v6759_v20  ;;  %vm4334_vm7 = vcmp.ge.f32.partialorder %v4326_v8, 0.0 }
 0x349   : > { %v4345_v59 = vsel %vm4329_vm4, %v4321_v4, %v4337_v12  ;;  %vm4331_vm9 = vcmp.ge.f32.partialorder %v4323_v13, 0.0  ;;  %v4339_v53 = vmul.f32 0.2, %v4323_v13  ;;  %v4341_v56 = vmul.f32 0.2, %v4325_v6 }
 0x34a   : > { %v4346_v20 = vsel %vm4330_vm6, %v4322_v47, %v4338_v14  ;;  %vm4332_vm11 = vcmp.ge.f32.partialorder %v4324_v15, 0.0  ;;  %v4340_v16 = vmul.f32 0.2, %v4324_v15  ;;  %v4342_v17 = vmul.f32 0.2, %v4326_v8 }
 0x34b   : > { %v5061_v18 = vpack.c.bf16 %v4346_v20, %v4345_v59  ;;  %v4347_v19 = vsel %vm4331_vm9, %v4323_v13, %v4339_v53  ;;  %v4349_v22 = vsel %vm4333_vm5, %v4325_v6, %v4341_v56  ;;  %v4327_v23 = vmul.f32 %v5895_v46, %v6761_v11 }
 0x34c   : > { %v4348_v26 = vsel %vm4332_vm11, %v4324_v15, %v4340_v16  ;;  %v4350_v27 = vsel %vm4334_vm7, %v4326_v8, %v4342_v17  ;;  %v4328_v63 = vmul.f32 %v5897_v9, %v6763_v21 }
 0x34d   : > { %4377 = vst [vmem:[%s6061_s23] sm:$0xff] %v5061_v18  ;;  %v5062_v2 = vpack.c.bf16 %v4348_v26, %v4347_v19  ;;  %v5063_v3 = vpack.c.bf16 %v4350_v27, %v4349_v22  ;;  %vm4335_vm13 = vcmp.ge.f32.partialorder %v4327_v23, 0.0  ;;  %v4343_v28 = vmul.f32 0.2, %v4327_v23 }
 0x34e   : > { %vm4336_vm14 = vcmp.ge.f32.partialorder %v4328_v63, 0.0  ;;  %v4344_v11 = vmul.f32 0.2, %v4328_v63 }
 0x34f   : > { %4378 = vst [vmem:[%s6061_s23 + $0x8] sm:$0xff] %v5062_v2  ;;  %v4387_v29 = vsel %vm4385_vm12, %v5063_v3, %v4386_v62  ;;  %v4351_v30 = vsel %vm4335_vm13, %v4327_v23, %v4343_v28 }
 0x350   : > { %4388 = vst [vmem:[%s6061_s23 + $0x10] sm:$0x11] %v4387_v29  ;;  %v4352_v31 = vsel %vm4336_vm14, %v4328_v63, %v4344_v11 }
 0x351   : > { %v5064_v21 = vpack.c.bf16 %v4352_v31, %v4351_v30 }
 0x353   : > { %v4390_v33 = vsel %vm4385_vm12, %v5064_v21, %v4389_v32 }
 0x354   : > { %4391 = vst [vmem:[%s6061_s23 + $0x18] sm:$0x11] %v4390_v33 }
 0x355 PF: > { %s13_s18 = sadd.s32 1, %s5952_s18   ;;  %s6850_s12 = smov %s5932_s13 }
 0x356   : > { %p10_p0 = scmp.ge.s32.totalorder %s13_s18, 6   ;;  %s6851_s13 = smov %s6026_s25 }
 0x357   : > { %s6852_s14 = smov %s5944_s16  ;;  %s6853_s15 = smov %s5948_s17 }
 0x358   : > { %s6854_s16 = smov %s6857_s19  ;;  %s6855_s17 = smov %s6861_s20 }
 0x359   :  { %12 = sbr.rel (!%p10_p0) target bundleno = 4 (0x4), region = 101 }

// kernel: discriminator_forward.9
= control target key start
LH: loop header
LB: loop body
LE: loop exit
PB: predicated region body
PF: predicated region fallthrough
CT: control target
= control target key end

     0   :  { %s2414_s12 = smov 0   ;;  %s2416_s13 = smov 0   ;;  %s2638_s0 = inlined_call_operand.vmem [shape: bf16[2,4,8192], index: 0, kind: input, shape index: {}]   ;;  %s2639_s1 = inlined_call_operand.vmem [shape: bf16[8192,128], index: 1, kind: input, shape index: {}]   ;;  %s2640_s2 = inlined_call_operand.vmem [shape: f32[1,128], index: 2, kind: input, shape index: {}]   ;;  %s2641_s3 = inlined_call_operand.vmem [shape: f32[2,1,128], index: 3, kind: output, shape index: {}]  }
   0x1   :  { %s2418_s14 = smov 0   ;;  %s2420_s15 = smov 0  }
   0x2   :  { %s2422_s16 = smov 0  }
   0x3 LB: > { %s25_s17 = sadd.s32 1, %s2383_s14  ;;  %s32_s18 = sadd.s32 1, %s2387_s15  ;;  %s2391_s16 = sphi %s2422_s16, %s13_s16   ;;  %s2387_s15 = sphi %s2420_s15, %s2645_s15   ;;  %s2383_s14 = sphi %s2418_s14, %s2644_s14   ;;  %s2379_s13 = sphi %s2416_s13, %s2643_s13   ;;  %s2375_s12 = sphi %s2414_s12, %s2642_s12  }
   0x4   : > { %p26_p0 = scmp.ge.s32.totalorder %s25_s17, 4  ;;  %p1870_p1 = scmp.ge.s32.totalorder %s2391_s16, 1 }
   0x5   : > { %p180_p2 = scmp.lt.s32.totalorder %s2391_s16, 9 }
   0x6   : > { %s2647_s17 = smov (%p26_p0, %s25_s17), 0  ;;  %s2649_s18 = smov (!%p26_p0, %s32_s18), %s2387_s15 }
   0x7   : > { %p181_p3 = pnand %p1870_p1, %p180_p2  ;;  %p34_p4 = scmp.ge.s32.totalorder %s2649_s18, 2 }
   0x8   : > { %s1874_s19 = sshll.u32 (!%p181_p3), %s2375_s12, 8  ;;  %p216_p6 = scmp.lt.s32.totalorder (!%p181_p3), %s2379_s13, 1 }
   0x9   : > { %s2651_s18 = smov (%p34_p4, %s2649_s18), 0  ;;  %184 = sbr.rel (%p181_p3) target bundleno = 370 (0x172), region = 32 }
   0xa   : > { %p230_p5 = scmp.lt.s32.totalorder (!%p181_p3), %s1874_s19, 1023  ;;  %s1871_s27 = sshll.u32 (!%p181_p3), %s2375_s12, 4 }
   0xb   : > { %p220_p7 = scmp.lt.s32.totalorder (!%p181_p3), %s1871_s27, 63  ;;  %p2004_p8 = scmp.ne.s32.totalorder (!%p181_p3), %s2375_s12, 0 }
   0xe   : > { %s2653_s19 = smov (!%p230_p5, %s1874_s19), 1023  ;;  %s2655_s13 = smov (!%p216_p6, %s2379_s13), 1  ;;  %vm531_vm0 = vcmask 1043456  }
   0xf   : > { %s1875_s20 = sshll.u32 %s2653_s19, 2  ;;  %s237_s26 = scalar_lea.vmem %s2641_s3, %s2655_s13 }
  0x10   : > { %s2452_s23 = scalar_lea.vmem %s2639_s1, %s1875_s20  ;;  %s2657_s27 = smov (!%p220_p7, %s1871_s27), 63 }
  0x11   : > { %v2225_v0 = vld [vmem:[%s2452_s23 + $0x78] sm:$0xff]   ;;  %v2229_v4 = vld [vmem:[%s2452_s23 + $0x70] sm:$0xff]   ;;  %v2233_v8 = vld [vmem:[%s2452_s23 + $0x68] sm:$0xff]   ;;  %s1872_s28 = sshll.u32 %s2655_s13, 6 }
  0x12   : > { %v2226_v1 = vld [vmem:[%s2452_s23 + $0xf8] sm:$0xff]   ;;  %2008 = vmatprep.subr.bf16.mxu0 %v2225_v0  ;;  %v2230_v5 = vld [vmem:[%s2452_s23 + $0xf0] sm:$0xff]   ;;  %v2234_v9 = vld [vmem:[%s2452_s23 + $0xe8] sm:$0xff]   ;;  %s225_s29 = sadd.s32 %s1872_s28, %s2657_s27 }
  0x13   : > { %v2227_v2 = vld [vmem:[%s2452_s23 + $0x38] sm:$0xff]   ;;  %2030 = vmatprep.subr.bf16.mxu1 %v2226_v1  ;;  %v2231_v6 = vld [vmem:[%s2452_s23 + $0x30] sm:$0xff]   ;;  %v2235_v10 = vld [vmem:[%s2452_s23 + $0x28] sm:$0xff]   ;;  %s1873_s30 = sshll.u32 %s225_s29, 1 }
  0x14   : > { %v2228_v3 = vld [vmem:[%s2452_s23 + $0xb8] sm:$0xff]   ;;  %2009 = vmatpush3.bf16.msra.mxu0 %v2227_v2  ;;  %v2232_v7 = vld [vmem:[%s2452_s23 + $0xb0] sm:$0xff]   ;;  %v2236_v11 = vld [vmem:[%s2452_s23 + $0xa8] sm:$0xff]   ;;  %s2493_s6 = scalar_lea.vmem %s2638_s0, %s1873_s30 }
  0x15   : > { %2031 = vmatpush3.bf16.msra.mxu1 %v2228_v3  ;;  %2010 = vmatprep.subr.bf16.mxu0 %v2229_v4  ;;  %v2237_v12 = vld [vmem:[%s2452_s23 + $0x60] sm:$0xff]   ;;  %v2241_v16 = vld [vmem:[%s2452_s23 + $0x58] sm:$0xff]   ;;  %v2245_v20 = vld [vmem:[%s2452_s23 + $0x50] sm:$0xff]  }
  0x16   : > { %2032 = vmatprep.subr.bf16.mxu1 %v2230_v5  ;;  %v2238_v13 = vld [vmem:[%s2452_s23 + $0xe0] sm:$0xff]   ;;  %v2242_v17 = vld [vmem:[%s2452_s23 + $0xd8] sm:$0xff]   ;;  %v2246_v21 = vld [vmem:[%s2452_s23 + $0xd0] sm:$0xff]  }
  0x17   : > { %v2239_v14 = vld [vmem:[%s2452_s23 + $0x20] sm:$0xff]   ;;  %v2243_v18 = vld [vmem:[%s2452_s23 + $0x18] sm:$0xff]   ;;  %v2247_v22 = vld [vmem:[%s2452_s23 + $0x10] sm:$0xff]  }
  0x18   : > { %2011 = vmatpush3.bf16.msra.mxu0 %v2231_v6  ;;  %v2240_v15 = vld [vmem:[%s2452_s23 + $0xa0] sm:$0xff]   ;;  %v2244_v19 = vld [vmem:[%s2452_s23 + $0x98] sm:$0xff]   ;;  %v2248_v23 = vld [vmem:[%s2452_s23 + $0x90] sm:$0xff]  }
  0x19   : > { %2033 = vmatpush3.bf16.msra.mxu1 %v2232_v7  ;;  %2012 = vmatprep.subr.bf16.mxu0 %v2233_v8  ;;  %v2249_v24 = vld [vmem:[%s2452_s23 + $0x48] sm:$0xff]   ;;  %v2253_v28 = vld [vmem:[%s2452_s23 + $0x40] sm:$0xff]   ;;  %v2257_v35 = vld [vmem:[%s2452_s23 + $0x178] sm:$0xff]  }
  0x1a   : > { %2034 = vmatprep.subr.bf16.mxu1 %v2234_v9  ;;  %v2250_v25 = vld [vmem:[%s2452_s23 + $0xc8] sm:$0xff]   ;;  %v2254_v29 = vld [vmem:[%s2452_s23 + $0xc0] sm:$0xff]   ;;  %v2258_v36 = vld [vmem:[%s2452_s23 + $0x1f8] sm:$0xff]  }
  0x1b   : > { %v2251_v26 = vld [vmem:[%s2452_s23 + $0x8] sm:$0xff]   ;;  %v2255_v30 = vld [vmem:[%s2452_s23] sm:$0xff]   ;;  %v2259_v7 = vld [vmem:[%s2452_s23 + $0x138] sm:$0xff]  }
  0x1c   : > { %2013 = vmatpush3.bf16.msra.mxu0 %v2235_v10  ;;  %v2252_v27 = vld [vmem:[%s2452_s23 + $0x88] sm:$0xff]   ;;  %v2256_v31 = vld [vmem:[%s2452_s23 + $0x80] sm:$0xff]   ;;  %v2260_v8 = vld [vmem:[%s2452_s23 + $0x1b8] sm:$0xff]  }
  0x1d   : > { %2035 = vmatpush3.bf16.msra.mxu1 %v2236_v11  ;;  %2014 = vmatprep.subr.bf16.mxu0 %v2237_v12  ;;  %v239_v32 = vld [vmem:[%s2493_s6] sm:$0xff] }
  0x1e   : > { %2036 = vmatprep.subr.bf16.mxu1 %v2238_v13  ;;  %v499_v33 = vunpack.c.l.bf16 %v239_v32  ;;  %v500_v34 = vunpack.c.h.bf16 %v239_v32  ;;  %v2261_v13 = vld [vmem:[%s2452_s23 + $0x170] sm:$0xff]  }
  0x1f   : > { %v2277_v32 = vld [vmem:[%s2452_s23 + $0x150] sm:$0xff]  }
  0x20   : > { %2015 = vmatpush3.bf16.msra.mxu0 %v2239_v14  ;;  %v515_v37 = vcombine.high %v499_v33, %v499_v33  ;;  %v516_v38 = vcombine.high %v500_v34, %v500_v34  ;;  %v532_v39 = vsel %vm531_vm0, %v499_v33, 0.0  ;;  %v546_v40 = vsel %vm531_vm0, %v500_v34, 0.0  ;;  %v2262_v14 = vld [vmem:[%s2452_s23 + $0x1f0] sm:$0xff]  }
  0x21   : > { %2037 = vmatpush3.bf16.msra.mxu1 %v2240_v15  ;;  %2016 = vmatprep.subr.bf16.mxu0 %v2241_v16  ;;  %v533_v41 = vrot.slane %v532_v39, 4  ;;  %v547_v42 = vrot.slane %v546_v40, 4  ;;  %v2263_v15 = vld [vmem:[%s2452_s23 + $0x130] sm:$0xff]  }
  0x22   : > { %2038 = vmatprep.subr.bf16.mxu1 %v2242_v17  ;;  %v539_v43 = vsel %vm531_vm0, %v515_v37, 0.0  ;;  %v553_v44 = vsel %vm531_vm0, %v516_v38, 0.0  ;;  %v2264_v16 = vld [vmem:[%s2452_s23 + $0x1b0] sm:$0xff]   ;;  %v2265_v17 = vld [vmem:[%s2452_s23 + $0x168] sm:$0xff]  }
  0x23   : > { %v540_v45 = vrot.slane %v539_v43, 4  ;;  %v554_v46 = vrot.slane %v553_v44, 4  ;;  %v534_v47 = vadd.f32 %v533_v41, %v532_v39  ;;  %v548_v48 = vadd.f32 %v547_v42, %v546_v40  ;;  %v2278_v33 = vld [vmem:[%s2452_s23 + $0x1d0] sm:$0xff]  }
  0x24   : > { %2017 = vmatpush3.bf16.msra.mxu0 %v2243_v18  ;;  %v2266_v18 = vld [vmem:[%s2452_s23 + $0x1e8] sm:$0xff]   ;;  %v2279_v42 = vld [vmem:[%s2452_s23 + $0x110] sm:$0xff]  }
  0x25   : > { %2039 = vmatpush3.bf16.msra.mxu1 %v2244_v19  ;;  %2018 = vmatprep.subr.bf16.mxu0 %v2245_v20  ;;  %v541_v49 = vadd.f32 %v540_v45, %v539_v43  ;;  %v555_v50 = vadd.f32 %v554_v46, %v553_v44  ;;  %v535_v51 = vrot.slane %v534_v47, 2  ;;  %v549_v52 = vrot.slane %v548_v48, 2  ;;  %v2267_v19 = vld [vmem:[%s2452_s23 + $0x128] sm:$0xff]   ;;  %v2280_v43 = vld [vmem:[%s2452_s23 + $0x190] sm:$0xff]  }
  0x26   : > { %2040 = vmatprep.subr.bf16.mxu1 %v2246_v21  ;;  %v2268_v20 = vld [vmem:[%s2452_s23 + $0x1a8] sm:$0xff]   ;;  %v2269_v21 = vld [vmem:[%s2452_s23 + $0x160] sm:$0xff]  }
  0x27   : > { %v542_v53 = vrot.slane %v541_v49, 2  ;;  %v556_v54 = vrot.slane %v555_v50, 2  ;;  %v536_v55 = vadd.f32 %v535_v51, %v534_v47  ;;  %v550_v56 = vadd.f32 %v549_v52, %v548_v48  ;;  %v2281_v48 = vld [vmem:[%s2452_s23 + $0x148] sm:$0xff]  }
  0x28   : > { %2019 = vmatpush3.bf16.msra.mxu0 %v2247_v22  ;;  %v2270_v22 = vld [vmem:[%s2452_s23 + $0x1e0] sm:$0xff]  }
  0x29   : > { %2041 = vmatpush3.bf16.msra.mxu1 %v2248_v23  ;;  %2020 = vmatprep.subr.bf16.mxu0 %v2249_v24  ;;  %v543_v57 = vadd.f32 %v542_v53, %v541_v49  ;;  %v557_v58 = vadd.f32 %v556_v54, %v555_v50  ;;  %v537_v59 = vrot.slane %v536_v55, 1  ;;  %v551_v60 = vrot.slane %v550_v56, 1  ;;  %v2271_v23 = vld [vmem:[%s2452_s23 + $0x120] sm:$0xff]   ;;  %v2282_v49 = vld [vmem:[%s2452_s23 + $0x1c8] sm:$0xff]  }
  0x2a   : > { %2042 = vmatprep.subr.bf16.mxu1 %v2250_v25  ;;  %v2272_v24 = vld [vmem:[%s2452_s23 + $0x1a0] sm:$0xff]   ;;  %v2273_v25 = vld [vmem:[%s2452_s23 + $0x158] sm:$0xff]   ;;  %v2283_v54 = vld [vmem:[%s2452_s23 + $0x108] sm:$0xff]  }
  0x2b   : > { %v544_v61 = vrot.slane %v543_v57, 1  ;;  %v558_v62 = vrot.slane %v557_v58, 1  ;;  %v538_v63 = vadd.f32 %v537_v59, %v536_v55  ;;  %v552_v0 = vadd.f32 %v551_v60, %v550_v56  ;;  %v2284_v55 = vld [vmem:[%s2452_s23 + $0x188] sm:$0xff]   ;;  %v2285_v60 = vld [vmem:[%s2452_s23 + $0x140] sm:$0xff]  }
  0x2c   : > { %2021 = vmatpush3.bf16.msra.mxu0 %v2251_v26  ;;  %v2274_v26 = vld [vmem:[%s2452_s23 + $0x1d8] sm:$0xff]  }
  0x2d   : > { %2043 = vmatpush3.bf16.msra.mxu1 %v2252_v27  ;;  %2022 = vmatprep.subr.bf16.mxu0 %v2253_v28  ;;  %v545_v1 = vadd.f32 %v544_v61, %v543_v57  ;;  %v559_v2 = vadd.f32 %v558_v62, %v557_v58  ;;  %v645_v3 = vmul.f32 0.25, %v538_v63  ;;  %v647_v4 = vmul.f32 0.25, %v552_v0  ;;  %v240_v27 = vld [vmem:[%s2493_s6 + $0x8] sm:$0xff]  ;;  %v2275_v28 = vld [vmem:[%s2452_s23 + $0x118] sm:$0xff]   ;;  %v2286_v61 = vld [vmem:[%s2452_s23 + $0x1c0] sm:$0xff]  }
  0x2e   : > { %2044 = vmatprep.subr.bf16.mxu1 %v2254_v29  ;;  %v501_v29 = vunpack.c.l.bf16 %v240_v27 }
  0x2f   : > { %v646_v5 = vmul.f32 0.25, %v545_v1  ;;  %v648_v6 = vmul.f32 0.25, %v559_v2  ;;  %v661_v9 = vpack.c.bf16 %v645_v3, %v645_v3  ;;  %v663_v10 = vpack.c.bf16 %v647_v4, %v647_v4  ;;  %v2287_v2 = vld [vmem:[%s2452_s23 + $0x100] sm:$0xff]  }
  0x30   : > { %2023 = vmatpush3.bf16.msra.mxu0 %v2255_v30  ;;  %v502_v30 = vunpack.c.h.bf16 %v240_v27  ;;  %v517_v34 = vcombine.high %v501_v29, %v501_v29  ;;  %v2288_v3 = vld [vmem:[%s2452_s23 + $0x180] sm:$0xff]   ;;  %v2298_v27 = vld [vmem:[%s2452_s23 + $0x2e8] sm:$0xff]  }
  0x31   : > { %2045 = vmatpush3.bf16.msra.mxu1 %v2256_v31  ;;  %2052 = vmatprep.subr.bf16.mxu0 %v2257_v35  ;;  %v662_v11 = vpack.c.bf16 %v646_v5, %v646_v5  ;;  %v664_v12 = vpack.c.bf16 %v648_v6, %v648_v6  ;;  %v2276_v31 = vld [vmem:[%s2452_s23 + $0x198] sm:$0xff]  }
  0x32   : > { %2074 = vmatprep.subr.bf16.mxu1 %v2258_v36  ;;  %v518_v35 = vcombine.high %v502_v30, %v502_v30  ;;  %v560_v36 = vsel %vm531_vm0, %v501_v29, 0.0  ;;  %v574_v37 = vsel %vm531_vm0, %v502_v30, 0.0  ;;  %v567_v40 = vsel %vm531_vm0, %v517_v34, 0.0  ;;  %v2300_v29 = vld [vmem:[%s2452_s23 + $0x2a8] sm:$0xff]   ;;  %v2301_v30 = vld [vmem:[%s2452_s23 + $0x260] sm:$0xff]   ;;  %v2305_v34 = vld [vmem:[%s2452_s23 + $0x258] sm:$0xff]  }
  0x33   : > { %1477 = vmatprep.mubr.bf16.mxu0 %v662_v11  ;;  %1517 = vmatprep.mubr.bf16.mxu1 %v664_v12  ;;  %v561_v38 = vrot.slane %v560_v36, 4  ;;  %v575_v39 = vrot.slane %v574_v37, 4  ;;  %v568_v44 = vrot.slane %v567_v40, 4  ;;  %v2289_v12 = vld [vmem:[%s2452_s23 + $0x278] sm:$0xff]  }
  0x34   : > { %1478 = vmatmul.mubr.bf16.vlgmr.msra.gmra.mxu0 %v661_v9  ;;  %1518 = vmatmul.mubr.bf16.vlgmr.msra.gmra.mxu1 %v663_v10  ;;  %v581_v41 = vsel %vm531_vm0, %v518_v35, 0.0  ;;  %v2306_v35 = vld [vmem:[%s2452_s23 + $0x2d8] sm:$0xff]  }
  0x35   : > { %2053 = vmatpush3.bf16.msra.mxu0 %v2259_v7  ;;  %2075 = vmatpush3.bf16.msra.mxu1 %v2260_v8  ;;  %v582_v45 = vrot.slane %v581_v41, 4  ;;  %v562_v46 = vadd.f32 %v561_v38, %v560_v36  ;;  %v576_v47 = vadd.f32 %v575_v39, %v574_v37  ;;  %v569_v50 = vadd.f32 %v568_v44, %v567_v40  ;;  %v241_v36 = vld [vmem:[%s2493_s6 + $0x10] sm:$0xff]  ;;  %v2307_v37 = vld [vmem:[%s2452_s23 + $0x218] sm:$0xff]  }
  0x36   : > { %2054 = vmatprep.subr.bf16.mxu0 %v2261_v13  ;;  %2076 = vmatprep.subr.bf16.mxu1 %v2262_v14  ;;  %v2290_v13 = vld [vmem:[%s2452_s23 + $0x2f8] sm:$0xff]   ;;  %v503_v38 = vunpack.c.l.bf16 %v241_v36  ;;  %v504_v39 = vunpack.c.h.bf16 %v241_v36  ;;  %v2330_v36 = vld [vmem:[%s2452_s23 + $0x3e8] sm:$0xff]  }
  0x37   : > { %v583_v51 = vadd.f32 %v582_v45, %v581_v41  ;;  %v563_v52 = vrot.slane %v562_v46, 2  ;;  %v577_v53 = vrot.slane %v576_v47, 2  ;;  %v570_v56 = vrot.slane %v569_v50, 2  ;;  %v2308_v40 = vld [vmem:[%s2452_s23 + $0x298] sm:$0xff]   ;;  %v2309_v41 = vld [vmem:[%s2452_s23 + $0x250] sm:$0xff]  }
  0x38   : > { %v520_v44 = vcombine.high %v504_v39, %v504_v39  ;;  %v588_v45 = vsel %vm531_vm0, %v503_v38, 0.0 }
  0x39   : > { %2055 = vmatpush3.bf16.msra.mxu0 %v2263_v15  ;;  %2077 = vmatpush3.bf16.msra.mxu1 %v2264_v16  ;;  %v584_v57 = vrot.slane %v583_v51, 2  ;;  %v564_v58 = vadd.f32 %v563_v52, %v562_v46  ;;  %v578_v59 = vadd.f32 %v577_v53, %v576_v47  ;;  %v571_v62 = vadd.f32 %v570_v56, %v569_v50  ;;  %v2291_v16 = vld [vmem:[%s2452_s23 + $0x238] sm:$0xff]   ;;  %v2312_v52 = vld [vmem:[%s2452_s23 + $0x290] sm:$0xff]  }
  0x3a   : > { %2056 = vmatprep.subr.bf16.mxu0 %v2265_v17  ;;  %2078 = vmatprep.subr.bf16.mxu1 %v2266_v18  ;;  %v2292_v17 = vld [vmem:[%s2452_s23 + $0x2b8] sm:$0xff]   ;;  %v602_v46 = vsel %vm531_vm0, %v504_v39, 0.0  ;;  %v589_v47 = vrot.slane %v588_v45, 4  ;;  %v609_v50 = vsel %vm531_vm0, %v520_v44, 0.0  ;;  %v2333_v39 = vld [vmem:[%s2452_s23 + $0x360] sm:$0xff]  }
  0x3b   : > { %v585_v63 = vadd.f32 %v584_v57, %v583_v51  ;;  %v565_v0 = vrot.slane %v564_v58, 1  ;;  %v579_v1 = vrot.slane %v578_v59, 1  ;;  %v572_v4 = vrot.slane %v571_v62, 1  ;;  %v2311_v51 = vld [vmem:[%s2452_s23 + $0x210] sm:$0xff]   ;;  %v2313_v57 = vld [vmem:[%s2452_s23 + $0x248] sm:$0xff]   ;;  %v2338_v44 = vld [vmem:[%s2452_s23 + $0x3d8] sm:$0xff]  }
  0x3d   : > { %2057 = vmatpush3.bf16.msra.mxu0 %v2267_v19  ;;  %2079 = vmatpush3.bf16.msra.mxu1 %v2268_v20  ;;  %v586_v5 = vrot.slane %v585_v63, 1  ;;  %v566_v6 = vadd.f32 %v565_v0, %v564_v58  ;;  %v580_v7 = vadd.f32 %v579_v1, %v578_v59  ;;  %v573_v8 = vadd.f32 %v572_v4, %v571_v62  ;;  %v2314_v58 = vld [vmem:[%s2452_s23 + $0x2c8] sm:$0xff]  }
  0x3e   : > { %2058 = vmatprep.subr.bf16.mxu0 %v2269_v21  ;;  %2080 = vmatprep.subr.bf16.mxu1 %v2270_v22  ;;  %v2293_v22 = vld [vmem:[%s2452_s23 + $0x270] sm:$0xff]   ;;  %v2316_v0 = vld [vmem:[%s2452_s23 + $0x288] sm:$0xff]  }
  0x3f   : > { %v587_v9 = vadd.f32 %v586_v5, %v585_v63  ;;  %v649_v10 = vmul.f32 0.25, %v566_v6  ;;  %v651_v11 = vmul.f32 0.25, %v580_v7  ;;  %v650_v14 = vmul.f32 0.25, %v573_v8  ;;  %v2315_v63 = vld [vmem:[%s2452_s23 + $0x208] sm:$0xff]   ;;  %v2317_v5 = vld [vmem:[%s2452_s23 + $0x240] sm:$0xff]  }
  0x40   : > { %v2318_v6 = vld [vmem:[%s2452_s23 + $0x2c0] sm:$0xff]  }
  0x41   : > { %2059 = vmatpush3.bf16.msra.mxu0 %v2271_v23  ;;  %2081 = vmatpush3.bf16.msra.mxu1 %v2272_v24  ;;  %v652_v15 = vmul.f32 0.25, %v587_v9  ;;  %v665_v18 = vpack.c.bf16 %v649_v10, %v649_v10  ;;  %v667_v19 = vpack.c.bf16 %v651_v11, %v651_v11  ;;  %v666_v20 = vpack.c.bf16 %v650_v14, %v650_v14  ;;  %v2294_v23 = vld [vmem:[%s2452_s23 + $0x2f0] sm:$0xff]   ;;  %v2319_v11 = vld [vmem:[%s2452_s23 + $0x200] sm:$0xff]  }
  0x42   : > { %2060 = vmatprep.subr.bf16.mxu0 %v2273_v25  ;;  %2082 = vmatprep.subr.bf16.mxu1 %v2274_v26  ;;  %v2295_v24 = vld [vmem:[%s2452_s23 + $0x230] sm:$0xff]   ;;  %v2297_v26 = vld [vmem:[%s2452_s23 + $0x268] sm:$0xff]  }
  0x43   : > { %v668_v21 = vpack.c.bf16 %v652_v15, %v652_v15  ;;  %1557 = vmatprep.mubr.bf16.mxu0 %v666_v20  ;;  %v2296_v25 = vld [vmem:[%s2452_s23 + $0x2b0] sm:$0xff]  }
  0x45   : > { %2061 = vmatpush3.bf16.msra.mxu0 %v2275_v28  ;;  %2083 = vmatpush3.bf16.msra.mxu1 %v2276_v31  ;;  %v2299_v28 = vld [vmem:[%s2452_s23 + $0x228] sm:$0xff]   ;;  %v2302_v31 = vld [vmem:[%s2452_s23 + $0x2e0] sm:$0xff]  }
  0x46   : > { %2062 = vmatprep.subr.bf16.mxu0 %v2277_v32  ;;  %2084 = vmatprep.subr.bf16.mxu1 %v2278_v33  ;;  %v2303_v32 = vld [vmem:[%s2452_s23 + $0x220] sm:$0xff]  }
  0x47   : > { %1597 = vmatprep.mubr.bf16.mxu1 %v668_v21  ;;  %v2304_v33 = vld [vmem:[%s2452_s23 + $0x2a0] sm:$0xff]   ;;  %v2321_v21 = vld [vmem:[%s2452_s23 + $0x378] sm:$0xff]  }
  0x49   : > { %2063 = vmatpush3.bf16.msra.mxu0 %v2279_v42  ;;  %2085 = vmatpush3.bf16.msra.mxu1 %v2280_v43  ;;  %v2310_v42 = vld [vmem:[%s2452_s23 + $0x2d0] sm:$0xff]   ;;  %v519_v43 = vcombine.high %v503_v38, %v503_v38  ;;  %v2332_v38 = vld [vmem:[%s2452_s23 + $0x3a8] sm:$0xff]  }
  0x4a   : > { %2064 = vmatprep.subr.bf16.mxu0 %v2281_v48  ;;  %2086 = vmatprep.subr.bf16.mxu1 %v2282_v49  ;;  %v603_v48 = vrot.slane %v602_v46, 4 }
  0x4b   : > { %v595_v49 = vsel %vm531_vm0, %v519_v43, 0.0  ;;  %v2337_v43 = vld [vmem:[%s2452_s23 + $0x358] sm:$0xff]  }
  0x4c   : > { %v596_v53 = vrot.slane %v595_v49, 4  ;;  %v604_v56 = vadd.f32 %v603_v48, %v602_v46  ;;  %v2339_v48 = vld [vmem:[%s2452_s23 + $0x318] sm:$0xff]  }
  0x4d   : > { %2065 = vmatpush3.bf16.msra.mxu0 %v2283_v54  ;;  %2087 = vmatpush3.bf16.msra.mxu1 %v2284_v55  ;;  %v610_v54 = vrot.slane %v609_v50, 4  ;;  %v590_v55 = vadd.f32 %v589_v47, %v588_v45  ;;  %v242_v45 = vld [vmem:[%s2493_s6 + $0x18] sm:$0xff] }
  0x4e   : > { %2066 = vmatprep.subr.bf16.mxu0 %v2285_v60  ;;  %2088 = vmatprep.subr.bf16.mxu1 %v2286_v61  ;;  %v597_v59 = vadd.f32 %v596_v53, %v595_v49  ;;  %v605_v62 = vrot.slane %v604_v56, 2  ;;  %v505_v46 = vunpack.c.l.bf16 %v242_v45  ;;  %v506_v47 = vunpack.c.h.bf16 %v242_v45  ;;  %v2340_v49 = vld [vmem:[%s2452_s23 + $0x398] sm:$0xff]  }
  0x4f   : > { %v611_v60 = vadd.f32 %v610_v54, %v609_v50  ;;  %v591_v61 = vrot.slane %v590_v55, 2  ;;  %v2341_v54 = vld [vmem:[%s2452_s23 + $0x350] sm:$0xff]  }
  0x50   : > { %v598_v1 = vrot.slane %v597_v59, 2  ;;  %v606_v4 = vadd.f32 %v605_v62, %v604_v56  ;;  %v521_v50 = vcombine.high %v505_v46, %v505_v46  ;;  %v630_v53 = vsel %vm531_vm0, %v506_v47, 0.0 }
  0x51   : > { %2067 = vmatpush3.bf16.msra.mxu0 %v2287_v2  ;;  %2089 = vmatpush3.bf16.msra.mxu1 %v2288_v3  ;;  %v612_v2 = vrot.slane %v611_v60, 2  ;;  %v592_v3 = vadd.f32 %v591_v61, %v590_v55  ;;  %v2342_v55 = vld [vmem:[%s2452_s23 + $0x3d0] sm:$0xff]  }
  0x52   : > { %2096 = vmatprep.subr.bf16.mxu0 %v2289_v12  ;;  %2118 = vmatprep.subr.bf16.mxu1 %v2290_v13  ;;  %v599_v7 = vadd.f32 %v598_v1, %v597_v59  ;;  %v607_v10 = vrot.slane %v606_v4, 1  ;;  %v2320_v12 = vld [vmem:[%s2452_s23 + $0x280] sm:$0xff]   ;;  %v2344_v1 = vld [vmem:[%s2452_s23 + $0x390] sm:$0xff]  }
  0x53   : > { %v613_v8 = vadd.f32 %v612_v2, %v611_v60  ;;  %v593_v9 = vrot.slane %v592_v3, 1  ;;  %v2345_v2 = vld [vmem:[%s2452_s23 + $0x348] sm:$0xff]  }
  0x54   : > { %1558 = vmatmul.mubr.bf16.vlgmr.msra.gmra.mxu0 %v665_v18  ;;  %1598 = vmatmul.mubr.bf16.vlgmr.msra.gmra.mxu1 %v667_v19  ;;  %v600_v13 = vrot.slane %v599_v7, 1 }
  0x55   : > { %2097 = vmatpush3.bf16.msra.mxu0 %v2291_v16  ;;  %2119 = vmatpush3.bf16.msra.mxu1 %v2292_v17  ;;  %v614_v14 = vrot.slane %v613_v8, 1  ;;  %v594_v15 = vadd.f32 %v593_v9, %v592_v3  ;;  %v608_v16 = vadd.f32 %v607_v10, %v606_v4  ;;  %v2346_v3 = vld [vmem:[%s2452_s23 + $0x3c8] sm:$0xff]  }
  0x56   : > { %2098 = vmatprep.subr.bf16.mxu0 %v2293_v22  ;;  %2120 = vmatprep.subr.bf16.mxu1 %v2294_v23  ;;  %v601_v17 = vadd.f32 %v600_v13, %v599_v7  ;;  %v2322_v22 = vld [vmem:[%s2452_s23 + $0x3f8] sm:$0xff]   ;;  %v2348_v13 = vld [vmem:[%s2452_s23 + $0x388] sm:$0xff]  }
  0x57   : > { %v615_v18 = vadd.f32 %v614_v14, %v613_v8  ;;  %v653_v19 = vmul.f32 0.25, %v594_v15  ;;  %v655_v20 = vmul.f32 0.25, %v608_v16  ;;  %v2349_v14 = vld [vmem:[%s2452_s23 + $0x340] sm:$0xff]  }
  0x58   : > { %v654_v23 = vmul.f32 0.25, %v601_v17  ;;  %v2350_v15 = vld [vmem:[%s2452_s23 + $0x3c0] sm:$0xff]  }
  0x59   : > { %2099 = vmatpush3.bf16.msra.mxu0 %v2295_v24  ;;  %2121 = vmatpush3.bf16.msra.mxu1 %v2296_v25  ;;  %v656_v24 = vmul.f32 0.25, %v615_v18  ;;  %v2323_v25 = vld [vmem:[%s2452_s23 + $0x338] sm:$0xff]  }
  0x5a   : > { %2100 = vmatprep.subr.bf16.mxu0 %v2297_v26  ;;  %2122 = vmatprep.subr.bf16.mxu1 %v2298_v27  ;;  %v2324_v26 = vld [vmem:[%s2452_s23 + $0x3b8] sm:$0xff]   ;;  %v669_v27 = vpack.c.bf16 %v653_v19, %v653_v19 }
  0x5d   : > { %2101 = vmatpush3.bf16.msra.mxu0 %v2299_v28  ;;  %2123 = vmatpush3.bf16.msra.mxu1 %v2300_v29  ;;  %v671_v28 = vpack.c.bf16 %v655_v20, %v655_v20  ;;  %v670_v29 = vpack.c.bf16 %v654_v23, %v654_v23 }
  0x5e   : > { %2102 = vmatprep.subr.bf16.mxu0 %v2301_v30  ;;  %2124 = vmatprep.subr.bf16.mxu1 %v2302_v31  ;;  %v672_v30 = vpack.c.bf16 %v656_v24, %v656_v24  ;;  %v2325_v31 = vld [vmem:[%s2452_s23 + $0x370] sm:$0xff]   ;;  %v2351_v24 = vld [vmem:[%s2452_s23 + $0x300] sm:$0xff]  }
  0x5f   : > { %1637 = vmatprep.mubr.bf16.mxu0 %v670_v29 }
  0x60   : > { %1677 = vmatprep.mubr.bf16.mxu1 %v672_v30 }
  0x61   : > { %2103 = vmatpush3.bf16.msra.mxu0 %v2303_v32  ;;  %2125 = vmatpush3.bf16.msra.mxu1 %v2304_v33  ;;  %v2326_v32 = vld [vmem:[%s2452_s23 + $0x3f0] sm:$0xff]  }
  0x62   : > { %2104 = vmatprep.subr.bf16.mxu0 %v2305_v34  ;;  %2126 = vmatprep.subr.bf16.mxu1 %v2306_v35  ;;  %v2327_v33 = vld [vmem:[%s2452_s23 + $0x330] sm:$0xff]   ;;  %v2329_v35 = vld [vmem:[%s2452_s23 + $0x368] sm:$0xff]  }
  0x63   : > { %v2328_v34 = vld [vmem:[%s2452_s23 + $0x3b0] sm:$0xff]  }
  0x65   : > { %2105 = vmatpush3.bf16.msra.mxu0 %v2307_v37  ;;  %2127 = vmatpush3.bf16.msra.mxu1 %v2308_v40  ;;  %v2331_v37 = vld [vmem:[%s2452_s23 + $0x328] sm:$0xff]   ;;  %v2334_v40 = vld [vmem:[%s2452_s23 + $0x3e0] sm:$0xff]  }
  0x66   : > { %2106 = vmatprep.subr.bf16.mxu0 %v2309_v41  ;;  %2128 = vmatprep.subr.bf16.mxu1 %v2310_v42  ;;  %v2335_v41 = vld [vmem:[%s2452_s23 + $0x320] sm:$0xff]  }
  0x67   : > { %v2336_v42 = vld [vmem:[%s2452_s23 + $0x3a0] sm:$0xff]  }
  0x69   : > { %2107 = vmatpush3.bf16.msra.mxu0 %v2311_v51  ;;  %2129 = vmatpush3.bf16.msra.mxu1 %v2312_v52  ;;  %v522_v51 = vcombine.high %v506_v47, %v506_v47  ;;  %v616_v52 = vsel %vm531_vm0, %v505_v46, 0.0 }
  0x6a   : > { %2108 = vmatprep.subr.bf16.mxu0 %v2313_v57  ;;  %2130 = vmatprep.subr.bf16.mxu1 %v2314_v58  ;;  %v617_v56 = vrot.slane %v616_v52, 4  ;;  %v631_v57 = vrot.slane %v630_v53, 4  ;;  %v623_v58 = vsel %vm531_vm0, %v521_v50, 0.0 }
  0x6b   : > { %v637_v59 = vsel %vm531_vm0, %v522_v51, 0.0  ;;  %v624_v60 = vrot.slane %v623_v58, 4 }
  0x6c   : > { %v638_v61 = vrot.slane %v637_v59, 4  ;;  %v618_v62 = vadd.f32 %v617_v56, %v616_v52 }
  0x6d   : > { %2109 = vmatpush3.bf16.msra.mxu0 %v2315_v63  ;;  %2131 = vmatpush3.bf16.msra.mxu1 %v2316_v0  ;;  %v632_v63 = vadd.f32 %v631_v57, %v630_v53  ;;  %v2343_v0 = vld [vmem:[%s2452_s23 + $0x310] sm:$0xff]   ;;  %v625_v4 = vadd.f32 %v624_v60, %v623_v58 }
  0x6e   : > { %2110 = vmatprep.subr.bf16.mxu0 %v2317_v5  ;;  %2132 = vmatprep.subr.bf16.mxu1 %v2318_v6  ;;  %v639_v5 = vadd.f32 %v638_v61, %v637_v59  ;;  %v619_v6 = vrot.slane %v618_v62, 2 }
  0x6f   : > { %v633_v7 = vrot.slane %v632_v63, 2  ;;  %v626_v8 = vrot.slane %v625_v4, 2 }
  0x70   : > { %v640_v9 = vrot.slane %v639_v5, 2  ;;  %v620_v10 = vadd.f32 %v619_v6, %v618_v62 }
  0x71   : > { %2111 = vmatpush3.bf16.msra.mxu0 %v2319_v11  ;;  %2133 = vmatpush3.bf16.msra.mxu1 %v2320_v12  ;;  %v634_v11 = vadd.f32 %v633_v7, %v632_v63  ;;  %v2347_v12 = vld [vmem:[%s2452_s23 + $0x308] sm:$0xff]   ;;  %v627_v16 = vadd.f32 %v626_v8, %v625_v4 }
  0x72   : > { %2140 = vmatprep.subr.bf16.mxu0 %v2321_v21  ;;  %2162 = vmatprep.subr.bf16.mxu1 %v2322_v22  ;;  %v641_v17 = vadd.f32 %v640_v9, %v639_v5  ;;  %v621_v18 = vrot.slane %v620_v10, 1 }
  0x73   : > { %v635_v19 = vrot.slane %v634_v11, 1  ;;  %v628_v20 = vrot.slane %v627_v16, 1 }
  0x74   : > { %1638 = vmatmul.mubr.bf16.vlgmr.msra.gmra.mxu0 %v669_v27  ;;  %1678 = vmatmul.mubr.bf16.vlgmr.msra.gmra.mxu1 %v671_v28  ;;  %v642_v21 = vrot.slane %v641_v17, 1  ;;  %v622_v22 = vadd.f32 %v621_v18, %v620_v10 }
  0x75   : > { %2141 = vmatpush3.bf16.msra.mxu0 %v2323_v25  ;;  %2163 = vmatpush3.bf16.msra.mxu1 %v2324_v26  ;;  %v636_v23 = vadd.f32 %v635_v19, %v634_v11  ;;  %v2352_v25 = vld [vmem:[%s2452_s23 + $0x380] sm:$0xff]   ;;  %v629_v26 = vadd.f32 %v628_v20, %v627_v16 }
  0x76   : > { %2142 = vmatprep.subr.bf16.mxu0 %v2325_v31  ;;  %2164 = vmatprep.subr.bf16.mxu1 %v2326_v32  ;;  %v643_v27 = vadd.f32 %v642_v21, %v641_v17  ;;  %v657_v28 = vmul.f32 0.25, %v622_v22 }
  0x77   : > { %v659_v29 = vmul.f32 0.25, %v636_v23  ;;  %v658_v30 = vmul.f32 0.25, %v629_v26 }
  0x78   : > { %v660_v31 = vmul.f32 0.25, %v643_v27  ;;  %v673_v32 = vpack.c.bf16 %v657_v28, %v657_v28 }
  0x79   : > { %2143 = vmatpush3.bf16.msra.mxu0 %v2327_v33  ;;  %2165 = vmatpush3.bf16.msra.mxu1 %v2328_v34  ;;  %v675_v33 = vpack.c.bf16 %v659_v29, %v659_v29  ;;  %v674_v34 = vpack.c.bf16 %v658_v30, %v658_v30 }
  0x7a   : > { %2144 = vmatprep.subr.bf16.mxu0 %v2329_v35  ;;  %2166 = vmatprep.subr.bf16.mxu1 %v2330_v36  ;;  %v676_v35 = vpack.c.bf16 %v660_v31, %v660_v31 }
  0x7b   : > { %1717 = vmatprep.mubr.bf16.mxu0 %v674_v34 }
  0x7c   : > { %1757 = vmatprep.mubr.bf16.mxu1 %v676_v35 }
  0x7d   : > { %2145 = vmatpush3.bf16.msra.mxu0 %v2331_v37  ;;  %2167 = vmatpush3.bf16.msra.mxu1 %v2332_v38 }
  0x7e   : > { %2146 = vmatprep.subr.bf16.mxu0 %v2333_v39  ;;  %2168 = vmatprep.subr.bf16.mxu1 %v2334_v40 }
  0x81   : > { %2147 = vmatpush3.bf16.msra.mxu0 %v2335_v41  ;;  %2169 = vmatpush3.bf16.msra.mxu1 %v2336_v42 }
  0x82   : > { %2148 = vmatprep.subr.bf16.mxu0 %v2337_v43  ;;  %2170 = vmatprep.subr.bf16.mxu1 %v2338_v44 }
  0x85   : > { %2149 = vmatpush3.bf16.msra.mxu0 %v2339_v48  ;;  %2171 = vmatpush3.bf16.msra.mxu1 %v2340_v49 }
  0x86   : > { %2150 = vmatprep.subr.bf16.mxu0 %v2341_v54  ;;  %2172 = vmatprep.subr.bf16.mxu1 %v2342_v55 }
  0x89   : > { %2151 = vmatpush3.bf16.msra.mxu0 %v2343_v0  ;;  %2173 = vmatpush3.bf16.msra.mxu1 %v2344_v1 }
  0x8a   : > { %2152 = vmatprep.subr.bf16.mxu0 %v2345_v2  ;;  %2174 = vmatprep.subr.bf16.mxu1 %v2346_v3 }
  0x8d   : > { %2153 = vmatpush3.bf16.msra.mxu0 %v2347_v12  ;;  %2175 = vmatpush3.bf16.msra.mxu1 %v2348_v13 }
  0x8e   : > { %2154 = vmatprep.subr.bf16.mxu0 %v2349_v14  ;;  %2176 = vmatprep.subr.bf16.mxu1 %v2350_v15 }
  0x91   : > { %2155 = vmatpush3.bf16.msra.mxu0 %v2351_v24  ;;  %2177 = vmatpush3.bf16.msra.mxu1 %v2352_v25 }
  0x94   : > { %1718 = vmatmul.mubr.bf16.vlgmr.msra.gmra.mxu0 %v673_v32  ;;  %1758 = vmatmul.mubr.bf16.vlgmr.msra.gmra.mxu1 %v675_v33 }
  0xf4   : > { %v2024_v36 = vpop.f32.mrf.mxu0  ;;  %v2046_v37 = vpop.f32.mrf.mxu1 }
  0xf6   : > { %v2025_v38 = vpop.f32.mrf.mxu0  ;;  %v2047_v39 = vpop.f32.mrf.mxu1 }
  0xf7   : > { %v2026_v40 = vadd.f32 %v2025_v38, %v2024_v36  ;;  %v2048_v41 = vadd.f32 %v2047_v39, %v2046_v37 }
  0xf8   : > { %v2027_v42 = vpop.f32.mrf.mxu0  ;;  %v2049_v43 = vpop.f32.mrf.mxu1 }
  0xf9   : > { %v1520_v44 = vadd.f32 %v2048_v41, %v2026_v40 }
  0xfa   : > { %v2028_v45 = vpop.f32.mrf.mxu0  ;;  %v2050_v46 = vpop.f32.mrf.mxu1 }
 0x114   : > { %v2068_v47 = vpop.f32.mrf.mxu0  ;;  %v2090_v48 = vpop.f32.mrf.mxu1 }
 0x116   : > { %v2069_v49 = vpop.f32.mrf.mxu0  ;;  %v2091_v50 = vpop.f32.mrf.mxu1 }
 0x117   : > { %v2070_v63 = vadd.f32 %v2069_v49, %v2068_v47  ;;  %v2092_v1 = vadd.f32 %v2091_v50, %v2090_v48 }
 0x118   : > { %v2071_v51 = vpop.f32.mrf.mxu0  ;;  %v2093_v52 = vpop.f32.mrf.mxu1 }
 0x119   : > { %v1560_v0 = vadd.f32 %v2070_v63, %v1520_v44 }
 0x11a   : > { %v2072_v53 = vpop.f32.mrf.mxu0  ;;  %v2094_v54 = vpop.f32.mrf.mxu1 }
 0x11b   : > { %v1600_v3 = vadd.f32 %v2092_v1, %v1560_v0 }
 0x134   : > { %v2112_v55 = vpop.f32.mrf.mxu0  ;;  %v2134_v56 = vpop.f32.mrf.mxu1 }
 0x136   : > { %v2113_v57 = vpop.f32.mrf.mxu0  ;;  %v2135_v58 = vpop.f32.mrf.mxu1 }
 0x137   : > { %v2114_v2 = vadd.f32 %v2113_v57, %v2112_v55  ;;  %v2136_v7 = vadd.f32 %v2135_v58, %v2134_v56 }
 0x138   : > { %v2115_v59 = vpop.f32.mrf.mxu0  ;;  %v2137_v60 = vpop.f32.mrf.mxu1 }
 0x139   : > { %v1640_v4 = vadd.f32 %v2114_v2, %v1600_v3 }
 0x13a   : > { %v2116_v61 = vpop.f32.mrf.mxu0  ;;  %v2138_v62 = vpop.f32.mrf.mxu1 }
 0x13b   : > { %v1680_v10 = vadd.f32 %v2136_v7, %v1640_v4 }
 0x154   : > { %v2156_v5 = vpop.f32.mrf.mxu0  ;;  %v2178_v6 = vpop.f32.mrf.mxu1 }
 0x156   : > { %v2157_v8 = vpop.f32.mrf.mxu0  ;;  %v2179_v9 = vpop.f32.mrf.mxu1 }
 0x157   : > { %v2158_v11 = vadd.f32 %v2157_v8, %v2156_v5  ;;  %v2180_v15 = vadd.f32 %v2179_v9, %v2178_v6  ;;  %1768 = sbr.rel (%p2004_p8) target bundleno = 350 (0x15e), region = 36 }
 0x158   : > { %v2159_v12 = vpop.f32.mrf.mxu0  ;;  %v2181_v13 = vpop.f32.mrf.mxu1 }
 0x159   : > { %v1720_v14 = vadd.f32 %v2158_v11, %v1680_v10 }
 0x15a   : > { %v2160_v16 = vpop.f32.mrf.mxu0  ;;  %v2182_v17 = vpop.f32.mrf.mxu1 }
 0x15b   : > { %v1760_v18 = vadd.f32 %v2180_v15, %v1720_v14 }
 0x15c   : > { %v2393_v19 = vmov 0.0  }
 0x15d   : > { %1769 = vst [vmem:[#allocation2] sm:$0x1] %v2393_v19 }
 0x15e PF: > { %p2005_p9 = scmp.ne.s32.totalorder %s2375_s12, 3 }
 0x163   : > { %1776 = sbr.rel (%p2005_p9) target bundleno = 370 (0x172), region = 40 }
 0x164   : > { %v1770_v20 = vld [vmem:[#allocation2] sm:$0x1] }
 0x165   : > { %v1771_v21 = vadd.f32 %v1770_v20, %v1760_v18 }
 0x167   : > { %1772 = vst [vmem:[#allocation2] sm:$0x1] %v1771_v21 }
 0x168   : > { %v1778_v23 = vld [vmem:[%s2640_s2] sm:$0x1] }
 0x16e   : > { %v1777_v22 = vld [vmem:[#allocation2] sm:$0x1] }
 0x16f   : > { %v1779_v24 = vadd.f32 %v1778_v23, %v1777_v22 }
 0x171   : > { %1780 = vst [vmem:[%s237_s26] sm:$0x1] %v1779_v24 }
 0x172 PF: > { %s13_s16 = sadd.s32 1, %s2391_s16   ;;  %s2642_s12 = smov %s2383_s14 }
 0x173   : > { %p10_p10 = scmp.ge.s32.totalorder %s13_s16, 10   ;;  %s2643_s13 = smov %s2387_s15 }
 0x174   : > { %s2644_s14 = smov %s2647_s17  ;;  %s2645_s15 = smov %s2651_s18 }
 0x175   :  { %12 = sbr.rel (!%p10_p10) target bundleno = 3 (0x3), region = 73 }

</bundles_post_ra>
